<compile_context>
chip_gen: v6e
topology: v6e:2x2x1
jax: 0.10.0
libtpu: 0.0.40
codegen_flags: <defaults>
</compile_context>

<pallas_src>
import jax
import jax.numpy as jnp
import numpy as np
from jax import lax
from jax.experimental import pallas as pl
from jax.experimental.pallas import tpu as pltpu

# ----- static problem sizes (Net(s=(16,16))) -----
C1, C2 = 2, 4            # conv1 / conv2 out-channels (n1, n2)
K1, K2 = 4, 2            # kernel sizes
H1 = 17                  # conv1 output spatial size (16 + 2*2 - 4 + 1)
W2BLK = 10               # per-conv2-out-channel lane block (8 + 2*pad2)
NL2 = C2 * W2BLK         # 40 lanes: conv2 output channels tiled along lanes
L_CONV2 = NL2 - 1        # 39-wide conv2 canvas (after the dq tap slice)
L_POOL2 = L_CONV2 - 1    # 38-wide pool2/relu canvas
N3, N4, N5, N6, NCLS = 64, 32, 16, 8, 10

TB_MAX = 64                       # batch tile: safe for v7x 64 MiB VMEM; on v6e
                                  # (128 MiB) raise to 128-256 with a bigger limit.
VMEM_LIMIT_BYTES = 32 * 1024 * 1024


# --------------------- packed-constants buffer layout (one VMEM operand) --------
def _cbuf_layout():
    off = 0
    out = {}

    def take(name, rows):
        nonlocal off
        out[name] = off
        off += ((rows + 7) // 8) * 8          # 8-aligned row offsets (sublane tiles)

    take("W2L", C1 * K2 * K2)                 # (8, 39)  conv2 per-lane weights
    take("B2L", 1)                            # (1, 39)  conv2 per-lane bias
    take("ER", W2BLK)                         # (10, 16) even-row selector
    take("EC", 16)                            # (16, 40) even-col selector (4x tiled)
    for u in range(4):
        take(f"W1E{u}", L_POOL2)              # (38, 32) expanded fc1 weights
    take("FB1", 1)
    take("FW2", N4)                           # (32, 16)
    take("FB2", 1)
    take("FW3", N5)                           # (16, 8)
    take("FB3", 1)
    take("FW4", N6)                           # (8, 10)
    take("FB4", 1)
    return out, off


_L, CBUF_ROWS = _cbuf_layout()
CBUF_COLS = NL2                               # 40 lanes (widest constant: ec)


# --------------------------------- fused kernel ---------------------------------
def net_kernel(x_ref, w1b1_ref, cbuf_ref, out_ref, xp_ref):
    f32 = jnp.float32
    TB = x_ref.shape[0]

    # ---- conv1 zero-padding (pad=2) built in VMEM: no padded HBM round trip ----
    # The scratch persists across grid steps and a core may not start at step 0
    # (megacore split), so re-zero every step (trivial) instead of gating on it.
    xp_ref[...] = jnp.zeros_like(xp_ref)
    xp_ref[:, 2:18, 2:18] = x_ref[...]

    # ---- stage 1: conv1 -> 2x2 maxpool -> relu (batch-vectorized) --------------
    # dj lane-shifts hoisted out of the (di, co) loops: 4 lane-offset windows
    # instead of 32; inner taps are sublane-only slices; MACs stay SMEM-scalar *
    # tile VPU FMAs and the taps are shared by both output channels.
    acc = [jnp.zeros((TB, H1, H1), f32) for _ in range(C1)]
    for dj in range(K1):
        xsj = xp_ref[:, :, dj:dj + H1]                     # (TB, 20, 17)
        for di in range(K1):
            tap = xsj[:, di:di + H1, :]                    # (TB, 17, 17)
            for co in range(C1):
                acc[co] = acc[co] + tap * w1b1_ref[co * 16 + di * 4 + dj]

    # Selectors loaded once from the packed constants buffer, broadcast once
    # in-kernel (no longer DMA'd per sample).
    er = jnp.broadcast_to(cbuf_ref[_L["ER"]:_L["ER"] + W2BLK, 0:16], (TB, W2BLK, 16))
    ec = jnp.broadcast_to(cbuf_ref[_L["EC"]:_L["EC"] + 16, 0:NL2], (TB, 16, NL2))

    hw = []   # per conv1 channel: (TB, 10, 40) zero-padded pooled map, 4x lane-tiled
    for co in range(C1):
        a = acc[co] + w1b1_ref[32 + co]
        cmax = jnp.maximum(a[:, :, 0:16], a[:, :, 1:17])   # one lane shift
        r = jnp.maximum(jnp.maximum(cmax[:, 0:16, :], cmax[:, 1:17, :]), 0.0)
        # even-index compaction + conv2 zero-pad + 4x lane tiling via two tiny
        # 0/1 selection matmuls (MXU).
        t = jnp.einsum('bps,bsc->bpc', er, r, preferred_element_type=f32)
        hw.append(jnp.einsum('bpc,bcl->bpl', t, ec, preferred_element_type=f32))

    # ---- stage 2: conv2 (out-channels along lanes) -> 2x2 maxpool -> relu ------
    # TODO(synk): nn.Dropout2d after conv2 is identity (eval-mode forward).
    w2l = cbuf_ref[_L["W2L"]:_L["W2L"] + C1 * K2 * K2, 0:L_CONV2]     # (8, 39)
    b2l = cbuf_ref[_L["B2L"]:_L["B2L"] + 1, 0:L_CONV2]                # (1, 39)
    acc2 = jnp.zeros((TB, 9, L_CONV2), f32)
    for ci in range(C1):
        for dq in range(K2):
            hq = hw[ci][:, :, dq:dq + L_CONV2]             # hoisted lane shift
            for dp in range(K2):
                k = (ci * K2 + dp) * K2 + dq
                acc2 = acc2 + hq[:, dp:dp + 9, :] * w2l[k:k + 1, :]
    acc2 = acc2 + b2l
    cmax2 = jnp.maximum(acc2[:, :, 0:L_POOL2], acc2[:, :, 1:L_CONV2])
    r2 = jnp.maximum(jnp.maximum(cmax2[:, 0:8, :], cmax2[:, 1:9, :]), 0.0)  # (TB,8,38)

    # ---- fully connected chain (all weights read from the packed buffer) -------
    # fc1: stride-2 lane gather + channel flatten folded into expanded weights
    # -> 4 accumulated (TB,38)x(38,32) MXU contractions with M = TB.
    h = cbuf_ref[_L["FB1"]:_L["FB1"] + 1, 0:N4]                        # (1, 32)
    for u in range(4):
        w1e_u = cbuf_ref[_L[f"W1E{u}"]:_L[f"W1E{u}"] + L_POOL2, 0:N4]  # (38, 32)
        h = h + jnp.dot(r2[:, 2 * u, :], w1e_u, preferred_element_type=f32)
    h = jnp.maximum(h, 0.0)
    # TODO(synk): F.dropout after fc1 is identity (eval-mode forward).
    h = jnp.maximum(
        jnp.dot(h, cbuf_ref[_L["FW2"]:_L["FW2"] + N4, 0:N5],
                preferred_element_type=f32)
        + cbuf_ref[_L["FB2"]:_L["FB2"] + 1, 0:N5], 0.0)
    h = jnp.maximum(
        jnp.dot(h, cbuf_ref[_L["FW3"]:_L["FW3"] + N5, 0:N6],
                preferred_element_type=f32)
        + cbuf_ref[_L["FB3"]:_L["FB3"] + 1, 0:N6], 0.0)
    logits = (jnp.dot(h, cbuf_ref[_L["FW4"]:_L["FW4"] + N6, 0:NCLS],
                      preferred_element_type=f32)
              + cbuf_ref[_L["FB4"]:_L["FB4"] + 1, 0:NCLS])

    zmax = jnp.max(logits, axis=1, keepdims=True)           # log_softmax
    z = logits - zmax
    lse = jnp.log(jnp.sum(jnp.exp(z), axis=1, keepdims=True))
    out_ref[...] = z - lse


# --------------------- one-time (per parameter set) host-side packing -----------
def pack_params(params):
    """Parameter-only prep, hoisted out of the per-call jit path."""
    (w1, b1, w2, b2, fw1, fb1, fw2, fb2, fw3, fb3, fw4, fb4) = [
        np.asarray(p, np.float32) for p in params]

    # conv1 weights + bias as SMEM scalars (34 floats).
    w1b1 = np.concatenate([w1.reshape(-1), b1.reshape(-1)])

    cbuf = np.zeros((CBUF_ROWS, CBUF_COLS), np.float32)

    # conv2 weights/bias as per-lane rows (output channel = lane // 10).
    co_of_lane = np.arange(L_CONV2) // W2BLK
    for ci in range(C1):
        for dp in range(K2):
            for dq in range(K2):
                k = (ci * K2 + dp) * K2 + dq
                cbuf[_L["W2L"] + k, :L_CONV2] = w2[co_of_lane, ci, dp, dq]
    cbuf[_L["B2L"], :L_CONV2] = b2[co_of_lane]

    # stage-1 selectors: even-row / even-col compaction + conv2 zero-pad + 4x tile.
    for p in range(1, 9):
        cbuf[_L["ER"] + p, 2 * (p - 1)] = 1.0
    for l in range(NL2):
        q = l % W2BLK
        if 1 <= q <= 8:
            cbuf[_L["EC"] + 2 * (q - 1), l] = 1.0

    # fc1 weights expanded so the stride-2 gather + channel flatten is a lane
    # contraction: w1e_u[lane=10c+2v, :] = fw1[:, c*16 + u*4 + v].
    for u in range(4):
        for c in range(C2):
            for v in range(4):
                cbuf[_L[f"W1E{u}"] + W2BLK * c + 2 * v, :N4] = fw1[:, c * 16 + u * 4 + v]
    cbuf[_L["FB1"], :N4] = fb1
    cbuf[_L["FW2"]:_L["FW2"] + N4, :N5] = fw2.T
    cbuf[_L["FB2"], :N5] = fb2
    cbuf[_L["FW3"]:_L["FW3"] + N5, :N6] = fw3.T
    cbuf[_L["FB3"], :N6] = fb3
    cbuf[_L["FW4"]:_L["FW4"] + N6, :NCLS] = fw4.T
    cbuf[_L["FB4"], :NCLS] = fb4

    return jnp.asarray(w1b1), jnp.asarray(cbuf)


def _round_up(n, m):
    return ((n + m - 1) // m) * m


@jax.jit
def net_forward(x, w1b1, cbuf):
    B = x.shape[0]
    xs = x[:, 0].astype(jnp.float32)                       # raw (B,16,16), un-padded
    TB = min(_round_up(B, 8), TB_MAX)                      # sublane-aligned batch tile
    Bp = _round_up(B, TB)
    if Bp != B:
        xs = jnp.pad(xs, ((0, Bp - B), (0, 0), (0, 0)))

    out = pl.pallas_call(
        net_kernel,
        out_shape=jax.ShapeDtypeStruct((Bp, NCLS), jnp.float32),
        grid=(Bp // TB,),
        in_specs=[
            pl.BlockSpec((TB, 16, 16), lambda i: (i, 0, 0)),          # batch tile
            pl.BlockSpec(memory_space=pltpu.MemorySpace.SMEM),        # conv1 scalars
            pl.BlockSpec((CBUF_ROWS, CBUF_COLS), lambda i: (0, 0)),   # resident consts
        ],
        out_specs=pl.BlockSpec((TB, NCLS), lambda i: (i, 0)),
        scratch_shapes=[pltpu.VMEM((TB, 20, 20), jnp.float32)],       # padded conv1 in
        compiler_params=pltpu.CompilerParams(
            dimension_semantics=("parallel",),     # batch sharded across v7x's 2 TCs
            vmem_limit_bytes=VMEM_LIMIT_BYTES,
        ),
    )(xs, w1b1, cbuf)
    return out[:B]


# ------------------------------- pure-JAX reference ------------------------------
def ref_forward(x, params):
    w1, b1, w2, b2, fw1, fb1, fw2, fb2, fw3, fb3, fw4, fb4 = params
    dn = ('NCHW', 'OIHW', 'NCHW')
    hp = lax.Precision.HIGHEST
    c1 = lax.conv_general_dilated(x, w1, (1, 1), [(2, 2), (2, 2)],
                                  dimension_numbers=dn, precision=hp)
    c1 = c1 + b1[None, :, None, None]
    p1 = lax.reduce_window(c1, -jnp.inf, lax.max, (1, 1, 2, 2), (1, 1, 2, 2), 'VALID')
    h = jax.nn.relu(p1)
    c2 = lax.conv_general_dilated(h, w2, (1, 1), [(1, 1), (1, 1)],
                                  dimension_numbers=dn, precision=hp)
    c2 = c2 + b2[None, :, None, None]
    p2 = lax.reduce_window(c2, -jnp.inf, lax.max, (1, 1, 2, 2), (1, 1, 2, 2), 'VALID')
    h = jax.nn.relu(p2)
    f = h.reshape(x.shape[0], -1)
    h = jax.nn.relu(jnp.dot(f, fw1.T, precision=hp) + fb1)
    h = jax.nn.relu(jnp.dot(h, fw2.T, precision=hp) + fb2)
    h = jax.nn.relu(jnp.dot(h, fw3.T, precision=hp) + fb3)
    logits = jnp.dot(h, fw4.T, precision=hp) + fb4
    return jax.nn.log_softmax(logits, axis=1)


if __name__ == "__main__":
    key = jax.random.PRNGKey(0)
    ks = jax.random.split(key, 13)
    B = 2                                                          # Net(s=(16,16)), batch=2
    x = jax.random.normal(ks[0], (B, 1, 16, 16), jnp.float32)
    params = (
        0.2 * jax.random.normal(ks[1], (C1, 1, K1, K1), jnp.float32),   # conv1.weight
        0.1 * jax.random.normal(ks[2], (C1,), jnp.float32),             # conv1.bias
        0.2 * jax.random.normal(ks[3], (C2, C1, K2, K2), jnp.float32),  # conv2.weight
        0.1 * jax.random.normal(ks[4], (C2,), jnp.float32),             # conv2.bias
        0.2 * jax.random.normal(ks[5], (N4, N3), jnp.float32),          # fc1.weight
        0.1 * jax.random.normal(ks[6], (N4,), jnp.float32),             # fc1.bias
        0.2 * jax.random.normal(ks[7], (N5, N4), jnp.float32),          # fc2.weight
        0.1 * jax.random.normal(ks[8], (N5,), jnp.float32),             # fc2.bias
        0.2 * jax.random.normal(ks[9], (N6, N5), jnp.float32),          # fc3.weight
        0.1 * jax.random.normal(ks[10], (N6,), jnp.float32),            # fc3.bias
        0.2 * jax.random.normal(ks[11], (NCLS, N6), jnp.float32),       # fc4.weight
        0.1 * jax.random.normal(ks[12], (NCLS,), jnp.float32),          # fc4.bias
    )

    w1b1, cbuf = pack_params(params)                 # one-time parameter packing
    out = jax.block_until_ready(net_forward(x, w1b1, cbuf))
    ref = ref_forward(x, params)
    np.testing.assert_allclose(np.asarray(out), np.asarray(ref), rtol=2e-5, atol=2e-5)
    print("KERNEL_OK")
</pallas_src>

<mosaic_0001>
module attributes {stable_mosaic.version = 11 : i64} {
  func.func @net_kernel(%arg0: i32, %arg1: memref<8x16x16xf32, #tpu.memory_space<vmem>>, %arg2: memref<34xf32, #tpu.memory_space<smem>>, %arg3: memref<296x40xf32, #tpu.memory_space<vmem>>, %arg4: memref<8x10xf32, #tpu.memory_space<vmem>>, %arg5: memref<8x20x20xf32, #tpu.memory_space<vmem>>) attributes {dimension_semantics = [#tpu.dimension_semantics<parallel>], iteration_bounds = array<i64: 1>, scalar_prefetch = 0 : i64, scratch_operands = 1 : i64, tpu.core_type = #tpu.core_type<tc>, window_params = [{transform_indices = @transform_0, window_bounds = array<i64: 8, 16, 16>}, {transform_indices = @transform_1, window_bounds = array<i64: 34>}, {pipeline_mode = #tpu.pipeline_mode<synchronous>, transform_indices = @transform_2, window_bounds = array<i64: 296, 40>}, {transform_indices = @transform_3, window_bounds = array<i64: 8, 10>}]} {
    %cst = arith.constant 0.000000e+00 : f32
    %0 = vector.broadcast %cst : f32 to vector<8x20x20xf32>
    %c0 = arith.constant 0 : index
    %c0_0 = arith.constant 0 : index
    %c0_1 = arith.constant 0 : index
    %1 = vector.load %arg5[%c0, %c0_0, %c0_1] : memref<8x20x20xf32, #tpu.memory_space<vmem>>, vector<8x20x20xf32>
    tpu.vector_store %arg5[%c0, %c0_0, %c0_1], %0 {strides = array<i32>} : memref<8x20x20xf32, #tpu.memory_space<vmem>>, vector<8x20x20xf32>,
    %c0_2 = arith.constant 0 : index
    %c0_3 = arith.constant 0 : index
    %c0_4 = arith.constant 0 : index
    %2 = vector.load %arg1[%c0_2, %c0_3, %c0_4] : memref<8x16x16xf32, #tpu.memory_space<vmem>>, vector<8x16x16xf32>
    %c0_5 = arith.constant 0 : index
    %c2 = arith.constant 2 : index
    %c2_6 = arith.constant 2 : index
    %3 = vector.load %arg5[%c0_5, %c2, %c2_6] : memref<8x20x20xf32, #tpu.memory_space<vmem>>, vector<8x16x16xf32>
    tpu.vector_store %arg5[%c0_5, %c2, %c2_6], %2 {strides = array<i32>} : memref<8x20x20xf32, #tpu.memory_space<vmem>>, vector<8x16x16xf32>,
    %cst_7 = arith.constant 0.000000e+00 : f32
    %4 = vector.broadcast %cst_7 : f32 to vector<8x17x17xf32>
    %cst_8 = arith.constant 0.000000e+00 : f32
    %5 = vector.broadcast %cst_8 : f32 to vector<8x17x17xf32>
    %c0_9 = arith.constant 0 : index
    %c0_10 = arith.constant 0 : index
    %c0_11 = arith.constant 0 : index
    %6 = vector.load %arg5[%c0_9, %c0_10, %c0_11] : memref<8x20x20xf32, #tpu.memory_space<vmem>>, vector<8x20x17xf32>
    %7 = vector.extract_strided_slice %6 {offsets = [0, 0, 0], sizes = [8, 17, 17], strides = [1, 1, 1]} : vector<8x20x17xf32> to vector<8x17x17xf32>
    %c0_12 = arith.constant 0 : index
    %8 = memref.load %arg2[%c0_12] : memref<34xf32, #tpu.memory_space<smem>>
    %9 = vector.broadcast %8 : f32 to vector<8x17x17xf32>
    %10 = arith.mulf %7, %9 : vector<8x17x17xf32>
    %11 = arith.addf %4, %10 : vector<8x17x17xf32>
    %c16 = arith.constant 16 : index
    %12 = memref.load %arg2[%c16] : memref<34xf32, #tpu.memory_space<smem>>
    %13 = vector.broadcast %12 : f32 to vector<8x17x17xf32>
    %14 = arith.mulf %7, %13 : vector<8x17x17xf32>
    %15 = arith.addf %5, %14 : vector<8x17x17xf32>
    %16 = vector.extract_strided_slice %6 {offsets = [0, 1, 0], sizes = [8, 17, 17], strides = [1, 1, 1]} : vector<8x20x17xf32> to vector<8x17x17xf32>
    %c4 = arith.constant 4 : index
    %17 = memref.load %arg2[%c4] : memref<34xf32, #tpu.memory_space<smem>>
    %18 = vector.broadcast %17 : f32 to vector<8x17x17xf32>
    %19 = arith.mulf %16, %18 : vector<8x17x17xf32>
    %20 = arith.addf %11, %19 : vector<8x17x17xf32>
    %c20 = arith.constant 20 : index
    %21 = memref.load %arg2[%c20] : memref<34xf32, #tpu.memory_space<smem>>
    %22 = vector.broadcast %21 : f32 to vector<8x17x17xf32>
    %23 = arith.mulf %16, %22 : vector<8x17x17xf32>
    %24 = arith.addf %15, %23 : vector<8x17x17xf32>
    %25 = vector.extract_strided_slice %6 {offsets = [0, 2, 0], sizes = [8, 17, 17], strides = [1, 1, 1]} : vector<8x20x17xf32> to vector<8x17x17xf32>
    %c8 = arith.constant 8 : index
    %26 = memref.load %arg2[%c8] : memref<34xf32, #tpu.memory_space<smem>>
    %27 = vector.broadcast %26 : f32 to vector<8x17x17xf32>
    %28 = arith.mulf %25, %27 : vector<8x17x17xf32>
    %29 = arith.addf %20, %28 : vector<8x17x17xf32>
    %c24 = arith.constant 24 : index
    %30 = memref.load %arg2[%c24] : memref<34xf32, #tpu.memory_space<smem>>
    %31 = vector.broadcast %30 : f32 to vector<8x17x17xf32>
    %32 = arith.mulf %25, %31 : vector<8x17x17xf32>
    %33 = arith.addf %24, %32 : vector<8x17x17xf32>
    %34 = vector.extract_strided_slice %6 {offsets = [0, 3, 0], sizes = [8, 17, 17], strides = [1, 1, 1]} : vector<8x20x17xf32> to vector<8x17x17xf32>
    %c12 = arith.constant 12 : index
    %35 = memref.load %arg2[%c12] : memref<34xf32, #tpu.memory_space<smem>>
    %36 = vector.broadcast %35 : f32 to vector<8x17x17xf32>
    %37 = arith.mulf %34, %36 : vector<8x17x17xf32>
    %38 = arith.addf %29, %37 : vector<8x17x17xf32>
    %c28 = arith.constant 28 : index
    %39 = memref.load %arg2[%c28] : memref<34xf32, #tpu.memory_space<smem>>
    %40 = vector.broadcast %39 : f32 to vector<8x17x17xf32>
    %41 = arith.mulf %34, %40 : vector<8x17x17xf32>
    %42 = arith.addf %33, %41 : vector<8x17x17xf32>
    %c0_13 = arith.constant 0 : index
    %c0_14 = arith.constant 0 : index
    %c1 = arith.constant 1 : index
    %43 = vector.load %arg5[%c0_13, %c0_14, %c1] : memref<8x20x20xf32, #tpu.memory_space<vmem>>, vector<8x20x17xf32>
    %44 = vector.extract_strided_slice %43 {offsets = [0, 0, 0], sizes = [8, 17, 17], strides = [1, 1, 1]} : vector<8x20x17xf32> to vector<8x17x17xf32>
    %c1_15 = arith.constant 1 : index
    %45 = memref.load %arg2[%c1_15] : memref<34xf32, #tpu.memory_space<smem>>
    %46 = vector.broadcast %45 : f32 to vector<8x17x17xf32>
    %47 = arith.mulf %44, %46 : vector<8x17x17xf32>
    %48 = arith.addf %38, %47 : vector<8x17x17xf32>
    %c17 = arith.constant 17 : index
    %49 = memref.load %arg2[%c17] : memref<34xf32, #tpu.memory_space<smem>>
    %50 = vector.broadcast %49 : f32 to vector<8x17x17xf32>
    %51 = arith.mulf %44, %50 : vector<8x17x17xf32>
    %52 = arith.addf %42, %51 : vector<8x17x17xf32>
    %53 = vector.extract_strided_slice %43 {offsets = [0, 1, 0], sizes = [8, 17, 17], strides = [1, 1, 1]} : vector<8x20x17xf32> to vector<8x17x17xf32>
    %c5 = arith.constant 5 : index
    %54 = memref.load %arg2[%c5] : memref<34xf32, #tpu.memory_space<smem>>
    %55 = vector.broadcast %54 : f32 to vector<8x17x17xf32>
    %56 = arith.mulf %53, %55 : vector<8x17x17xf32>
    %57 = arith.addf %48, %56 : vector<8x17x17xf32>
    %c21 = arith.constant 21 : index
    %58 = memref.load %arg2[%c21] : memref<34xf32, #tpu.memory_space<smem>>
    %59 = vector.broadcast %58 : f32 to vector<8x17x17xf32>
    %60 = arith.mulf %53, %59 : vector<8x17x17xf32>
    %61 = arith.addf %52, %60 : vector<8x17x17xf32>
    %62 = vector.extract_strided_slice %43 {offsets = [0, 2, 0], sizes = [8, 17, 17], strides = [1, 1, 1]} : vector<8x20x17xf32> to vector<8x17x17xf32>
    %c9 = arith.constant 9 : index
    %63 = memref.load %arg2[%c9] : memref<34xf32, #tpu.memory_space<smem>>
    %64 = vector.broadcast %63 : f32 to vector<8x17x17xf32>
    %65 = arith.mulf %62, %64 : vector<8x17x17xf32>
    %66 = arith.addf %57, %65 : vector<8x17x17xf32>
    %c25 = arith.constant 25 : index
    %67 = memref.load %arg2[%c25] : memref<34xf32, #tpu.memory_space<smem>>
    %68 = vector.broadcast %67 : f32 to vector<8x17x17xf32>
    %69 = arith.mulf %62, %68 : vector<8x17x17xf32>
    %70 = arith.addf %61, %69 : vector<8x17x17xf32>
    %71 = vector.extract_strided_slice %43 {offsets = [0, 3, 0], sizes = [8, 17, 17], strides = [1, 1, 1]} : vector<8x20x17xf32> to vector<8x17x17xf32>
    %c13 = arith.constant 13 : index
    %72 = memref.load %arg2[%c13] : memref<34xf32, #tpu.memory_space<smem>>
    %73 = vector.broadcast %72 : f32 to vector<8x17x17xf32>
    %74 = arith.mulf %71, %73 : vector<8x17x17xf32>
    %75 = arith.addf %66, %74 : vector<8x17x17xf32>
    %c29 = arith.constant 29 : index
    %76 = memref.load %arg2[%c29] : memref<34xf32, #tpu.memory_space<smem>>
    %77 = vector.broadcast %76 : f32 to vector<8x17x17xf32>
    %78 = arith.mulf %71, %77 : vector<8x17x17xf32>
    %79 = arith.addf %70, %78 : vector<8x17x17xf32>
    %c0_16 = arith.constant 0 : index
    %c0_17 = arith.constant 0 : index
    %c2_18 = arith.constant 2 : index
    %80 = vector.load %arg5[%c0_16, %c0_17, %c2_18] : memref<8x20x20xf32, #tpu.memory_space<vmem>>, vector<8x20x17xf32>
    %81 = vector.extract_strided_slice %80 {offsets = [0, 0, 0], sizes = [8, 17, 17], strides = [1, 1, 1]} : vector<8x20x17xf32> to vector<8x17x17xf32>
    %c2_19 = arith.constant 2 : index
    %82 = memref.load %arg2[%c2_19] : memref<34xf32, #tpu.memory_space<smem>>
    %83 = vector.broadcast %82 : f32 to vector<8x17x17xf32>
    %84 = arith.mulf %81, %83 : vector<8x17x17xf32>
    %85 = arith.addf %75, %84 : vector<8x17x17xf32>
    %c18 = arith.constant 18 : index
    %86 = memref.load %arg2[%c18] : memref<34xf32, #tpu.memory_space<smem>>
    %87 = vector.broadcast %86 : f32 to vector<8x17x17xf32>
    %88 = arith.mulf %81, %87 : vector<8x17x17xf32>
    %89 = arith.addf %79, %88 : vector<8x17x17xf32>
    %90 = vector.extract_strided_slice %80 {offsets = [0, 1, 0], sizes = [8, 17, 17], strides = [1, 1, 1]} : vector<8x20x17xf32> to vector<8x17x17xf32>
    %c6 = arith.constant 6 : index
    %91 = memref.load %arg2[%c6] : memref<34xf32, #tpu.memory_space<smem>>
    %92 = vector.broadcast %91 : f32 to vector<8x17x17xf32>
    %93 = arith.mulf %90, %92 : vector<8x17x17xf32>
    %94 = arith.addf %85, %93 : vector<8x17x17xf32>
    %c22 = arith.constant 22 : index
    %95 = memref.load %arg2[%c22] : memref<34xf32, #tpu.memory_space<smem>>
    %96 = vector.broadcast %95 : f32 to vector<8x17x17xf32>
    %97 = arith.mulf %90, %96 : vector<8x17x17xf32>
    %98 = arith.addf %89, %97 : vector<8x17x17xf32>
    %99 = vector.extract_strided_slice %80 {offsets = [0, 2, 0], sizes = [8, 17, 17], strides = [1, 1, 1]} : vector<8x20x17xf32> to vector<8x17x17xf32>
    %c10 = arith.constant 10 : index
    %100 = memref.load %arg2[%c10] : memref<34xf32, #tpu.memory_space<smem>>
    %101 = vector.broadcast %100 : f32 to vector<8x17x17xf32>
    %102 = arith.mulf %99, %101 : vector<8x17x17xf32>
    %103 = arith.addf %94, %102 : vector<8x17x17xf32>
    %c26 = arith.constant 26 : index
    %104 = memref.load %arg2[%c26] : memref<34xf32, #tpu.memory_space<smem>>
    %105 = vector.broadcast %104 : f32 to vector<8x17x17xf32>
    %106 = arith.mulf %99, %105 : vector<8x17x17xf32>
    %107 = arith.addf %98, %106 : vector<8x17x17xf32>
    %108 = vector.extract_strided_slice %80 {offsets = [0, 3, 0], sizes = [8, 17, 17], strides = [1, 1, 1]} : vector<8x20x17xf32> to vector<8x17x17xf32>
    %c14 = arith.constant 14 : index
    %109 = memref.load %arg2[%c14] : memref<34xf32, #tpu.memory_space<smem>>
    %110 = vector.broadcast %109 : f32 to vector<8x17x17xf32>
    %111 = arith.mulf %108, %110 : vector<8x17x17xf32>
    %112 = arith.addf %103, %111 : vector<8x17x17xf32>
    %c30 = arith.constant 30 : index
    %113 = memref.load %arg2[%c30] : memref<34xf32, #tpu.memory_space<smem>>
    %114 = vector.broadcast %113 : f32 to vector<8x17x17xf32>
    %115 = arith.mulf %108, %114 : vector<8x17x17xf32>
    %116 = arith.addf %107, %115 : vector<8x17x17xf32>
    %c0_20 = arith.constant 0 : index
    %c0_21 = arith.constant 0 : index
    %c3 = arith.constant 3 : index
    %117 = vector.load %arg5[%c0_20, %c0_21, %c3] : memref<8x20x20xf32, #tpu.memory_space<vmem>>, vector<8x20x17xf32>
    %118 = vector.extract_strided_slice %117 {offsets = [0, 0, 0], sizes = [8, 17, 17], strides = [1, 1, 1]} : vector<8x20x17xf32> to vector<8x17x17xf32>
    %c3_22 = arith.constant 3 : index
    %119 = memref.load %arg2[%c3_22] : memref<34xf32, #tpu.memory_space<smem>>
    %120 = vector.broadcast %119 : f32 to vector<8x17x17xf32>
    %121 = arith.mulf %118, %120 : vector<8x17x17xf32>
    %122 = arith.addf %112, %121 : vector<8x17x17xf32>
    %c19 = arith.constant 19 : index
    %123 = memref.load %arg2[%c19] : memref<34xf32, #tpu.memory_space<smem>>
    %124 = vector.broadcast %123 : f32 to vector<8x17x17xf32>
    %125 = arith.mulf %118, %124 : vector<8x17x17xf32>
    %126 = arith.addf %116, %125 : vector<8x17x17xf32>
    %127 = vector.extract_strided_slice %117 {offsets = [0, 1, 0], sizes = [8, 17, 17], strides = [1, 1, 1]} : vector<8x20x17xf32> to vector<8x17x17xf32>
    %c7 = arith.constant 7 : index
    %128 = memref.load %arg2[%c7] : memref<34xf32, #tpu.memory_space<smem>>
    %129 = vector.broadcast %128 : f32 to vector<8x17x17xf32>
    %130 = arith.mulf %127, %129 : vector<8x17x17xf32>
    %131 = arith.addf %122, %130 : vector<8x17x17xf32>
    %c23 = arith.constant 23 : index
    %132 = memref.load %arg2[%c23] : memref<34xf32, #tpu.memory_space<smem>>
    %133 = vector.broadcast %132 : f32 to vector<8x17x17xf32>
    %134 = arith.mulf %127, %133 : vector<8x17x17xf32>
    %135 = arith.addf %126, %134 : vector<8x17x17xf32>
    %136 = vector.extract_strided_slice %117 {offsets = [0, 2, 0], sizes = [8, 17, 17], strides = [1, 1, 1]} : vector<8x20x17xf32> to vector<8x17x17xf32>
    %c11 = arith.constant 11 : index
    %137 = memref.load %arg2[%c11] : memref<34xf32, #tpu.memory_space<smem>>
    %138 = vector.broadcast %137 : f32 to vector<8x17x17xf32>
    %139 = arith.mulf %136, %138 : vector<8x17x17xf32>
    %140 = arith.addf %131, %139 : vector<8x17x17xf32>
    %c27 = arith.constant 27 : index
    %141 = memref.load %arg2[%c27] : memref<34xf32, #tpu.memory_space<smem>>
    %142 = vector.broadcast %141 : f32 to vector<8x17x17xf32>
    %143 = arith.mulf %136, %142 : vector<8x17x17xf32>
    %144 = arith.addf %135, %143 : vector<8x17x17xf32>
    %145 = vector.extract_strided_slice %117 {offsets = [0, 3, 0], sizes = [8, 17, 17], strides = [1, 1, 1]} : vector<8x20x17xf32> to vector<8x17x17xf32>
    %c15 = arith.constant 15 : index
    %146 = memref.load %arg2[%c15] : memref<34xf32, #tpu.memory_space<smem>>
    %147 = vector.broadcast %146 : f32 to vector<8x17x17xf32>
    %148 = arith.mulf %145, %147 : vector<8x17x17xf32>
    %149 = arith.addf %140, %148 : vector<8x17x17xf32>
    %c31 = arith.constant 31 : index
    %150 = memref.load %arg2[%c31] : memref<34xf32, #tpu.memory_space<smem>>
    %151 = vector.broadcast %150 : f32 to vector<8x17x17xf32>
    %152 = arith.mulf %145, %151 : vector<8x17x17xf32>
    %153 = arith.addf %144, %152 : vector<8x17x17xf32>
    %c16_23 = arith.constant 16 : index
    %c0_24 = arith.constant 0 : index
    %154 = vector.load %arg3[%c16_23, %c0_24] : memref<296x40xf32, #tpu.memory_space<vmem>>, vector<10x16xf32>
    %155 = vector.shape_cast %154 : vector<10x16xf32> to vector<1x10x16xf32>
    %156 = vector.broadcast %155 : vector<1x10x16xf32> to vector<8x10x16xf32>
    %c32 = arith.constant 32 : index
    %c0_25 = arith.constant 0 : index
    %157 = vector.load %arg3[%c32, %c0_25] : memref<296x40xf32, #tpu.memory_space<vmem>>, vector<16x40xf32>
    %158 = vector.shape_cast %157 : vector<16x40xf32> to vector<1x16x40xf32>
    %159 = vector.broadcast %158 : vector<1x16x40xf32> to vector<8x16x40xf32>
    %c32_26 = arith.constant 32 : index
    %160 = memref.load %arg2[%c32_26] : memref<34xf32, #tpu.memory_space<smem>>
    %161 = vector.broadcast %160 : f32 to vector<8x17x17xf32>
    %162 = arith.addf %149, %161 : vector<8x17x17xf32>
    %163 = vector.extract_strided_slice %162 {offsets = [0, 0, 0], sizes = [8, 17, 16], strides = [1, 1, 1]} : vector<8x17x17xf32> to vector<8x17x16xf32>
    %164 = vector.extract_strided_slice %162 {offsets = [0, 0, 1], sizes = [8, 17, 16], strides = [1, 1, 1]} : vector<8x17x17xf32> to vector<8x17x16xf32>
    %165 = arith.maximumf %163, %164 : vector<8x17x16xf32>
    %166 = vector.extract_strided_slice %165 {offsets = [0, 0, 0], sizes = [8, 16, 16], strides = [1, 1, 1]} : vector<8x17x16xf32> to vector<8x16x16xf32>
    %167 = vector.extract_strided_slice %165 {offsets = [0, 1, 0], sizes = [8, 16, 16], strides = [1, 1, 1]} : vector<8x17x16xf32> to vector<8x16x16xf32>
    %168 = arith.maximumf %166, %167 : vector<8x16x16xf32>
    %cst_27 = arith.constant 0.000000e+00 : f32
    %169 = vector.broadcast %cst_27 : f32 to vector<8x16x16xf32>
    %170 = arith.maximumf %168, %169 : vector<8x16x16xf32>
    "tpu.trace_start"() <{level = 10 : i32, message = "bps,bsc->bpc"}> : () -> ()
    %cst_28 = arith.constant dense<0.000000e+00> : vector<8x10x16xf32>
    %171 = tpu.matmul %156, %170, %cst_28 {dimension_numbers = #tpu.dot_dimension_numbers<[2], [1], [1], [2], [0, 0, 0, 1, 1, 2], [0], [0]>} : vector<8x10x16xf32>, vector<8x16x16xf32>, vector<8x10x16xf32> -> vector<8x10x16xf32>
    "tpu.trace_stop"() : () -> ()
    "tpu.trace_start"() <{level = 10 : i32, message = "bpc,bcl->bpl"}> : () -> ()
    %cst_29 = arith.constant dense<0.000000e+00> : vector<8x10x40xf32>
    %172 = tpu.matmul %171, %159, %cst_29 {dimension_numbers = #tpu.dot_dimension_numbers<[2], [1], [1], [2], [0, 0, 0, 1, 1, 2], [0], [0]>} : vector<8x10x16xf32>, vector<8x16x40xf32>, vector<8x10x40xf32> -> vector<8x10x40xf32>
    "tpu.trace_stop"() : () -> ()
    %c33 = arith.constant 33 : index
    %173 = memref.load %arg2[%c33] : memref<34xf32, #tpu.memory_space<smem>>
    %174 = vector.broadcast %173 : f32 to vector<8x17x17xf32>
    %175 = arith.addf %153, %174 : vector<8x17x17xf32>
    %176 = vector.extract_strided_slice %175 {offsets = [0, 0, 0], sizes = [8, 17, 16], strides = [1, 1, 1]} : vector<8x17x17xf32> to vector<8x17x16xf32>
    %177 = vector.extract_strided_slice %175 {offsets = [0, 0, 1], sizes = [8, 17, 16], strides = [1, 1, 1]} : vector<8x17x17xf32> to vector<8x17x16xf32>
    %178 = arith.maximumf %176, %177 : vector<8x17x16xf32>
    %179 = vector.extract_strided_slice %178 {offsets = [0, 0, 0], sizes = [8, 16, 16], strides = [1, 1, 1]} : vector<8x17x16xf32> to vector<8x16x16xf32>
    %180 = vector.extract_strided_slice %178 {offsets = [0, 1, 0], sizes = [8, 16, 16], strides = [1, 1, 1]} : vector<8x17x16xf32> to vector<8x16x16xf32>
    %181 = arith.maximumf %179, %180 : vector<8x16x16xf32>
    %cst_30 = arith.constant 0.000000e+00 : f32
    %182 = vector.broadcast %cst_30 : f32 to vector<8x16x16xf32>
    %183 = arith.maximumf %181, %182 : vector<8x16x16xf32>
    "tpu.trace_start"() <{level = 10 : i32, message = "bps,bsc->bpc"}> : () -> ()
    %cst_31 = arith.constant dense<0.000000e+00> : vector<8x10x16xf32>
    %184 = tpu.matmul %156, %183, %cst_31 {dimension_numbers = #tpu.dot_dimension_numbers<[2], [1], [1], [2], [0, 0, 0, 1, 1, 2], [0], [0]>} : vector<8x10x16xf32>, vector<8x16x16xf32>, vector<8x10x16xf32> -> vector<8x10x16xf32>
    "tpu.trace_stop"() : () -> ()
    "tpu.trace_start"() <{level = 10 : i32, message = "bpc,bcl->bpl"}> : () -> ()
    %cst_32 = arith.constant dense<0.000000e+00> : vector<8x10x40xf32>
    %185 = tpu.matmul %184, %159, %cst_32 {dimension_numbers = #tpu.dot_dimension_numbers<[2], [1], [1], [2], [0, 0, 0, 1, 1, 2], [0], [0]>} : vector<8x10x16xf32>, vector<8x16x40xf32>, vector<8x10x40xf32> -> vector<8x10x40xf32>
    "tpu.trace_stop"() : () -> ()
    %c0_33 = arith.constant 0 : index
    %c0_34 = arith.constant 0 : index
    %186 = vector.load %arg3[%c0_33, %c0_34] : memref<296x40xf32, #tpu.memory_space<vmem>>, vector<8x39xf32>
    %c8_35 = arith.constant 8 : index
    %c0_36 = arith.constant 0 : index
    %187 = vector.load %arg3[%c8_35, %c0_36] : memref<296x40xf32, #tpu.memory_space<vmem>>, vector<1x39xf32>
    %cst_37 = arith.constant 0.000000e+00 : f32
    %188 = vector.broadcast %cst_37 : f32 to vector<8x9x39xf32>
    %189 = vector.extract_strided_slice %172 {offsets = [0, 0, 0], sizes = [8, 10, 39], strides = [1, 1, 1]} : vector<8x10x40xf32> to vector<8x10x39xf32>
    %190 = vector.extract_strided_slice %189 {offsets = [0, 0, 0], sizes = [8, 9, 39], strides = [1, 1, 1]} : vector<8x10x39xf32> to vector<8x9x39xf32>
    %191 = vector.extract_strided_slice %186 {offsets = [0, 0], sizes = [1, 39], strides = [1, 1]} : vector<8x39xf32> to vector<1x39xf32>
    %192 = vector.shape_cast %191 : vector<1x39xf32> to vector<1x1x39xf32>
    %193 = vector.broadcast %192 : vector<1x1x39xf32> to vector<8x9x39xf32>
    %194 = arith.mulf %190, %193 : vector<8x9x39xf32>
    %195 = arith.addf %188, %194 : vector<8x9x39xf32>
    %196 = vector.extract_strided_slice %189 {offsets = [0, 1, 0], sizes = [8, 9, 39], strides = [1, 1, 1]} : vector<8x10x39xf32> to vector<8x9x39xf32>
    %197 = vector.extract_strided_slice %186 {offsets = [2, 0], sizes = [1, 39], strides = [1, 1]} : vector<8x39xf32> to vector<1x39xf32>
    %198 = vector.shape_cast %197 : vector<1x39xf32> to vector<1x1x39xf32>
    %199 = vector.broadcast %198 : vector<1x1x39xf32> to vector<8x9x39xf32>
    %200 = arith.mulf %196, %199 : vector<8x9x39xf32>
    %201 = arith.addf %195, %200 : vector<8x9x39xf32>
    %202 = vector.extract_strided_slice %172 {offsets = [0, 0, 1], sizes = [8, 10, 39], strides = [1, 1, 1]} : vector<8x10x40xf32> to vector<8x10x39xf32>
    %203 = vector.extract_strided_slice %202 {offsets = [0, 0, 0], sizes = [8, 9, 39], strides = [1, 1, 1]} : vector<8x10x39xf32> to vector<8x9x39xf32>
    %204 = vector.extract_strided_slice %186 {offsets = [1, 0], sizes = [1, 39], strides = [1, 1]} : vector<8x39xf32> to vector<1x39xf32>
    %205 = vector.shape_cast %204 : vector<1x39xf32> to vector<1x1x39xf32>
    %206 = vector.broadcast %205 : vector<1x1x39xf32> to vector<8x9x39xf32>
    %207 = arith.mulf %203, %206 : vector<8x9x39xf32>
    %208 = arith.addf %201, %207 : vector<8x9x39xf32>
    %209 = vector.extract_strided_slice %202 {offsets = [0, 1, 0], sizes = [8, 9, 39], strides = [1, 1, 1]} : vector<8x10x39xf32> to vector<8x9x39xf32>
    %210 = vector.extract_strided_slice %186 {offsets = [3, 0], sizes = [1, 39], strides = [1, 1]} : vector<8x39xf32> to vector<1x39xf32>
    %211 = vector.shape_cast %210 : vector<1x39xf32> to vector<1x1x39xf32>
    %212 = vector.broadcast %211 : vector<1x1x39xf32> to vector<8x9x39xf32>
    %213 = arith.mulf %209, %212 : vector<8x9x39xf32>
    %214 = arith.addf %208, %213 : vector<8x9x39xf32>
    %215 = vector.extract_strided_slice %185 {offsets = [0, 0, 0], sizes = [8, 10, 39], strides = [1, 1, 1]} : vector<8x10x40xf32> to vector<8x10x39xf32>
    %216 = vector.extract_strided_slice %215 {offsets = [0, 0, 0], sizes = [8, 9, 39], strides = [1, 1, 1]} : vector<8x10x39xf32> to vector<8x9x39xf32>
    %217 = vector.extract_strided_slice %186 {offsets = [4, 0], sizes = [1, 39], strides = [1, 1]} : vector<8x39xf32> to vector<1x39xf32>
    %218 = vector.shape_cast %217 : vector<1x39xf32> to vector<1x1x39xf32>
    %219 = vector.broadcast %218 : vector<1x1x39xf32> to vector<8x9x39xf32>
    %220 = arith.mulf %216, %219 : vector<8x9x39xf32>
    %221 = arith.addf %214, %220 : vector<8x9x39xf32>
    %222 = vector.extract_strided_slice %215 {offsets = [0, 1, 0], sizes = [8, 9, 39], strides = [1, 1, 1]} : vector<8x10x39xf32> to vector<8x9x39xf32>
    %223 = vector.extract_strided_slice %186 {offsets = [6, 0], sizes = [1, 39], strides = [1, 1]} : vector<8x39xf32> to vector<1x39xf32>
    %224 = vector.shape_cast %223 : vector<1x39xf32> to vector<1x1x39xf32>
    %225 = vector.broadcast %224 : vector<1x1x39xf32> to vector<8x9x39xf32>
    %226 = arith.mulf %222, %225 : vector<8x9x39xf32>
    %227 = arith.addf %221, %226 : vector<8x9x39xf32>
    %228 = vector.extract_strided_slice %185 {offsets = [0, 0, 1], sizes = [8, 10, 39], strides = [1, 1, 1]} : vector<8x10x40xf32> to vector<8x10x39xf32>
    %229 = vector.extract_strided_slice %228 {offsets = [0, 0, 0], sizes = [8, 9, 39], strides = [1, 1, 1]} : vector<8x10x39xf32> to vector<8x9x39xf32>
    %230 = vector.extract_strided_slice %186 {offsets = [5, 0], sizes = [1, 39], strides = [1, 1]} : vector<8x39xf32> to vector<1x39xf32>
    %231 = vector.shape_cast %230 : vector<1x39xf32> to vector<1x1x39xf32>
    %232 = vector.broadcast %231 : vector<1x1x39xf32> to vector<8x9x39xf32>
    %233 = arith.mulf %229, %232 : vector<8x9x39xf32>
    %234 = arith.addf %227, %233 : vector<8x9x39xf32>
    %235 = vector.extract_strided_slice %228 {offsets = [0, 1, 0], sizes = [8, 9, 39], strides = [1, 1, 1]} : vector<8x10x39xf32> to vector<8x9x39xf32>
    %236 = vector.extract_strided_slice %186 {offsets = [7, 0], sizes = [1, 39], strides = [1, 1]} : vector<8x39xf32> to vector<1x39xf32>
    %237 = vector.shape_cast %236 : vector<1x39xf32> to vector<1x1x39xf32>
    %238 = vector.broadcast %237 : vector<1x1x39xf32> to vector<8x9x39xf32>
    %239 = arith.mulf %235, %238 : vector<8x9x39xf32>
    %240 = arith.addf %234, %239 : vector<8x9x39xf32>
    %241 = vector.shape_cast %187 : vector<1x39xf32> to vector<1x1x39xf32>
    %242 = vector.broadcast %241 : vector<1x1x39xf32> to vector<8x9x39xf32>
    %243 = arith.addf %240, %242 : vector<8x9x39xf32>
    %244 = vector.extract_strided_slice %243 {offsets = [0, 0, 0], sizes = [8, 9, 38], strides = [1, 1, 1]} : vector<8x9x39xf32> to vector<8x9x38xf32>
    %245 = vector.extract_strided_slice %243 {offsets = [0, 0, 1], sizes = [8, 9, 38], strides = [1, 1, 1]} : vector<8x9x39xf32> to vector<8x9x38xf32>
    %246 = arith.maximumf %244, %245 : vector<8x9x38xf32>
    %247 = vector.extract_strided_slice %246 {offsets = [0, 0, 0], sizes = [8, 8, 38], strides = [1, 1, 1]} : vector<8x9x38xf32> to vector<8x8x38xf32>
    %248 = vector.extract_strided_slice %246 {offsets = [0, 1, 0], sizes = [8, 8, 38], strides = [1, 1, 1]} : vector<8x9x38xf32> to vector<8x8x38xf32>
    %249 = arith.maximumf %247, %248 : vector<8x8x38xf32>
    %cst_38 = arith.constant 0.000000e+00 : f32
    %250 = vector.broadcast %cst_38 : f32 to vector<8x8x38xf32>
    %251 = arith.maximumf %249, %250 : vector<8x8x38xf32>
    %c208 = arith.constant 208 : index
    %c0_39 = arith.constant 0 : index
    %252 = vector.load %arg3[%c208, %c0_39] : memref<296x40xf32, #tpu.memory_space<vmem>>, vector<1x32xf32>
    %c48 = arith.constant 48 : index
    %c0_40 = arith.constant 0 : index
    %253 = vector.load %arg3[%c48, %c0_40] : memref<296x40xf32, #tpu.memory_space<vmem>>, vector<38x32xf32>
    %254 = vector.extract_strided_slice %251 {offsets = [0, 0, 0], sizes = [8, 1, 38], strides = [1, 1, 1]} : vector<8x8x38xf32> to vector<8x1x38xf32>
    %255 = vector.shape_cast %254 : vector<8x1x38xf32> to vector<8x38xf32>
    %cst_41 = arith.constant dense<0.000000e+00> : vector<8x32xf32>
    %256 = tpu.matmul %255, %253, %cst_41 {dimension_numbers = #tpu.dot_dimension_numbers<[1], [0], [0], [1], [0, 0, 1, 1], [], []>} : vector<8x38xf32>, vector<38x32xf32>, vector<8x32xf32> -> vector<8x32xf32>
    %257 = vector.broadcast %252 : vector<1x32xf32> to vector<8x32xf32>
    %258 = arith.addf %257, %256 : vector<8x32xf32>
    %c88 = arith.constant 88 : index
    %c0_42 = arith.constant 0 : index
    %259 = vector.load %arg3[%c88, %c0_42] : memref<296x40xf32, #tpu.memory_space<vmem>>, vector<38x32xf32>
    %260 = vector.extract_strided_slice %251 {offsets = [0, 2, 0], sizes = [8, 1, 38], strides = [1, 1, 1]} : vector<8x8x38xf32> to vector<8x1x38xf32>
    %261 = vector.shape_cast %260 : vector<8x1x38xf32> to vector<8x38xf32>
    %cst_43 = arith.constant dense<0.000000e+00> : vector<8x32xf32>
    %262 = tpu.matmul %261, %259, %cst_43 {dimension_numbers = #tpu.dot_dimension_numbers<[1], [0], [0], [1], [0, 0, 1, 1], [], []>} : vector<8x38xf32>, vector<38x32xf32>, vector<8x32xf32> -> vector<8x32xf32>
    %263 = arith.addf %258, %262 : vector<8x32xf32>
    %c128 = arith.constant 128 : index
    %c0_44 = arith.constant 0 : index
    %264 = vector.load %arg3[%c128, %c0_44] : memref<296x40xf32, #tpu.memory_space<vmem>>, vector<38x32xf32>
    %265 = vector.extract_strided_slice %251 {offsets = [0, 4, 0], sizes = [8, 1, 38], strides = [1, 1, 1]} : vector<8x8x38xf32> to vector<8x1x38xf32>
    %266 = vector.shape_cast %265 : vector<8x1x38xf32> to vector<8x38xf32>
    %cst_45 = arith.constant dense<0.000000e+00> : vector<8x32xf32>
    %267 = tpu.matmul %266, %264, %cst_45 {dimension_numbers = #tpu.dot_dimension_numbers<[1], [0], [0], [1], [0, 0, 1, 1], [], []>} : vector<8x38xf32>, vector<38x32xf32>, vector<8x32xf32> -> vector<8x32xf32>
    %268 = arith.addf %263, %267 : vector<8x32xf32>
    %c168 = arith.constant 168 : index
    %c0_46 = arith.constant 0 : index
    %269 = vector.load %arg3[%c168, %c0_46] : memref<296x40xf32, #tpu.memory_space<vmem>>, vector<38x32xf32>
    %270 = vector.extract_strided_slice %251 {offsets = [0, 6, 0], sizes = [8, 1, 38], strides = [1, 1, 1]} : vector<8x8x38xf32> to vector<8x1x38xf32>
    %271 = vector.shape_cast %270 : vector<8x1x38xf32> to vector<8x38xf32>
    %cst_47 = arith.constant dense<0.000000e+00> : vector<8x32xf32>
    %272 = tpu.matmul %271, %269, %cst_47 {dimension_numbers = #tpu.dot_dimension_numbers<[1], [0], [0], [1], [0, 0, 1, 1], [], []>} : vector<8x38xf32>, vector<38x32xf32>, vector<8x32xf32> -> vector<8x32xf32>
    %273 = arith.addf %268, %272 : vector<8x32xf32>
    %cst_48 = arith.constant 0.000000e+00 : f32
    %274 = vector.broadcast %cst_48 : f32 to vector<8x32xf32>
    %275 = arith.maximumf %273, %274 : vector<8x32xf32>
    %c216 = arith.constant 216 : index
    %c0_49 = arith.constant 0 : index
    %276 = vector.load %arg3[%c216, %c0_49] : memref<296x40xf32, #tpu.memory_space<vmem>>, vector<32x16xf32>
    %cst_50 = arith.constant dense<0.000000e+00> : vector<8x16xf32>
    %277 = tpu.matmul %275, %276, %cst_50 {dimension_numbers = #tpu.dot_dimension_numbers<[1], [0], [0], [1], [0, 0, 1, 1], [], []>} : vector<8x32xf32>, vector<32x16xf32>, vector<8x16xf32> -> vector<8x16xf32>
    %c248 = arith.constant 248 : index
    %c0_51 = arith.constant 0 : index
    %278 = vector.load %arg3[%c248, %c0_51] : memref<296x40xf32, #tpu.memory_space<vmem>>, vector<1x16xf32>
    %279 = vector.broadcast %278 : vector<1x16xf32> to vector<8x16xf32>
    %280 = arith.addf %277, %279 : vector<8x16xf32>
    %cst_52 = arith.constant 0.000000e+00 : f32
    %281 = vector.broadcast %cst_52 : f32 to vector<8x16xf32>
    %282 = arith.maximumf %280, %281 : vector<8x16xf32>
    %c256 = arith.constant 256 : index
    %c0_53 = arith.constant 0 : index
    %283 = vector.load %arg3[%c256, %c0_53] : memref<296x40xf32, #tpu.memory_space<vmem>>, vector<16x8xf32>
    %cst_54 = arith.constant dense<0.000000e+00> : vector<8x8xf32>
    %284 = tpu.matmul %282, %283, %cst_54 {dimension_numbers = #tpu.dot_dimension_numbers<[1], [0], [0], [1], [0, 0, 1, 1], [], []>} : vector<8x16xf32>, vector<16x8xf32>, vector<8x8xf32> -> vector<8x8xf32>
    %c272 = arith.constant 272 : index
    %c0_55 = arith.constant 0 : index
    %285 = vector.load %arg3[%c272, %c0_55] : memref<296x40xf32, #tpu.memory_space<vmem>>, vector<1x8xf32>
    %286 = vector.broadcast %285 : vector<1x8xf32> to vector<8x8xf32>
    %287 = arith.addf %284, %286 : vector<8x8xf32>
    %cst_56 = arith.constant 0.000000e+00 : f32
    %288 = vector.broadcast %cst_56 : f32 to vector<8x8xf32>
    %289 = arith.maximumf %287, %288 : vector<8x8xf32>
    %c280 = arith.constant 280 : index
    %c0_57 = arith.constant 0 : index
    %290 = vector.load %arg3[%c280, %c0_57] : memref<296x40xf32, #tpu.memory_space<vmem>>, vector<8x10xf32>
    %cst_58 = arith.constant dense<0.000000e+00> : vector<8x10xf32>
    %291 = tpu.matmul %289, %290, %cst_58 {dimension_numbers = #tpu.dot_dimension_numbers<[1], [0], [0], [1], [0, 0, 1, 1], [], []>} : vector<8x8xf32>, vector<8x10xf32>, vector<8x10xf32> -> vector<8x10xf32>
    %c288 = arith.constant 288 : index
    %c0_59 = arith.constant 0 : index
    %292 = vector.load %arg3[%c288, %c0_59] : memref<296x40xf32, #tpu.memory_space<vmem>>, vector<1x10xf32>
    %293 = vector.broadcast %292 : vector<1x10xf32> to vector<8x10xf32>
    %294 = arith.addf %291, %293 : vector<8x10xf32>
    %cst_60 = arith.constant dense<0xFF800000> : vector<8xf32>
    %295 = vector.multi_reduction <maximumf>, %294, %cst_60 [1] : vector<8x10xf32> to vector<8xf32>
    %296 = vector.shape_cast %295 : vector<8xf32> to vector<8x1xf32>
    %297 = vector.broadcast %296 : vector<8x1xf32> to vector<8x10xf32>
    %298 = arith.subf %294, %297 : vector<8x10xf32>
    %299 = math.exp %298 : vector<8x10xf32>
    %cst_61 = arith.constant dense<0.000000e+00> : vector<8xf32>
    %300 = vector.multi_reduction <add>, %299, %cst_61 [1] : vector<8x10xf32> to vector<8xf32>
    %301 = vector.shape_cast %300 : vector<8xf32> to vector<8x1xf32>
    %302 = math.log %301 : vector<8x1xf32>
    %303 = vector.broadcast %302 : vector<8x1xf32> to vector<8x10xf32>
    %304 = arith.subf %298, %303 : vector<8x10xf32>
    %c0_62 = arith.constant 0 : index
    %c0_63 = arith.constant 0 : index
    %305 = vector.load %arg4[%c0_62, %c0_63] : memref<8x10xf32, #tpu.memory_space<vmem>>, vector<8x10xf32>
    tpu.vector_store %arg4[%c0_62, %c0_63], %304 {strides = array<i32>} : memref<8x10xf32, #tpu.memory_space<vmem>>, vector<8x10xf32>,
    return
  }
  func.func @transform_0(%arg0: i32) -> (i32, i32, i32) {
    %c0_i32 = arith.constant 0 : i32
    %c0_i32_0 = arith.constant 0 : i32
    %c0_i32_1 = arith.constant 0 : i32
    return %arg0, %c0_i32, %c0_i32_0 : i32, i32, i32
  }
  func.func @transform_1(%arg0: i32) -> i32 {
    %c0_i32 = arith.constant 0 : i32
    %c0_i32_0 = arith.constant 0 : i32
    return %c0_i32 : i32
  }
  func.func @transform_2(%arg0: i32) -> (i32, i32) {
    %c0_i32 = arith.constant 0 : i32
    %c0_i32_0 = arith.constant 0 : i32
    %c0_i32_1 = arith.constant 0 : i32
    return %c0_i32, %c0_i32_0 : i32, i32
  }
  func.func @transform_3(%arg0: i32) -> (i32, i32) {
    %c0_i32 = arith.constant 0 : i32
    %c0_i32_0 = arith.constant 0 : i32
    return %arg0, %c0_i32 : i32, i32
  }
}

</mosaic_0001>

<bundles_post_ra>
// kernel: net_forward.1
= control target key start
LH: loop header
LB: loop body
LE: loop exit
PB: predicated region body
PF: predicated region fallthrough
CT: control target
= control target key end

     0   :  { %8 = vsyncpa [#allocation4], 0  ;;  %s17897_s0 = inlined_call_operand.vmem [shape: f32[8,16,16], index: 0, kind: input, shape index: {}]   ;;  %s17898_s1 = inlined_call_operand.vmem [shape: f32[34], index: 1, kind: input, shape index: {}]   ;;  %s17899_s2 = inlined_call_operand.vmem [shape: f32[296,40], index: 2, kind: input, shape index: {}]   ;;  %s17900_s3 = inlined_call_operand.vmem [shape: f32[8,10], index: 3, kind: output, shape index: {}]  }
   0x1   :  { %s17_s14 = sshll.u32 %s17898_s1, 4  ;;  %s18_s14 = int_to_ptr.vmem [resolvable:$true] %s17_s14 }
   0x2   :  { %s10616_s15 = scalar_lea.vmem %s18_s14, 16  ;;  %p10621_p1 = scmp.lt.s32.totalorder %s18_s14, %s18_s14 }
   0x3   :  { %p10617_p0 = scmp.ne.s32.totalorder %s18_s14, %s10616_s15  ;;  %p10622_p2 = scmp.lt.s32.totalorder %s10616_s15, %s10616_s15 }
   0x5   :  { %p10623_p3 = por %p10622_p2, %p10621_p1 }
   0x7   :  { %p10624_p4 = pnand %p10623_p3, %p10617_p0 }
   0x9   :  { %10627 = shalt.err (!%p10624_p4)
}
   0xa   :  { %s10630_s16 = smov [#allocation3]  }
   0xb   :  { %20 = dma.vmem_to_smem %s18_s14, 16, %s10630_s16, [#allocation4]  }
   0xc   :  { %10628 = dma.done.wait [#allocation4], 16  }
   0xd   :  { %10629 = vsyncadd [#allocation4], 4294967280 }
   0xe   :  { %26 = sfence }
   0xf   :  { %v55_v0 = vld [vmem:[%s17897_s0 + $0x10] sm:$0xff]  ;;  %v53_v1 = vld [vmem:[%s17897_s0] sm:$0xff]  ;;  %vm27_vm0 = vcmask 162816   ;;  %s10631_s1 = smov 2   ;;  %vm30_vm1 = vcmask 158720   ;;  %v56_v2 = vld [vmem:[%s17897_s0 + $0x18] sm:$0xff] }
  0x10   :  { %89 = vrot.lane.b32.xlu1 %v55_v0, %s10631_s1  ;;  %85 = vrot.lane.b32.xlu0 %v53_v1, %s10631_s1  ;;  %v54_v3 = vld [vmem:[%s17897_s0 + $0x8] sm:$0xff]  ;;  %v17901_v4 = vmov 0.0   ;;  %v57_v6 = vld [vmem:[%s17897_s0 + $0x20] sm:$0xff]  ;;  %vm133_vm2 = vcmask 146448   ;;  %s9911_s22 = sld [smem:[#allocation3 + $0x1]]  ;;  %s10634_s24 = smov 126  }
  0x11   :  { %32 = vst.msk [vmem:[#allocation2 + $0x18] sm:$0xff] %vm27_vm0, %v17901_v4  ;;  %33 = vst.msk [vmem:[#allocation2 + $0x20] sm:$0xff] %vm27_vm0, %v17901_v4  ;;  %v58_v5 = vld [vmem:[%s17897_s0 + $0x28] sm:$0xff]  ;;  %v60_v7 = vld [vmem:[%s17897_s0 + $0x38] sm:$0xff]  ;;  %s9913_s23 = sld [smem:[#allocation3 + $0x5]]  ;;  %vm324_vm3 = vcmask 1046528  }
  0x12   :  { %28 = vst.msk [vmem:[#allocation2] sm:$0xff] %vm27_vm0, %v17901_v4  ;;  %29 = vst.msk [vmem:[#allocation2 + $0x8] sm:$0xff] %vm27_vm0, %v17901_v4  ;;  %v59_v8 = vld [vmem:[%s17897_s0 + $0x30] sm:$0xff]  ;;  %v62_v9 = vld [vmem:[%s17897_s0 + $0x48] sm:$0xff]  ;;  %s9915_s25 = sld [smem:[#allocation3 + $0x9]]  ;;  %vm601_vm4 = vcmask 1045504  }
  0x13   :  { %35 = vst.msk [vmem:[#allocation2 + $0x30] sm:$0xff] %vm27_vm0, %v17901_v4  ;;  %36 = vst.msk [vmem:[#allocation2 + $0x38] sm:$0xff] %vm27_vm0, %v17901_v4  ;;  %v61_v10 = vld [vmem:[%s17897_s0 + $0x40] sm:$0xff]  ;;  %v64_v11 = vld [vmem:[%s17897_s0 + $0x58] sm:$0xff]  ;;  %s9917_s26 = sld [smem:[#allocation3 + $0xd]]  ;;  %vm878_vm5 = vcmask 1044480  }
  0x14   :  { %38 = vst.msk [vmem:[#allocation2 + $0x48] sm:$0xff] %vm27_vm0, %v17901_v4  ;;  %39 = vst.msk [vmem:[#allocation2 + $0x50] sm:$0xff] %vm27_vm0, %v17901_v4  ;;  %91 = vrot.lane.b32.xlu1 %v56_v2, %s10631_s1  ;;  %87 = vrot.lane.b32.xlu0 %v54_v3, %s10631_s1  ;;  %v63_v12 = vld [vmem:[%s17897_s0 + $0x50] sm:$0xff]  ;;  %v66_v13 = vld [vmem:[%s17897_s0 + $0x68] sm:$0xff]  ;;  %s9921_s27 = sld [smem:[#allocation3 + $0x6]]  ;;  %s10635_s4 = smov 125  }
  0x15   :  { %41 = vst.msk [vmem:[#allocation2 + $0x60] sm:$0xff] %vm27_vm0, %v17901_v4  ;;  %42 = vst.msk [vmem:[#allocation2 + $0x68] sm:$0xff] %vm27_vm0, %v17901_v4  ;;  %v65_v14 = vld [vmem:[%s17897_s0 + $0x60] sm:$0xff]  ;;  %v68_v15 = vld [vmem:[%s17897_s0 + $0x78] sm:$0xff]  ;;  %s9923_s28 = sld [smem:[#allocation3 + $0xa]]  ;;  %vm5591_vm6 = vcmask 130048  }
  0x16   :  { %44 = vst.msk [vmem:[#allocation2 + $0x78] sm:$0xff] %vm27_vm0, %v17901_v4  ;;  %45 = vst.msk [vmem:[#allocation2 + $0x80] sm:$0xff] %vm27_vm0, %v17901_v4  ;;  %v67_v16 = vld [vmem:[%s17897_s0 + $0x70] sm:$0xff]  ;;  %v10781_v24 = vstv %s9911_s22  ;;  %s10633_s0 = smov 127   ;;  %s9925_s29 = sld [smem:[#allocation3 + $0xe]]  ;;  %vm10637_vm7 = vmmov 0  }
  0x17   :  { %47 = vst.msk [vmem:[#allocation2 + $0x90] sm:$0xff] %vm27_vm0, %v17901_v4  ;;  %48 = vst.msk [vmem:[#allocation2 + $0x98] sm:$0xff] %vm27_vm0, %v17901_v4  ;;  %v10873_v3 = vstv %s9913_s23  ;;  %s9927_s30 = sld [smem:[#allocation3 + $0x3]]  ;;  %vm9253_vm8 = vcmask 1041409   ;;  %vm9256_vm9 = vcmask 1042434   ;;  %vm9259_vm10 = vcmask 1043459  }
  0x18   :  { %50 = vst.msk [vmem:[#allocation2 + $0xa8] sm:$0xff] %vm27_vm0, %v17901_v4  ;;  %51 = vst.msk [vmem:[#allocation2 + $0xb0] sm:$0xff] %vm27_vm0, %v17901_v4  ;;  %95 = vrot.lane.b32.xlu1 %v58_v5, %s10631_s1  ;;  %93 = vrot.lane.b32.xlu0 %v57_v6, %s10631_s1  ;;  %s9929_s5 = sld [smem:[#allocation3 + $0x7]]  ;;  %vm9262_vm11 = vcmask 1044484   ;;  %vm9265_vm12 = vcmask 1045509   ;;  %vm9268_vm13 = vcmask 1046534  }
  0x19   :  { %34 = vst.msk [vmem:[#allocation2 + $0x28] sm:$0xf] %vm30_vm1, %v17901_v4  ;;  %31 = vst.msk [vmem:[#allocation2 + $0x10] sm:$0xf] %vm30_vm1, %v17901_v4  ;;  %s9931_s6 = sld [smem:[#allocation3 + $0xb]]  ;;  %vm9271_vm14 = vcmask 1047559  }
  0x1a   :  { %37 = vst.msk [vmem:[#allocation2 + $0x40] sm:$0xf] %vm30_vm1, %v17901_v4  ;;  %40 = vst.msk [vmem:[#allocation2 + $0x58] sm:$0xf] %vm30_vm1, %v17901_v4  ;;  %s9933_s7 = sld [smem:[#allocation3 + $0xf]]  ;;  %vm9273_vm15 = vcmask 310272  }
  0x1b   :  { %43 = vst.msk [vmem:[#allocation2 + $0x70] sm:$0xf] %vm30_vm1, %v17901_v4  ;;  %46 = vst.msk [vmem:[#allocation2 + $0x88] sm:$0xf] %vm30_vm1, %v17901_v4  ;;  %s9905_s8 = sld [smem:[#allocation3 + $0x4]]  ;;  %vm9649_vm0 = vcmask 261120  }
  0x1c   :  { %49 = vst.msk [vmem:[#allocation2 + $0xa0] sm:$0xf] %vm30_vm1, %v17901_v4  ;;  %52 = vst.msk [vmem:[#allocation2 + $0xb8] sm:$0xf] %vm30_vm1, %v17901_v4  ;;  %99 = vrot.lane.b32.xlu1 %v60_v7, %s10631_s1  ;;  %97 = vrot.lane.b32.xlu0 %v59_v8, %s10631_s1  ;;  %s174_s9 = sld [smem:[#allocation3]]  ;;  %vm9811_vm1 = vcmask 64512  }
  0x1d   :  { %s9907_s10 = sld [smem:[#allocation3 + $0x8]] }
  0x1e   :  { %s12578_s11 = sld [smem:[#allocation3 + $0xc]] }
  0x1f   :  { %s13064_s12 = sld [smem:[#allocation3 + $0x20]] }
  0x20   :  { %103 = vrot.lane.b32.xlu1 %v62_v9, %s10631_s1  ;;  %101 = vrot.lane.b32.xlu0 %v61_v10, %s10631_s1  ;;  %v10887_v9 = vstv %s9915_s25  ;;  %s9912_s15 = sld [smem:[#allocation3 + $0x11]] }
  0x21   :  { %s9914_s16 = sld [smem:[#allocation3 + $0x15]] }
  0x22   :  { %s13798_s17 = sld [smem:[#allocation3 + $0x19]] }
  0x23   :  { %s9918_s22 = sld [smem:[#allocation3 + $0x1d]] }
  0x24   :  { %107 = vrot.lane.b32.xlu1 %v64_v11, %s10631_s1  ;;  %105 = vrot.lane.b32.xlu0 %v63_v12, %s10631_s1  ;;  %s9922_s23 = sld [smem:[#allocation3 + $0x16]] }
  0x25   :  { %s9924_s25 = sld [smem:[#allocation3 + $0x1a]] }
  0x26   :  { %s16254_s14 = sld [smem:[#allocation3 + $0x21]] }
  0x28   :  { %111 = vrot.lane.b32.xlu1 %v66_v13, %s10631_s1  ;;  %109 = vrot.lane.b32.xlu0 %v65_v14, %s10631_s1  ;;  %v10900_v13 = vstv %s9917_s26  ;;  %s9926_s26 = sld [smem:[#allocation3 + $0x1e]] }
  0x2c   :  { %115 = vrot.lane.b32.xlu1 %v68_v15, %s10631_s1  ;;  %113 = vrot.lane.b32.xlu0 %v67_v16, %s10631_s1  ;;  %s9919_s1 = sld [smem:[#allocation3 + $0x2]] }
  0x32   :  { %v10855_v60 = vstv %s9919_s1  ;;  %s9920_s1 = sld [smem:[#allocation3 + $0x12]] }
  0x82   :  { %v90_v17 = vpop.permute.xlu1 %89  ;;  %v86_v18 = vpop.permute.xlu0 %85 }
  0x83   :  { %136 = vst.msk [vmem:[#allocation2 + $0x1a] sm:$0xff] %vm133_vm2, %v90_v17  ;;  %134 = vst.msk [vmem:[#allocation2 + $0x2] sm:$0xff] %vm133_vm2, %v86_v18 }
  0x86   :  { %v92_v19 = vpop.permute.xlu1 %91  ;;  %v88_v20 = vpop.permute.xlu0 %87 }
  0x87   :  { %137 = vst.msk [vmem:[#allocation2 + $0x22] sm:$0xff] %vm133_vm2, %v92_v19  ;;  %135 = vst.msk [vmem:[#allocation2 + $0xa] sm:$0xff] %vm133_vm2, %v88_v20 }
  0x8a   :  { %v96_v21 = vpop.permute.xlu1 %95  ;;  %v94_v22 = vpop.permute.xlu0 %93  ;;  %v10803_v36 = vld [vmem:[#allocation2] sm:$0xff]  ;;  %v10805_v37 = vld [vmem:[#allocation2 + $0x18] sm:$0xff] }
  0x8b   :  { %139 = vst.msk [vmem:[#allocation2 + $0x3a] sm:$0xff] %vm133_vm2, %v96_v21  ;;  %138 = vst.msk [vmem:[#allocation2 + $0x32] sm:$0xff] %vm133_vm2, %v94_v22  ;;  %v1107_v40 = vmul.f32 %v10781_v24, %v10803_v36  ;;  %v1110_v42 = vmul.f32 %v10781_v24, %v10805_v37 }
  0x8e   :  { %v10779_v23 = vld [vmem:[#allocation2 + $0x8] sm:$0xff]  ;;  %v100_v25 = vpop.permute.xlu1 %99  ;;  %v98_v26 = vpop.permute.xlu0 %97  ;;  %v10783_v27 = vld [vmem:[#allocation2 + $0x10] sm:$0xf]  ;;  %v10789_v29 = vld [vmem:[#allocation2 + $0x20] sm:$0xff] }
  0x8f   :  { %v1108_v28 = vmul.f32 %v10781_v24, %v10779_v23  ;;  %141 = vst.msk [vmem:[#allocation2 + $0x52] sm:$0xff] %vm133_vm2, %v100_v25  ;;  %140 = vst.msk [vmem:[#allocation2 + $0x4a] sm:$0xff] %vm133_vm2, %v98_v26  ;;  %v1109_v30 = vmul.f32 %v10781_v24, %v10783_v27  ;;  %v10793_v31 = vld [vmem:[#allocation2 + $0x28] sm:$0xf]  ;;  %v1111_v35 = vmul.f32 %v10781_v24, %v10789_v29 }
  0x90   :  { %v1112_v32 = vmul.f32 %v10781_v24, %v10793_v31  ;;  %v2517_v62 = vmul.f32 %v10855_v60, %v10783_v27  ;;  %v2516_v2 = vmul.f32 %v10855_v60, %v10779_v23  ;;  %v2520_v5 = vmul.f32 %v10855_v60, %v10793_v31 }
  0x91   :  { %1157 = vrot.lane.b32.xlu0 %v1108_v28, %s10633_s0  ;;  %1159 = vrot.lane.b32.xlu1 %v1109_v30, %s10633_s0  ;;  %v10879_v6 = vmul.f32 %v10873_v3, %v10793_v31  ;;  %v10892_v11 = vmul.f32 %v10887_v9, %v10793_v31  ;;  %v2519_v12 = vmul.f32 %v10855_v60, %v10789_v29 }
  0x92   :  { %v104_v33 = vpop.permute.xlu1 %103  ;;  %v102_v34 = vpop.permute.xlu0 %101  ;;  %v10813_v41 = vld [vmem:[#allocation2 + $0x38] sm:$0xff]  ;;  %v10817_v43 = vld [vmem:[#allocation2 + $0x40] sm:$0xf]  ;;  %v10842_v55 = vld [vmem:[#allocation2 + $0x30] sm:$0xff]  ;;  %v10905_v15 = vmul.f32 %v10900_v13, %v10783_v27  ;;  %v1401_v18 = vmul.f32 %v10873_v3, %v10783_v27  ;;  %v10920_v20 = vmul.f32 %v10900_v13, %v10793_v31  ;;  %v1400_v21 = vmul.f32 %v10873_v3, %v10779_v23 }
  0x93   :  { %143 = vst.msk [vmem:[#allocation2 + $0x6a] sm:$0xff] %vm133_vm2, %v104_v33  ;;  %142 = vst.msk [vmem:[#allocation2 + $0x62] sm:$0xff] %vm133_vm2, %v102_v34  ;;  %v1114_v44 = vmul.f32 %v10781_v24, %v10813_v41  ;;  %v1115_v45 = vmul.f32 %v10781_v24, %v10817_v43  ;;  %v1113_v57 = vmul.f32 %v10781_v24, %v10842_v55  ;;  %v1455_v10 = vrot.slane %v10879_v6, 1 }
  0x94   :  { %v1827_v14 = vrot.slane %v10892_v11, 2  ;;  %v2194_v19 = vrot.slane %v10905_v15, 3  ;;  %v1450_v22 = vrot.slane %v1401_v18, 1  ;;  %v1773_v25 = vmul.f32 %v10887_v9, %v10783_v27 }
  0x95   :  { %1163 = vrot.lane.b32.xlu0 %v1111_v35, %s10633_s0  ;;  %1165 = vrot.lane.b32.xlu1 %v1112_v32, %s10633_s0  ;;  %v2199_v26 = vrot.slane %v10920_v20, 3  ;;  %v1448_v28 = vrot.slane %v1400_v21, 1  ;;  %v1772_v30 = vmul.f32 %v10887_v9, %v10779_v23  ;;  %v1407_v33 = vmul.f32 %v10873_v3, %v10817_v43 }
  0x96   :  { %v108_v38 = vpop.permute.xlu1 %107  ;;  %v106_v39 = vpop.permute.xlu0 %105  ;;  %v10827_v48 = vld [vmem:[#allocation2 + $0x58] sm:$0xf]  ;;  %v10829_v49 = vld [vmem:[#allocation2 + $0x50] sm:$0xff]  ;;  %v10850_v58 = vld [vmem:[#allocation2 + $0x48] sm:$0xff]  ;;  %v1822_v32 = vrot.slane %v1773_v25, 2  ;;  %v1399_v18 = vmul.f32 %v10873_v3, %v10803_v36 }
  0x97   :  { %145 = vst.msk [vmem:[#allocation2 + $0x82] sm:$0xff] %vm133_vm2, %v108_v38  ;;  %144 = vst.msk [vmem:[#allocation2 + $0x7a] sm:$0xff] %vm133_vm2, %v106_v39  ;;  %v1118_v50 = vmul.f32 %v10781_v24, %v10827_v48  ;;  %v1117_v51 = vmul.f32 %v10781_v24, %v10829_v49  ;;  %v1116_v61 = vmul.f32 %v10781_v24, %v10850_v58  ;;  %v1820_v35 = vrot.slane %v1772_v30, 2 }
  0x98   :  { %v1451_v34 = vsel %vm324_vm3, %v1448_v28, %v1450_v22  ;;  %v1402_v38 = vmul.f32 %v10873_v3, %v10805_v37  ;;  %v1403_v39 = vmul.f32 %v10873_v3, %v10789_v29 }
  0x99   :  { %1155 = vrot.lane.b32.xlu0 %v1107_v40, %s10633_s0  ;;  %1161 = vrot.lane.b32.xlu1 %v1110_v42, %s10633_s0  ;;  %v1460_v40 = vrot.slane %v1407_v33, 1  ;;  %v1410_v42 = vmul.f32 %v10873_v3, %v10827_v48  ;;  %v1447_v33 = vrot.slane %v1399_v18, 1 }
  0x9a   :  { %v112_v46 = vpop.permute.xlu1 %111  ;;  %v110_v47 = vpop.permute.xlu0 %109  ;;  %v10837_v54 = vld [vmem:[#allocation2 + $0x70] sm:$0xf]  ;;  %v10862_v63 = vld [vmem:[#allocation2 + $0x68] sm:$0xff]  ;;  %v10908_v16 = vld [vmem:[#allocation2 + $0x60] sm:$0xff] }
  0x9b   :  { %147 = vst.msk [vmem:[#allocation2 + $0x9a] sm:$0xff] %vm133_vm2, %v112_v46  ;;  %146 = vst.msk [vmem:[#allocation2 + $0x92] sm:$0xff] %vm133_vm2, %v110_v47  ;;  %v1121_v56 = vmul.f32 %v10781_v24, %v10837_v54  ;;  %v1120_v1 = vmul.f32 %v10781_v24, %v10862_v63  ;;  %v1119_v17 = vmul.f32 %v10781_v24, %v10908_v16  ;;  %v1453_v46 = vrot.slane %v1403_v39, 1 }
  0x9c   :  { %v10952_v47 = vmul.f32 %v10873_v3, %v10813_v41  ;;  %v1413_v20 = vmul.f32 %v10873_v3, %v10837_v54 }
  0x9d   :  { %1169 = vrot.lane.b32.xlu0 %v1114_v44, %s10633_s0  ;;  %1171 = vrot.lane.b32.xlu1 %v1115_v45, %s10633_s0  ;;  %v1823_v44 = vsel %vm601_vm4, %v1820_v35, %v1822_v32  ;;  %v1452_v45 = vrot.slane %v1402_v38, 1  ;;  %v1456_v21 = vsel %vm324_vm3, %v1453_v46, %v1455_v10  ;;  %v2143_v38 = vmul.f32 %v10900_v13, %v10803_v36 }
  0x9e   :  { %v116_v52 = vpop.permute.xlu1 %115  ;;  %v114_v53 = vpop.permute.xlu0 %113  ;;  %v10853_v59 = vld [vmem:[#allocation2 + $0x88] sm:$0xf]  ;;  %v10882_v7 = vld [vmem:[#allocation2 + $0x80] sm:$0xff] }
  0x9f   :  { %149 = vst.msk [vmem:[#allocation2 + $0xb2] sm:$0xff] %vm133_vm2, %v116_v52  ;;  %148 = vst.msk [vmem:[#allocation2 + $0xaa] sm:$0xff] %vm133_vm2, %v114_v53  ;;  %v1124_v0 = vmul.f32 %v10781_v24, %v10853_v59  ;;  %v1123_v8 = vmul.f32 %v10781_v24, %v10882_v7  ;;  %v1454_v52 = vsel %vm324_vm3, %v1452_v45, %v1453_v46  ;;  %v1458_v53 = vrot.slane %v10952_v47, 1 }
  0xa0   :  { %v2191_v45 = vrot.slane %v2143_v38, 3  ;;  %v1405_v46 = vmul.f32 %v10873_v3, %v10842_v55  ;;  %v1416_v38 = vmul.f32 %v10873_v3, %v10853_v59  ;;  %vm9885_vm2 = vcmask 80896  }
  0xa1   :  { %1177 = vrot.lane.b32.xlu0 %v1118_v50, %s10633_s0  ;;  %1175 = vrot.lane.b32.xlu1 %v1117_v51, %s10633_s0  ;;  %v1465_v50 = vrot.slane %v1410_v42, 1  ;;  %v1779_v51 = vmul.f32 %v10887_v9, %v10817_v43 }
  0xa5   :  { %1167 = vrot.lane.b32.xlu0 %v1113_v57, %s10633_s0  ;;  %1183 = vrot.lane.b32.xlu1 %v1121_v56, %s10633_s0  ;;  %v1832_v56 = vrot.slane %v1779_v51, 2  ;;  %v1771_v57 = vmul.f32 %v10887_v9, %v10803_v36  ;;  %v2146_v51 = vmul.f32 %v10900_v13, %v10805_v37 }
  0xa9   :  { %1173 = vrot.lane.b32.xlu0 %v1116_v61, %s10633_s0  ;;  %2567 = vrot.lane.b32.xlu1 %v2517_v62, %s10634_s24  ;;  %v1782_v61 = vmul.f32 %v10887_v9, %v10827_v48  ;;  %v1461_v62 = vsel %vm324_vm3, %v1458_v53, %v1460_v40 }
  0xad   :  { %1181 = vrot.lane.b32.xlu0 %v1120_v1, %s10633_s0  ;;  %1189 = vrot.lane.b32.xlu1 %v1124_v0, %s10633_s0  ;;  %v10969_v0 = vmul.f32 %v10873_v3, %v10829_v49  ;;  %v1819_v1 = vrot.slane %v1771_v57, 2  ;;  %v2196_v57 = vrot.slane %v2146_v51, 3 }
  0xb1   :  { %2565 = vrot.lane.b32.xlu0 %v2516_v2, %s10634_s24  ;;  %2573 = vrot.lane.b32.xlu1 %v2520_v5, %s10634_s24  ;;  %v1837_v2 = vrot.slane %v1782_v61, 2  ;;  %v1821_v5 = vsel %vm601_vm4, %v1819_v1, %v1820_v35  ;;  %v2144_v35 = vmul.f32 %v10900_v13, %v10779_v23  ;;  %v11032_v61 = vmul.f32 %v10873_v3, %v10862_v63 }
  0xb3   :  { %v1468_v1 = vrot.slane %v11032_v61, 1 }
  0xb5   :  { %1187 = vrot.lane.b32.xlu0 %v1123_v8, %s10633_s0  ;;  %1497 = vrot.lane.b32.xlu1 %v1455_v10, %s10633_s0  ;;  %v1463_v8 = vrot.slane %v10969_v0, 1 }
  0xb9   :  { %2571 = vrot.lane.b32.xlu0 %v2519_v12, %s10634_s24  ;;  %1869 = vrot.lane.b32.xlu1 %v1827_v14, %s10633_s0  ;;  %v1774_v12 = vmul.f32 %v10887_v9, %v10805_v37 }
  0xbb   :  { %v1824_v25 = vrot.slane %v1774_v12, 2 }
  0xbd   :  { %1179 = vrot.lane.b32.xlu0 %v1119_v17, %s10633_s0  ;;  %2235 = vrot.lane.b32.xlu1 %v2194_v19, %s10633_s0  ;;  %v1775_v17 = vmul.f32 %v10887_v9, %v10789_v29 }
  0xbf   :  { %v1825_v30 = vrot.slane %v1775_v17, 2  ;;  %v2151_v17 = vmul.f32 %v10900_v13, %v10817_v43 }
  0xc1   :  { %1491 = vrot.lane.b32.xlu0 %v1450_v22, %s10633_s0  ;;  %2241 = vrot.lane.b32.xlu1 %v2199_v26, %s10633_s0  ;;  %v1466_v22 = vsel %vm324_vm3, %v1463_v8, %v1465_v50  ;;  %v1826_v6 = vsel %vm601_vm4, %v1824_v25, %v1825_v30  ;;  %v1828_v39 = vsel %vm601_vm4, %v1825_v30, %v1827_v14 }
  0xc5   :  { %1863 = vrot.lane.b32.xlu0 %v1822_v32, %s10633_s0  ;;  %1489 = vrot.lane.b32.xlu1 %v1451_v34, %s10633_s0  ;;  %v1778_v32 = vmul.f32 %v10887_v9, %v10813_v41  ;;  %v1449_v34 = vsel %vm324_vm3, %v1447_v33, %v1448_v28  ;;  %v2147_v28 = vmul.f32 %v10900_v13, %v10789_v29 }
  0xc7   :  { %v1830_v10 = vrot.slane %v1778_v32, 2  ;;  %v2197_v14 = vrot.slane %v2147_v28, 3  ;;  %v11087_v28 = vld [vmem:[#allocation2 + $0x78] sm:$0xff] }
  0xc9   :  { %1503 = vrot.lane.b32.xlu0 %v1460_v40, %s10633_s0  ;;  %1861 = vrot.lane.b32.xlu1 %v1823_v44, %s10633_s0  ;;  %v2192_v40 = vrot.slane %v2144_v35, 3  ;;  %v1833_v42 = vsel %vm601_vm4, %v1830_v10, %v1832_v56  ;;  %v11007_v44 = vmul.f32 %v10887_v9, %v10829_v49  ;;  %v2200_v15 = vsel %vm878_vm5, %v2197_v14, %v2199_v26 }
  0xca   :  { %v2198_v0 = vsel %vm878_vm5, %v2196_v57, %v2197_v14  ;;  %v1780_v14 = vmul.f32 %v10887_v9, %v10850_v58 }
  0xcb   :  { %v2195_v11 = vsel %vm878_vm5, %v2192_v40, %v2194_v19  ;;  %v2193_v47 = vsel %vm878_vm5, %v2191_v45, %v2192_v40  ;;  %v1457_v19 = vrot.slane %v1405_v46, 1  ;;  %v1475_v45 = vrot.slane %v1416_v38, 1  ;;  %v11158_v38 = vld [vmem:[#allocation2 + $0xa0] sm:$0xf] }
  0xcc   :  { %v11097_v46 = vmul.f32 %v10900_v13, %v10829_v49 }
  0xcd   :  { %1509 = vrot.lane.b32.xlu0 %v1465_v50, %s10633_s0  ;;  %1493 = vrot.lane.b32.xlu1 %v1454_v52, %s10633_s0  ;;  %v1835_v50 = vrot.slane %v11007_v44, 2  ;;  %v1408_v52 = vmul.f32 %v10873_v3, %v10850_v58  ;;  %v1459_v26 = vsel %vm324_vm3, %v1457_v19, %v1458_v53  ;;  %v11049_v53 = vmul.f32 %v10900_v13, %v10813_v41 }
  0xcf   :  { %v2202_v25 = vrot.slane %v11049_v53, 3  ;;  %v2522_v53 = vmul.f32 %v10855_v60, %v10813_v41 }
  0xd1   :  { %1875 = vrot.lane.b32.xlu0 %v1832_v56, %s10633_s0  ;;  %1501 = vrot.lane.b32.xlu1 %v1461_v62, %s10633_s0  ;;  %v1838_v56 = vsel %vm601_vm4, %v1835_v50, %v1837_v2  ;;  %v1462_v62 = vrot.slane %v1408_v52, 1  ;;  %v1834_v52 = vrot.slane %v1780_v14, 2  ;;  %v1127_v14 = vmul.f32 %v10781_v24, %v11158_v38 }
  0xd3   :  { %v1464_v12 = vsel %vm324_vm3, %v1462_v62, %v1463_v8  ;;  %v11057_v8 = vstv %s9921_s27  ;;  %v1836_v62 = vsel %vm601_vm4, %v1834_v52, %v1835_v50  ;;  %v2518_v50 = vmul.f32 %v10855_v60, %v10805_v37  ;;  %s9928_s27 = sld [smem:[#allocation3 + $0x13]] }
  0xd4   :  { %v11063_v32 = vmul.f32 %v11057_v8, %v10779_v23  ;;  %v2809_v33 = vmul.f32 %v11057_v8, %v10783_v27 }
  0xd5   :  { %1881 = vrot.lane.b32.xlu0 %v1837_v2, %s10633_s0  ;;  %1859 = vrot.lane.b32.xlu1 %v1821_v5, %s10633_s0  ;;  %v1470_v2 = vrot.slane %v1413_v20, 1  ;;  %v1777_v5 = vmul.f32 %v10887_v9, %v10842_v55 }
  0xd6   :  { %v2856_v35 = vrot.slane %v11063_v32, 1 }
  0xd7   :  { %v1471_v18 = vsel %vm324_vm3, %v1468_v1, %v1470_v2 }
  0xd9   :  { %1495 = vrot.lane.b32.xlu0 %v1456_v21, %s10633_s0  ;;  %1507 = vrot.lane.b32.xlu1 %v1466_v22, %s10633_s0  ;;  %v1829_v21 = vrot.slane %v1777_v5, 2  ;;  %v2204_v22 = vrot.slane %v2151_v17, 3 }
  0xdb   :  { %v1831_v30 = vsel %vm601_vm4, %v1829_v21, %v1830_v10  ;;  %v2515_v10 = vmul.f32 %v10855_v60, %v10803_v36 }
  0xdd   :  { %1487 = vrot.lane.b32.xlu0 %v1449_v34, %s10633_s0  ;;  %1865 = vrot.lane.b32.xlu1 %v1826_v6, %s10633_s0  ;;  %v2205_v34 = vsel %vm878_vm5, %v2202_v25, %v2204_v22  ;;  %v2858_v6 = vrot.slane %v2809_v33, 1  ;;  %v1411_v33 = vmul.f32 %v10873_v3, %v10908_v16 }
  0xdf   :  { %v2859_v40 = vsel %vm324_vm3, %v2856_v35, %v2858_v6 }
  0xe1   :  { %1867 = vrot.lane.b32.xlu0 %v1828_v39, %s10633_s0  ;;  %1873 = vrot.lane.b32.xlu1 %v1833_v42, %s10633_s0  ;;  %v11080_v39 = vmul.f32 %v10873_v3, %v10882_v7  ;;  %v1122_v42 = vmul.f32 %v10781_v24, %v11087_v28 }
  0xe5   :  { %2233 = vrot.lane.b32.xlu0 %v2195_v11, %s10633_s0  ;;  %2231 = vrot.lane.b32.xlu1 %v2193_v47, %s10633_s0  ;;  %v17907_v11 = vrot.slane %v11080_v39, 1  ;;  %v2154_v47 = vmul.f32 %v10900_v13, %v10827_v48 }
  0xe7   :  { %v1476_v19 = vsel %vm324_vm3, %v17907_v11, %v1475_v45  ;;  %v2209_v57 = vrot.slane %v2154_v47, 3  ;;  %v1467_v47 = vrot.slane %v1411_v33, 1 }
  0xe9   :  { %2239 = vrot.lane.b32.xlu0 %v2200_v15, %s10633_s0  ;;  %1879 = vrot.lane.b32.xlu1 %v1838_v56, %s10633_s0  ;;  %v17906_v56 = vrot.slane %v11097_v46, 3 }
  0xeb   :  { %v2210_v5 = vsel %vm878_vm5, %v17906_v56, %v2209_v57 }
  0xed   :  { %1499 = vrot.lane.b32.xlu0 %v1459_v26, %s10633_s0  ;;  %2237 = vrot.lane.b32.xlu1 %v2198_v0, %s10633_s0  ;;  %v2812_v0 = vmul.f32 %v11057_v8, %v10793_v31 }
  0xef   :  { %v2863_v17 = vrot.slane %v2812_v0, 1 }
  0xf1   :  { %1505 = vrot.lane.b32.xlu0 %v1464_v12, %s10633_s0  ;;  %1513 = vrot.lane.b32.xlu1 %v1471_v18, %s10633_s0 }
  0xf5   :  { %1515 = vrot.lane.b32.xlu0 %v1470_v2, %s10633_s0  ;;  %1871 = vrot.lane.b32.xlu1 %v1831_v30, %s10633_s0  ;;  %v11123_v2 = vmul.f32 %v11057_v8, %v10789_v29 }
  0xf7   :  { %v17905_v18 = vrot.slane %v11123_v2, 1 }
  0xf9   :  { %2245 = vrot.lane.b32.xlu0 %v2205_v34, %s10633_s0  ;;  %2247 = vrot.lane.b32.xlu1 %v2204_v22, %s10633_s0  ;;  %v2864_v30 = vsel %vm324_vm3, %v17905_v18, %v2863_v17  ;;  %v11151_v34 = vmul.f32 %v10887_v9, %v10862_v63 }
  0xfd   :  { %2563 = vrot.lane.b32.xlu0 %v2515_v10, %s10634_s24  ;;  %2897 = vrot.lane.b32.xlu1 %v2859_v40, %s10634_s24  ;;  %v11155_v10 = vld [vmem:[#allocation2 + $0x98] sm:$0xff] }
 0x101   :  { %2899 = vrot.lane.b32.xlu0 %v2858_v6, %s10634_s24  ;;  %1185 = vrot.lane.b32.xlu1 %v1122_v42, %s10633_s0  ;;  %v1785_v6 = vmul.f32 %v10887_v9, %v10837_v54  ;;  %v1126_v42 = vmul.f32 %v10781_v24, %v11155_v10 }
 0x103   :  { %v11102_v51 = vpop.permute.xlu0 %1157  ;;  %v11104_v15 = vpop.permute.xlu1 %1159  ;;  %v1842_v52 = vrot.slane %v1785_v6, 2  ;;  %v11189_v6 = vstv %s9923_s28  ;;  %s9930_s28 = sld [smem:[#allocation3 + $0x17]] }
 0x105   :  { %1519 = vrot.lane.b32.xlu0 %v1476_v19, %s10633_s0  ;;  %1521 = vrot.lane.b32.xlu1 %v1475_v45, %s10633_s0  ;;  %v17903_v19 = vrot.slane %v11151_v34, 2 }
 0x107   :  { %v11112_v20 = vpop.permute.xlu0 %1163  ;;  %v11114_v26 = vpop.permute.xlu1 %1165 }
 0x109   :  { %1877 = vrot.lane.b32.xlu0 %v1836_v62, %s10633_s0  ;;  %2251 = vrot.lane.b32.xlu1 %v2210_v5, %s10633_s0  ;;  %v1469_v5 = vsel %vm324_vm3, %v1467_v47, %v1468_v1  ;;  %v11197_v1 = vmul.f32 %v11189_v6, %v10779_v23 }
 0x10b   :  { %v11130_v12 = vpop.permute.xlu0 %1155  ;;  %v11132_v44 = vpop.permute.xlu1 %1161 }
 0x10c   :  { %18070 = vst [vmem:[#allocation6_spill] sm:$0xff] %v11130_v12  ;;  %18071 = vst [vmem:[#allocation7_spill] sm:$0xff] %v11132_v44 }
 0x10d   :  { %2253 = vrot.lane.b32.xlu0 %v2209_v57, %s10633_s0  ;;  %2569 = vrot.lane.b32.xlu1 %v2518_v50, %s10634_s24  ;;  %v2149_v57 = vmul.f32 %v10900_v13, %v10842_v55  ;;  %v1843_v50 = vsel %vm601_vm4, %v17903_v19, %v1842_v52 }
 0x10f   :  { %v11139_v21 = vpop.permute.xlu0 %1169  ;;  %v11141_v22 = vpop.permute.xlu1 %1171 }
 0x110   :  { %18072 = vst [vmem:[#allocation8_spill] sm:$0xff] %v11139_v21  ;;  %18073 = vst [vmem:[#allocation9_spill] sm:$0xff] %v11141_v22  ;;  %v10521_v21 = vld [vmem:[#allocation2] sm:$0xff] }
 0x111   :  { %2903 = vrot.lane.b32.xlu0 %v2864_v30, %s10634_s24  ;;  %2905 = vrot.lane.b32.xlu1 %v2863_v17, %s10634_s24  ;;  %v2201_v17 = vrot.slane %v2149_v57, 3  ;;  %v17904_v57 = vrot.slane %v11197_v1, 2 }
 0x113   :  { %v11160_v40 = vpop.permute.xlu0 %1177  ;;  %v11164_v45 = vpop.permute.xlu1 %1175  ;;  %v2203_v61 = vsel %vm878_vm5, %v2201_v17, %v2202_v25 }
 0x114   :  { %18074 = vst [vmem:[#allocation10_spill] sm:$0xff] %v11160_v40  ;;  %18075 = vst [vmem:[#allocation11_spill] sm:$0xff] %v11164_v45  ;;  %v11318_v45 = vld [vmem:[#allocation2 + $0x90] sm:$0xff] }
 0x115   :  { %1193 = vrot.lane.b32.xlu0 %v1126_v42, %s10633_s0  ;;  %1195 = vrot.lane.b32.xlu1 %v1127_v14, %s10633_s0  ;;  %v3181_v42 = vmul.f32 %v11189_v6, %v10783_v27  ;;  %v2807_v14 = vmul.f32 %v11057_v8, %v10803_v36 }
 0x117   :  { %v11173_v62 = vpop.permute.xlu0 %1167  ;;  %v11175_v0 = vpop.permute.xlu1 %1183 }
 0x118   :  { %18076 = vst [vmem:[#allocation12_spill] sm:$0xff] %v11173_v62  ;;  %18077 = vst [vmem:[#allocation13_spill] sm:$0xff] %v11175_v0  ;;  %v18093_v62 = vrot.slane %v11123_v2, 1 }
 0x119   :  { %1511 = vrot.lane.b32.xlu0 %v1469_v5, %s10633_s0  ;;  %1885 = vrot.lane.b32.xlu1 %v1843_v50, %s10633_s0  ;;  %v3230_v5 = vrot.slane %v3181_v42, 2  ;;  %v2855_v50 = vrot.slane %v2807_v14, 1  ;;  %v1414_v42 = vmul.f32 %v10873_v3, %v11087_v28  ;;  %v11229_v14 = vld [vmem:[#allocation2 + $0xb0] sm:$0xff] }
 0x11a   :  { %v1129_v32 = vmul.f32 %v10781_v24, %v11229_v14 }
 0x11b   :  { %v11185_v30 = vpop.permute.xlu0 %1173  ;;  %v11187_v33 = vpop.permute.xlu1 %2567  ;;  %v2857_v4 = vsel %vm324_vm3, %v2855_v50, %v2856_v35  ;;  %v3231_v19 = vsel %vm601_vm4, %v17904_v57, %v3230_v5  ;;  %v1788_v35 = vmul.f32 %v10887_v9, %v10853_v59  ;;  %v1472_v50 = vrot.slane %v1414_v42, 1 }
 0x11c   :  { %18078 = vst [vmem:[#allocation14_spill] sm:$0xff] %v11185_v30  ;;  %18079 = vst [vmem:[#allocation15_spill] sm:$0xff] %v11187_v33  ;;  %v2526_v30 = vmul.f32 %v10855_v60, %v10827_v48 }
 0x11d   :  { %1887 = vrot.lane.b32.xlu0 %v1842_v52, %s10633_s0  ;;  %2243 = vrot.lane.b32.xlu1 %v2203_v61, %s10633_s0  ;;  %v2523_v52 = vmul.f32 %v10855_v60, %v10817_v43  ;;  %v1847_v11 = vrot.slane %v1788_v35, 2 }
 0x11f   :  { %v11204_v47 = vpop.permute.xlu0 %1181  ;;  %v11208_v25 = vpop.permute.xlu1 %1189 }
 0x120   :  { %18080 = vst [vmem:[#allocation16_spill] sm:$0xff] %v11204_v47  ;;  %18081 = vst [vmem:[#allocation17_spill] sm:$0xff] %v11208_v25 }
 0x121   :  { %2577 = vrot.lane.b32.xlu0 %v2522_v53, %s10634_s24  ;;  %2579 = vrot.lane.b32.xlu1 %v2523_v52, %s10634_s24 }
 0x123   :  { %v11215_v17 = vpop.permute.xlu0 %2565  ;;  %v11217_v61 = vpop.permute.xlu1 %2573 }
 0x124   :  { %18082 = vst [vmem:[#allocation18_spill] sm:$0xff] %v11215_v17  ;;  %18083 = vst [vmem:[#allocation19_spill] sm:$0xff] %v11217_v61 }
 0x125   :  { %2895 = vrot.lane.b32.xlu0 %v2857_v4, %s10634_s24  ;;  %3269 = vrot.lane.b32.xlu1 %v3231_v19, %s10634_s24  ;;  %v11241_v4 = vmul.f32 %v10887_v9, %v10882_v7  ;;  %v11244_v19 = vld [vmem:[#allocation2 + $0xb8] sm:$0xf] }
 0x126   :  { %v1130_v18 = vmul.f32 %v10781_v24, %v11244_v19 }
 0x127   :  { %v11231_v53 = vpop.permute.xlu0 %1187  ;;  %v11233_v52 = vpop.permute.xlu1 %1497  ;;  %v17908_v25 = vrot.slane %v11241_v4, 2 }
 0x128   :  { %18084 = vst [vmem:[#allocation20_spill] sm:$0xff] %v11231_v53  ;;  %v2152_v53 = vmul.f32 %v10900_v13, %v10850_v58 }
 0x129   :  { %3271 = vrot.lane.b32.xlu0 %v3230_v5, %s10634_s24  ;;  %1199 = vrot.lane.b32.xlu1 %v1129_v32, %s10633_s0  ;;  %v18087_v5 = vrot.slane %v11080_v39, 1  ;;  %v1848_v35 = vsel %vm601_vm4, %v17908_v25, %v1847_v11  ;;  %v2810_v39 = vmul.f32 %v11057_v8, %v10805_v37 }
 0x12a   :  { %v2206_v47 = vrot.slane %v2152_v53, 3  ;;  %v3184_v53 = vmul.f32 %v11189_v6, %v10793_v31 }
 0x12b   :  { %v11247_v57 = vpop.permute.xlu0 %2571  ;;  %v11251_v56 = vpop.permute.xlu1 %1869  ;;  %v1474_v42 = vsel %vm324_vm3, %v1472_v50, %v18087_v5  ;;  %v2525_v5 = vmul.f32 %v10855_v60, %v10829_v49 }
 0x12c   :  { %18085 = vst [vmem:[#allocation21_spill] sm:$0xff] %v11247_v57  ;;  %18086 = vst [vmem:[#allocation22_spill] sm:$0xff] %v11251_v56  ;;  %v1125_v57 = vmul.f32 %v10781_v24, %v11318_v45 }
 0x12d   :  { %1201 = vrot.lane.b32.xlu0 %v1130_v18, %s10633_s0  ;;  %1517 = vrot.lane.b32.xlu1 %v1474_v42, %s10633_s0  ;;  %v18091_v42 = vrot.slane %v11097_v46, 3 }
 0x12f   :  { %v11261_v32 = vpop.permute.xlu0 %1179  ;;  %v11263_v0 = vpop.permute.xlu1 %2235 }
 0x130   :  { %18088 = vst [vmem:[#allocation23_spill] sm:$0xff] %v11261_v32  ;;  %18089 = vst [vmem:[#allocation24_spill] sm:$0xff] %v11263_v0  ;;  %v2208_v32 = vsel %vm878_vm5, %v2206_v47, %v18091_v42  ;;  %v3235_v47 = vrot.slane %v3184_v53, 2  ;;  %v18107_v0 = vrot.slane %v11197_v1, 2 }
 0x131   :  { %1891 = vrot.lane.b32.xlu0 %v1848_v35, %s10633_s0  ;;  %1893 = vrot.lane.b32.xlu1 %v1847_v11, %s10633_s0  ;;  %v11285_v35 = vmul.f32 %v11189_v6, %v10789_v29  ;;  %v2860_v11 = vrot.slane %v2810_v39, 1  ;;  %v1419_v39 = vmul.f32 %v10873_v3, %v11158_v38 }
 0x133   :  { %v11272_v50 = vpop.permute.xlu0 %1491  ;;  %v11274_v18 = vpop.permute.xlu1 %2241  ;;  %v17909_v42 = vrot.slane %v11285_v35, 2  ;;  %v2862_v40 = vsel %vm324_vm3, %v2860_v11, %v18093_v62  ;;  %v1783_v11 = vmul.f32 %v10887_v9, %v10908_v16 }
 0x134   :  { %18090 = vst [vmem:[#allocation25_spill] sm:$0xff] %v11274_v18 }
 0x135   :  { %2249 = vrot.lane.b32.xlu0 %v2208_v32, %s10633_s0  ;;  %2583 = vrot.lane.b32.xlu1 %v2525_v5, %s10634_s24  ;;  %v11302_v32 = vmul.f32 %v10873_v3, %v11155_v10  ;;  %v3236_v2 = vsel %vm601_vm4, %v17909_v42, %v3235_v47 }
 0x137   :  { %v11289_v25 = vpop.permute.xlu0 %1863  ;;  %v11293_v46 = vpop.permute.xlu1 %1489  ;;  %v17910_v62 = vrot.slane %v11302_v32, 1 }
 0x138   :  { %18092 = vst [vmem:[#allocation26_spill] sm:$0xff] %v11289_v25 }
 0x139   :  { %2585 = vrot.lane.b32.xlu0 %v2526_v30, %s10634_s24  ;;  %2901 = vrot.lane.b32.xlu1 %v2862_v40, %s10634_s24  ;;  %v1480_v30 = vrot.slane %v1419_v39, 1  ;;  %v11331_v39 = vmul.f32 %v10900_v13, %v10862_v63 }
 0x13b   :  { %v11307_v5 = vpop.permute.xlu0 %1503  ;;  %v11309_v53 = vpop.permute.xlu1 %1861  ;;  %v1481_v42 = vsel %vm324_vm3, %v17910_v62, %v1480_v30  ;;  %v17911_v17 = vrot.slane %v11331_v39, 3  ;;  %v3179_v62 = vmul.f32 %v11189_v6, %v10803_v36 }
 0x13c   :  { %18094 = vst [vmem:[#allocation27_spill] sm:$0xff] %v11307_v5  ;;  %18095 = vst [vmem:[#allocation28_spill] sm:$0xff] %v11309_v53 }
 0x13d   :  { %3275 = vrot.lane.b32.xlu0 %v3236_v2, %s10634_s24  ;;  %3277 = vrot.lane.b32.xlu1 %v3235_v47, %s10634_s24  ;;  %v2157_v2 = vmul.f32 %v10900_v13, %v10837_v54  ;;  %v1839_v47 = vrot.slane %v1783_v11, 2 }
 0x13f   :  { %v11321_v40 = vpop.permute.xlu0 %1509  ;;  %v11325_v61 = vpop.permute.xlu1 %1493  ;;  %v2214_v5 = vrot.slane %v2157_v2, 3 }
 0x140   :  { %18096 = vst [vmem:[#allocation29_spill] sm:$0xff] %v11321_v40  ;;  %18097 = vst [vmem:[#allocation30_spill] sm:$0xff] %v11325_v61  ;;  %v18100_v61 = vrot.slane %v11151_v34, 2 }
 0x141   :  { %1191 = vrot.lane.b32.xlu0 %v1125_v57, %s10633_s0  ;;  %1525 = vrot.lane.b32.xlu1 %v1481_v42, %s10633_s0  ;;  %v11349_v57 = vmul.f32 %v11057_v8, %v10813_v41  ;;  %v2815_v42 = vmul.f32 %v11057_v8, %v10817_v43  ;;  %v2215_v34 = vsel %vm878_vm5, %v17911_v17, %v2214_v5 }
 0x142   :  { %v1841_v22 = vsel %vm601_vm4, %v1839_v47, %v18100_v61 }
 0x143   :  { %v11338_v40 = vpop.permute.xlu0 %1875  ;;  %v11340_v33 = vpop.permute.xlu1 %1501  ;;  %v17912_v61 = vrot.slane %v11349_v57, 1 }
 0x144   :  { %18098 = vst [vmem:[#allocation31_spill] sm:$0xff] %v11338_v40  ;;  %18099 = vst [vmem:[#allocation32_spill] sm:$0xff] %v11340_v33 }
 0x145   :  { %1527 = vrot.lane.b32.xlu0 %v1480_v30, %s10633_s0  ;;  %1883 = vrot.lane.b32.xlu1 %v1841_v22, %s10633_s0  ;;  %v2868_v30 = vrot.slane %v2815_v42, 1  ;;  %v2521_v22 = vmul.f32 %v10855_v60, %v10842_v55 }
 0x147   :  { %v11354_v11 = vpop.permute.xlu0 %1881  ;;  %v11356_v2 = vpop.permute.xlu1 %1859 }
 0x148   :  { %18101 = vst [vmem:[#allocation33_spill] sm:$0xff] %v11354_v11  ;;  %18102 = vst [vmem:[#allocation34_spill] sm:$0xff] %v11356_v2  ;;  %v11370_v11 = vstv %s9925_s29  ;;  %v3227_v2 = vrot.slane %v3179_v62, 2  ;;  %s9932_s29 = sld [smem:[#allocation3 + $0x1b]] }
 0x149   :  { %2257 = vrot.lane.b32.xlu0 %v2215_v34, %s10633_s0  ;;  %2259 = vrot.lane.b32.xlu1 %v2214_v5, %s10633_s0  ;;  %v3553_v34 = vmul.f32 %v11370_v11, %v10783_v27  ;;  %v11378_v42 = vmul.f32 %v11370_v11, %v10779_v23  ;;  %v2869_v5 = vsel %vm324_vm3, %v17912_v61, %v2868_v30 }
 0x14a   :  { %v3229_v23 = vsel %vm601_vm4, %v3227_v2, %v18107_v0  ;;  %v11396_v61 = vmul.f32 %v10873_v3, %v11229_v14 }
 0x14b   :  { %v11364_v47 = vpop.permute.xlu0 %1495  ;;  %v11372_v40 = vpop.permute.xlu1 %1507  ;;  %v17913_v27 = vrot.slane %v11378_v42, 3 }
 0x14c   :  { %18103 = vst [vmem:[#allocation35_spill] sm:$0xff] %v11364_v47  ;;  %18104 = vst [vmem:[#allocation36_spill] sm:$0xff] %v11372_v40  ;;  %v3602_v40 = vrot.slane %v3553_v34, 3  ;;  %v17914_v0 = vrot.slane %v11396_v61, 1 }
 0x14d   :  { %2575 = vrot.lane.b32.xlu0 %v2521_v22, %s10634_s24  ;;  %2909 = vrot.lane.b32.xlu1 %v2869_v5, %s10634_s24  ;;  %v1422_v22 = vmul.f32 %v10873_v3, %v11244_v19  ;;  %v11412_v5 = vld [vmem:[#allocation2 + $0xa8] sm:$0xff] }
 0x14e   :  { %v3603_v1 = vsel %vm878_vm5, %v17913_v27, %v3602_v40 }
 0x14f   :  { %v11385_v17 = vpop.permute.xlu0 %1487  ;;  %v11387_v33 = vpop.permute.xlu1 %1865  ;;  %v1485_v2 = vrot.slane %v1422_v22, 1  ;;  %v11425_v22 = vmul.f32 %v10900_v13, %v10882_v7 }
 0x150   :  { %18105 = vst [vmem:[#allocation37_spill] sm:$0xff] %v11385_v17  ;;  %18106 = vst [vmem:[#allocation38_spill] sm:$0xff] %v11387_v33 }
 0x151   :  { %2911 = vrot.lane.b32.xlu0 %v2868_v30, %s10634_s24  ;;  %3267 = vrot.lane.b32.xlu1 %v3229_v23, %s10634_s24  ;;  %v1786_v30 = vmul.f32 %v10887_v9, %v11087_v28  ;;  %v1486_v27 = vsel %vm324_vm3, %v17914_v0, %v1485_v2  ;;  %v17915_v18 = vrot.slane %v11425_v22, 3  ;;  %v11443_v0 = vmul.f32 %v11057_v8, %v10829_v49 }
 0x153   :  { %v11401_v62 = vpop.permute.xlu0 %1867  ;;  %v11403_v34 = vpop.permute.xlu1 %1873 }
 0x154   :  { %18108 = vst [vmem:[#allocation39_spill] sm:$0xff] %v11401_v62  ;;  %18109 = vst [vmem:[#allocation40_spill] sm:$0xff] %v11403_v34  ;;  %v1128_v34 = vmul.f32 %v10781_v24, %v11412_v5 }
 0x155   :  { %3641 = vrot.lane.b32.xlu0 %v3603_v1, %s10634_s24  ;;  %3643 = vrot.lane.b32.xlu1 %v3602_v40, %s10634_s24  ;;  %v2160_v1 = vmul.f32 %v10900_v13, %v10853_v59  ;;  %v1844_v40 = vrot.slane %v1786_v30, 2 }
 0x157   :  { %v11415_v23 = vpop.permute.xlu0 %2233  ;;  %v11419_v33 = vpop.permute.xlu1 %2231 }
 0x158   :  { %18110 = vst [vmem:[#allocation41_spill] sm:$0xff] %v11415_v23  ;;  %18111 = vst [vmem:[#allocation42_spill] sm:$0xff] %v11419_v33  ;;  %v2219_v33 = vrot.slane %v2160_v1, 3  ;;  %v18114_v23 = vrot.slane %v11241_v4, 2  ;;  %v3182_v1 = vmul.f32 %v11189_v6, %v10805_v37 }
 0x159   :  { %1197 = vrot.lane.b32.xlu0 %v1128_v34, %s10633_s0  ;;  %1531 = vrot.lane.b32.xlu1 %v1486_v27, %s10633_s0  ;;  %v2818_v27 = vmul.f32 %v11057_v8, %v10827_v48 }
 0x15a   :  { %v1846_v17 = vsel %vm601_vm4, %v1844_v40, %v18114_v23  ;;  %v2220_v4 = vsel %vm878_vm5, %v17915_v18, %v2219_v33  ;;  %v3556_v18 = vmul.f32 %v11370_v11, %v10793_v31 }
 0x15b   :  { %v11432_v62 = vpop.permute.xlu0 %2239  ;;  %v11434_v24 = vpop.permute.xlu1 %1879  ;;  %v2873_v23 = vrot.slane %v2818_v27, 1 }
 0x15c   :  { %18112 = vst [vmem:[#allocation43_spill] sm:$0xff] %v11432_v62  ;;  %18113 = vst [vmem:[#allocation44_spill] sm:$0xff] %v11434_v24  ;;  %v18121_v24 = vrot.slane %v11285_v35, 2 }
 0x15d   :  { %1533 = vrot.lane.b32.xlu0 %v1485_v2, %s10633_s0  ;;  %1889 = vrot.lane.b32.xlu1 %v1846_v17, %s10633_s0  ;;  %v17916_v2 = vrot.slane %v11443_v0, 1  ;;  %v2524_v17 = vmul.f32 %v10855_v60, %v10850_v58 }
 0x15f   :  { %v11448_v34 = vpop.permute.xlu0 %1499  ;;  %v11450_v30 = vpop.permute.xlu1 %2237  ;;  %v2874_v37 = vsel %vm324_vm3, %v17916_v2, %v2873_v23  ;;  %v2155_v2 = vmul.f32 %v10900_v13, %v10908_v16 }
 0x160   :  { %18115 = vst [vmem:[#allocation45_spill] sm:$0xff] %v11448_v34  ;;  %18116 = vst [vmem:[#allocation46_spill] sm:$0xff] %v11450_v30 }
 0x161   :  { %2263 = vrot.lane.b32.xlu0 %v2220_v4, %s10633_s0  ;;  %2265 = vrot.lane.b32.xlu1 %v2219_v33, %s10633_s0  ;;  %v11470_v4 = vmul.f32 %v11370_v11, %v10789_v29  ;;  %v3232_v33 = vrot.slane %v3182_v1, 2  ;;  %v1417_v29 = vmul.f32 %v10873_v3, %v11318_v45  ;;  %v11490_v1 = vmul.f32 %v10887_v9, %v11155_v10 }
 0x163   :  { %v11460_v40 = vpop.permute.xlu0 %1505  ;;  %v11464_v34 = vpop.permute.xlu1 %1513  ;;  %v17917_v31 = vrot.slane %v11470_v4, 3  ;;  %v3234_v30 = vsel %vm601_vm4, %v3232_v33, %v18121_v24  ;;  %v1477_v24 = vrot.slane %v1417_v29, 1 }
 0x164   :  { %18117 = vst [vmem:[#allocation47_spill] sm:$0xff] %v11460_v40  ;;  %18118 = vst [vmem:[#allocation48_spill] sm:$0xff] %v11464_v34  ;;  %v3607_v34 = vrot.slane %v3556_v18, 3 }
 0x165   :  { %2581 = vrot.lane.b32.xlu0 %v2524_v17, %s10634_s24  ;;  %2915 = vrot.lane.b32.xlu1 %v2874_v37, %s10634_s24  ;;  %v1791_v17 = vmul.f32 %v10887_v9, %v11158_v38 }
 0x166   :  { %v3608_v35 = vsel %vm878_vm5, %v17917_v31, %v3607_v34  ;;  %v2813_v31 = vmul.f32 %v11057_v8, %v10842_v55  ;;  %v2528_v55 = vmul.f32 %v10855_v60, %v10862_v63 }
 0x167   :  { %v11477_v27 = vpop.permute.xlu0 %1515  ;;  %v11479_v40 = vpop.permute.xlu1 %1871  ;;  %v1852_v33 = vrot.slane %v1791_v17, 2  ;;  %v2211_v17 = vrot.slane %v2155_v2, 3  ;;  %v3187_v2 = vmul.f32 %v11189_v6, %v10817_v43 }
 0x168   :  { %18119 = vst [vmem:[#allocation49_spill] sm:$0xff] %v11477_v27  ;;  %18120 = vst [vmem:[#allocation50_spill] sm:$0xff] %v11479_v40  ;;  %v18126_v40 = vrot.slane %v11302_v32, 1  ;;  %v18129_v32 = vrot.slane %v11331_v39, 3  ;;  %v2529_v39 = vmul.f32 %v10855_v60, %v10837_v54 }
 0x169   :  { %2917 = vrot.lane.b32.xlu0 %v2873_v23, %s10634_s24  ;;  %3273 = vrot.lane.b32.xlu1 %v3234_v30, %s10634_s24  ;;  %v17919_v23 = vrot.slane %v11490_v1, 2 }
 0x16b   :  { %v11495_v18 = vpop.permute.xlu0 %2245  ;;  %v11497_v37 = vpop.permute.xlu1 %2247  ;;  %v1853_v29 = vsel %vm601_vm4, %v17919_v23, %v1852_v33 }
 0x16c   :  { %18122 = vst [vmem:[#allocation51_spill] sm:$0xff] %v11495_v18  ;;  %18123 = vst [vmem:[#allocation52_spill] sm:$0xff] %v11497_v37  ;;  %v1479_v37 = vsel %vm324_vm3, %v1477_v24, %v18126_v40  ;;  %v2213_v40 = vsel %vm878_vm5, %v2211_v17, %v18129_v32  ;;  %v11531_v24 = vmul.f32 %v11189_v6, %v10813_v41  ;;  %v3240_v17 = vrot.slane %v3187_v2, 2 }
 0x16d   :  { %3647 = vrot.lane.b32.xlu0 %v3608_v35, %s10634_s24  ;;  %3649 = vrot.lane.b32.xlu1 %v3607_v34, %s10634_s24  ;;  %v3551_v32 = vmul.f32 %v11370_v11, %v10803_v36  ;;  %v1420_v36 = vmul.f32 %v10873_v3, %v11412_v5  ;;  %v11582_v3 = vld [vmem:[#allocation2 + $0x8] sm:$0xff] }
 0x16e   :  { %v17918_v41 = vrot.slane %v11531_v24, 2 }
 0x16f   :  { %v11507_v30 = vpop.permute.xlu0 %2563  ;;  %v11509_v27 = vpop.permute.xlu1 %2897 }
 0x170   :  { %18124 = vst [vmem:[#allocation53_spill] sm:$0xff] %v11507_v30  ;;  %18125 = vst [vmem:[#allocation54_spill] sm:$0xff] %v11509_v27 }
 0x171   :  { %1523 = vrot.lane.b32.xlu0 %v1479_v37, %s10633_s0  ;;  %1897 = vrot.lane.b32.xlu1 %v1853_v29, %s10633_s0 }
 0x173   :  { %v11519_v35 = vpop.permute.xlu0 %2899  ;;  %v11521_v34 = vpop.permute.xlu1 %1185 }
 0x174   :  { %18127 = vst [vmem:[#allocation55_spill] sm:$0xff] %v11519_v35  ;;  %18128 = vst [vmem:[#allocation56_spill] sm:$0xff] %v11521_v34  ;;  %v2158_v34 = vmul.f32 %v10900_v13, %v11087_v28 }
 0x175   :  { %1899 = vrot.lane.b32.xlu0 %v1852_v33, %s10633_s0  ;;  %2255 = vrot.lane.b32.xlu1 %v2213_v40, %s10633_s0  ;;  %v2865_v33 = vrot.slane %v2813_v31, 1  ;;  %v18134_v40 = vrot.slane %v11349_v57, 1  ;;  %v3241_v31 = vsel %vm601_vm4, %v17918_v41, %v3240_v17  ;;  %v18137_v57 = vrot.slane %v11378_v42, 3 }
 0x176   :  { %v1482_v41 = vrot.slane %v1420_v36, 1 }
 0x177   :  { %v11536_v37 = vpop.permute.xlu0 %1519  ;;  %v11540_v29 = vpop.permute.xlu1 %1521  ;;  %v2867_v54 = vsel %vm324_vm3, %v2865_v33, %v18134_v40  ;;  %v11573_v40 = vmul.f32 %v10887_v9, %v11229_v14 }
 0x178   :  { %18130 = vst [vmem:[#allocation57_spill] sm:$0xff] %v11536_v37  ;;  %18131 = vst [vmem:[#allocation58_spill] sm:$0xff] %v11540_v29 }
 0x179   :  { %2589 = vrot.lane.b32.xlu0 %v2528_v55, %s10634_s24  ;;  %2591 = vrot.lane.b32.xlu1 %v2529_v39, %s10634_s24  ;;  %v3599_v55 = vrot.slane %v3551_v32, 3  ;;  %v11578_v32 = vstv %s9927_s30  ;;  %s9934_s30 = sld [smem:[#allocation3 + $0x1f]] }
 0x17a   :  { %v3924_v42 = vmul.f32 %v11582_v3, %v11578_v32 }
 0x17b   :  { %v11547_v43 = vpop.permute.xlu0 %1877  ;;  %v11551_v63 = vpop.permute.xlu1 %2251  ;;  %v3601_v33 = vsel %vm878_vm5, %v3599_v55, %v18137_v57 }
 0x17c   :  { %18132 = vst [vmem:[#allocation59_spill] sm:$0xff] %v11547_v43  ;;  %18133 = vst [vmem:[#allocation60_spill] sm:$0xff] %v11551_v63  ;;  %v18142_v43 = vrot.slane %v11396_v61, 1  ;;  %v18145_v61 = vrot.slane %v11425_v22, 3  ;;  %v2532_v22 = vmul.f32 %v10855_v60, %v10853_v59  ;;  %v11692_v63 = vld [vmem:[#allocation2 + $0x70] sm:$0xf] }
 0x17d   :  { %2907 = vrot.lane.b32.xlu0 %v2867_v54, %s10634_s24  ;;  %3281 = vrot.lane.b32.xlu1 %v3241_v31, %s10634_s24  ;;  %v1794_v54 = vmul.f32 %v10887_v9, %v11244_v19 }
 0x17f   :  { %v11561_v2 = vpop.permute.xlu0 %2253  ;;  %v11563_v39 = vpop.permute.xlu1 %2569  ;;  %v1857_v23 = vrot.slane %v1794_v54, 2  ;;  %v2216_v54 = vrot.slane %v2158_v34, 3  ;;  %v3190_v34 = vmul.f32 %v11189_v6, %v10827_v48 }
 0x180   :  { %18135 = vst [vmem:[#allocation61_spill] sm:$0xff] %v11561_v2  ;;  %18136 = vst [vmem:[#allocation62_spill] sm:$0xff] %v11563_v39  ;;  %v1484_v2 = vsel %vm324_vm3, %v1482_v41, %v18142_v43  ;;  %v11621_v43 = vmul.f32 %v11189_v6, %v10829_v49 }
 0x181   :  { %3283 = vrot.lane.b32.xlu0 %v3240_v17, %s10634_s24  ;;  %3639 = vrot.lane.b32.xlu1 %v3601_v33, %s10634_s24  ;;  %v11588_v17 = vld [vmem:[#allocation2 + $0x10] sm:$0xf]  ;;  %v17920_v33 = vrot.slane %v11573_v40, 2  ;;  %v2218_v41 = vsel %vm878_vm5, %v2216_v54, %v18145_v61  ;;  %v3245_v54 = vrot.slane %v3190_v34, 2  ;;  %v11636_v61 = vld [vmem:[#allocation2 + $0x18] sm:$0xff] }
 0x182   :  { %v3925_v57 = vmul.f32 %v11588_v17, %v11578_v32  ;;  %v17921_v49 = vrot.slane %v11621_v43, 2  ;;  %v3554_v48 = vmul.f32 %v11636_v61, %v11370_v11 }
 0x183   :  { %v11580_v31 = vpop.permute.xlu0 %2903  ;;  %v11586_v55 = vpop.permute.xlu1 %2905  ;;  %v1858_v36 = vsel %vm601_vm4, %v17920_v33, %v1857_v23  ;;  %v18150_v33 = vrot.slane %v11443_v0, 1  ;;  %v18153_v0 = vrot.slane %v11470_v4, 3 }
 0x184   :  { %18138 = vst [vmem:[#allocation63_spill] sm:$0xff] %v11580_v31  ;;  %18139 = vst [vmem:[#allocation64_spill] sm:$0xff] %v11586_v55  ;;  %v3604_v34 = vrot.slane %v3554_v48, 3  ;;  %v2163_v48 = vmul.f32 %v10900_v13, %v11158_v38  ;;  %v11742_v31 = vstv %s9929_s5 }
 0x185   :  { %3973 = vrot.lane.b32.xlu0 %v3924_v42, %s10635_s4  ;;  %3975 = vrot.lane.b32.xlu1 %v3925_v57, %s10635_s4 }
 0x187   :  { %v11597_v29 = vpop.permute.xlu0 %1193  ;;  %v11599_v37 = vpop.permute.xlu1 %1195 }
 0x188   :  { %18140 = vst [vmem:[#allocation65_spill] sm:$0xff] %v11597_v29  ;;  %18141 = vst [vmem:[#allocation66_spill] sm:$0xff] %v11599_v37  ;;  %v2816_v37 = vmul.f32 %v11057_v8, %v10850_v58  ;;  %v2531_v58 = vmul.f32 %v10855_v60, %v10882_v7  ;;  %v1789_v29 = vmul.f32 %v10887_v9, %v11318_v45 }
 0x189   :  { %1529 = vrot.lane.b32.xlu0 %v1484_v2, %s10633_s0  ;;  %1903 = vrot.lane.b32.xlu1 %v1858_v36, %s10633_s0 }
 0x18b   :  { %v11609_v42 = vpop.permute.xlu0 %1511  ;;  %v11611_v57 = vpop.permute.xlu1 %1885 }
 0x18c   :  { %18143 = vst [vmem:[#allocation67_spill] sm:$0xff] %v11609_v42  ;;  %18144 = vst [vmem:[#allocation68_spill] sm:$0xff] %v11611_v57 }
 0x18d   :  { %1905 = vrot.lane.b32.xlu0 %v1857_v23, %s10633_s0  ;;  %2261 = vrot.lane.b32.xlu1 %v2218_v41, %s10633_s0  ;;  %v2870_v23 = vrot.slane %v2816_v37, 1  ;;  %v3246_v37 = vsel %vm601_vm4, %v17921_v49, %v3245_v54 }
 0x18f   :  { %v11626_v2 = vpop.permute.xlu0 %1887  ;;  %v11630_v36 = vpop.permute.xlu1 %2243  ;;  %v2872_v59 = vsel %vm324_vm3, %v2870_v23, %v18150_v33  ;;  %v3606_v33 = vsel %vm878_vm5, %v3604_v34, %v18153_v0  ;;  %v11665_v23 = vmul.f32 %v10900_v13, %v11155_v10  ;;  %v11678_v34 = vld [vmem:[#allocation2 + $0x28] sm:$0xf]  ;;  %v1849_v0 = vrot.slane %v1789_v29, 2 }
 0x190   :  { %18146 = vst [vmem:[#allocation69_spill] sm:$0xff] %v11626_v2  ;;  %18147 = vst [vmem:[#allocation70_spill] sm:$0xff] %v11630_v36  ;;  %v18158_v36 = vrot.slane %v11490_v1, 2  ;;  %v2821_v29 = vmul.f32 %v11692_v63, %v11057_v8 }
 0x191   :  { %2595 = vrot.lane.b32.xlu0 %v2531_v58, %s10634_s24  ;;  %2597 = vrot.lane.b32.xlu1 %v2532_v22, %s10634_s24  ;;  %v17922_v42 = vrot.slane %v11665_v23, 3 }
 0x193   :  { %v11641_v41 = vpop.permute.xlu0 %2577  ;;  %v11643_v7 = vpop.permute.xlu1 %2579 }
 0x194   :  { %18148 = vst [vmem:[#allocation71_spill] sm:$0xff] %v11641_v41  ;;  %18149 = vst [vmem:[#allocation72_spill] sm:$0xff] %v11643_v7  ;;  %v11696_v7 = vld [vmem:[#allocation2 + $0x68] sm:$0xff] }
 0x195   :  { %2913 = vrot.lane.b32.xlu0 %v2872_v59, %s10634_s24  ;;  %3287 = vrot.lane.b32.xlu1 %v3246_v37, %s10634_s24  ;;  %v11672_v37 = vld [vmem:[#allocation2 + $0x20] sm:$0xff] }
 0x196   :  { %v3927_v4 = vmul.f32 %v11672_v37, %v11578_v32 }
 0x197   :  { %v11653_v58 = vpop.permute.xlu0 %2895  ;;  %v11655_v22 = vpop.permute.xlu1 %3269 }
 0x198   :  { %18151 = vst [vmem:[#allocation73_spill] sm:$0xff] %v11653_v58  ;;  %18152 = vst [vmem:[#allocation74_spill] sm:$0xff] %v11655_v22 }
 0x199   :  { %3289 = vrot.lane.b32.xlu0 %v3245_v54, %s10634_s24  ;;  %3645 = vrot.lane.b32.xlu1 %v3606_v33, %s10634_s24  ;;  %v3928_v54 = vmul.f32 %v11678_v34, %v11578_v32  ;;  %v2224_v33 = vrot.slane %v2163_v48, 3  ;;  %v11700_v48 = vmul.f32 %v11696_v7, %v11057_v8 }
 0x19b   :  { %v11670_v59 = vpop.permute.xlu0 %3271  ;;  %v11676_v49 = vpop.permute.xlu1 %1199 }
 0x19c   :  { %18154 = vst [vmem:[#allocation75_spill] sm:$0xff] %v11670_v59  ;;  %18155 = vst [vmem:[#allocation76_spill] sm:$0xff] %v11676_v49  ;;  %v1851_v49 = vsel %vm601_vm4, %v1849_v0, %v18158_v36  ;;  %v2878_v0 = vrot.slane %v2821_v29, 1 }
 0x19d   :  { %3979 = vrot.lane.b32.xlu0 %v3927_v4, %s10635_s4  ;;  %3981 = vrot.lane.b32.xlu1 %v3928_v54, %s10635_s4  ;;  %v2225_v4 = vsel %vm878_vm5, %v17922_v42, %v2224_v33  ;;  %v2527_v54 = vmul.f32 %v10855_v60, %v10908_v16 }
 0x19f   :  { %v11685_v2 = vpop.permute.xlu0 %1201  ;;  %v11687_v57 = vpop.permute.xlu1 %1517 }
 0x1a0   :  { %18156 = vst [vmem:[#allocation77_spill] sm:$0xff] %v11685_v2  ;;  %18157 = vst [vmem:[#allocation78_spill] sm:$0xff] %v11687_v57  ;;  %v11714_v57 = vld [vmem:[#allocation2 + $0x30] sm:$0xff] }
 0x1a1   :  { %1895 = vrot.lane.b32.xlu0 %v1851_v49, %s10633_s0  ;;  %2269 = vrot.lane.b32.xlu1 %v2225_v4, %s10633_s0  ;;  %v3185_v42 = vmul.f32 %v11714_v57, %v11189_v6  ;;  %v11719_v49 = vld [vmem:[#allocation2 + $0x38] sm:$0xff] }
 0x1a2   :  { %v11723_v4 = vmul.f32 %v11719_v49, %v11370_v11 }
 0x1a3   :  { %v11707_v1 = vpop.permute.xlu0 %1891  ;;  %v11709_v36 = vpop.permute.xlu1 %1893  ;;  %v3237_v41 = vrot.slane %v3185_v42, 2  ;;  %v4217_v42 = vmul.f32 %v11588_v17, %v11742_v31 }
 0x1a4   :  { %18159 = vst [vmem:[#allocation79_spill] sm:$0xff] %v11707_v1  ;;  %18160 = vst [vmem:[#allocation80_spill] sm:$0xff] %v11709_v36  ;;  %v11725_v36 = vld [vmem:[#allocation2 + $0x40] sm:$0xf]  ;;  %v18163_v1 = vrot.slane %v11700_v48, 1  ;;  %v17923_v58 = vrot.slane %v11723_v4, 3 }
 0x1a5   :  { %2271 = vrot.lane.b32.xlu0 %v2224_v33, %s10633_s0  ;;  %v3559_v16 = vmul.f32 %v11725_v36, %v11370_v11  ;;  %2587 = vrot.lane.b32.xlu1 %v2527_v54, %s10634_s24 }
 0x1a6   :  { %v2879_v33 = vsel %vm324_vm3, %v18163_v1, %v2878_v0  ;;  %v11753_v1 = vmul.f32 %v11582_v3, %v11742_v31 }
 0x1a7   :  { %v11730_v29 = vpop.permute.xlu0 %2249  ;;  %v11732_v2 = vpop.permute.xlu1 %2583  ;;  %v3612_v39 = vrot.slane %v3559_v16, 3 }
 0x1a8   :  { %18161 = vst [vmem:[#allocation81_spill] sm:$0xff] %v11730_v29  ;;  %18162 = vst [vmem:[#allocation82_spill] sm:$0xff] %v11732_v2  ;;  %v18166_v29 = vrot.slane %v11531_v24, 2 }
 0x1a9   :  { %2921 = vrot.lane.b32.xlu0 %v2879_v33, %s10634_s24  ;;  %2923 = vrot.lane.b32.xlu1 %v2878_v0, %s10634_s24  ;;  %v3613_v0 = vsel %vm878_vm5, %v17923_v58, %v3612_v39  ;;  %v4266_v33 = vrot.slane %v4217_v42, 1 }
 0x1aa   :  { %v3239_v2 = vsel %vm601_vm4, %v3237_v41, %v18166_v29  ;;  %v11764_v41 = vld [vmem:[#allocation2] sm:$0xff] }
 0x1ab   :  { %v11740_v55 = vpop.permute.xlu0 %2585  ;;  %v11744_v54 = vpop.permute.xlu1 %2901  ;;  %v3923_v29 = vmul.f32 %v11764_v41, %v11578_v32 }
 0x1ac   :  { %18164 = vst [vmem:[#allocation83_spill] sm:$0xff] %v11740_v55  ;;  %18165 = vst [vmem:[#allocation84_spill] sm:$0xff] %v11744_v54  ;;  %v17924_v55 = vrot.slane %v11753_v1, 1  ;;  %v1792_v54 = vmul.f32 %v10887_v9, %v11412_v5 }
 0x1ad   :  { %3279 = vrot.lane.b32.xlu0 %v3239_v2, %s10634_s24  ;;  %3653 = vrot.lane.b32.xlu1 %v3613_v0, %s10634_s24  ;;  %v11774_v2 = vmul.f32 %v10900_v13, %v11229_v14  ;;  %v2166_v0 = vmul.f32 %v10900_v13, %v11244_v19 }
 0x1ae   :  { %v4267_v42 = vsel %vm324_vm3, %v17924_v55, %v4266_v33  ;;  %v1854_v9 = vrot.slane %v1792_v54, 2  ;;  %v11800_v55 = vld [vmem:[#allocation2 + $0x80] sm:$0xff] }
 0x1af   :  { %v11760_v16 = vpop.permute.xlu0 %3275  ;;  %v11762_v24 = vpop.permute.xlu1 %3277 }
 0x1b0   :  { %18167 = vst [vmem:[#allocation85_spill] sm:$0xff] %v11760_v16  ;;  %18168 = vst [vmem:[#allocation86_spill] sm:$0xff] %v11762_v24  ;;  %v2229_v16 = vrot.slane %v2166_v0, 3  ;;  %v11804_v0 = vmul.f32 %v11800_v55, %v11057_v8 }
 0x1b1   :  { %3655 = vrot.lane.b32.xlu0 %v3612_v39, %s10634_s24  ;;  %3971 = vrot.lane.b32.xlu1 %v3923_v29, %s10635_s4  ;;  %v17925_v39 = vrot.slane %v11774_v2, 3  ;;  %v18173_v29 = vrot.slane %v11573_v40, 2 }
 0x1b3   :  { %v11779_v58 = vpop.permute.xlu0 %1191  ;;  %v11781_v24 = vpop.permute.xlu1 %1525 }
 0x1b4   :  { %18169 = vst [vmem:[#allocation87_spill] sm:$0xff] %v11779_v58  ;;  %18170 = vst [vmem:[#allocation88_spill] sm:$0xff] %v11781_v24  ;;  %v1856_v58 = vsel %vm601_vm4, %v1854_v9, %v18173_v29  ;;  %v11796_v24 = vld [vmem:[#allocation2 + $0x88] sm:$0xf]  ;;  %v2530_v9 = vmul.f32 %v10855_v60, %v11087_v28 }
 0x1b5   :  { %4305 = vrot.lane.b32.xlu0 %v4267_v42, %s10635_s4  ;;  %4307 = vrot.lane.b32.xlu1 %v4266_v33, %s10635_s4  ;;  %v2824_v54 = vmul.f32 %v11796_v24, %v11057_v8  ;;  %v2230_v33 = vsel %vm878_vm5, %v17925_v39, %v2229_v16  ;;  %v11829_v39 = vld [vmem:[#allocation2 + $0x58] sm:$0xf] }
 0x1b7   :  { %v11789_v30 = vpop.permute.xlu0 %1527  ;;  %v11791_v18 = vpop.permute.xlu1 %1883  ;;  %v2883_v29 = vrot.slane %v2824_v54, 1  ;;  %v3562_v54 = vmul.f32 %v11829_v39, %v11370_v11 }
 0x1b8   :  { %18171 = vst [vmem:[#allocation89_spill] sm:$0xff] %v11789_v30  ;;  %18172 = vst [vmem:[#allocation90_spill] sm:$0xff] %v11791_v18  ;;  %v11818_v18 = vld [vmem:[#allocation2 + $0x48] sm:$0xff] }
 0x1b9   :  { %1901 = vrot.lane.b32.xlu0 %v1856_v58, %s10633_s0  ;;  %2275 = vrot.lane.b32.xlu1 %v2230_v33, %s10633_s0  ;;  %v3188_v59 = vmul.f32 %v11818_v18, %v11189_v6  ;;  %v11823_v58 = vld [vmem:[#allocation2 + $0x50] sm:$0xff]  ;;  %v3617_v27 = vrot.slane %v3562_v54, 3 }
 0x1ba   :  { %v11827_v33 = vmul.f32 %v11823_v58, %v11370_v11 }
 0x1bb   :  { %v11811_v40 = vpop.permute.xlu0 %2257  ;;  %v11813_v42 = vpop.permute.xlu1 %2259  ;;  %v3242_v22 = vrot.slane %v3188_v59, 2  ;;  %v11855_v59 = vmul.f32 %v11672_v37, %v11742_v31 }
 0x1bc   :  { %18174 = vst [vmem:[#allocation91_spill] sm:$0xff] %v11811_v40  ;;  %18175 = vst [vmem:[#allocation92_spill] sm:$0xff] %v11813_v42  ;;  %v18178_v40 = vrot.slane %v11804_v0, 1  ;;  %v17926_v35 = vrot.slane %v11827_v33, 3 }
 0x1bd   :  { %2277 = vrot.lane.b32.xlu0 %v2229_v16, %s10633_s0  ;;  %2593 = vrot.lane.b32.xlu1 %v2530_v9, %s10634_s24  ;;  %v18181_v9 = vrot.slane %v11621_v43, 2 }
 0x1be   :  { %v2884_v16 = vsel %vm324_vm3, %v18178_v40, %v2883_v29  ;;  %v3618_v40 = vsel %vm878_vm5, %v17926_v35, %v3617_v27 }
 0x1bf   :  { %v11834_v30 = vpop.permute.xlu0 %2575  ;;  %v11836_v42 = vpop.permute.xlu1 %2909 }
 0x1c0   :  { %18176 = vst [vmem:[#allocation93_spill] sm:$0xff] %v11834_v30  ;;  %18177 = vst [vmem:[#allocation94_spill] sm:$0xff] %v11836_v42  ;;  %v3244_v30 = vsel %vm601_vm4, %v3242_v22, %v18181_v9  ;;  %v4220_v42 = vmul.f32 %v11678_v34, %v11742_v31  ;;  %v3926_v22 = vmul.f32 %v11636_v61, %v11578_v32 }
 0x1c1   :  { %2927 = vrot.lane.b32.xlu0 %v2884_v16, %s10634_s24  ;;  %2929 = vrot.lane.b32.xlu1 %v2883_v29, %s10634_s24  ;;  %v17927_v16 = vrot.slane %v11855_v59, 1  ;;  %v2161_v9 = vmul.f32 %v10900_v13, %v11318_v45 }
 0x1c2   :  { %v4271_v54 = vrot.slane %v4220_v42, 1  ;;  %v11881_v42 = vld [vmem:[#allocation2 + $0x60] sm:$0xff] }
 0x1c3   :  { %v11844_v62 = vpop.permute.xlu0 %2911  ;;  %v11846_v47 = vpop.permute.xlu1 %3267 }
 0x1c4   :  { %18179 = vst [vmem:[#allocation95_spill] sm:$0xff] %v11844_v62  ;;  %18180 = vst [vmem:[#allocation96_spill] sm:$0xff] %v11846_v47  ;;  %v4272_v35 = vsel %vm324_vm3, %v17927_v16, %v4271_v54  ;;  %v2221_v62 = vrot.slane %v2161_v9, 3  ;;  %v2819_v47 = vmul.f32 %v11881_v42, %v11057_v8  ;;  %v11899_v16 = vmul.f32 %v11696_v7, %v11189_v6 }
 0x1c5   :  { %3285 = vrot.lane.b32.xlu0 %v3244_v30, %s10634_s24  ;;  %3659 = vrot.lane.b32.xlu1 %v3618_v40, %s10634_s24 }
 0x1c7   :  { %v11862_v29 = vpop.permute.xlu0 %3641  ;;  %v11864_v43 = vpop.permute.xlu1 %3643 }
 0x1c8   :  { %18182 = vst [vmem:[#allocation97_spill] sm:$0xff] %v11862_v29  ;;  %18183 = vst [vmem:[#allocation98_spill] sm:$0xff] %v11864_v43  ;;  %v3557_v43 = vmul.f32 %v11714_v57, %v11370_v11  ;;  %v18191_v29 = vrot.slane %v11700_v48, 1 }
 0x1c9   :  { %3661 = vrot.lane.b32.xlu0 %v3617_v27, %s10634_s24  ;;  %3977 = vrot.lane.b32.xlu1 %v3926_v22, %s10635_s4 }
 0x1cb   :  { %v11873_v30 = vpop.permute.xlu0 %1197  ;;  %v11875_v40 = vpop.permute.xlu1 %1531 }
 0x1cc   :  { %18184 = vst [vmem:[#allocation99_spill] sm:$0xff] %v11873_v30  ;;  %18185 = vst [vmem:[#allocation100_spill] sm:$0xff] %v11875_v40  ;;  %v2534_v30 = vmul.f32 %v10855_v60, %v11155_v10  ;;  %v18188_v40 = vrot.slane %v11665_v23, 3 }
 0x1cd   :  { %4311 = vrot.lane.b32.xlu0 %v4272_v35, %s10635_s4  ;;  %4313 = vrot.lane.b32.xlu1 %v4271_v54, %s10635_s4  ;;  %v3193_v35 = vmul.f32 %v11692_v63, %v11189_v6  ;;  %v2875_v54 = vrot.slane %v2819_v47, 1 }
 0x1ce   :  { %v2223_v9 = vsel %vm878_vm5, %v2221_v62, %v18188_v40  ;;  %v17928_v40 = vrot.slane %v11899_v16, 2 }
 0x1cf   :  { %v11886_v27 = vpop.permute.xlu0 %1533  ;;  %v11888_v22 = vpop.permute.xlu1 %1889  ;;  %v3250_v62 = vrot.slane %v3193_v35, 2  ;;  %v2877_v47 = vsel %vm324_vm3, %v2875_v54, %v18191_v29  ;;  %v4215_v29 = vmul.f32 %v11764_v41, %v11742_v31 }
 0x1d0   :  { %18186 = vst [vmem:[#allocation101_spill] sm:$0xff] %v11886_v27  ;;  %18187 = vst [vmem:[#allocation102_spill] sm:$0xff] %v11888_v22  ;;  %v2535_v22 = vmul.f32 %v10855_v60, %v11158_v38 }
 0x1d1   :  { %2267 = vrot.lane.b32.xlu0 %v2223_v9, %s10633_s0  ;;  %2601 = vrot.lane.b32.xlu1 %v2534_v30, %s10634_s24  ;;  %v3251_v35 = vsel %vm601_vm4, %v17928_v40, %v3250_v62 }
 0x1d3   :  { %v11903_v27 = vpop.permute.xlu0 %2263  ;;  %v11907_v23 = vpop.permute.xlu1 %2265 }
 0x1d4   :  { %18189 = vst [vmem:[#allocation103_spill] sm:$0xff] %v11903_v27  ;;  %18190 = vst [vmem:[#allocation104_spill] sm:$0xff] %v11907_v23  ;;  %v3609_v23 = vrot.slane %v3557_v43, 3  ;;  %v18196_v27 = vrot.slane %v11723_v4, 3 }
 0x1d5   :  { %2603 = vrot.lane.b32.xlu0 %v2535_v22, %s10634_s24  ;;  %2919 = vrot.lane.b32.xlu1 %v2877_v47, %s10634_s24  ;;  %v11930_v22 = vstv %s9931_s6  ;;  %v3930_v47 = vmul.f32 %v11719_v49, %v11578_v32 }
 0x1d6   :  { %v3611_v43 = vsel %vm878_vm5, %v3609_v23, %v18196_v27 }
 0x1d7   :  { %v11917_v30 = vpop.permute.xlu0 %2581  ;;  %v11919_v9 = vpop.permute.xlu1 %2915 }
 0x1d8   :  { %18192 = vst [vmem:[#allocation105_spill] sm:$0xff] %v11917_v30  ;;  %18193 = vst [vmem:[#allocation106_spill] sm:$0xff] %v11919_v9  ;;  %v4263_v30 = vrot.slane %v4215_v29, 1  ;;  %v2164_v9 = vmul.f32 %v10900_v13, %v11412_v5  ;;  %v2822_v13 = vmul.f32 %v11057_v8, %v11087_v28 }
 0x1d9   :  { %3293 = vrot.lane.b32.xlu0 %v3251_v35, %s10634_s24  ;;  %3295 = vrot.lane.b32.xlu1 %v3250_v62, %s10634_s24  ;;  %v4589_v35 = vmul.f32 %v11588_v17, %v11930_v22  ;;  %v11943_v62 = vmul.f32 %v11582_v3, %v11930_v22 }
 0x1da   :  { %v2880_v28 = vrot.slane %v2822_v13, 1 }
 0x1db   :  { %v11926_v48 = vpop.permute.xlu0 %2917  ;;  %v11932_v54 = vpop.permute.xlu1 %3273  ;;  %v4638_v27 = vrot.slane %v4589_v35, 2  ;;  %v17929_v23 = vrot.slane %v11943_v62, 2 }
 0x1dc   :  { %18194 = vst [vmem:[#allocation107_spill] sm:$0xff] %v11926_v48  ;;  %18195 = vst [vmem:[#allocation108_spill] sm:$0xff] %v11932_v54  ;;  %v3931_v48 = vmul.f32 %v11725_v36, %v11578_v32  ;;  %v18199_v54 = vrot.slane %v11753_v1, 1 }
 0x1dd   :  { %3651 = vrot.lane.b32.xlu0 %v3611_v43, %s10634_s24  ;;  %3985 = vrot.lane.b32.xlu1 %v3930_v47, %s10635_s4  ;;  %v4639_v35 = vsel %vm601_vm4, %v17929_v23, %v4638_v27  ;;  %v3560_v23 = vmul.f32 %v11818_v18, %v11370_v11 }
 0x1de   :  { %v4265_v43 = vsel %vm324_vm3, %v4263_v30, %v18199_v54  ;;  %v18204_v54 = vrot.slane %v11774_v2, 3 }
 0x1df   :  { %v11947_v40 = vpop.permute.xlu0 %3647  ;;  %v11951_v4 = vpop.permute.xlu1 %3649 }
 0x1e0   :  { %18197 = vst [vmem:[#allocation109_spill] sm:$0xff] %v11947_v40  ;;  %18198 = vst [vmem:[#allocation110_spill] sm:$0xff] %v11951_v4  ;;  %v2226_v4 = vrot.slane %v2164_v9, 3  ;;  %v3196_v9 = vmul.f32 %v11796_v24, %v11189_v6 }
 0x1e1   :  { %3987 = vrot.lane.b32.xlu0 %v3931_v48, %s10635_s4  ;;  %4303 = vrot.lane.b32.xlu1 %v4265_v43, %s10635_s4  ;;  %v2537_v48 = vmul.f32 %v10855_v60, %v11229_v14  ;;  %v2538_v14 = vmul.f32 %v10855_v60, %v11244_v19 }
 0x1e2   :  { %v2228_v43 = vsel %vm878_vm5, %v2226_v4, %v18204_v54  ;;  %v3255_v4 = vrot.slane %v3196_v9, 2 }
 0x1e3   :  { %v11961_v29 = vpop.permute.xlu0 %1523  ;;  %v11963_v47 = vpop.permute.xlu1 %1897 }
 0x1e4   :  { %18200 = vst [vmem:[#allocation111_spill] sm:$0xff] %v11961_v29  ;;  %18201 = vst [vmem:[#allocation112_spill] sm:$0xff] %v11963_v47  ;;  %v18207_v29 = vrot.slane %v11804_v0, 1  ;;  %v4218_v0 = vmul.f32 %v11636_v61, %v11742_v31 }
 0x1e5   :  { %4677 = vrot.lane.b32.xlu0 %v4639_v35, %s10635_s4  ;;  %4679 = vrot.lane.b32.xlu1 %v4638_v27, %s10635_s4  ;;  %v11985_v35 = vmul.f32 %v11800_v55, %v11189_v6 }
 0x1e7   :  { %v11972_v1 = vpop.permute.xlu0 %1899  ;;  %v11974_v30 = vpop.permute.xlu1 %2255  ;;  %v17930_v54 = vrot.slane %v11985_v35, 2 }
 0x1e8   :  { %18202 = vst [vmem:[#allocation113_spill] sm:$0xff] %v11972_v1  ;;  %18203 = vst [vmem:[#allocation114_spill] sm:$0xff] %v11974_v30  ;;  %v3614_v1 = vrot.slane %v3560_v23, 3  ;;  %v4592_v23 = vmul.f32 %v11678_v34, %v11930_v22  ;;  %v3934_v30 = vmul.f32 %v11829_v39, %v11578_v32 }
 0x1e9   :  { %2273 = vrot.lane.b32.xlu0 %v2228_v43, %s10633_s0  ;;  %2607 = vrot.lane.b32.xlu1 %v2537_v48, %s10634_s24  ;;  %v2882_v43 = vsel %vm324_vm3, %v2880_v28, %v18207_v29  ;;  %v3256_v9 = vsel %vm601_vm4, %v17930_v54, %v3255_v4 }
 0x1eb   :  { %v11989_v27 = vpop.permute.xlu0 %2589  ;;  %v11993_v2 = vpop.permute.xlu1 %2591 }
 0x1ec   :  { %18205 = vst [vmem:[#allocation115_spill] sm:$0xff] %v11989_v27  ;;  %18206 = vst [vmem:[#allocation116_spill] sm:$0xff] %v11993_v2  ;;  %v18215_v2 = vrot.slane %v11855_v59, 1 }
 0x1ed   :  { %2609 = vrot.lane.b32.xlu0 %v2538_v14, %s10634_s24  ;;  %2925 = vrot.lane.b32.xlu1 %v2882_v43, %s10634_s24  ;;  %v3933_v14 = vmul.f32 %v11823_v58, %v11578_v32  ;;  %v18212_v43 = vrot.slane %v11827_v33, 3 }
 0x1ef   :  { %v12003_v13 = vpop.permute.xlu0 %2907  ;;  %v12005_v48 = vpop.permute.xlu1 %3281  ;;  %v3616_v47 = vsel %vm878_vm5, %v3614_v1, %v18212_v43  ;;  %v4643_v1 = vrot.slane %v4592_v23, 2 }
 0x1f0   :  { %18208 = vst [vmem:[#allocation117_spill] sm:$0xff] %v12003_v13  ;;  %18209 = vst [vmem:[#allocation118_spill] sm:$0xff] %v12005_v48  ;;  %v12134_v48 = vld [vmem:[#allocation2 + $0xb0] sm:$0xff] }
 0x1f1   :  { %3299 = vrot.lane.b32.xlu0 %v3256_v9, %s10634_s24  ;;  %3301 = vrot.lane.b32.xlu1 %v3255_v4, %s10634_s24  ;;  %v12027_v9 = vmul.f32 %v11672_v37, %v11930_v22  ;;  %v4268_v4 = vrot.slane %v4218_v0, 1  ;;  %v2827_v0 = vmul.f32 %v11057_v8, %v11158_v38 }
 0x1f3   :  { %v12014_v29 = vpop.permute.xlu0 %3283  ;;  %v12016_v28 = vpop.permute.xlu1 %3639  ;;  %v17931_v43 = vrot.slane %v12027_v9, 2  ;;  %v4270_v27 = vsel %vm324_vm3, %v4268_v4, %v18215_v2  ;;  %v2888_v2 = vrot.slane %v2827_v0, 1 }
 0x1f4   :  { %18210 = vst [vmem:[#allocation119_spill] sm:$0xff] %v12014_v29  ;;  %18211 = vst [vmem:[#allocation120_spill] sm:$0xff] %v12016_v28  ;;  %v18229_v29 = vrot.slane %v11943_v62, 2 }
 0x1f5   :  { %3657 = vrot.lane.b32.xlu0 %v3616_v47, %s10634_s24  ;;  %3991 = vrot.lane.b32.xlu1 %v3933_v14, %s10635_s4  ;;  %v12044_v47 = vmul.f32 %v11057_v8, %v11155_v10  ;;  %v4644_v59 = vsel %vm601_vm4, %v17931_v43, %v4643_v1  ;;  %v3191_v10 = vmul.f32 %v11881_v42, %v11189_v6 }
 0x1f6   :  { %v3565_v43 = vmul.f32 %v11692_v63, %v11370_v11 }
 0x1f7   :  { %v12031_v54 = vpop.permute.xlu0 %3973  ;;  %v12035_v33 = vpop.permute.xlu1 %3975 }
 0x1f8   :  { %18213 = vst [vmem:[#allocation121_spill] sm:$0xff] %v12031_v54  ;;  %18214 = vst [vmem:[#allocation122_spill] sm:$0xff] %v12035_v33 }
 0x1f9   :  { %3993 = vrot.lane.b32.xlu0 %v3934_v30, %s10635_s4  ;;  %4309 = vrot.lane.b32.xlu1 %v4270_v27, %s10635_s4  ;;  %v17932_v30 = vrot.slane %v12044_v47, 1  ;;  %v2533_v27 = vmul.f32 %v10855_v60, %v11318_v45 }
 0x1fb   :  { %v12049_v14 = vpop.permute.xlu0 %1529  ;;  %v12051_v23 = vpop.permute.xlu1 %1903  ;;  %v2889_v0 = vsel %vm324_vm3, %v17932_v30, %v2888_v2  ;;  %v4587_v30 = vmul.f32 %v11764_v41, %v11930_v22 }
 0x1fc   :  { %18216 = vst [vmem:[#allocation123_spill] sm:$0xff] %v12049_v14  ;;  %18217 = vst [vmem:[#allocation124_spill] sm:$0xff] %v12051_v23 }
 0x1fd   :  { %4683 = vrot.lane.b32.xlu0 %v4644_v59, %s10635_s4  ;;  %4685 = vrot.lane.b32.xlu1 %v4643_v1, %s10635_s4  ;;  %v12071_v59 = vmul.f32 %v11696_v7, %v11370_v11  ;;  %v3247_v1 = vrot.slane %v3191_v10, 2  ;;  %v4223_v10 = vmul.f32 %v11725_v36, %v11742_v31 }
 0x1ff   :  { %v12061_v38 = vpop.permute.xlu0 %1905  ;;  %v12065_v4 = vpop.permute.xlu1 %2261  ;;  %v17933_v23 = vrot.slane %v12071_v59, 3 }
 0x200   :  { %18218 = vst [vmem:[#allocation125_spill] sm:$0xff] %v12061_v38  ;;  %18219 = vst [vmem:[#allocation126_spill] sm:$0xff] %v12065_v4  ;;  %v3622_v38 = vrot.slane %v3565_v43, 3  ;;  %v18222_v4 = vrot.slane %v11899_v16, 2 }
 0x201   :  { %2599 = vrot.lane.b32.xlu0 %v2533_v27, %s10634_s24  ;;  %2933 = vrot.lane.b32.xlu1 %v2889_v0, %s10634_s24  ;;  %v12089_v27 = vmul.f32 %v11719_v49, %v11742_v31 }
 0x202   :  { %v3249_v13 = vsel %vm601_vm4, %v3247_v1, %v18222_v4  ;;  %v3623_v16 = vsel %vm878_vm5, %v17933_v23, %v3622_v38  ;;  %v4276_v4 = vrot.slane %v4223_v10, 1 }
 0x203   :  { %v12078_v14 = vpop.permute.xlu0 %2595  ;;  %v12080_v45 = vpop.permute.xlu1 %2597 }
 0x204   :  { %18220 = vst [vmem:[#allocation127_spill] sm:$0xff] %v12078_v14  ;;  %18221 = vst [vmem:[#allocation128_spill] sm:$0xff] %v12080_v45  ;;  %v12110_v45 = vstv %s9933_s7 }
 0x205   :  { %2935 = vrot.lane.b32.xlu0 %v2888_v2, %s10634_s24  ;;  %3291 = vrot.lane.b32.xlu1 %v3249_v13, %s10634_s24  ;;  %v17934_v2 = vrot.slane %v12089_v27, 1  ;;  %v3929_v13 = vmul.f32 %v11714_v57, %v11578_v32  ;;  %v12118_v10 = vmul.f32 %v11582_v3, %v12110_v45 }
 0x207   :  { %v12094_v0 = vpop.permute.xlu0 %2913  ;;  %v12096_v43 = vpop.permute.xlu1 %3287 }
 0x208   :  { %18223 = vst [vmem:[#allocation129_spill] sm:$0xff] %v12094_v0  ;;  %18224 = vst [vmem:[#allocation130_spill] sm:$0xff] %v12096_v43  ;;  %v4635_v0 = vrot.slane %v4587_v30, 2  ;;  %v2830_v30 = vmul.f32 %v11057_v8, %v11244_v19 }
 0x209   :  { %3665 = vrot.lane.b32.xlu0 %v3623_v16, %s10634_s24  ;;  %3667 = vrot.lane.b32.xlu1 %v3622_v38, %s10634_s24  ;;  %v4961_v16 = vmul.f32 %v11588_v17, %v12110_v45  ;;  %v4277_v38 = vsel %vm324_vm3, %v17934_v2, %v4276_v4  ;;  %v17935_v17 = vrot.slane %v12118_v10, 3  ;;  %v2536_v2 = vmul.f32 %v10855_v60, %v11412_v5 }
 0x20a   :  { %v4637_v3 = vsel %vm601_vm4, %v4635_v0, %v18229_v29  ;;  %v2893_v0 = vrot.slane %v2830_v30, 1  ;;  %v12167_v30 = vmul.f32 %v11800_v55, %v11370_v11 }
 0x20b   :  { %v12104_v1 = vpop.permute.xlu0 %3289  ;;  %v12112_v14 = vpop.permute.xlu1 %3645  ;;  %v5010_v43 = vrot.slane %v4961_v16, 3 }
 0x20c   :  { %18225 = vst [vmem:[#allocation131_spill] sm:$0xff] %v12104_v1  ;;  %18226 = vst [vmem:[#allocation132_spill] sm:$0xff] %v12112_v14  ;;  %v18237_v14 = vrot.slane %v11985_v35, 2 }
 0x20d   :  { %3983 = vrot.lane.b32.xlu0 %v3929_v13, %s10635_s4  ;;  %4317 = vrot.lane.b32.xlu1 %v4277_v38, %s10635_s4  ;;  %v12138_v13 = vmul.f32 %v12134_v48, %v11057_v8  ;;  %v5011_v62 = vsel %vm878_vm5, %v17935_v17, %v5010_v43 }
 0x20f   :  { %v12125_v23 = vpop.permute.xlu0 %3979  ;;  %v12127_v1 = vpop.permute.xlu1 %3981  ;;  %v17936_v29 = vrot.slane %v12138_v13, 1 }
 0x210   :  { %18227 = vst [vmem:[#allocation133_spill] sm:$0xff] %v12125_v23  ;;  %18228 = vst [vmem:[#allocation134_spill] sm:$0xff] %v12127_v1 }
 0x211   :  { %4319 = vrot.lane.b32.xlu0 %v4276_v4, %s10635_s4  ;;  %4675 = vrot.lane.b32.xlu1 %v4637_v3, %s10635_s4  ;;  %v12152_v4 = vld [vmem:[#allocation2 + $0x78] sm:$0xff]  ;;  %v2894_v17 = vsel %vm324_vm3, %v17936_v29, %v2893_v0  ;;  %v12185_v29 = vmul.f32 %v11823_v58, %v11742_v31 }
 0x212   :  { %18232 = vst [vmem:[#allocation137_spill] sm:$0xff] %v12152_v4  ;;  %v3194_v19 = vmul.f32 %v12152_v4, %v11189_v6 }
 0x213   :  { %v12143_v16 = vpop.permute.xlu0 %1895  ;;  %v12145_v38 = vpop.permute.xlu1 %2269 }
 0x214   :  { %18230 = vst [vmem:[#allocation135_spill] sm:$0xff] %v12143_v16  ;;  %18231 = vst [vmem:[#allocation136_spill] sm:$0xff] %v12145_v38 }
 0x215   :  { %5049 = vrot.lane.b32.xlu0 %v5011_v62, %s10635_s4  ;;  %5051 = vrot.lane.b32.xlu1 %v5010_v43, %s10635_s4  ;;  %v3568_v62 = vmul.f32 %v11796_v24, %v11370_v11  ;;  %v3252_v43 = vrot.slane %v3194_v19, 2 }
 0x217   :  { %v12157_v3 = vpop.permute.xlu0 %2271  ;;  %v12161_v16 = vpop.permute.xlu1 %2587  ;;  %v3627_v38 = vrot.slane %v3568_v62, 3  ;;  %v3254_v28 = vsel %vm601_vm4, %v3252_v43, %v18237_v14  ;;  %v17938_v14 = vrot.slane %v12185_v29, 1  ;;  %v4590_v62 = vmul.f32 %v11636_v61, %v11930_v22 }
 0x218   :  { %18233 = vst [vmem:[#allocation138_spill] sm:$0xff] %v12157_v3  ;;  %18234 = vst [vmem:[#allocation139_spill] sm:$0xff] %v12161_v16  ;;  %v17937_v16 = vrot.slane %v12167_v30, 3 }
 0x219   :  { %2605 = vrot.lane.b32.xlu0 %v2536_v2, %s10634_s24  ;;  %2939 = vrot.lane.b32.xlu1 %v2894_v17, %s10634_s24  ;;  %v4226_v2 = vmul.f32 %v11829_v39, %v11742_v31 }
 0x21a   :  { %v3628_v35 = vsel %vm878_vm5, %v17937_v16, %v3627_v38  ;;  %v4964_v16 = vmul.f32 %v11678_v34, %v12110_v45 }
 0x21b   :  { %v12174_v3 = vpop.permute.xlu0 %2921  ;;  %v12176_v60 = vpop.permute.xlu1 %2923 }
 0x21c   :  { %18235 = vst [vmem:[#allocation140_spill] sm:$0xff] %v12174_v3  ;;  %18236 = vst [vmem:[#allocation141_spill] sm:$0xff] %v12176_v60 }
 0x21d   :  { %2941 = vrot.lane.b32.xlu0 %v2893_v0, %s10634_s24  ;;  %3297 = vrot.lane.b32.xlu1 %v3254_v28, %s10634_s24  ;;  %v4281_v0 = vrot.slane %v4226_v2, 1  ;;  %v3932_v28 = vmul.f32 %v11818_v18, %v11578_v32 }
 0x21f   :  { %v12190_v17 = vpop.permute.xlu0 %3279  ;;  %v12192_v19 = vpop.permute.xlu1 %3653  ;;  %v4282_v2 = vsel %vm324_vm3, %v17938_v14, %v4281_v0 }
 0x220   :  { %18238 = vst [vmem:[#allocation142_spill] sm:$0xff] %v12190_v17  ;;  %18239 = vst [vmem:[#allocation143_spill] sm:$0xff] %v12192_v19  ;;  %v12224_v19 = vld [vmem:[#allocation2 + $0x90] sm:$0xff] }
 0x221   :  { %3671 = vrot.lane.b32.xlu0 %v3628_v35, %s10634_s24  ;;  %3673 = vrot.lane.b32.xlu1 %v3627_v38, %s10634_s24  ;;  %v12212_v35 = vmul.f32 %v11672_v37, %v12110_v45  ;;  %v4640_v38 = vrot.slane %v4590_v62, 2  ;;  %v2825_v37 = vmul.f32 %v12224_v19, %v11057_v8  ;;  %v12232_v62 = vld [vmem:[#allocation2 + $0x98] sm:$0xff] }
 0x223   :  { %v12202_v43 = vpop.permute.xlu0 %3655  ;;  %v12206_v60 = vpop.permute.xlu1 %3971 }
 0x224   :  { %18240 = vst [vmem:[#allocation144_spill] sm:$0xff] %v12202_v43  ;;  %18241 = vst [vmem:[#allocation145_spill] sm:$0xff] %v12206_v60  ;;  %v5015_v43 = vrot.slane %v4964_v16, 3  ;;  %v18244_v60 = vrot.slane %v12027_v9, 2  ;;  %v12238_v16 = vld [vmem:[#allocation2 + $0xa0] sm:$0xf] }
 0x225   :  { %3989 = vrot.lane.b32.xlu0 %v3932_v28, %s10635_s4  ;;  %4323 = vrot.lane.b32.xlu1 %v4282_v2, %s10635_s4  ;;  %v12236_v28 = vmul.f32 %v12232_v62, %v11189_v6  ;;  %v3199_v2 = vmul.f32 %v12238_v16, %v11189_v6 }
 0x226   :  { %v4642_v14 = vsel %vm601_vm4, %v4640_v38, %v18244_v60  ;;  %v18247_v60 = vrot.slane %v12212_v35, 3  ;;  %v2885_v38 = vrot.slane %v2825_v37, 1 }
 0x227   :  { %v12219_v3 = vpop.permute.xlu0 %4305  ;;  %v12221_v17 = vpop.permute.xlu1 %4307  ;;  %v17939_v1 = vrot.slane %v12236_v28, 2  ;;  %v3260_v23 = vrot.slane %v3199_v2, 2 }
 0x228   :  { %18242 = vst [vmem:[#allocation146_spill] sm:$0xff] %v12219_v3  ;;  %18243 = vst [vmem:[#allocation147_spill] sm:$0xff] %v12221_v17  ;;  %v3563_v17 = vmul.f32 %v11881_v42, %v11370_v11 }
 0x229   :  { %4325 = vrot.lane.b32.xlu0 %v4281_v0, %s10635_s4  ;;  %4681 = vrot.lane.b32.xlu1 %v4642_v14, %s10635_s4  ;;  %v5016_v0 = vsel %vm878_vm5, %v18247_v60, %v5015_v43  ;;  %v3261_v37 = vsel %vm601_vm4, %v17939_v1, %v3260_v23 }
 0x22a   :  { %v3619_v2 = vrot.slane %v3563_v17, 3 }
 0x22b   :  { %v12243_v34 = vpop.permute.xlu0 %1901  ;;  %v12245_v9 = vpop.permute.xlu1 %2275 }
 0x22c   :  { %18245 = vst [vmem:[#allocation148_spill] sm:$0xff] %v12243_v34  ;;  %18246 = vst [vmem:[#allocation149_spill] sm:$0xff] %v12245_v9  ;;  %v18250_v9 = vrot.slane %v12044_v47, 1  ;;  %v18253_v47 = vrot.slane %v12071_v59, 3  ;;  %v3937_v59 = vmul.f32 %v11692_v63, %v11578_v32 }
 0x22d   :  { %5055 = vrot.lane.b32.xlu0 %v5016_v0, %s10635_s4  ;;  %5057 = vrot.lane.b32.xlu1 %v5015_v43, %s10635_s4  ;;  %v4221_v0 = vmul.f32 %v11714_v57, %v11742_v31 }
 0x22e   :  { %v2887_v3 = vsel %vm324_vm3, %v2885_v38, %v18250_v9  ;;  %v3621_v9 = vsel %vm878_vm5, %v3619_v2, %v18253_v47  ;;  %v12279_v38 = vmul.f32 %v11719_v49, %v11930_v22 }
 0x22f   :  { %v12255_v14 = vpop.permute.xlu0 %2277  ;;  %v12257_v34 = vpop.permute.xlu1 %2593 }
 0x230   :  { %18248 = vst [vmem:[#allocation150_spill] sm:$0xff] %v12255_v14  ;;  %18249 = vst [vmem:[#allocation151_spill] sm:$0xff] %v12257_v34  ;;  %v17940_v2 = vrot.slane %v12279_v38, 2 }
 0x231   :  { %2931 = vrot.lane.b32.xlu0 %v2887_v3, %s10634_s24  ;;  %3305 = vrot.lane.b32.xlu1 %v3261_v37, %s10634_s24  ;;  %v4595_v3 = vmul.f32 %v11725_v36, %v11930_v22  ;;  %v3936_v37 = vmul.f32 %v11696_v7, %v11578_v32 }
 0x233   :  { %v12267_v60 = vpop.permute.xlu0 %2927  ;;  %v12269_v43 = vpop.permute.xlu1 %2929  ;;  %v4648_v47 = vrot.slane %v4595_v3, 2 }
 0x234   :  { %18251 = vst [vmem:[#allocation152_spill] sm:$0xff] %v12267_v60  ;;  %18252 = vst [vmem:[#allocation153_spill] sm:$0xff] %v12269_v43  ;;  %v18258_v43 = vrot.slane %v12089_v27, 1 }
 0x235   :  { %3307 = vrot.lane.b32.xlu0 %v3260_v23, %s10634_s24  ;;  %3663 = vrot.lane.b32.xlu1 %v3621_v9, %s10634_s24  ;;  %v4273_v23 = vrot.slane %v4221_v0, 1  ;;  %v4959_v9 = vmul.f32 %v11764_v41, %v12110_v45  ;;  %v2828_v0 = vmul.f32 %v11057_v8, %v11412_v5  ;;  %v4649_v3 = vsel %vm601_vm4, %v17940_v2, %v4648_v47  ;;  %v12314_v41 = vld [vmem:[#allocation2 + $0xb8] sm:$0xf] }
 0x236   :  { %v3202_v27 = vmul.f32 %v12314_v41, %v11189_v6 }
 0x237   :  { %v12284_v17 = vpop.permute.xlu0 %3285  ;;  %v12288_v1 = vpop.permute.xlu1 %3659  ;;  %v4275_v60 = vsel %vm324_vm3, %v4273_v23, %v18258_v43  ;;  %v5007_v8 = vrot.slane %v4959_v9, 3  ;;  %v18261_v23 = vrot.slane %v12118_v10, 3 }
 0x238   :  { %18254 = vst [vmem:[#allocation154_spill] sm:$0xff] %v12284_v17  ;;  %18255 = vst [vmem:[#allocation155_spill] sm:$0xff] %v12288_v1  ;;  %v3265_v17 = vrot.slane %v3202_v27, 2 }
 0x239   :  { %3997 = vrot.lane.b32.xlu0 %v3936_v37, %s10635_s4  ;;  %3999 = vrot.lane.b32.xlu1 %v3937_v59, %s10635_s4  ;;  %v12312_v37 = vmul.f32 %v12134_v48, %v11189_v6  ;;  %v2890_v59 = vrot.slane %v2828_v0, 1  ;;  %v18264_v0 = vrot.slane %v12138_v13, 1  ;;  %v18267_v13 = vrot.slane %v12167_v30, 3 }
 0x23a   :  { %v3940_v30 = vmul.f32 %v11796_v24, %v11578_v32 }
 0x23b   :  { %v12295_v14 = vpop.permute.xlu0 %3661  ;;  %v12299_v34 = vpop.permute.xlu1 %3977  ;;  %v17941_v2 = vrot.slane %v12312_v37, 2  ;;  %v2892_v10 = vsel %vm324_vm3, %v2890_v59, %v18264_v0  ;;  %v12355_v0 = vmul.f32 %v11823_v58, %v11930_v22 }
 0x23c   :  { %18256 = vst [vmem:[#allocation156_spill] sm:$0xff] %v12295_v14  ;;  %18257 = vst [vmem:[#allocation157_spill] sm:$0xff] %v12299_v34  ;;  %v3566_v14 = vmul.f32 %v12152_v4, %v11370_v11 }
 0x23d   :  { %4315 = vrot.lane.b32.xlu0 %v4275_v60, %s10635_s4  ;;  %4689 = vrot.lane.b32.xlu1 %v4649_v3, %s10635_s4  ;;  %v5009_v60 = vsel %vm878_vm5, %v5007_v8, %v18261_v23 }
 0x23e   :  { %v3624_v27 = vrot.slane %v3566_v14, 3  ;;  %v4598_v14 = vmul.f32 %v11829_v39, %v11930_v22 }
 0x23f   :  { %v12319_v43 = vpop.permute.xlu0 %4311  ;;  %v12321_v5 = vpop.permute.xlu1 %4313 }
 0x240   :  { %18259 = vst [vmem:[#allocation158_spill] sm:$0xff] %v12319_v43  ;;  %18260 = vst [vmem:[#allocation159_spill] sm:$0xff] %v12321_v5  ;;  %v3626_v59 = vsel %vm878_vm5, %v3624_v27, %v18267_v13  ;;  %v17942_v27 = vrot.slane %v12355_v0, 2  ;;  %v4653_v13 = vrot.slane %v4598_v14, 2 }
 0x241   :  { %4691 = vrot.lane.b32.xlu0 %v4648_v47, %s10635_s4  ;;  %5047 = vrot.lane.b32.xlu1 %v5009_v60, %s10635_s4  ;;  %v3266_v47 = vsel %vm601_vm4, %v17941_v2, %v3265_v17  ;;  %v4224_v60 = vmul.f32 %v11818_v18, %v11742_v31 }
 0x242   :  { %v4654_v14 = vsel %vm601_vm4, %v17942_v27, %v4653_v13 }
 0x243   :  { %v12331_v3 = vpop.permute.xlu0 %2267  ;;  %v12333_v9 = vpop.permute.xlu1 %2601 }
 0x244   :  { %18262 = vst [vmem:[#allocation160_spill] sm:$0xff] %v12331_v3  ;;  %18263 = vst [vmem:[#allocation161_spill] sm:$0xff] %v12333_v9  ;;  %v4962_v3 = vmul.f32 %v11636_v61, %v12110_v45  ;;  %v18272_v9 = vrot.slane %v12185_v29, 1 }
 0x245   :  { %2937 = vrot.lane.b32.xlu0 %v2892_v10, %s10634_s24  ;;  %3311 = vrot.lane.b32.xlu1 %v3266_v47, %s10634_s24  ;;  %v3939_v47 = vmul.f32 %v11800_v55, %v11578_v32 }
 0x246   :  { %v5012_v61 = vrot.slane %v4962_v3, 3 }
 0x247   :  { %v12343_v8 = vpop.permute.xlu0 %2603  ;;  %v12345_v23 = vpop.permute.xlu1 %2919 }
 0x248   :  { %18265 = vst [vmem:[#allocation162_spill] sm:$0xff] %v12343_v8  ;;  %18266 = vst [vmem:[#allocation163_spill] sm:$0xff] %v12345_v23 }
 0x249   :  { %3313 = vrot.lane.b32.xlu0 %v3265_v17, %s10634_s24  ;;  %3669 = vrot.lane.b32.xlu1 %v3626_v59, %s10634_s24  ;;  %v4278_v17 = vrot.slane %v4224_v60, 1  ;;  %v3197_v60 = vmul.f32 %v12224_v19, %v11189_v6 }
 0x24b   :  { %v12360_v10 = vpop.permute.xlu0 %3293  ;;  %v12364_v2 = vpop.permute.xlu1 %3295  ;;  %v4280_v23 = vsel %vm324_vm3, %v4278_v17, %v18272_v9  ;;  %v3257_v17 = vrot.slane %v3197_v60, 2  ;;  %v3935_v60 = vmul.f32 %v11881_v42, %v11578_v32 }
 0x24c   :  { %18268 = vst [vmem:[#allocation164_spill] sm:$0xff] %v12360_v10  ;;  %18269 = vst [vmem:[#allocation165_spill] sm:$0xff] %v12364_v2  ;;  %v18275_v2 = vrot.slane %v12212_v35, 3  ;;  %v4229_v35 = vmul.f32 %v11692_v63, %v11742_v31 }
 0x24d   :  { %4003 = vrot.lane.b32.xlu0 %v3939_v47, %s10635_s4  ;;  %4005 = vrot.lane.b32.xlu1 %v3940_v30, %s10635_s4  ;;  %v12388_v47 = vmul.f32 %v12232_v62, %v11370_v11  ;;  %v3571_v30 = vmul.f32 %v12238_v16, %v11370_v11 }
 0x24e   :  { %v5014_v27 = vsel %vm878_vm5, %v5012_v61, %v18275_v2  ;;  %v12414_v2 = vmul.f32 %v11696_v7, %v11742_v31  ;;  %v4286_v61 = vrot.slane %v4229_v35, 1 }
 0x24f   :  { %v12373_v59 = vpop.permute.xlu0 %3651  ;;  %v12375_v8 = vpop.permute.xlu1 %3985  ;;  %v17943_v3 = vrot.slane %v12388_v47, 3 }
 0x250   :  { %18270 = vst [vmem:[#allocation166_spill] sm:$0xff] %v12373_v59  ;;  %18271 = vst [vmem:[#allocation167_spill] sm:$0xff] %v12375_v8  ;;  %v18295_v8 = vrot.slane %v12355_v0, 2  ;;  %v4227_v0 = vmul.f32 %v11881_v42, %v11742_v31 }
 0x251   :  { %4321 = vrot.lane.b32.xlu0 %v4280_v23, %s10635_s4  ;;  %4695 = vrot.lane.b32.xlu1 %v4654_v14, %s10635_s4  ;;  %v3632_v23 = vrot.slane %v3571_v30, 3  ;;  %v18278_v14 = vrot.slane %v12236_v28, 2  ;;  %v17944_v30 = vrot.slane %v12414_v2, 1 }
 0x253   :  { %v12393_v29 = vpop.permute.xlu0 %3987  ;;  %v12395_v9 = vpop.permute.xlu1 %4303  ;;  %v3259_v1 = vsel %vm601_vm4, %v3257_v17, %v18278_v14  ;;  %v4593_v17 = vmul.f32 %v11714_v57, %v11930_v22  ;;  %v4967_v14 = vmul.f32 %v11725_v36, %v12110_v45  ;;  %v4287_v35 = vsel %vm324_vm3, %v17944_v30, %v4286_v61 }
 0x254   :  { %18273 = vst [vmem:[#allocation168_spill] sm:$0xff] %v12393_v29  ;;  %18274 = vst [vmem:[#allocation169_spill] sm:$0xff] %v12395_v9 }
 0x255   :  { %4697 = vrot.lane.b32.xlu0 %v4653_v13, %s10635_s4  ;;  %5053 = vrot.lane.b32.xlu1 %v5014_v27, %s10635_s4  ;;  %v3633_v13 = vsel %vm878_vm5, %v17943_v3, %v3632_v23 }
 0x257   :  { %v12403_v10 = vpop.permute.xlu0 %4677  ;;  %v12405_v59 = vpop.permute.xlu1 %4679 }
 0x258   :  { %18276 = vst [vmem:[#allocation170_spill] sm:$0xff] %v12403_v10  ;;  %18277 = vst [vmem:[#allocation171_spill] sm:$0xff] %v12405_v59 }
 0x259   :  { %3303 = vrot.lane.b32.xlu0 %v3259_v1, %s10634_s24  ;;  %3677 = vrot.lane.b32.xlu1 %v3633_v13, %s10634_s24  ;;  %v12433_v1 = vmul.f32 %v11719_v49, %v12110_v45  ;;  %v5020_v49 = vrot.slane %v4967_v14, 3  ;;  %v12463_v14 = vmul.f32 %v12134_v48, %v11370_v11 }
 0x25b   :  { %v12421_v27 = vpop.permute.xlu0 %2273  ;;  %v12423_v28 = vpop.permute.xlu1 %2607 }
 0x25c   :  { %18279 = vst [vmem:[#allocation172_spill] sm:$0xff] %v12421_v27  ;;  %18280 = vst [vmem:[#allocation173_spill] sm:$0xff] %v12423_v28  ;;  %v4645_v27 = vrot.slane %v4593_v17, 2  ;;  %v12447_v28 = vld [vmem:[#allocation2 + $0xa8] sm:$0xff] }
 0x25d   :  { %3679 = vrot.lane.b32.xlu0 %v3632_v23, %s10634_s24  ;;  %3995 = vrot.lane.b32.xlu1 %v3935_v60, %s10635_s4  ;;  %v17945_v23 = vrot.slane %v12433_v1, 3  ;;  %v3200_v36 = vmul.f32 %v12447_v28, %v11189_v6 }
 0x25f   :  { %v12438_v13 = vpop.permute.xlu0 %2609  ;;  %v12440_v3 = vpop.permute.xlu1 %2925  ;;  %v5021_v6 = vsel %vm878_vm5, %v17945_v23, %v5020_v49  ;;  %v12481_v23 = vmul.f32 %v11800_v55, %v11742_v31 }
 0x260   :  { %18281 = vst [vmem:[#allocation174_spill] sm:$0xff] %v12438_v13  ;;  %18282 = vst [vmem:[#allocation175_spill] sm:$0xff] %v12440_v3  ;;  %v18285_v3 = vrot.slane %v12279_v38, 2 }
 0x261   :  { %4329 = vrot.lane.b32.xlu0 %v4287_v35, %s10635_s4  ;;  %4331 = vrot.lane.b32.xlu1 %v4286_v61, %s10635_s4  ;;  %v3574_v35 = vmul.f32 %v12314_v41, %v11370_v11  ;;  %v3262_v61 = vrot.slane %v3200_v36, 2  ;;  %v4232_v36 = vmul.f32 %v11796_v24, %v11742_v31 }
 0x262   :  { %v4647_v17 = vsel %vm601_vm4, %v4645_v27, %v18285_v3  ;;  %v17946_v27 = vrot.slane %v12463_v14, 3 }
 0x263   :  { %v12452_v60 = vpop.permute.xlu0 %3299  ;;  %v12454_v13 = vpop.permute.xlu1 %3301  ;;  %v3637_v3 = vrot.slane %v3574_v35, 3 }
 0x264   :  { %18283 = vst [vmem:[#allocation176_spill] sm:$0xff] %v12452_v60  ;;  %18284 = vst [vmem:[#allocation177_spill] sm:$0xff] %v12454_v13  ;;  %v18288_v13 = vrot.slane %v12312_v37, 2 }
 0x265   :  { %4687 = vrot.lane.b32.xlu0 %v4647_v17, %s10635_s4  ;;  %5061 = vrot.lane.b32.xlu1 %v5021_v6, %s10635_s4  ;;  %v3638_v37 = vsel %vm878_vm5, %v17946_v27, %v3637_v3  ;;  %v4596_v6 = vmul.f32 %v11818_v18, %v11930_v22  ;;  %v4970_v27 = vmul.f32 %v11829_v39, %v12110_v45 }
 0x266   :  { %v3264_v60 = vsel %vm601_vm4, %v3262_v61, %v18288_v13  ;;  %v17947_v13 = vrot.slane %v12481_v23, 1 }
 0x267   :  { %v12470_v30 = vpop.permute.xlu0 %3657  ;;  %v12472_v38 = vpop.permute.xlu1 %3991  ;;  %v5025_v29 = vrot.slane %v4970_v27, 3 }
 0x268   :  { %18286 = vst [vmem:[#allocation178_spill] sm:$0xff] %v12470_v30  ;;  %18287 = vst [vmem:[#allocation179_spill] sm:$0xff] %v12472_v38 }
 0x269   :  { %5063 = vrot.lane.b32.xlu0 %v5020_v49, %s10635_s4  ;;  %3309 = vrot.lane.b32.xlu1 %v3264_v60, %s10634_s24  ;;  %v4291_v49 = vrot.slane %v4232_v36, 1  ;;  %v3938_v60 = vmul.f32 %v12152_v4, %v11578_v32 }
 0x26b   :  { %v12486_v17 = vpop.permute.xlu0 %3993  ;;  %v12488_v35 = vpop.permute.xlu1 %4309  ;;  %v4292_v36 = vsel %vm324_vm3, %v17947_v13, %v4291_v49 }
 0x26c   :  { %18289 = vst [vmem:[#allocation180_spill] sm:$0xff] %v12486_v17  ;;  %18290 = vst [vmem:[#allocation181_spill] sm:$0xff] %v12488_v35 }
 0x26d   :  { %3683 = vrot.lane.b32.xlu0 %v3638_v37, %s10634_s24  ;;  %3685 = vrot.lane.b32.xlu1 %v3637_v3, %s10634_s24  ;;  %v12508_v37 = vmul.f32 %v11823_v58, %v12110_v45  ;;  %v4650_v3 = vrot.slane %v4596_v6, 2  ;;  %v3569_v58 = vmul.f32 %v12224_v19, %v11370_v11 }
 0x26f   :  { %v12498_v61 = vpop.permute.xlu0 %4683  ;;  %v12502_v30 = vpop.permute.xlu1 %4685  ;;  %v17948_v39 = vrot.slane %v12508_v37, 3  ;;  %v4652_v35 = vsel %vm601_vm4, %v4650_v3, %v18295_v8  ;;  %v18300_v3 = vrot.slane %v12388_v47, 3  ;;  %v3943_v47 = vmul.f32 %v12238_v16, %v11578_v32 }
 0x270   :  { %18291 = vst [vmem:[#allocation182_spill] sm:$0xff] %v12498_v61  ;;  %18292 = vst [vmem:[#allocation183_spill] sm:$0xff] %v12502_v30 }
 0x271   :  { %4001 = vrot.lane.b32.xlu0 %v3938_v60, %s10635_s4  ;;  %4335 = vrot.lane.b32.xlu1 %v4292_v36, %s10635_s4  ;;  %v5026_v27 = vsel %vm878_vm5, %v17948_v39, %v5025_v29  ;;  %v3629_v36 = vrot.slane %v3569_v58, 3  ;;  %v4601_v58 = vmul.f32 %v11692_v63, %v11930_v22 }
 0x273   :  { %v12515_v17 = vpop.permute.xlu0 %2599  ;;  %v12517_v38 = vpop.permute.xlu1 %2933  ;;  %v3631_v13 = vsel %vm878_vm5, %v3629_v36, %v18300_v3  ;;  %v4658_v36 = vrot.slane %v4601_v58, 2 }
 0x274   :  { %18293 = vst [vmem:[#allocation184_spill] sm:$0xff] %v12515_v17  ;;  %18294 = vst [vmem:[#allocation185_spill] sm:$0xff] %v12517_v38 }
 0x275   :  { %4337 = vrot.lane.b32.xlu0 %v4291_v49, %s10635_s4  ;;  %4693 = vrot.lane.b32.xlu1 %v4652_v35, %s10635_s4  ;;  %v3942_v35 = vmul.f32 %v12232_v62, %v11578_v32 }
 0x277   :  { %v12527_v6 = vpop.permute.xlu0 %2935  ;;  %v12529_v60 = vpop.permute.xlu1 %3291 }
 0x278   :  { %18296 = vst [vmem:[#allocation186_spill] sm:$0xff] %v12527_v6  ;;  %18297 = vst [vmem:[#allocation187_spill] sm:$0xff] %v12529_v60 }
 0x279   :  { %5067 = vrot.lane.b32.xlu0 %v5026_v27, %s10635_s4  ;;  %5069 = vrot.lane.b32.xlu1 %v5025_v29, %s10635_s4  ;;  %v12551_v27 = vmul.f32 %v11696_v7, %v11930_v22  ;;  %v4283_v29 = vrot.slane %v4227_v0, 1  ;;  %v4965_v7 = vmul.f32 %v11714_v57, %v12110_v45 }
 0x27b   :  { %v12538_v8 = vpop.permute.xlu0 %3665  ;;  %v12540_v49 = vpop.permute.xlu1 %3667  ;;  %v17949_v63 = vrot.slane %v12551_v27, 2  ;;  %v5017_v6 = vrot.slane %v4965_v7, 3  ;;  %v18308_v7 = vrot.slane %v12433_v1, 3  ;;  %v12607_v1 = vstv %s174_s9  ;;  %s15633_s9 = sld [smem:[#allocation3 + $0x14]] }
 0x27c   :  { %18298 = vst [vmem:[#allocation188_spill] sm:$0xff] %v12538_v8  ;;  %18299 = vst [vmem:[#allocation189_spill] sm:$0xff] %v12540_v49  ;;  %v12603_v49 = vmul.f32 %v11800_v55, %v11930_v22  ;;  %v4604_v8 = vmul.f32 %v11796_v24, %v11930_v22  ;;  %v3945_v55 = vmul.f32 %v12134_v48, %v11578_v32 }
 0x27d   :  { %3675 = vrot.lane.b32.xlu0 %v3631_v13, %s10634_s24  ;;  %4009 = vrot.lane.b32.xlu1 %v3942_v35, %s10635_s4  ;;  %v18303_v13 = vrot.slane %v12414_v2, 1  ;;  %v3572_v35 = vmul.f32 %v12447_v28, %v11370_v11  ;;  %v4659_v57 = vsel %vm601_vm4, %v17949_v63, %v4658_v36  ;;  %v10514_v11 = vld [vmem:[#allocation2 + $0x10] sm:$0xf] }
 0x27e   :  { %v178_v9 = vmul.f32 %v10514_v11, %v12607_v1 }
 0x27f   :  { %v12555_v39 = vpop.permute.xlu0 %3983  ;;  %v12559_v17 = vpop.permute.xlu1 %4317  ;;  %v4285_v0 = vsel %vm324_vm3, %v4283_v29, %v18303_v13  ;;  %v3634_v2 = vrot.slane %v3572_v35, 3  ;;  %v12581_v29 = vstv %s9905_s8  ;;  %v10515_v13 = vld [vmem:[#allocation2 + $0x8] sm:$0xff]  ;;  %v4230_v35 = vmul.f32 %v12152_v4, %v11742_v31 }
 0x280   :  { %18301 = vst [vmem:[#allocation190_spill] sm:$0xff] %v12555_v39  ;;  %18302 = vst [vmem:[#allocation191_spill] sm:$0xff] %v12559_v17  ;;  %v4663_v17 = vrot.slane %v4604_v8, 2 }
 0x281   :  { %4011 = vrot.lane.b32.xlu0 %v3943_v47, %s10635_s4  ;;  %4327 = vrot.lane.b32.xlu1 %v4285_v0, %s10635_s4  ;;  %v278_v47 = vmul.f32 %v10514_v11, %v12581_v29  ;;  %v12586_v0 = vmul.f32 %v10515_v13, %v12581_v29 }
 0x283   :  { %v12571_v3 = vpop.permute.xlu0 %4319  ;;  %v12573_v58 = vpop.permute.xlu1 %4675 }
 0x284   :  { %18304 = vst [vmem:[#allocation192_spill] sm:$0xff] %v12571_v3  ;;  %18305 = vst [vmem:[#allocation193_spill] sm:$0xff] %v12573_v58  ;;  %v4968_v58 = vmul.f32 %v11818_v18, %v12110_v45 }
 0x285   :  { %4701 = vrot.lane.b32.xlu0 %v4659_v57, %s10635_s4  ;;  %4703 = vrot.lane.b32.xlu1 %v4658_v36, %s10635_s4  ;;  %v5019_v57 = vsel %vm878_vm5, %v5017_v6, %v18308_v7  ;;  %v18309_v36 = vrot.slane %v12463_v14, 3  ;;  %v12609_v6 = vstv %s9907_s10  ;;  %v328_v7 = vrot.slane %v278_v47, 1  ;;  %s15658_s10 = sld [smem:[#allocation3 + $0x10]] }
 0x286   :  { %v555_v24 = vmul.f32 %v10514_v11, %v12609_v6  ;;  %v12622_v39 = vmul.f32 %v10515_v13, %v12609_v6  ;;  %v4288_v47 = vrot.slane %v4230_v35, 1  ;;  %v12629_v14 = vstv %s12578_s11  ;;  %s15666_s11 = sld [smem:[#allocation3 + $0x18]] }
 0x287   :  { %v12588_v38 = vpop.permute.xlu0 %5049  ;;  %v12590_v63 = vpop.permute.xlu1 %5051  ;;  %v3636_v60 = vsel %vm878_vm5, %v3634_v2, %v18309_v36  ;;  %v10516_v2 = vld [vmem:[#allocation2 + $0x28] sm:$0xf]  ;;  %v12637_v30 = vmul.f32 %v10514_v11, %v12629_v14  ;;  %v12641_v34 = vmul.f32 %v10515_v13, %v12629_v14  ;;  %v18312_v35 = vrot.slane %v12586_v0, 1 }
 0x288   :  { %18306 = vst [vmem:[#allocation194_spill] sm:$0xff] %v12588_v38  ;;  %18307 = vst [vmem:[#allocation195_spill] sm:$0xff] %v12590_v63  ;;  %v181_v8 = vmul.f32 %v10516_v2, %v12607_v1  ;;  %v605_v63 = vrot.slane %v555_v24, 2  ;;  %v12656_v5 = vmul.f32 %v10516_v2, %v12609_v6  ;;  %v5022_v59 = vrot.slane %v4968_v58, 3 }
 0x289   :  { %5059 = vrot.lane.b32.xlu0 %v5019_v57, %s10635_s4  ;;  %3681 = vrot.lane.b32.xlu1 %v3636_v60, %s10634_s24  ;;  %v12614_v57 = vmul.f32 %v10516_v2, %v12581_v29  ;;  %v3946_v60 = vmul.f32 %v12314_v41, %v11578_v32  ;;  %v12669_v24 = vmul.f32 %v12232_v62, %v11742_v31  ;;  %v882_v58 = vrot.slane %v12637_v30, 3 }
 0x28a   :  { %v835_v40 = vmul.f32 %v10516_v2, %v12629_v14  ;;  %v18320_v30 = vrot.slane %v12508_v37, 3 }
 0x28b   :  { %v12616_v36 = vpop.permute.xlu0 %2605  ;;  %v12624_v3 = vpop.permute.xlu1 %2939  ;;  %v333_v18 = vrot.slane %v12614_v57, 1  ;;  %v18316_v57 = vrot.slane %v12603_v49, 2 }
 0x28c   :  { %18310 = vst [vmem:[#allocation196_spill] sm:$0xff] %v12616_v36  ;;  %18311 = vst [vmem:[#allocation197_spill] sm:$0xff] %v12624_v3  ;;  %v177_v3 = vmul.f32 %v10515_v13, %v12607_v1  ;;  %v10517_v36 = vld [vmem:[#allocation2 + $0x20] sm:$0xff]  ;;  %v12673_v13 = vmul.f32 %v12238_v16, %v11742_v31 }
 0x28d   :  { %4015 = vrot.lane.b32.xlu0 %v3945_v55, %s10635_s4  ;;  %4017 = vrot.lane.b32.xlu1 %v3946_v60, %s10635_s4  ;;  %v329_v55 = vsel %vm324_vm3, %v18312_v35, %v328_v7  ;;  %v12650_v61 = vmul.f32 %v10517_v36, %v12581_v29  ;;  %v18315_v35 = vrot.slane %v12481_v23, 1  ;;  %v4664_v43 = vsel %vm601_vm4, %v18316_v57, %v4663_v17  ;;  %v12675_v23 = vld [vmem:[#allocation2 + $0x18] sm:$0xff] }
 0x28e   :  { %v394_v57 = vadd.f32 %v333_v18, %v181_v8  ;;  %v557_v33 = vmul.f32 %v10517_v36, %v12609_v6  ;;  %v5024_v8 = vsel %vm878_vm5, %v5022_v59, %v18320_v30  ;;  %v12706_v2 = vmul.f32 %v10517_v36, %v12629_v14 }
 0x28f   :  { %v12652_v11 = vpop.permute.xlu0 %2941  ;;  %v12658_v60 = vpop.permute.xlu1 %3297  ;;  %v4290_v38 = vsel %vm324_vm3, %v4288_v47, %v18315_v35  ;;  %v12679_v47 = vmul.f32 %v12675_v23, %v12607_v1  ;;  %v331_v10 = vrot.slane %v12650_v61, 1  ;;  %v4296_v35 = vrot.slane %v12673_v13, 1 }
 0x290   :  { %18313 = vst [vmem:[#allocation198_spill] sm:$0xff] %v12652_v11  ;;  %18314 = vst [vmem:[#allocation199_spill] sm:$0xff] %v12658_v60  ;;  %v391_v11 = vadd.f32 %v328_v7, %v178_v9  ;;  %v390_v60 = vadd.f32 %v329_v55, %v177_v3  ;;  %v18318_v3 = vrot.slane %v12622_v39, 2  ;;  %v610_v55 = vrot.slane %v12656_v5, 2 }
 0x291   :  { %4333 = vrot.lane.b32.xlu0 %v4290_v38, %s10635_s4  ;;  %v279_v38 = vmul.f32 %v12675_v23, %v12581_v29  ;;  %4707 = vrot.lane.b32.xlu1 %v4664_v43, %s10635_s4  ;;  %v3941_v13 = vmul.f32 %v12224_v19, %v11578_v32  ;;  %v887_v61 = vrot.slane %v835_v40, 3 }
 0x292   :  { %v606_v7 = vsel %vm601_vm4, %v18318_v3, %v605_v63  ;;  %v4599_v3 = vmul.f32 %v11881_v42, %v11930_v22  ;;  %v668_v5 = vadd.f32 %v605_v63, %v391_v11  ;;  %v671_v59 = vadd.f32 %v610_v55, %v394_v57 }
 0x293   :  { %v12687_v9 = vpop.permute.xlu0 %3671  ;;  %v12695_v43 = vpop.permute.xlu1 %3673  ;;  %v330_v37 = vrot.slane %v279_v38, 1  ;;  %v180_v42 = vmul.f32 %v10517_v36, %v12607_v1  ;;  %v608_v63 = vrot.slane %v557_v33, 2  ;;  %v18325_v38 = vrot.slane %v12641_v34, 3 }
 0x294   :  { %18317 = vst [vmem:[#allocation200_spill] sm:$0xff] %v12687_v9  ;;  %18319 = vst [vmem:[#allocation201_spill] sm:$0xff] %v12695_v43  ;;  %v667_v9 = vadd.f32 %v606_v7, %v390_v60  ;;  %v556_v43 = vmul.f32 %v12675_v23, %v12609_v6  ;;  %v12719_v60 = vld [vmem:[#allocation2 + $0x70] sm:$0xf]  ;;  %v18326_v33 = vrot.slane %v12669_v24, 1  ;;  %v12742_v56 = vadd.f32 %v887_v61, %v671_v59  ;;  %v10523_v59 = vld [vmem:[#allocation2 + $0x38] sm:$0xff] }
 0x295   :  { %4709 = vrot.lane.b32.xlu0 %v4663_v17, %s10635_s4  ;;  %5065 = vrot.lane.b32.xlu1 %v5024_v8, %s10635_s4  ;;  %v334_v17 = vsel %vm324_vm3, %v331_v10, %v333_v18  ;;  %18323 = vst [vmem:[#allocation204_spill] sm:$0xff] %v12719_v60  ;;  %v4973_v7 = vmul.f32 %v12719_v60, %v12110_v45  ;;  %v12723_v8 = vld [vmem:[#allocation2 + $0x68] sm:$0xff] }
 0x296   :  { %18324 = vst [vmem:[#allocation205_spill] sm:$0xff] %v12723_v8  ;;  %v12727_v18 = vmul.f32 %v12723_v8, %v12110_v45  ;;  %v883_v57 = vsel %vm878_vm5, %v18325_v38, %v882_v58  ;;  %v4297_v36 = vsel %vm324_vm3, %v18326_v33, %v4296_v35  ;;  %v393_v54 = vadd.f32 %v334_v17, %v180_v42 }
 0x297   :  { %v12712_v30 = vpop.permute.xlu0 %3989  ;;  %v12717_v11 = vpop.permute.xlu1 %4323  ;;  %v12738_v60 = vadd.f32 %v883_v57, %v667_v9  ;;  %v17954_v8 = vrot.slane %v12706_v2, 3  ;;  %v332_v40 = vsel %vm324_vm3, %v330_v37, %v331_v10  ;;  %v607_v38 = vrot.slane %v556_v43, 2 }
 0x298   :  { %18321 = vst [vmem:[#allocation202_spill] sm:$0xff] %v12712_v30  ;;  %18322 = vst [vmem:[#allocation203_spill] sm:$0xff] %v12717_v11  ;;  %v4655_v30 = vrot.slane %v4599_v3, 2  ;;  %v12736_v11 = vadd.f32 %v882_v58, %v668_v5  ;;  %v276_v33 = vmul.f32 %v10521_v21, %v12581_v29  ;;  %v611_v58 = vsel %vm601_vm4, %v608_v63, %v610_v55  ;;  %v10522_v3 = vld [vmem:[#allocation2 + $0x40] sm:$0xf] }
 0x299   :  { %4007 = vrot.lane.b32.xlu0 %v3941_v13, %s10635_s4  ;;  %4341 = vrot.lane.b32.xlu1 %v4297_v36, %s10635_s4  ;;  %v284_v9 = vmul.f32 %v10522_v3, %v12581_v29  ;;  %v5030_v17 = vrot.slane %v4973_v7, 3  ;;  %v12754_v42 = vmul.f32 %v10523_v59, %v12581_v29  ;;  %v18330_v10 = vrot.slane %v12551_v27, 2 }
 0x29a   :  { %v12762_v55 = vmul.f32 %v12134_v48, %v11742_v31  ;;  %v4238_v37 = vmul.f32 %v12314_v41, %v11742_v31  ;;  %v670_v7 = vadd.f32 %v611_v58, %v393_v54  ;;  %v888_v57 = vsel %vm878_vm5, %v17954_v8, %v887_v61 }
 0x29b   :  { %v12746_v44 = vpop.permute.xlu0 %4325  ;;  %v12750_v5 = vpop.permute.xlu1 %4681  ;;  %18329 = vst [vmem:[#allocation208_spill] sm:$0xff] %v12754_v42  ;;  %v4657_v43 = vsel %vm601_vm4, %v4655_v30, %v18330_v10  ;;  %v392_v36 = vadd.f32 %v332_v40, %v12679_v47  ;;  %v553_v27 = vmul.f32 %v10521_v21, %v12609_v6  ;;  %v833_v30 = vmul.f32 %v12675_v23, %v12629_v14 }
 0x29c   :  { %18327 = vst [vmem:[#allocation206_spill] sm:$0xff] %v12746_v44  ;;  %18328 = vst [vmem:[#allocation207_spill] sm:$0xff] %v12750_v5  ;;  %v176_v10 = vmul.f32 %v10521_v21, %v12607_v1  ;;  %v325_v13 = vrot.slane %v276_v33, 1  ;;  %v338_v54 = vrot.slane %v284_v9, 1  ;;  %v561_v58 = vmul.f32 %v10522_v3, %v12609_v6 }
 0x29d   :  { %4343 = vrot.lane.b32.xlu0 %v4296_v35, %s10635_s4  ;;  %18331 = vst [vmem:[#allocation209_spill] sm:$0xff] %v12762_v55  ;;  %4699 = vrot.lane.b32.xlu1 %v4657_v43, %s10635_s4  ;;  %v609_v35 = vsel %vm601_vm4, %v607_v38, %v608_v63  ;;  %v12780_v61 = vmul.f32 %v10523_v59, %v12609_v6  ;;  %v18334_v40 = vrot.slane %v12727_v18, 3  ;;  %v4301_v33 = vrot.slane %v4238_v37, 1 }
 0x29e   :  { %v4602_v9 = vmul.f32 %v12152_v4, %v11930_v22  ;;  %v12792_v43 = vadd.f32 %v888_v57, %v670_v7  ;;  %v602_v8 = vrot.slane %v553_v27, 2  ;;  %v830_v5 = vmul.f32 %v10521_v21, %v12629_v14 }
 0x29f   :  { %v12776_v44 = vpop.permute.xlu0 %5055  ;;  %v12782_v47 = vpop.permute.xlu1 %5057  ;;  %v5031_v63 = vsel %vm878_vm5, %v18334_v40, %v5030_v17  ;;  %v18335_v40 = vrot.slane %v12586_v0, 1  ;;  %v12802_v37 = vmul.f32 %v10523_v59, %v12629_v14  ;;  %v3944_v7 = vmul.f32 %v12447_v28, %v11578_v32 }
 0x2a0   :  { %18332 = vst [vmem:[#allocation210_spill] sm:$0xff] %v12776_v44  ;;  %18333 = vst [vmem:[#allocation211_spill] sm:$0xff] %v12782_v47  ;;  %v184_v47 = vmul.f32 %v10522_v3, %v12607_v1  ;;  %v615_v57 = vrot.slane %v561_v58, 2  ;;  %v183_v21 = vmul.f32 %v10523_v59, %v12607_v1  ;;  %v18341_v59 = vrot.slane %v12762_v55, 1 }
 0x2a1   :  { %5073 = vrot.lane.b32.xlu0 %v5031_v63, %s10635_s4  ;;  %5075 = vrot.lane.b32.xlu1 %v5030_v17, %s10635_s4  ;;  %v327_v38 = vsel %vm324_vm3, %v325_v13, %v18335_v40  ;;  %v838_v63 = vmul.f32 %v10522_v3, %v12629_v14  ;;  %v12811_v17 = vld [vmem:[#allocation2 + $0x88] sm:$0xf]  ;;  %v12815_v13 = vld [vmem:[#allocation2 + $0x80] sm:$0xff]  ;;  %v18340_v40 = vrot.slane %v12754_v42, 1  ;;  %v884_v44 = vrot.slane %v833_v30, 3 }
 0x2a2   :  { %18338 = vst [vmem:[#allocation214_spill] sm:$0xff] %v12811_v17  ;;  %v4976_v0 = vmul.f32 %v12811_v17, %v12110_v45  ;;  %18339 = vst [vmem:[#allocation215_spill] sm:$0xff] %v12815_v13  ;;  %v12819_v3 = vmul.f32 %v12815_v13, %v12110_v45  ;;  %v669_v17 = vadd.f32 %v609_v35, %v392_v36  ;;  %v18342_v13 = vrot.slane %v12622_v39, 2 }
 0x2a3   :  { %v12804_v23 = vpop.permute.xlu0 %2931  ;;  %v12809_v27 = vpop.permute.xlu1 %3305  ;;  %v339_v32 = vsel %vm324_vm3, %v18340_v40, %v338_v54  ;;  %v389_v53 = vadd.f32 %v327_v38, %v176_v10  ;;  %v397_v25 = vadd.f32 %v338_v54, %v184_v47  ;;  %v879_v40 = vrot.slane %v830_v5, 3 }
 0x2a4   :  { %18336 = vst [vmem:[#allocation212_spill] sm:$0xff] %v12804_v23  ;;  %18337 = vst [vmem:[#allocation213_spill] sm:$0xff] %v12809_v27  ;;  %v4302_v23 = vsel %vm324_vm3, %v18341_v59, %v4301_v33  ;;  %v4660_v27 = vrot.slane %v4602_v9, 2  ;;  %v604_v42 = vsel %vm601_vm4, %v602_v8, %v18342_v13  ;;  %v892_v12 = vrot.slane %v838_v63, 3 }
 0x2a5   :  { %4013 = vrot.lane.b32.xlu0 %v3944_v7, %s10635_s4  ;;  %4347 = vrot.lane.b32.xlu1 %v4302_v23, %s10635_s4  ;;  %v17962_v58 = vrot.slane %v12802_v37, 3  ;;  %v396_v59 = vadd.f32 %v339_v32, %v183_v21  ;;  %v5035_v9 = vrot.slane %v4976_v0, 3  ;;  %v17965_v36 = vrot.slane %v12819_v3, 3  ;;  %v10526_v7 = vld [vmem:[#allocation2 + $0x50] sm:$0xff]  ;;  %v10527_v0 = vld [vmem:[#allocation2 + $0x58] sm:$0xf] }
 0x2a6   :  { %v4233_v35 = vmul.f32 %v12224_v19, %v11742_v31  ;;  %v18343_v30 = vrot.slane %v12780_v61, 2  ;;  %v18344_v8 = vrot.slane %v12603_v49, 2  ;;  %v12850_v10 = vmul.f32 %v12232_v62, %v11930_v22 }
 0x2a7   :  { %v12834_v55 = vpop.permute.xlu0 %3307  ;;  %v12836_v4 = vpop.permute.xlu1 %3663  ;;  %v4607_v54 = vmul.f32 %v12238_v16, %v11930_v22  ;;  %v18345_v47 = vrot.slane %v12706_v2, 3  ;;  %v666_v23 = vadd.f32 %v604_v42, %v389_v53  ;;  %v674_v63 = vadd.f32 %v615_v57, %v397_v25 }
 0x2a8   :  { %v616_v39 = vsel %vm601_vm4, %v18343_v30, %v615_v57  ;;  %v4662_v5 = vsel %vm601_vm4, %v4660_v27, %v18344_v8  ;;  %v12858_v49 = vmul.f32 %v10526_v7, %v12581_v29  ;;  %v18346_v21 = vrot.slane %v12641_v34, 3 }
 0x2a9   :  { %4349 = vrot.lane.b32.xlu0 %v4301_v33, %s10635_s4  ;;  %v886_v38 = vsel %vm878_vm5, %v884_v44, %v18345_v47  ;;  %4705 = vrot.lane.b32.xlu1 %v4662_v5, %s10635_s4  ;;  %v287_v13 = vmul.f32 %v10527_v0, %v12581_v29  ;;  %v12866_v2 = vmul.f32 %v10526_v7, %v12609_v6  ;;  %v4293_v57 = vrot.slane %v4233_v35, 1 }
 0x2aa   :  { %v946_v33 = vadd.f32 %v886_v38, %v669_v17  ;;  %v881_v27 = vsel %vm878_vm5, %v879_v40, %v18346_v21  ;;  %v673_v25 = vadd.f32 %v616_v39, %v396_v59  ;;  %v12871_v53 = vmul.f32 %v10526_v7, %v12607_v1  ;;  %v12883_v59 = vld [vmem:[#allocation2 + $0x60] sm:$0xff] }
 0x2ab   :  { %v12868_v44 = vpop.permute.xlu0 %3997  ;;  %v12873_v42 = vpop.permute.xlu1 %3999  ;;  %v5036_v34 = vsel %vm878_vm5, %v17965_v36, %v5035_v9  ;;  %v893_v17 = vsel %vm878_vm5, %v17962_v58, %v892_v12  ;;  %v17964_v32 = vrot.slane %v12850_v10, 2  ;;  %v4668_v40 = vrot.slane %v4607_v54, 2 }
 0x2ac   :  { %v4971_v30 = vmul.f32 %v12883_v59, %v12110_v45  ;;  %v943_v39 = vadd.f32 %v881_v27, %v666_v23  ;;  %v12887_v8 = vadd.f32 %v892_v12, %v674_v63  ;;  %v17963_v5 = vrot.slane %v12858_v49, 1 }
 0x2ad   :  { %5079 = vrot.lane.b32.xlu0 %v5036_v34, %s10635_s4  ;;  %v12891_v35 = vmul.f32 %v10527_v0, %v12609_v6  ;;  %5081 = vrot.lane.b32.xlu1 %v5035_v9, %s10635_s4  ;;  %v343_v47 = vrot.slane %v287_v13, 1  ;;  %v12896_v54 = vmul.f32 %v10526_v7, %v12629_v14  ;;  %v12899_v21 = vmul.f32 %v10527_v0, %v12629_v14 }
 0x2ae   :  { %v950_v12 = vadd.f32 %v893_v17, %v673_v25  ;;  %v187_v23 = vmul.f32 %v10527_v0, %v12607_v1  ;;  %v18347_v27 = vrot.slane %v12669_v24, 1  ;;  %v4236_v13 = vmul.f32 %v12447_v28, %v11742_v31 }
 0x2af   :  { %v12901_v34 = vpop.permute.xlu0 %4315  ;;  %v12904_v63 = vpop.permute.xlu1 %4689  ;;  %v4669_v7 = vsel %vm601_vm4, %v17964_v32, %v4668_v40  ;;  %v5027_v58 = vrot.slane %v4971_v30, 3  ;;  %v12917_v25 = vmul.f32 %v12134_v48, %v11930_v22  ;;  %v4610_v0 = vmul.f32 %v12314_v41, %v11930_v22  ;;  %v18349_v32 = vld [vmem:[#allocation137_spill] sm:$0xff] }
 0x2b0   :  { %v4295_v9 = vsel %vm324_vm3, %v4293_v57, %v18347_v27  ;;  %v1229_v24 = vadd.f32 %v11104_v15, %v12736_v11  ;;  %v1228_v31 = vadd.f32 %v11102_v51, %v12738_v60  ;;  %v1232_v57 = vadd.f32 %v11114_v26, %v12742_v56  ;;  %v18355_v15 = vld [vmem:[#allocation22_spill] sm:$0xff] }
 0x2b1   :  { %4339 = vrot.lane.b32.xlu0 %v4295_v9, %s10635_s4  ;;  %4713 = vrot.lane.b32.xlu1 %v4669_v7, %s10635_s4  ;;  %v1231_v48 = vadd.f32 %v11112_v20, %v12792_v43  ;;  %v344_v30 = vsel %vm324_vm3, %v17963_v5, %v343_v47  ;;  %v4298_v9 = vrot.slane %v4236_v13, 1  ;;  %v18348_v20 = vrot.slane %v12727_v18, 3  ;;  %v18353_v18 = vld [vmem:[#allocation7_spill] sm:$0xff] }
 0x2b2   :  { %v1564_v51 = vadd.f32 %v11233_v52, %v1232_v57  ;;  %v1561_v56 = vadd.f32 %v11272_v50, %v1229_v24  ;;  %v1560_v26 = vadd.f32 %v11293_v46, %v1228_v31  ;;  %v17966_v7 = vrot.slane %v12917_v25, 2  ;;  %v18350_v52 = vld [vmem:[#allocation6_spill] sm:$0xff]  ;;  %v18352_v31 = vld [vmem:[#allocation28_spill] sm:$0xff] }
 0x2b3   :  { %v12936_v11 = vpop.permute.xlu0 %4691  ;;  %v12941_v60 = vpop.permute.xlu1 %5047  ;;  %v5029_v43 = vsel %vm878_vm5, %v5027_v58, %v18348_v20  ;;  %v4673_v5 = vrot.slane %v4610_v0, 2  ;;  %v4974_v27 = vmul.f32 %v18349_v32, %v12110_v45  ;;  %v1227_v57 = vadd.f32 %v18350_v52, %v943_v39  ;;  %v18351_v46 = vld [vmem:[#allocation26_spill] sm:$0xff]  ;;  %v18354_v20 = vld [vmem:[#allocation8_spill] sm:$0xff]  ;;  %v18356_v0 = vld [vmem:[#allocation35_spill] sm:$0xff] }
 0x2b4   :  { %v12951_v50 = vadd.f32 %v343_v47, %v187_v23  ;;  %v1933_v24 = vadd.f32 %v18351_v46, %v1561_v56  ;;  %v1932_v13 = vadd.f32 %v18352_v31, %v1560_v26  ;;  %v1230_v58 = vadd.f32 %v18353_v18, %v946_v33  ;;  %v18358_v32 = vld [vmem:[#allocation37_spill] sm:$0xff]  ;;  %v18364_v31 = vld [vmem:[#allocation24_spill] sm:$0xff]  ;;  %v18365_v18 = vld [vmem:[#allocation39_spill] sm:$0xff] }
 0x2b5   :  { %4715 = vrot.lane.b32.xlu0 %v4668_v40, %s10635_s4  ;;  %5071 = vrot.lane.b32.xlu1 %v5029_v43, %s10635_s4  ;;  %v1234_v40 = vadd.f32 %v18354_v20, %v950_v12  ;;  %v1936_v36 = vadd.f32 %v18355_v15, %v1564_v51  ;;  %v1563_v38 = vadd.f32 %v18356_v0, %v1231_v48  ;;  %v18359_v47 = vld [vmem:[#allocation41_spill] sm:$0xff]  ;;  %v5032_v48 = vrot.slane %v4974_v27, 3 }
 0x2b6   :  { %v1559_v39 = vadd.f32 %v18358_v32, %v1227_v57  ;;  %v2304_v23 = vadd.f32 %v18359_v47, %v1932_v13  ;;  %v18361_v56 = vld [vmem:[#allocation209_spill] sm:$0xff]  ;;  %v4605_v33 = vmul.f32 %v12224_v19, %v11930_v22  ;;  %v4674_v12 = vsel %vm601_vm4, %v17966_v7, %v4673_v5  ;;  %v18370_v47 = vld [vmem:[#allocation32_spill] sm:$0xff] }
 0x2b7   :  { %v12960_v17 = vpop.permute.xlu0 %2937  ;;  %v12964_v52 = vpop.permute.xlu1 %3311  ;;  %v18362_v26 = vrot.slane %v18361_v56, 1  ;;  %v12977_v15 = vmul.f32 %v12232_v62, %v12110_v45  ;;  %v4979_v51 = vmul.f32 %v12238_v16, %v12110_v45  ;;  %v12982_v57 = vadd.f32 %v344_v30, %v12871_v53  ;;  %v18366_v27 = vld [vmem:[#allocation9_spill] sm:$0xff]  ;;  %v18369_v53 = vld [vmem:[#allocation30_spill] sm:$0xff] }
 0x2b8   :  { %18357 = vst [vmem:[#allocation137_spill] sm:$0xff] %v12960_v17  ;;  %18360 = vst [vmem:[#allocation6_spill] sm:$0xff] %v12964_v52  ;;  %v2305_v13 = vadd.f32 %v18364_v31, %v1933_v24  ;;  %v1935_v20 = vadd.f32 %v18365_v18, %v1563_v38  ;;  %v1235_v0 = vadd.f32 %v18366_v27, %v12887_v8  ;;  %v18367_v62 = vrot.slane %v12891_v35, 2  ;;  %v18372_v24 = vld [vmem:[#allocation34_spill] sm:$0xff] }
 0x2b9   :  { %v4300_v43 = vsel %vm324_vm3, %v4298_v9, %v18362_v26  ;;  %v18363_v9 = vld [vmem:[#allocation25_spill] sm:$0xff]  ;;  %4719 = vrot.lane.b32.xlu1 %v4674_v12, %s10635_s4  ;;  %v18368_v32 = vrot.slane %v12866_v2, 2  ;;  %v1562_v30 = vadd.f32 %v18369_v53, %v1230_v58  ;;  %v1931_v38 = vadd.f32 %v18372_v24, %v1559_v39  ;;  %v18373_v26 = vld [vmem:[#allocation43_spill] sm:$0xff]  ;;  %v18374_v12 = vld [vmem:[#allocation18_spill] sm:$0xff] }
 0x2ba   :  { %4345 = vrot.lane.b32.xlu0 %v4300_v43, %s10635_s4  ;;  %v2308_v46 = vadd.f32 %v18363_v9, %v1936_v36  ;;  %v1566_v36 = vadd.f32 %v18370_v47, %v1234_v40  ;;  %v2307_v43 = vadd.f32 %v18373_v26, %v1935_v20  ;;  %v2636_v9 = vadd.f32 %v18374_v12, %v2304_v23  ;;  %v18382_v24 = vld [vmem:[#allocation40_spill] sm:$0xff] }
 0x2bb   :  { %v12995_v16 = vsel %vm601_vm4, %v18368_v32, %v18367_v62  ;;  %v12999_v56 = vpop.permute.xlu0 %3313  ;;  %v13004_v8 = vpop.permute.xlu1 %3669  ;;  %v4665_v31 = vrot.slane %v4605_v33, 2  ;;  %v18375_v18 = vrot.slane %v12819_v3, 3  ;;  %v5040_v40 = vrot.slane %v4979_v51, 3  ;;  %v18378_v33 = vld [vmem:[#allocation27_spill] sm:$0xff] }
 0x2bc   :  { %18371 = vst [vmem:[#allocation26_spill] sm:$0xff] %v12999_v56  ;;  %v4608_v62 = vmul.f32 %v12447_v28, %v11930_v22  ;;  %v18376_v39 = vrot.slane %v12899_v21, 3  ;;  %v18377_v20 = vrot.slane %v12896_v54, 3  ;;  %v1567_v32 = vadd.f32 %v18378_v33, %v1235_v0  ;;  %v18379_v3 = vld [vmem:[#allocation15_spill] sm:$0xff]  ;;  %v18383_v22 = vld [vmem:[#allocation42_spill] sm:$0xff] }
 0x2bd   :  { %v5034_v27 = vsel %vm878_vm5, %v5032_v48, %v18375_v18  ;;  %v2637_v53 = vadd.f32 %v18379_v3, %v2305_v13  ;;  %v18380_v48 = vld [vmem:[#allocation19_spill] sm:$0xff]  ;;  %v1938_v26 = vadd.f32 %v18382_v24, %v1566_v36  ;;  %v2303_v12 = vadd.f32 %v18383_v22, %v1931_v38  ;;  %v18384_v18 = vld [vmem:[#allocation54_spill] sm:$0xff]  ;;  %v18387_v38 = vld [vmem:[#allocation21_spill] sm:$0xff] }
 0x2be   :  { %4721 = vrot.lane.b32.xlu0 %v4673_v5, %s10635_s4  ;;  %v13018_v23 = vsel %vm878_vm5, %v18377_v20, %v18376_v39  ;;  %v2640_v47 = vadd.f32 %v18380_v48, %v2308_v46  ;;  %5077 = vrot.lane.b32.xlu1 %v5034_v27, %s10635_s4  ;;  %v18381_v5 = vld [vmem:[#allocation38_spill] sm:$0xff]  ;;  %v2968_v7 = vadd.f32 %v18384_v18, %v2636_v9  ;;  %v18385_v39 = vld [vmem:[#allocation55_spill] sm:$0xff]  ;;  %v18386_v13 = vrot.slane %v12850_v10, 2 }
 0x2bf   :  { %v1934_v51 = vadd.f32 %v18381_v5, %v1562_v30  ;;  %v13028_v58 = vpop.permute.xlu0 %4003  ;;  %v2969_v20 = vadd.f32 %v18385_v39, %v2637_v53  ;;  %v13031_v17 = vpop.permute.xlu1 %4005  ;;  %v4982_v0 = vmul.f32 %v12314_v41, %v12110_v45  ;;  %v13038_v30 = vld [vmem:[#allocation2 + $0xb0] sm:$0xff]  ;;  %v2639_v9 = vadd.f32 %v18387_v38, %v2307_v43  ;;  %v18388_v27 = vld [vmem:[#allocation74_spill] sm:$0xff]  ;;  %v18392_v24 = vld [vmem:[#allocation75_spill] sm:$0xff] }
 0x2c0   :  { %v4667_v46 = vsel %vm601_vm4, %v4665_v31, %v18386_v13  ;;  %v13042_v36 = vmul.f32 %v13038_v30, %v12110_v45  ;;  %v3340_v33 = vadd.f32 %v18388_v27, %v2968_v7  ;;  %v18389_v3 = vrot.slane %v12977_v15, 3  ;;  %v18390_v31 = vld [vmem:[#allocation31_spill] sm:$0xff]  ;;  %v18391_v41 = vld [vmem:[#allocation46_spill] sm:$0xff]  ;;  %v18394_v39 = vld [vmem:[#allocation53_spill] sm:$0xff] }
 0x2c1   :  { %v4670_v10 = vrot.slane %v4608_v62, 2  ;;  %v1939_v48 = vadd.f32 %v18390_v31, %v1567_v32  ;;  %v2306_v5 = vadd.f32 %v18391_v41, %v1934_v51  ;;  %v3341_v22 = vadd.f32 %v18392_v24, %v2969_v20  ;;  %v18393_v18 = vld [vmem:[#allocation51_spill] sm:$0xff]  ;;  %v18397_v32 = vld [vmem:[#allocation64_spill] sm:$0xff]  ;;  %v18398_v51 = vld [vmem:[#allocation98_spill] sm:$0xff] }
 0x2c2   :  { %v5041_v53 = vsel %vm878_vm5, %v18389_v3, %v5040_v40  ;;  %4711 = vrot.lane.b32.xlu0 %v4667_v46, %s10635_s4  ;;  %v4977_v43 = vmul.f32 %v12224_v19, %v12110_v45  ;;  %v2310_v7 = vadd.f32 %v18393_v18, %v1938_v26  ;;  %v2635_v13 = vadd.f32 %v18394_v39, %v2303_v12  ;;  %v18395_v38 = vld [vmem:[#allocation63_spill] sm:$0xff]  ;;  %v18396_v3 = vld [vmem:[#allocation97_spill] sm:$0xff] }
 0x2c3   :  { %5085 = vrot.lane.b32.xlu1 %v5041_v53, %s10635_s4  ;;  %v2971_v27 = vadd.f32 %v18395_v38, %v2639_v9  ;;  %v3712_v46 = vadd.f32 %v18396_v3, %v3340_v33  ;;  %v13060_v62 = vpop.permute.xlu0 %4321  ;;  %v2972_v31 = vadd.f32 %v18397_v32, %v2640_v47  ;;  %v3713_v41 = vadd.f32 %v18398_v51, %v3341_v22  ;;  %v13066_v20 = vpop.permute.xlu1 %4695  ;;  %v18399_v26 = vld [vmem:[#allocation85_spill] sm:$0xff]  ;;  %v18402_v22 = vld [vmem:[#allocation62_spill] sm:$0xff] }
 0x2c4   :  { %v5045_v53 = vrot.slane %v4982_v0, 3  ;;  %v5043_v19 = vrot.slane %v13042_v36, 3  ;;  %v18400_v12 = vld [vmem:[#allocation121_spill] sm:$0xff]  ;;  %v18401_v9 = vrot.slane %v12917_v25, 2  ;;  %v4980_v47 = vmul.f32 %v12447_v28, %v12110_v45  ;;  %v18403_v38 = vld [vmem:[#allocation86_spill] sm:$0xff]  ;;  %v18409_v45 = vld [vmem:[#allocation84_spill] sm:$0xff] }
 0x2c5   :  { %v3343_v24 = vadd.f32 %v18399_v26, %v2971_v27  ;;  %v4044_v18 = vadd.f32 %v18400_v12, %v3712_v46  ;;  %v2638_v39 = vadd.f32 %v18402_v22, %v2306_v5  ;;  %v3344_v3 = vadd.f32 %v18403_v38, %v2972_v31  ;;  %v18404_v0 = vld [vmem:[#allocation122_spill] sm:$0xff]  ;;  %v18405_v27 = vld [vmem:[#allocation52_spill] sm:$0xff]  ;;  %v18406_v51 = vld [vmem:[#allocation73_spill] sm:$0xff] }
 0x2c6   :  { %v4672_v33 = vsel %vm601_vm4, %v4670_v10, %v18401_v9  ;;  %5087 = vrot.lane.b32.xlu0 %v5040_v40, %s10635_s4  ;;  %v4045_v32 = vadd.f32 %v18404_v0, %v3713_v41  ;;  %v5037_v36 = vrot.slane %v4977_v43, 3  ;;  %v2311_v46 = vadd.f32 %v18405_v27, %v1939_v48  ;;  %v18407_v26 = vld [vmem:[#allocation109_spill] sm:$0xff]  ;;  %v18408_v12 = vld [vmem:[#allocation146_spill] sm:$0xff]  ;;  %v18411_v31 = vld [vmem:[#allocation147_spill] sm:$0xff] }
 0x2c7   :  { %4717 = vrot.lane.b32.xlu1 %v4672_v33, %s10635_s4  ;;  %v2967_v25 = vadd.f32 %v18406_v51, %v2635_v13  ;;  %v3715_v10 = vadd.f32 %v18407_v26, %v3343_v24  ;;  %v4376_v40 = vadd.f32 %v18408_v12, %v4044_v18  ;;  %v13085_v9 = vpop.permute.xlu0 %4697  ;;  %v2970_v28 = vadd.f32 %v18409_v45, %v2638_v39  ;;  %v18410_v5 = vld [vmem:[#allocation110_spill] sm:$0xff]  ;;  %v5054_v41 = vpop.permute.xlu1 %5053  ;;  %v18412_v43 = vld [vmem:[#allocation96_spill] sm:$0xff]  ;;  %v18413_v48 = vld [vmem:[#allocation133_spill] sm:$0xff] }
 0x2c8   :  { %v3716_v22 = vadd.f32 %v18410_v5, %v3344_v3  ;;  %v4377_v38 = vadd.f32 %v18411_v31, %v4045_v32  ;;  %v5046_v33 = vsel %vm878_vm5, %v5043_v19, %v5045_v53  ;;  %v18414_v13 = vld [vmem:[#allocation170_spill] sm:$0xff]  ;;  %v5042_v18 = vrot.slane %v4980_v47, 3  ;;  %v18415_v51 = vld [vmem:[#allocation108_spill] sm:$0xff]  ;;  %v18417_v3 = vld [vmem:[#allocation171_spill] sm:$0xff] }
 0x2c9   :  { %v3339_v0 = vadd.f32 %v18412_v43, %v2967_v25  ;;  %v4047_v27 = vadd.f32 %v18413_v48, %v3715_v10  ;;  %v4748_v24 = vadd.f32 %v18414_v13, %v4376_v40  ;;  %v3342_v26 = vadd.f32 %v18415_v51, %v2970_v28  ;;  %v18416_v39 = vld [vmem:[#allocation134_spill] sm:$0xff]  ;;  %v18419_v5 = vld [vmem:[#allocation71_spill] sm:$0xff]  ;;  %v18420_v31 = vld [vmem:[#allocation120_spill] sm:$0xff] }
 0x2ca   :  { %5091 = vrot.lane.b32.xlu0 %v5046_v33, %s10635_s4  ;;  %v4048_v12 = vadd.f32 %v18416_v39, %v3716_v22  ;;  %v4749_v45 = vadd.f32 %v18417_v3, %v4377_v38  ;;  %v18418_v32 = vrot.slane %v12977_v15, 3  ;;  %v2642_v10 = vadd.f32 %v18419_v5, %v2310_v7  ;;  %v18421_v40 = vld [vmem:[#allocation158_spill] sm:$0xff]  ;;  %v18424_v28 = vld [vmem:[#allocation132_spill] sm:$0xff]  ;;  %v18425_v51 = vld [vmem:[#allocation159_spill] sm:$0xff] }
 0x2cb   :  { %5093 = vrot.lane.b32.xlu1 %v5045_v53, %s10635_s4  ;;  %v3711_v43 = vadd.f32 %v18420_v31, %v3339_v0  ;;  %v4379_v48 = vadd.f32 %v18421_v40, %v4047_v27  ;;  %v18422_v33 = vld [vmem:[#allocation194_spill] sm:$0xff]  ;;  %v13106_v13 = vpop.permute.xlu0 %3303  ;;  %v3714_v22 = vadd.f32 %v18424_v28, %v3342_v26  ;;  %v13111_v39 = vstv %s13064_s12  ;;  %v18426_v53 = vld [vmem:[#allocation195_spill] sm:$0xff]  ;;  %v13114_v3 = vpop.permute.xlu1 %3677  ;;  %v18431_v40 = vld [vmem:[#allocation157_spill] sm:$0xff]  ;;  %s15692_s12 = sld [smem:[#allocation3 + $0x1c]] }
 0x2cc   :  { %v5039_v25 = vsel %vm878_vm5, %v5037_v36, %v18418_v32  ;;  %v5120_v47 = vadd.f32 %v18422_v33, %v4748_v24  ;;  %18423 = vst [vmem:[#allocation28_spill] sm:$0xff] %v13106_v13  ;;  %v4380_v38 = vadd.f32 %v18425_v51, %v4048_v12  ;;  %v5121_v15 = vadd.f32 %v18426_v53, %v4749_v45  ;;  %v18427_v36 = vld [vmem:[#allocation94_spill] sm:$0xff]  ;;  %v18428_v32 = vld [vmem:[#allocation145_spill] sm:$0xff]  ;;  %v18430_v12 = vld [vmem:[#allocation72_spill] sm:$0xff] }
 0x2cd   :  { %v2974_v7 = vadd.f32 %v18427_v36, %v2642_v10  ;;  %v4043_v0 = vadd.f32 %v18428_v32, %v3711_v43  ;;  %v18429_v5 = vld [vmem:[#allocation182_spill] sm:$0xff]  ;;  %v5044_v24 = vsel %vm878_vm5, %v5042_v18, %v5043_v19  ;;  %v676_v26 = vadd.f32 %v12995_v16, %v12982_v57  ;;  %v18432_v45 = vld [vmem:[#allocation183_spill] sm:$0xff]  ;;  %v18434_v43 = vld [vmem:[#allocation169_spill] sm:$0xff] }
 0x2ce   :  { %v4751_v27 = vadd.f32 %v18429_v5, %v4379_v48  ;;  %5083 = vrot.lane.b32.xlu0 %v5039_v25, %s10635_s4  ;;  %v2643_v31 = vadd.f32 %v18430_v12, %v2311_v46  ;;  %v4046_v33 = vadd.f32 %v18431_v40, %v3714_v22  ;;  %v4752_v28 = vadd.f32 %v18432_v45, %v4380_v38  ;;  %v18433_v10 = vld [vmem:[#allocation118_spill] sm:$0xff]  ;;  %v18438_v57 = vld [vmem:[#allocation95_spill] sm:$0xff]  ;;  %v18439_v46 = vld [vmem:[#allocation181_spill] sm:$0xff] }
 0x2cf   :  { %5089 = vrot.lane.b32.xlu1 %v5044_v24, %s10635_s4  ;;  %v3346_v51 = vadd.f32 %v18433_v10, %v2974_v7  ;;  %v4375_v53 = vadd.f32 %v18434_v43, %v4043_v0  ;;  %v13130_v48 = vadd.f32 %v13111_v39, %v5120_v47  ;;  %v18436_v19 = vld [vmem:[#allocation210_spill] sm:$0xff]  ;;  %v13133_v25 = vpop.permute.xlu0 %3679  ;;  %v13138_v22 = vadd.f32 %v13111_v39, %v5121_v15  ;;  %v18441_v38 = vld [vmem:[#allocation211_spill] sm:$0xff]  ;;  %v13141_v5 = vpop.permute.xlu1 %3995  ;;  %v10530_v0 = vld [vmem:[#allocation2 + $0x30] sm:$0xff] }
 0x2d0   :  { %v5123_v18 = vadd.f32 %v18436_v19, %v4751_v27  ;;  %18437 = vst [vmem:[#allocation8_spill] sm:$0xff] %v13133_v25  ;;  %v2975_v16 = vadd.f32 %v18438_v57, %v2643_v31  ;;  %v4378_v36 = vadd.f32 %v18439_v46, %v4046_v33  ;;  %v5124_v32 = vadd.f32 %v18441_v38, %v4752_v28  ;;  %v18443_v24 = vld [vmem:[#allocation143_spill] sm:$0xff]  ;;  %v18444_v40 = vld [vmem:[#allocation193_spill] sm:$0xff]  ;;  %v18449_v57 = vld [vmem:[#allocation144_spill] sm:$0xff] }
 0x2d1   :  { %18435 = vst [vmem:[#allocation7_spill] sm:$0xff] %v13130_v48  ;;  %18440 = vst [vmem:[#allocation22_spill] sm:$0xff] %v13138_v22  ;;  %v18442_v7 = vrot.slane %v12891_v35, 2  ;;  %v282_v27 = vmul.f32 %v10530_v0, %v12581_v29  ;;  %v3718_v12 = vadd.f32 %v18443_v24, %v3346_v51  ;;  %v4747_v31 = vadd.f32 %v18444_v40, %v4375_v53  ;;  %v18445_v15 = vld [vmem:[#allocation119_spill] sm:$0xff]  ;;  %v18515_v25 = vld [vmem:[#allocation105_spill] sm:$0xff] }
 0x2d2   :  { %5385 = vrot.lane.b32.xlu0 %v13130_v48, %s10633_s0  ;;  %v3347_v33 = vadd.f32 %v18445_v15, %v2975_v16  ;;  %v18446_v45 = vld [vmem:[#allocation207_spill] sm:$0xff]  ;;  %v559_v35 = vmul.f32 %v10530_v0, %v12609_v6  ;;  %v13158_v43 = vadd.f32 %v13111_v39, %v5123_v18  ;;  %v953_v19 = vadd.f32 %v13018_v23, %v676_v26  ;;  %v18454_v26 = vld [vmem:[#allocation168_spill] sm:$0xff] }
 0x2d3   :  { %v677_v47 = vadd.f32 %v18442_v7, %v12951_v50  ;;  %v4750_v28 = vadd.f32 %v18446_v45, %v4378_v36  ;;  %5387 = vrot.lane.b32.xlu1 %v13138_v22, %s10633_s0  ;;  %v18447_v50 = vld [vmem:[#allocation167_spill] sm:$0xff]  ;;  %v5119_v51 = vadd.f32 %v12941_v60, %v4747_v31  ;;  %v13161_v53 = vpop.permute.xlu0 %4329  ;;  %v13166_v46 = vadd.f32 %v13111_v39, %v5124_v32  ;;  %v13168_v38 = vpop.permute.xlu1 %4331 }
 0x2d4   :  { %v4050_v10 = vadd.f32 %v18447_v50, %v3718_v12  ;;  %18448 = vst [vmem:[#allocation35_spill] sm:$0xff] %v13158_v43  ;;  %v3719_v16 = vadd.f32 %v18449_v57, %v3347_v33  ;;  %v18451_v7 = vrot.slane %v12899_v21, 3  ;;  %v335_v12 = vrot.slane %v282_v27, 1  ;;  %v18452_v18 = vld [vmem:[#allocation191_spill] sm:$0xff] }
 0x2d5   :  { %18450 = vst [vmem:[#allocation37_spill] sm:$0xff] %v13166_v46  ;;  %v5122_v36 = vadd.f32 %v5054_v41, %v4750_v28  ;;  %v18453_v60 = vld [vmem:[#allocation11_spill] sm:$0xff]  ;;  %v182_v23 = vmul.f32 %v10530_v0, %v12607_v1  ;;  %v18455_v41 = vld [vmem:[#allocation10_spill] sm:$0xff]  ;;  %v836_v21 = vmul.f32 %v10530_v0, %v12629_v14  ;;  %v13184_v27 = vadd.f32 %v13111_v39, %v5119_v51  ;;  %v18457_v28 = vld [vmem:[#allocation36_spill] sm:$0xff] }
 0x2d6   :  { %v954_v24 = vadd.f32 %v18451_v7, %v677_v47  ;;  %v4382_v40 = vadd.f32 %v18452_v18, %v4050_v10  ;;  %5391 = vrot.lane.b32.xlu0 %v13158_v43, %s10633_s0  ;;  %v1237_v31 = vadd.f32 %v18453_v60, %v953_v19  ;;  %v4051_v15 = vadd.f32 %v18454_v26, %v3719_v16  ;;  %v18458_v10 = vld [vmem:[#allocation192_spill] sm:$0xff]  ;;  %v18462_v18 = vld [vmem:[#allocation29_spill] sm:$0xff] }
 0x2d7   :  { %5393 = vrot.lane.b32.xlu1 %v13166_v46, %s10633_s0  ;;  %18456 = vst [vmem:[#allocation41_spill] sm:$0xff] %v13184_v27  ;;  %v13186_v33 = vpop.permute.xlu0 %4687  ;;  %v612_v45 = vrot.slane %v559_v35, 2  ;;  %v13191_v57 = vadd.f32 %v13111_v39, %v5122_v36  ;;  %v5062_v16 = vpop.permute.xlu1 %5061  ;;  %v18460_v7 = vld [vmem:[#allocation208_spill] sm:$0xff]  ;;  %v18490_v22 = vrot.slane %v12866_v2, 2 }
 0x2d8   :  { %v1238_v32 = vadd.f32 %v18455_v41, %v954_v24  ;;  %v4754_v47 = vadd.f32 %v12904_v63, %v4382_v40  ;;  %v1569_v50 = vadd.f32 %v18457_v28, %v1237_v31  ;;  %v4383_v19 = vadd.f32 %v18458_v10, %v4051_v15  ;;  %v5329_v35 = vld [vmem:[%s17899_s2 + $0x10] sm:$0xff] }
 0x2d9   :  { %18459 = vst [vmem:[#allocation209_spill] sm:$0xff] %v13191_v57  ;;  %v18461_v24 = vrot.slane %v18460_v7, 1  ;;  %v18463_v51 = vld [vmem:[#allocation44_spill] sm:$0xff]  ;;  %10183 = vmatprep.mubr.msk.f32.mxu0 %vm5591_vm6, %v5329_v35  ;;  %10190 = vmatprep.mubr.msk.f32.mxu1 %vm5591_vm6, %v5329_v35 }
 0x2da   :  { %v1570_v63 = vadd.f32 %v18462_v18, %v1238_v32  ;;  %v5126_v40 = vadd.f32 %v5062_v16, %v4754_v47  ;;  %5383 = vrot.lane.b32.xlu0 %v13184_v27, %s10633_s0  ;;  %v1941_v60 = vadd.f32 %v18463_v51, %v1569_v50  ;;  %v4755_v36 = vadd.f32 %v12936_v11, %v4383_v19  ;;  %v18466_v32 = vld [vmem:[#allocation60_spill] sm:$0xff]  ;;  %v18469_v16 = vld [vmem:[#allocation61_spill] sm:$0xff] }
 0x2db   :  { %v337_v0 = vsel %vm324_vm3, %v335_v12, %v18461_v24  ;;  %5389 = vrot.lane.b32.xlu1 %v13191_v57, %s10633_s0  ;;  %v18464_v12 = vld [vmem:[#allocation33_spill] sm:$0xff]  ;;  %v5064_v15 = vpop.permute.xlu0 %5063  ;;  %v13213_v28 = vpop.permute.xlu1 %3309  ;;  %v18468_v11 = vrot.slane %v12780_v61, 2  ;;  %v889_v19 = vrot.slane %v836_v21, 3  ;;  %v10531_v24 = vld [vmem:[#allocation2 + $0x48] sm:$0xff]  ;;  %v18487_v46 = vld [vmem:[#allocation180_spill] sm:$0xff] }
 0x2dc   :  { %v1942_v31 = vadd.f32 %v18464_v12, %v1570_v63  ;;  %v13209_v26 = vadd.f32 %v13111_v39, %v5126_v40  ;;  %v395_v41 = vadd.f32 %v337_v0, %v182_v23  ;;  %v2313_v47 = vadd.f32 %v18466_v32, %v1941_v60  ;;  %18467 = vst [vmem:[#allocation24_spill] sm:$0xff] %v13213_v28  ;;  %v18470_v63 = vld [vmem:[#allocation82_spill] sm:$0xff]  ;;  %v18472_v40 = vld [vmem:[#allocation204_spill] sm:$0xff]  ;;  %v18473_v61 = vld [vmem:[#allocation83_spill] sm:$0xff] }
 0x2dd   :  { %v5127_v50 = vadd.f32 %v5064_v15, %v4755_v36  ;;  %v614_v10 = vsel %vm601_vm4, %v612_v45, %v18468_v11  ;;  %v285_v18 = vmul.f32 %v10531_v24, %v12581_v29  ;;  %v290_v35 = vmul.f32 %v18472_v40, %v12581_v29  ;;  %v18475_v60 = vld [vmem:[#allocation106_spill] sm:$0xff] }
 0x2de   :  { %18465 = vst [vmem:[#allocation25_spill] sm:$0xff] %v13209_v26  ;;  %v2314_v7 = vadd.f32 %v18469_v16, %v1942_v31  ;;  %5397 = vrot.lane.b32.xlu0 %v13209_v26, %s10633_s0  ;;  %v2645_v23 = vadd.f32 %v18470_v63, %v2313_v47  ;;  %v672_v21 = vadd.f32 %v614_v10, %v395_v41  ;;  %v18477_v31 = vrot.slane %v12802_v37, 3  ;;  %v18478_v47 = vld [vmem:[#allocation107_spill] sm:$0xff]  ;;  %v18479_v16 = vld [vmem:[#allocation130_spill] sm:$0xff]  ;;  %v18483_v26 = vld [vmem:[#allocation12_spill] sm:$0xff] }
 0x2df   :  { %v13224_v0 = vadd.f32 %v13111_v39, %v5127_v50  ;;  %v13229_v45 = vpop.permute.xlu0 %3683  ;;  %v13232_v12 = vpop.permute.xlu1 %3685  ;;  %v562_v32 = vmul.f32 %v10531_v24, %v12609_v6  ;;  %v340_v11 = vrot.slane %v285_v18, 1  ;;  %v190_v41 = vmul.f32 %v18472_v40, %v12607_v1  ;;  %v18506_v28 = vld [vmem:[#allocation166_spill] sm:$0xff] }
 0x2e0   :  { %v2646_v51 = vadd.f32 %v18473_v61, %v2314_v7  ;;  %18474 = vst [vmem:[#allocation9_spill] sm:$0xff] %v13229_v45  ;;  %v2977_v36 = vadd.f32 %v18475_v60, %v2645_v23  ;;  %18476 = vst [vmem:[#allocation30_spill] sm:$0xff] %v13232_v12  ;;  %v891_v15 = vsel %vm878_vm5, %v889_v19, %v18477_v31  ;;  %v348_v10 = vrot.slane %v290_v35, 1  ;;  %v18480_v23 = vld [vmem:[#allocation131_spill] sm:$0xff] }
 0x2e1   :  { %18471 = vst [vmem:[#allocation39_spill] sm:$0xff] %v13224_v0  ;;  %5399 = vrot.lane.b32.xlu1 %v13224_v0, %s10633_s0  ;;  %v13246_v63 = vmul.f32 %v18472_v40, %v12609_v6  ;;  %v949_v19 = vadd.f32 %v891_v15, %v672_v21  ;;  %v839_v60 = vmul.f32 %v10531_v24, %v12629_v14  ;;  %v18481_v31 = vld [vmem:[#allocation155_spill] sm:$0xff]  ;;  %v18485_v15 = vld [vmem:[#allocation205_spill] sm:$0xff] }
 0x2e2   :  { %v2978_v50 = vadd.f32 %v18478_v47, %v2646_v51  ;;  %v3349_v7 = vadd.f32 %v18479_v16, %v2977_v36  ;;  %v13257_v36 = vmul.f32 %v18472_v40, %v12629_v14  ;;  %v185_v35 = vmul.f32 %v10531_v24, %v12607_v1  ;;  %v18482_v16 = vld [vmem:[#allocation156_spill] sm:$0xff] }
 0x2e3   :  { %v13249_v37 = vpop.permute.xlu0 %4001  ;;  %v13253_v18 = vpop.permute.xlu1 %4335  ;;  %v617_v47 = vrot.slane %v562_v32, 2  ;;  %v403_v27 = vadd.f32 %v348_v10, %v190_v41  ;;  %v625_v40 = vrot.slane %v13246_v63, 2 }
 0x2e4   :  { %v3350_v61 = vadd.f32 %v18480_v23, %v2978_v50  ;;  %v3721_v51 = vadd.f32 %v18481_v31, %v3349_v7  ;;  %v1233_v50 = vadd.f32 %v18483_v26, %v949_v19  ;;  %v18484_v23 = vrot.slane %v12858_v49, 1  ;;  %v18486_v31 = vld [vmem:[#allocation179_spill] sm:$0xff] }
 0x2e5   :  { %v13267_v7 = vmul.f32 %v18485_v15, %v12581_v29  ;;  %v18489_v19 = vld [vmem:[#allocation203_spill] sm:$0xff]  ;;  %v619_v41 = vsel %vm601_vm4, %v617_v47, %v18490_v22 }
 0x2e6   :  { %v3722_v0 = vadd.f32 %v18482_v16, %v3350_v61  ;;  %v342_v21 = vsel %vm324_vm3, %v340_v11, %v18484_v23  ;;  %v4053_v57 = vadd.f32 %v18486_v31, %v3721_v51  ;;  %v894_v61 = vrot.slane %v839_v60, 3  ;;  %v18488_v16 = vld [vmem:[#allocation45_spill] sm:$0xff]  ;;  %v18491_v51 = vld [vmem:[#allocation206_spill] sm:$0xff] }
 0x2e7   :  { %v13272_v32 = vpop.permute.xlu0 %4337  ;;  %v1565_v26 = vadd.f32 %v18488_v16, %v1233_v50  ;;  %v13276_v43 = vpop.permute.xlu1 %4693  ;;  %v398_v23 = vadd.f32 %v342_v21, %v185_v35  ;;  %v18492_v60 = vld [vmem:[#allocation50_spill] sm:$0xff]  ;;  %v13290_v31 = vadd.f32 %v625_v40, %v403_v27  ;;  %v189_v11 = vmul.f32 %v18485_v15, %v12607_v1 }
 0x2e8   :  { %v4054_v24 = vadd.f32 %v18487_v46, %v3722_v0  ;;  %v4385_v49 = vadd.f32 %v18489_v19, %v4053_v57  ;;  %v17975_v46 = vrot.slane %v13267_v7, 1  ;;  %v13286_v0 = vmul.f32 %v18485_v15, %v12609_v6  ;;  %v18493_v35 = vld [vmem:[#allocation214_spill] sm:$0xff] }
 0x2e9   :  { %v1937_v50 = vadd.f32 %v18492_v60, %v1565_v26  ;;  %v293_v21 = vmul.f32 %v18493_v35, %v12581_v29  ;;  %v13296_v2 = vmul.f32 %v18493_v35, %v12609_v6  ;;  %v18495_v26 = vld [vmem:[#allocation215_spill] sm:$0xff]  ;;  %v675_v60 = vadd.f32 %v619_v41, %v398_v23 }
 0x2ea   :  { %v4386_v63 = vadd.f32 %v18491_v51, %v4054_v24  ;;  %v4757_v57 = vadd.f32 %v13066_v20, %v4385_v49  ;;  %v18494_v24 = vrot.slane %v12896_v54, 3  ;;  %v13304_v19 = vmul.f32 %v18495_v26, %v12581_v29  ;;  %v18496_v20 = vld [vmem:[#allocation70_spill] sm:$0xff] }
 0x2eb   :  { %v5068_v47 = vpop.permute.xlu0 %5067  ;;  %v2309_v27 = vadd.f32 %v18496_v20, %v1937_v50  ;;  %v5070_v49 = vpop.permute.xlu1 %5069  ;;  %v349_v54 = vsel %vm324_vm3, %v17975_v46, %v348_v10  ;;  %v193_v23 = vmul.f32 %v18493_v35, %v12607_v1  ;;  %v13325_v41 = vmul.f32 %v18493_v35, %v12629_v14 }
 0x2ec   :  { %v4758_v22 = vadd.f32 %v13085_v9, %v4386_v63  ;;  %v896_v16 = vsel %vm878_vm5, %v894_v61, %v18494_v24  ;;  %v5129_v51 = vadd.f32 %v5068_v47, %v4757_v57  ;;  %v13311_v9 = vmul.f32 %v18485_v15, %v12629_v14  ;;  %v18497_v24 = vld [vmem:[#allocation93_spill] sm:$0xff] }
 0x2ed   :  { %v17978_v61 = vrot.slane %v13286_v0, 2  ;;  %v2641_v48 = vadd.f32 %v18497_v24, %v2309_v27  ;;  %v13329_v15 = vmul.f32 %v18495_v26, %v12609_v6  ;;  %v351_v47 = vrot.slane %v13304_v19, 1  ;;  %v18501_v27 = vld [vmem:[#allocation117_spill] sm:$0xff] }
 0x2ee   :  { %v5130_v63 = vadd.f32 %v5070_v49, %v4758_v22  ;;  %v13319_v50 = vadd.f32 %v13111_v39, %v5129_v51  ;;  %v353_v22 = vrot.slane %v293_v21, 1  ;;  %v288_v20 = vmul.f32 %v12883_v59, %v12581_v29  ;;  %v10532_v19 = vld [vmem:[#allocation2 + $0x78] sm:$0xff] }
 0x2ef   :  { %v13334_v57 = vpop.permute.xlu0 %3675  ;;  %v2973_v49 = vadd.f32 %v18501_v27, %v2641_v48  ;;  %v13340_v51 = vpop.permute.xlu1 %4009  ;;  %v952_v35 = vadd.f32 %v896_v16, %v675_v60  ;;  %v630_v24 = vrot.slane %v13296_v2, 2  ;;  %v626_v21 = vsel %vm601_vm4, %v17978_v61, %v625_v40  ;;  %v18503_v16 = vld [vmem:[#allocation142_spill] sm:$0xff] }
 0x2f0   :  { %18498 = vst [vmem:[#allocation32_spill] sm:$0xff] %v13319_v50  ;;  %v13332_v10 = vadd.f32 %v13111_v39, %v5130_v63  ;;  %18500 = vst [vmem:[#allocation43_spill] sm:$0xff] %v13334_v57  ;;  %5403 = vrot.lane.b32.xlu0 %v13319_v50, %s10633_s0  ;;  %v402_v63 = vadd.f32 %v349_v54, %v189_v11  ;;  %v13353_v48 = vmul.f32 %v18495_v26, %v12629_v14  ;;  %v18504_v2 = vld [vmem:[#allocation14_spill] sm:$0xff] }
 0x2f1   :  { %18502 = vst [vmem:[#allocation18_spill] sm:$0xff] %v13340_v51  ;;  %v291_v27 = vmul.f32 %v10532_v19, %v12581_v29  ;;  %v3345_v60 = vadd.f32 %v18503_v16, %v2973_v49  ;;  %v1236_v11 = vadd.f32 %v18504_v2, %v952_v35  ;;  %v907_v54 = vrot.slane %v13325_v41, 3  ;;  %v18509_v2 = vld [vmem:[#allocation47_spill] sm:$0xff] }
 0x2f2   :  { %18499 = vst [vmem:[#allocation34_spill] sm:$0xff] %v13332_v10  ;;  %5405 = vrot.lane.b32.xlu1 %v13332_v10, %s10633_s0  ;;  %v192_v46 = vmul.f32 %v18495_v26, %v12607_v1  ;;  %v628_v10 = vrot.slane %v13329_v15, 2  ;;  %v354_v40 = vsel %vm324_vm3, %v351_v47, %v353_v22  ;;  %v345_v61 = vrot.slane %v288_v20, 1 }
 0x2f3   :  { %v13362_v50 = vpop.permute.xlu0 %4011  ;;  %v565_v57 = vmul.f32 %v12883_v59, %v12609_v6  ;;  %v3717_v13 = vadd.f32 %v18506_v28, %v3345_v60  ;;  %v13368_v49 = vpop.permute.xlu1 %4327  ;;  %v406_v35 = vadd.f32 %v353_v22, %v193_v23  ;;  %v679_v16 = vadd.f32 %v626_v21, %v402_v63  ;;  %v18511_v22 = vld [vmem:[#allocation59_spill] sm:$0xff] }
 0x2f4   :  { %18505 = vst [vmem:[#allocation27_spill] sm:$0xff] %v13362_v50  ;;  %v18507_v41 = vrot.slane %v13257_v36, 3  ;;  %v18508_v26 = vrot.slane %v13311_v9, 3  ;;  %v1568_v12 = vadd.f32 %v18509_v2, %v1236_v11  ;;  %v905_v45 = vrot.slane %v13353_v48, 3  ;;  %v18510_v50 = vld [vmem:[#allocation190_spill] sm:$0xff] }
 0x2f5   :  { %v350_v20 = vrot.slane %v291_v27, 1  ;;  %v568_v56 = vmul.f32 %v10532_v19, %v12609_v6  ;;  %v4049_v52 = vadd.f32 %v18510_v50, %v3717_v13  ;;  %v405_v28 = vadd.f32 %v354_v40, %v192_v46 }
 0x2f6   :  { %v903_v15 = vsel %vm878_vm5, %v18508_v26, %v18507_v41  ;;  %v631_v60 = vsel %vm601_vm4, %v628_v10, %v630_v24  ;;  %v188_v23 = vmul.f32 %v12883_v59, %v12607_v1  ;;  %v1940_v63 = vadd.f32 %v18511_v22, %v1568_v12  ;;  %v18513_v12 = vld [vmem:[#allocation81_spill] sm:$0xff] }
 0x2f7   :  { %v13383_v21 = vpop.permute.xlu0 %4701  ;;  %v18512_v41 = vrot.slane %v13267_v7, 1  ;;  %v622_v48 = vrot.slane %v565_v57, 2  ;;  %v842_v27 = vmul.f32 %v12883_v59, %v12629_v14  ;;  %v4381_v13 = vadd.f32 %v12901_v34, %v4049_v52  ;;  %v13391_v46 = vpop.permute.xlu1 %4703 }
 0x2f8   :  { %v683_v50 = vadd.f32 %v630_v24, %v406_v35  ;;  %v191_v40 = vmul.f32 %v10532_v19, %v12607_v1  ;;  %v845_v26 = vmul.f32 %v10532_v19, %v12629_v14  ;;  %v2312_v2 = vadd.f32 %v18513_v12, %v1940_v63 }
 0x2f9   :  { %v347_v11 = vsel %vm324_vm3, %v345_v61, %v18512_v41  ;;  %v18514_v7 = vrot.slane %v13257_v36, 3  ;;  %v352_v61 = vsel %vm324_vm3, %v350_v20, %v351_v47  ;;  %v627_v57 = vrot.slane %v568_v56, 2  ;;  %v18519_v20 = vld [vmem:[#allocation16_spill] sm:$0xff] }
 0x2fa   :  { %v4753_v59 = vadd.f32 %v13186_v33, %v4381_v13  ;;  %v956_v41 = vadd.f32 %v903_v15, %v679_v16  ;;  %v682_v34 = vadd.f32 %v631_v60, %v405_v28  ;;  %v401_v52 = vadd.f32 %v347_v11, %v188_v23  ;;  %v18518_v16 = vld [vmem:[#allocation129_spill] sm:$0xff]  ;;  %v10533_v60 = vld [vmem:[#allocation2 + $0xa0] sm:$0xf] }
 0x2fb   :  { %v957_v22 = vadd.f32 %v18514_v7, %v13290_v31  ;;  %v2644_v24 = vadd.f32 %v18515_v25, %v2312_v2  ;;  %v5060_v35 = vpop.permute.xlu0 %5059  ;;  %v908_v51 = vsel %vm878_vm5, %v905_v45, %v907_v54  ;;  %v18516_v19 = vrot.slane %v13286_v0, 2  ;;  %v13406_v36 = vpop.permute.xlu1 %3681  ;;  %v18521_v11 = vld [vmem:[#allocation13_spill] sm:$0xff]  ;;  %v18525_v7 = vld [vmem:[#allocation48_spill] sm:$0xff] }
 0x2fc   :  { %v899_v12 = vrot.slane %v842_v27, 3  ;;  %18517 = vst [vmem:[#allocation15_spill] sm:$0xff] %v13406_v36  ;;  %v5125_v31 = vadd.f32 %v5060_v35, %v4753_v59  ;;  %v13408_v47 = vadd.f32 %v907_v54, %v683_v50  ;;  %v404_v56 = vadd.f32 %v352_v61, %v191_v40  ;;  %v18522_v54 = vld [vmem:[#allocation154_spill] sm:$0xff] }
 0x2fd   :  { %v624_v63 = vsel %vm601_vm4, %v622_v48, %v18516_v19  ;;  %v904_v33 = vrot.slane %v845_v26, 3  ;;  %v2976_v15 = vadd.f32 %v18518_v16, %v2644_v24  ;;  %v1240_v28 = vadd.f32 %v18519_v20, %v956_v41  ;;  %v18530_v20 = vld [vmem:[#allocation69_spill] sm:$0xff] }
 0x2fe   :  { %v629_v25 = vsel %vm601_vm4, %v627_v57, %v628_v10  ;;  %v296_v23 = vmul.f32 %v10533_v60, %v12581_v29  ;;  %v13415_v0 = vadd.f32 %v13111_v39, %v5125_v31  ;;  %v1241_v48 = vadd.f32 %v18521_v11, %v957_v22  ;;  %v10534_v57 = vld [vmem:[#allocation2 + $0x98] sm:$0xff]  ;;  %v18531_v11 = vld [vmem:[#allocation202_spill] sm:$0xff] }
 0x2ff   :  { %v959_v27 = vadd.f32 %v908_v51, %v682_v34  ;;  %v678_v13 = vadd.f32 %v624_v63, %v401_v52  ;;  %v3348_v50 = vadd.f32 %v18522_v54, %v2976_v15  ;;  %v13419_v40 = vpop.permute.xlu0 %4015  ;;  %v18524_v26 = vrot.slane %v13311_v9, 3  ;;  %v13429_v41 = vpop.permute.xlu1 %4017  ;;  %v18527_v51 = vld [vmem:[#allocation49_spill] sm:$0xff]  ;;  %v18528_v52 = vld [vmem:[#allocation178_spill] sm:$0xff] }
 0x300   :  { %18520 = vst [vmem:[#allocation19_spill] sm:$0xff] %v13415_v0  ;;  %18523 = vst [vmem:[#allocation38_spill] sm:$0xff] %v13419_v40  ;;  %v1572_v10 = vadd.f32 %v18525_v7, %v1240_v28  ;;  %v196_v61 = vmul.f32 %v10533_v60, %v12607_v1  ;;  %v13427_v59 = vmul.f32 %v10534_v57, %v12581_v29  ;;  %5395 = vrot.lane.b32.xlu0 %v13415_v0, %s10633_s0  ;;  %v18541_v0 = vld [vmem:[#allocation165_spill] sm:$0xff] }
 0x301   :  { %v901_v2 = vsel %vm878_vm5, %v899_v12, %v18524_v26  ;;  %18526 = vst [vmem:[#allocation40_spill] sm:$0xff] %v13429_v41  ;;  %v1573_v22 = vadd.f32 %v18527_v51, %v1241_v48  ;;  %v681_v34 = vadd.f32 %v629_v25, %v404_v56  ;;  %v906_v9 = vsel %vm878_vm5, %v904_v33, %v905_v45  ;;  %v18529_v12 = vld [vmem:[#allocation68_spill] sm:$0xff]  ;;  %v18532_v48 = vld [vmem:[#allocation91_spill] sm:$0xff] }
 0x302   :  { %v3720_v24 = vadd.f32 %v18528_v52, %v3348_v50  ;;  %v358_v35 = vrot.slane %v296_v23, 1  ;;  %v573_v19 = vmul.f32 %v10533_v60, %v12609_v6  ;;  %v13438_v63 = vmul.f32 %v10534_v57, %v12609_v6  ;;  %v18533_v26 = vld [vmem:[#allocation92_spill] sm:$0xff] }
 0x303   :  { %v1944_v31 = vadd.f32 %v18529_v12, %v1572_v10  ;;  %v13441_v16 = vadd.f32 %v901_v2, %v678_v13  ;;  %v850_v15 = vmul.f32 %v10533_v60, %v12629_v14  ;;  %v1945_v28 = vadd.f32 %v18530_v20, %v1573_v22  ;;  %v13446_v25 = vpop.permute.xlu0 %4333  ;;  %v13453_v50 = vpop.permute.xlu1 %4707  ;;  %v18534_v22 = vld [vmem:[#allocation115_spill] sm:$0xff]  ;;  %v10535_v12 = vld [vmem:[#allocation2 + $0xb8] sm:$0xf] }
 0x304   :  { %v4052_v56 = vadd.f32 %v18531_v11, %v3720_v24  ;;  %v409_v45 = vadd.f32 %v358_v35, %v196_v61  ;;  %v17979_v33 = vrot.slane %v13427_v59, 1  ;;  %v13450_v23 = vmul.f32 %v10534_v57, %v12629_v14  ;;  %v18536_v11 = vld [vmem:[#allocation140_spill] sm:$0xff] }
 0x305   :  { %v2316_v54 = vadd.f32 %v18532_v48, %v1944_v31  ;;  %v13455_v13 = vadd.f32 %v906_v9, %v681_v34  ;;  %v195_v60 = vmul.f32 %v10534_v57, %v12607_v1  ;;  %v2317_v2 = vadd.f32 %v18533_v26, %v1945_v28  ;;  %v18535_v9 = vld [vmem:[#allocation116_spill] sm:$0xff] }
 0x306   :  { %v4384_v7 = vadd.f32 %v13060_v62, %v4052_v56  ;;  %v635_v10 = vrot.slane %v573_v19, 2  ;;  %v17981_v61 = vrot.slane %v13438_v63, 2  ;;  %v13463_v51 = vmul.f32 %v13038_v30, %v12581_v29 }
 0x307   :  { %v2648_v52 = vadd.f32 %v18534_v22, %v2316_v54  ;;  %v912_v24 = vrot.slane %v850_v15, 3  ;;  %v299_v34 = vmul.f32 %v10535_v12, %v12581_v29  ;;  %v2649_v31 = vadd.f32 %v18535_v9, %v2317_v2  ;;  %v13469_v20 = vpop.permute.xlu0 %4709  ;;  %v5066_v48 = vpop.permute.xlu1 %5065 }
 0x308   :  { %v4756_v57 = vadd.f32 %v13276_v43, %v4384_v7  ;;  %v686_v62 = vadd.f32 %v635_v10, %v409_v45  ;;  %v359_v19 = vsel %vm324_vm3, %v17979_v33, %v358_v35  ;;  %v13478_v15 = vmul.f32 %v13038_v30, %v12609_v6  ;;  %v18537_v43 = vld [vmem:[#allocation141_spill] sm:$0xff]  ;;  %v18538_v45 = vld [vmem:[#allocation20_spill] sm:$0xff] }
 0x309   :  { %v2980_v56 = vadd.f32 %v18536_v11, %v2648_v52  ;;  %v13481_v54 = vmul.f32 %v10535_v12, %v12609_v6  ;;  %v2981_v26 = vadd.f32 %v18537_v43, %v2649_v31  ;;  %v1243_v7 = vadd.f32 %v18538_v45, %v959_v27  ;;  %v18539_v52 = vld [vmem:[#allocation164_spill] sm:$0xff]  ;;  %v18540_v11 = vld [vmem:[#allocation17_spill] sm:$0xff] }
 0x30a   :  { %v5128_v2 = vadd.f32 %v5066_v48, %v4756_v57  ;;  %v636_v35 = vsel %vm601_vm4, %v17981_v61, %v635_v10  ;;  %v17982_v22 = vrot.slane %v13463_v51, 1  ;;  %v1244_v33 = vadd.f32 %v18540_v11, %v13408_v47  ;;  %v18544_v27 = vld [vmem:[#allocation57_spill] sm:$0xff]  ;;  %v18545_v43 = vld [vmem:[#allocation188_spill] sm:$0xff] }
 0x30b   :  { %v3352_v9 = vadd.f32 %v18539_v52, %v2980_v56  ;;  %v363_v28 = vrot.slane %v299_v34, 1  ;;  %v3353_v36 = vadd.f32 %v18541_v0, %v2981_v26  ;;  %v13496_v31 = vpop.permute.xlu0 %4007  ;;  %v1575_v57 = vadd.f32 %v18544_v27, %v1243_v7  ;;  %v13502_v61 = vpop.permute.xlu1 %4341  ;;  %v18546_v56 = vld [vmem:[#allocation58_spill] sm:$0xff]  ;;  %v18547_v34 = vld [vmem:[#allocation189_spill] sm:$0xff] }
 0x30c   :  { %v13494_v41 = vadd.f32 %v13111_v39, %v5128_v2  ;;  %18543 = vst [vmem:[#allocation54_spill] sm:$0xff] %v13496_v31  ;;  %v13499_v48 = vadd.f32 %v912_v24, %v686_v62  ;;  %v408_v10 = vadd.f32 %v359_v19, %v195_v60  ;;  %v1576_v52 = vadd.f32 %v18546_v56, %v1244_v33  ;;  %v18548_v19 = vld [vmem:[#allocation79_spill] sm:$0xff] }
 0x30d   :  { %v3724_v45 = vadd.f32 %v18545_v43, %v3352_v9  ;;  %v17984_v47 = vrot.slane %v13478_v15, 2  ;;  %v640_v0 = vrot.slane %v13481_v54, 2  ;;  %v3725_v26 = vadd.f32 %v18547_v34, %v3353_v36  ;;  %v18550_v9 = vld [vmem:[#allocation80_spill] sm:$0xff] }
 0x30e   :  { %18542 = vst [vmem:[#allocation42_spill] sm:$0xff] %v13494_v41  ;;  %5401 = vrot.lane.b32.xlu1 %v13494_v41, %s10633_s0  ;;  %v198_v62 = vmul.f32 %v13038_v30, %v12607_v1  ;;  %v13514_v60 = vmul.f32 %v13038_v30, %v12629_v14  ;;  %v1947_v2 = vadd.f32 %v18548_v19, %v1575_v57  ;;  %v18549_v7 = vrot.slane %v13450_v23, 3  ;;  %v18552_v19 = vld [vmem:[#allocation104_spill] sm:$0xff] }
 0x30f   :  { %v4056_v33 = vadd.f32 %v12868_v44, %v3724_v45  ;;  %v364_v36 = vsel %vm324_vm3, %v17982_v22, %v363_v28  ;;  %v1948_v11 = vadd.f32 %v18550_v9, %v1576_v52  ;;  %v4057_v27 = vadd.f32 %v12873_v42, %v3725_v26  ;;  %v13526_v43 = vpop.permute.xlu0 %4343  ;;  %v18551_v44 = vld [vmem:[#allocation103_spill] sm:$0xff] }
 0x310   :  { %v913_v54 = vsel %vm878_vm5, %v18549_v7, %v912_v24  ;;  %v13529_v30 = vmul.f32 %v10535_v12, %v12629_v14  ;;  %v199_v57 = vmul.f32 %v10535_v12, %v12607_v1  ;;  %v2319_v45 = vadd.f32 %v18551_v44, %v1947_v2  ;;  %v13534_v24 = vpop.permute.xlu1 %4699  ;;  %v18553_v22 = vld [vmem:[#allocation127_spill] sm:$0xff]  ;;  %v10536_v44 = vld [vmem:[#allocation2 + $0x90] sm:$0xff] }
 0x311   :  { %v4388_v56 = vadd.f32 %v13161_v53, %v4056_v33  ;;  %v685_v34 = vadd.f32 %v636_v35, %v408_v10  ;;  %v641_v52 = vsel %vm601_vm4, %v17984_v47, %v640_v0  ;;  %v2320_v42 = vadd.f32 %v18552_v19, %v1948_v11  ;;  %v18554_v53 = vld [vmem:[#allocation23_spill] sm:$0xff]  ;;  %v18555_v10 = vld [vmem:[#allocation128_spill] sm:$0xff] }
 0x312   :  { %v4389_v26 = vadd.f32 %v13168_v38, %v4057_v27  ;;  %v411_v7 = vadd.f32 %v364_v36, %v198_v62  ;;  %v2651_v12 = vadd.f32 %v18553_v22, %v2319_v45  ;;  %v1239_v33 = vadd.f32 %v18554_v53, %v13441_v16  ;;  %v18556_v36 = vld [vmem:[#allocation152_spill] sm:$0xff]  ;;  %v18557_v45 = vld [vmem:[#allocation67_spill] sm:$0xff]  ;;  %v18558_v53 = vld [vmem:[#allocation153_spill] sm:$0xff] }
 0x313   :  { %v4760_v2 = vadd.f32 %v13383_v21, %v4388_v56  ;;  %v294_v35 = vmul.f32 %v10536_v44, %v12581_v29  ;;  %v2652_v41 = vadd.f32 %v18555_v10, %v2320_v42  ;;  %v5074_v11 = vpop.permute.xlu0 %5073  ;;  %v917_v38 = vrot.slane %v13529_v30, 3  ;;  %v10537_v56 = vld [vmem:[#allocation2 + $0xa8] sm:$0xff] }
 0x314   :  { %v4761_v47 = vadd.f32 %v13391_v46, %v4389_v26  ;;  %v412_v62 = vadd.f32 %v363_v28, %v199_v57  ;;  %v2983_v27 = vadd.f32 %v18556_v36, %v2651_v12  ;;  %v5076_v19 = vpop.permute.xlu1 %5075  ;;  %v1571_v21 = vadd.f32 %v18557_v45, %v1239_v33  ;;  %v18559_v46 = vld [vmem:[#allocation176_spill] sm:$0xff]  ;;  %v18560_v57 = vld [vmem:[#allocation90_spill] sm:$0xff] }
 0x315   :  { %v5132_v22 = vadd.f32 %v5074_v11, %v4760_v2  ;;  %v297_v16 = vmul.f32 %v10537_v56, %v12581_v29  ;;  %v2984_v9 = vadd.f32 %v18558_v53, %v2652_v41  ;;  %v962_v40 = vadd.f32 %v913_v54, %v685_v34  ;;  %v18561_v2 = vld [vmem:[#allocation177_spill] sm:$0xff]  ;;  %v18563_v36 = vld [vmem:[#allocation200_spill] sm:$0xff] }
 0x316   :  { %v5133_v31 = vadd.f32 %v5076_v19, %v4761_v47  ;;  %v571_v42 = vmul.f32 %v10536_v44, %v12609_v6  ;;  %v3355_v26 = vadd.f32 %v18559_v46, %v2983_v27  ;;  %v355_v28 = vrot.slane %v294_v35, 1  ;;  %v18564_v19 = vld [vmem:[#allocation114_spill] sm:$0xff]  ;;  %v18566_v46 = vld [vmem:[#allocation56_spill] sm:$0xff] }
 0x317   :  { %v13557_v10 = vadd.f32 %v13111_v39, %v5132_v22  ;;  %v1943_v12 = vadd.f32 %v18560_v57, %v1571_v21  ;;  %v3356_v11 = vadd.f32 %v18561_v2, %v2984_v9  ;;  %v13564_v29 = vpop.permute.xlu0 %4013  ;;  %v688_v41 = vadd.f32 %v641_v52, %v411_v7  ;;  %v18565_v52 = vld [vmem:[#allocation201_spill] sm:$0xff] }
 0x318   :  { %v13562_v33 = vadd.f32 %v13111_v39, %v5133_v31  ;;  %v18562_v47 = vrot.slane %v13514_v60, 3  ;;  %v574_v34 = vmul.f32 %v10537_v56, %v12609_v6  ;;  %v3727_v35 = vadd.f32 %v18563_v36, %v3355_v26  ;;  %v13573_v27 = vpop.permute.xlu1 %4347 }
 0x319   :  { %5409 = vrot.lane.b32.xlu0 %v13557_v10, %s10633_s0  ;;  %v689_v31 = vadd.f32 %v640_v0, %v412_v62  ;;  %v360_v9 = vrot.slane %v297_v16, 1  ;;  %v2315_v22 = vadd.f32 %v18564_v19, %v1943_v12  ;;  %v3728_v7 = vadd.f32 %v18565_v52, %v3356_v11  ;;  %v18568_v16 = vld [vmem:[#allocation139_spill] sm:$0xff] }
 0x31a   :  { %v918_v54 = vsel %vm878_vm5, %v18562_v47, %v917_v38  ;;  %5411 = vrot.lane.b32.xlu1 %v13562_v33, %s10633_s0  ;;  %v194_v45 = vmul.f32 %v10536_v44, %v12607_v1  ;;  %v632_v21 = vrot.slane %v571_v42, 2  ;;  %v848_v6 = vmul.f32 %v10536_v44, %v12629_v14 }
 0x31b   :  { %v4059_v53 = vadd.f32 %v13028_v58, %v3727_v35  ;;  %v1242_v26 = vadd.f32 %v18566_v46, %v13455_v13  ;;  %v18567_v0 = vrot.slane %v13427_v59, 1  ;;  %v2647_v57 = vadd.f32 %v18568_v16, %v2315_v22  ;;  %v13591_v2 = vpop.permute.xlu0 %4349  ;;  %v18569_v13 = vld [vmem:[#allocation78_spill] sm:$0xff]  ;;  %v18571_v35 = vld [vmem:[#allocation163_spill] sm:$0xff] }
 0x31c   :  { %v4060_v12 = vadd.f32 %v13031_v17, %v3728_v7  ;;  %v197_v11 = vmul.f32 %v10537_v56, %v12607_v1  ;;  %v637_v42 = vrot.slane %v574_v34, 2  ;;  %v851_v44 = vmul.f32 %v10537_v56, %v12629_v14  ;;  %v13596_v47 = vpop.permute.xlu1 %4705  ;;  %v18573_v56 = vld [vmem:[#allocation65_spill] sm:$0xff]  ;;  %v18574_v7 = vld [vmem:[#allocation102_spill] sm:$0xff]  ;;  %v18575_v46 = vld [vmem:[#allocation187_spill] sm:$0xff] }
 0x31d   :  { %v357_v62 = vsel %vm324_vm3, %v355_v28, %v18567_v0  ;;  %v4391_v58 = vadd.f32 %v13253_v18, %v4059_v53  ;;  %v1574_v36 = vadd.f32 %v18569_v13, %v1242_v26  ;;  %v18570_v59 = vrot.slane %v13463_v51, 1 }
 0x31e   :  { %v2979_v19 = vadd.f32 %v18571_v35, %v2647_v57  ;;  %v4392_v17 = vadd.f32 %v13272_v32, %v4060_v12  ;;  %v407_v22 = vadd.f32 %v357_v62, %v194_v45  ;;  %v18572_v1 = vrot.slane %v13438_v63, 2 }
 0x31f   :  { %v362_v28 = vsel %vm324_vm3, %v360_v9, %v18570_v59  ;;  %v909_v14 = vrot.slane %v848_v6, 3  ;;  %v4763_v18 = vadd.f32 %v13453_v50, %v4391_v58  ;;  %v1246_v52 = vadd.f32 %v18573_v56, %v962_v40  ;;  %v5080_v26 = vpop.permute.xlu0 %5079  ;;  %v18577_v6 = vld [vmem:[#allocation88_spill] sm:$0xff]  ;;  %v18578_v50 = vld [vmem:[#allocation126_spill] sm:$0xff]  ;;  %v18586_v56 = vld [vmem:[#allocation175_spill] sm:$0xff] }
 0x320   :  { %v634_v34 = vsel %vm601_vm4, %v632_v21, %v18572_v1  ;;  %v1946_v53 = vadd.f32 %v18574_v7, %v1574_v36  ;;  %v3351_v51 = vadd.f32 %v18575_v46, %v2979_v19  ;;  %v4764_v9 = vadd.f32 %v13469_v20, %v4392_v17  ;;  %v5082_v62 = vpop.permute.xlu1 %5081  ;;  %v18579_v58 = vld [vmem:[#allocation66_spill] sm:$0xff]  ;;  %v18581_v36 = vld [vmem:[#allocation151_spill] sm:$0xff]  ;;  %v18585_v1 = vld [vmem:[#allocation136_spill] sm:$0xff] }
 0x321   :  { %v410_v0 = vadd.f32 %v362_v28, %v197_v11  ;;  %v18576_v32 = vrot.slane %v13478_v15, 2  ;;  %v914_v63 = vrot.slane %v851_v44, 3  ;;  %v5135_v21 = vadd.f32 %v5080_v26, %v4763_v18 }
 0x322   :  { %v1578_v16 = vadd.f32 %v18577_v6, %v1246_v52  ;;  %v2318_v57 = vadd.f32 %v18578_v50, %v1946_v53  ;;  %v3723_v40 = vadd.f32 %v12836_v4, %v3351_v51  ;;  %v5136_v12 = vadd.f32 %v5082_v62, %v4764_v9  ;;  %v18589_v53 = vld [vmem:[#allocation77_spill] sm:$0xff] }
 0x323   :  { %v639_v45 = vsel %vm601_vm4, %v637_v42, %v18576_v32  ;;  %v1247_v13 = vadd.f32 %v18579_v58, %v13499_v48  ;;  %v965_v20 = vadd.f32 %v918_v54, %v688_v41  ;;  %v966_v11 = vadd.f32 %v917_v38, %v689_v31  ;;  %v18580_v42 = vld [vmem:[#allocation112_spill] sm:$0xff]  ;;  %v13631_v4 = vpop.permute.xlu0 %4339  ;;  %v18583_v38 = vld [vmem:[#allocation89_spill] sm:$0xff] }
 0x324   :  { %v13623_v15 = vadd.f32 %v13111_v39, %v5135_v21  ;;  %v1950_v44 = vadd.f32 %v18580_v42, %v1578_v16  ;;  %v2650_v59 = vadd.f32 %v18581_v36, %v2318_v57  ;;  %v4055_v28 = vadd.f32 %v13141_v5, %v3723_v40  ;;  %v4714_v31 = vpop.permute.xlu1 %4713  ;;  %v18590_v51 = vld [vmem:[#allocation161_spill] sm:$0xff]  ;;  %v18593_v21 = vld [vmem:[#allocation138_spill] sm:$0xff]  ;;  %v18597_v42 = vld [vmem:[#allocation99_spill] sm:$0xff] }
 0x325   :  { %v13629_v35 = vadd.f32 %v13111_v39, %v5136_v12  ;;  %v684_v19 = vadd.f32 %v634_v34, %v407_v22  ;;  %v18582_v48 = vrot.slane %v13450_v23, 3  ;;  %v1579_v41 = vadd.f32 %v18583_v38, %v1247_v13  ;;  %v18587_v23 = vld [vmem:[#allocation76_spill] sm:$0xff]  ;;  %v18594_v50 = vld [vmem:[#allocation101_spill] sm:$0xff] }
 0x326   :  { %v687_v54 = vadd.f32 %v639_v45, %v410_v0  ;;  %5415 = vrot.lane.b32.xlu0 %v13623_v15, %s10633_s0  ;;  %v18584_v17 = vrot.slane %v13514_v60, 3  ;;  %v2322_v18 = vadd.f32 %v18585_v1, %v1950_v44  ;;  %v2982_v52 = vadd.f32 %v18586_v56, %v2650_v59  ;;  %v18591_v60 = vld [vmem:[#allocation199_spill] sm:$0xff]  ;;  %v18595_v40 = vld [vmem:[#allocation185_spill] sm:$0xff]  ;;  %v18599_v59 = vld [vmem:[#allocation162_spill] sm:$0xff] }
 0x327   :  { %v911_v30 = vsel %vm878_vm5, %v909_v14, %v18582_v48  ;;  %v4387_v22 = vadd.f32 %v13368_v49, %v4055_v28  ;;  %5417 = vrot.lane.b32.xlu1 %v13629_v35, %s10633_s0  ;;  %v1249_v34 = vadd.f32 %v18587_v23, %v965_v20  ;;  %v18588_v14 = vld [vmem:[#allocation113_spill] sm:$0xff]  ;;  %v1250_v46 = vadd.f32 %v18589_v53, %v966_v11  ;;  %v4716_v32 = vpop.permute.xlu0 %4715  ;;  %v18596_v20 = vld [vmem:[#allocation87_spill] sm:$0xff]  ;;  %v18604_v56 = vld [vmem:[#allocation186_spill] sm:$0xff] }
 0x328   :  { %v916_v5 = vsel %vm878_vm5, %v914_v63, %v18584_v17  ;;  %v1951_v7 = vadd.f32 %v18588_v14, %v1579_v41  ;;  %v2654_v9 = vadd.f32 %v18590_v51, %v2322_v18  ;;  %v3354_v26 = vadd.f32 %v18591_v60, %v2982_v52  ;;  %v18592_v63 = vld [vmem:[#allocation100_spill] sm:$0xff]  ;;  %v5072_v16 = vpop.permute.xlu1 %5071  ;;  %v18603_v1 = vld [vmem:[#allocation149_spill] sm:$0xff]  ;;  %v18605_v23 = vld [vmem:[#allocation123_spill] sm:$0xff] }
 0x329   :  { %v4759_v0 = vadd.f32 %v13534_v24, %v4387_v22  ;;  %v961_v45 = vadd.f32 %v911_v30, %v684_v19  ;;  %v1581_v62 = vadd.f32 %v18592_v63, %v1249_v34  ;;  %v964_v49 = vadd.f32 %v916_v5, %v687_v54  ;;  %v18598_v24 = vld [vmem:[#allocation124_spill] sm:$0xff]  ;;  %v18600_v19 = vld [vmem:[#allocation125_spill] sm:$0xff]  ;;  %v18606_v14 = vld [vmem:[#allocation150_spill] sm:$0xff] }
 0x32a   :  { %v2323_v6 = vadd.f32 %v18593_v21, %v1951_v7  ;;  %v1582_v57 = vadd.f32 %v18594_v50, %v1250_v46  ;;  %v2986_v12 = vadd.f32 %v18595_v40, %v2654_v9  ;;  %v3726_v58 = vadd.f32 %v13004_v8, %v3354_v26  ;;  %v18601_v30 = vld [vmem:[#allocation213_spill] sm:$0xff]  ;;  %v18602_v8 = vld [vmem:[#allocation111_spill] sm:$0xff]  ;;  %v18610_v63 = vld [vmem:[#allocation174_spill] sm:$0xff] }
 0x32b   :  { %v5131_v13 = vadd.f32 %v5072_v16, %v4759_v0  ;;  %v1245_v11 = vadd.f32 %v18596_v20, %v961_v45  ;;  %v1248_v44 = vadd.f32 %v18597_v42, %v964_v49  ;;  %v1953_v36 = vadd.f32 %v18598_v24, %v1581_v62  ;;  %v18607_v46 = vld [vmem:[#allocation135_spill] sm:$0xff]  ;;  %v18608_v9 = vld [vmem:[#allocation173_spill] sm:$0xff]  ;;  %v18609_v0 = vld [vmem:[#allocation148_spill] sm:$0xff] }
 0x32c   :  { %v2655_v28 = vadd.f32 %v18599_v59, %v2323_v6  ;;  %v1954_v48 = vadd.f32 %v18600_v19, %v1582_v57  ;;  %v3358_v38 = vadd.f32 %v18601_v30, %v2986_v12  ;;  %v4058_v41 = vadd.f32 %v13249_v37, %v3726_v58  ;;  %v13668_v17 = vpop.permute.xlu0 %4345  ;;  %v4720_v22 = vpop.permute.xlu1 %4719  ;;  %v18611_v49 = vld [vmem:[#allocation18_spill] sm:$0xff]  ;;  %v18612_v16 = vld [vmem:[#allocation160_spill] sm:$0xff]  ;;  %v18613_v50 = vld [vmem:[#allocation197_spill] sm:$0xff] }
 0x32d   :  { %v13666_v54 = vadd.f32 %v13111_v39, %v5131_v13  ;;  %v1577_v5 = vadd.f32 %v18602_v8, %v1245_v11  ;;  %v2325_v18 = vadd.f32 %v18603_v1, %v1953_v36  ;;  %v1580_v34 = vadd.f32 %v18605_v23, %v1248_v44  ;;  %v18614_v40 = vld [vmem:[#allocation8_spill] sm:$0xff]  ;;  %v18616_v11 = vld [vmem:[#allocation198_spill] sm:$0xff] }
 0x32e   :  { %v2987_v52 = vadd.f32 %v18604_v56, %v2655_v28  ;;  %v2326_v7 = vadd.f32 %v18606_v14, %v1954_v48  ;;  %v3730_v53 = vadd.f32 %v13114_v3, %v3358_v38  ;;  %v4390_v37 = vadd.f32 %v13446_v25, %v4058_v41  ;;  %v18615_v13 = vld [vmem:[#allocation172_spill] sm:$0xff]  ;;  %v18618_v59 = vld [vmem:[#allocation6_spill] sm:$0xff]  ;;  %v18624_v14 = vld [vmem:[#allocation137_spill] sm:$0xff] }
 0x32f   :  { %5407 = vrot.lane.b32.xlu0 %v13666_v54, %s10633_s0  ;;  %v1949_v51 = vadd.f32 %v18607_v46, %v1577_v5  ;;  %v2657_v60 = vadd.f32 %v18608_v9, %v2325_v18  ;;  %v1952_v45 = vadd.f32 %v18609_v0, %v1580_v34  ;;  %v18617_v24 = vld [vmem:[#allocation184_spill] sm:$0xff]  ;;  %v18621_v38 = vld [vmem:[#allocation26_spill] sm:$0xff] }
 0x330   :  { %v3359_v26 = vadd.f32 %v12834_v55, %v2987_v52  ;;  %v2658_v62 = vadd.f32 %v18610_v63, %v2326_v7  ;;  %v4062_v21 = vadd.f32 %v18611_v49, %v3730_v53  ;;  %v4762_v6 = vadd.f32 %v13596_v47, %v4390_v37  ;;  %v4722_v3 = vpop.permute.xlu0 %4721  ;;  %v5078_v58 = vpop.permute.xlu1 %5077  ;;  %v18619_v47 = vld [vmem:[#allocation27_spill] sm:$0xff]  ;;  %v18620_v48 = vld [vmem:[#allocation196_spill] sm:$0xff]  ;;  %v18623_v52 = vld [vmem:[#allocation9_spill] sm:$0xff] }
 0x331   :  { %v2321_v25 = vadd.f32 %v18612_v16, %v1949_v51  ;;  %v2989_v57 = vadd.f32 %v18613_v50, %v2657_v60  ;;  %v2324_v20 = vadd.f32 %v18615_v13, %v1952_v45  ;;  %v18622_v18 = vld [vmem:[#allocation212_spill] sm:$0xff]  ;;  %v18625_v53 = vld [vmem:[#allocation30_spill] sm:$0xff] }
 0x332   :  { %v3731_v12 = vadd.f32 %v18614_v40, %v3359_v26  ;;  %v2990_v55 = vadd.f32 %v18616_v11, %v2658_v62  ;;  %v4394_v42 = vadd.f32 %v13502_v61, %v4062_v21  ;;  %v5134_v44 = vadd.f32 %v5078_v58, %v4762_v6  ;;  %v18627_v9 = vld [vmem:[#allocation38_spill] sm:$0xff]  ;;  %v18628_v0 = vld [vmem:[#allocation24_spill] sm:$0xff]  ;;  %v18630_v21 = vld [vmem:[#allocation43_spill] sm:$0xff] }
 0x333   :  { %v2653_v36 = vadd.f32 %v18617_v24, %v2321_v25  ;;  %v3361_v28 = vadd.f32 %v18618_v59, %v2989_v57  ;;  %v2656_v30 = vadd.f32 %v18620_v48, %v2324_v20  ;;  %v18629_v63 = vld [vmem:[#allocation40_spill] sm:$0xff]  ;;  %v18631_v57 = vld [vmem:[#allocation15_spill] sm:$0xff] }
 0x334   :  { %v4063_v19 = vadd.f32 %v18619_v47, %v3731_v12  ;;  %v3362_v41 = vadd.f32 %v18621_v38, %v2990_v55  ;;  %v4766_v8 = vadd.f32 %v4714_v31, %v4394_v42  ;;  %v13698_v5 = vadd.f32 %v13111_v39, %v5134_v44  ;;  %v4712_v1 = vpop.permute.xlu0 %4711  ;;  %v18626_v31 = vld [vmem:[#allocation28_spill] sm:$0xff] }
 0x335   :  { %v2985_v56 = vadd.f32 %v18622_v18, %v2653_v36  ;;  %v3733_v61 = vadd.f32 %v18623_v52, %v3361_v28  ;;  %v5086_v34 = vpop.permute.xlu1 %5085  ;;  %v2988_v7 = vadd.f32 %v18624_v14, %v2656_v30  ;;  %v13757_v14 = vld [vmem:[#allocation2 + $0x10] sm:$0xf] }
 0x336   :  { %v4395_v23 = vadd.f32 %v13526_v43, %v4063_v19  ;;  %v3734_v37 = vadd.f32 %v18625_v53, %v3362_v41  ;;  %v5138_v46 = vadd.f32 %v5086_v34, %v4766_v8  ;;  %5413 = vrot.lane.b32.xlu1 %v13698_v5, %s10633_s0  ;;  %v18633_v41 = vld [vmem:[#allocation7_spill] sm:$0xff]  ;;  %v13761_v53 = vstv %s9914_s16  ;;  %s10636_s16 = smov 1  }
 0x337   :  { %v3357_v51 = vadd.f32 %v18626_v31, %v2985_v56  ;;  %v4065_v60 = vadd.f32 %v18627_v9, %v3733_v61  ;;  %v3360_v45 = vadd.f32 %v18628_v0, %v2988_v7  ;;  %v13751_v56 = vstv %s9912_s15  ;;  %v13753_v61 = vld [vmem:[#allocation2 + $0x8] sm:$0xff] }
 0x338   :  { %v4767_v26 = vadd.f32 %v4716_v32, %v4395_v23  ;;  %v4066_v62 = vadd.f32 %v18629_v63, %v3734_v37  ;;  %v13712_v43 = vadd.f32 %v13111_v39, %v5138_v46  ;;  %v5088_v49 = vpop.permute.xlu0 %5087  ;;  %v18632_v32 = vld [vmem:[#allocation54_spill] sm:$0xff]  ;;  %v1255_v7 = vmul.f32 %v13757_v14, %v13751_v56  ;;  %v18635_v46 = vld [vmem:[#allocation35_spill] sm:$0xff] }
 0x339   :  { %v3729_v6 = vadd.f32 %v18630_v21, %v3357_v51  ;;  %v4397_v16 = vadd.f32 %v13573_v27, %v4065_v60  ;;  %v4718_v25 = vpop.permute.xlu1 %4717  ;;  %v3732_v40 = vadd.f32 %v18631_v57, %v3360_v45  ;;  %v13767_v51 = vmul.f32 %v13753_v61, %v13761_v53  ;;  %v18636_v60 = vld [vmem:[#allocation37_spill] sm:$0xff]  ;;  %v13774_v63 = vld [vmem:[#allocation2 + $0x20] sm:$0xff] }
 0x33a   :  { %v5139_v50 = vadd.f32 %v5088_v49, %v4767_v26  ;;  %v4398_v12 = vadd.f32 %v13591_v2, %v4066_v62  ;;  %5421 = vrot.lane.b32.xlu0 %v13712_v43, %s10633_s0  ;;  %v1587_v9 = vmul.f32 %v13757_v14, %v13761_v53  ;;  %v1257_v62 = vmul.f32 %v13774_v63, %v13751_v56  ;;  %v18637_v57 = vld [vmem:[#allocation41_spill] sm:$0xff] }
 0x33b   :  { %v4061_v58 = vadd.f32 %v18632_v32, %v3729_v6  ;;  %v4769_v13 = vadd.f32 %v4720_v22, %v4397_v16  ;;  %v4064_v11 = vadd.f32 %v13564_v29, %v3732_v40  ;;  %v13778_v16 = vld [vmem:[#allocation2 + $0x28] sm:$0xf]  ;;  %v1634_v32 = vrot.slane %v13767_v51, 1 }
 0x33c   :  { %v13722_v20 = vadd.f32 %v13111_v39, %v5139_v50  ;;  %v4770_v55 = vadd.f32 %v4722_v3, %v4398_v12  ;;  %v5092_v42 = vpop.permute.xlu0 %5091 }
 0x33d   :  { %v4393_v27 = vadd.f32 %v13631_v4, %v4061_v58  ;;  %v5094_v44 = vpop.permute.xlu1 %5093  ;;  %v5141_v24 = vadd.f32 %v5092_v42, %v4769_v13  ;;  %v4396_v2 = vadd.f32 %v13668_v17, %v4064_v11  ;;  %v1636_v58 = vrot.slane %v1587_v9, 1  ;;  %v18638_v13 = vld [vmem:[#allocation209_spill] sm:$0xff] }
 0x33e   :  { %5423 = vrot.lane.b32.xlu1 %v13722_v20, %s10633_s0  ;;  %v5142_v36 = vadd.f32 %v5094_v44, %v4770_v55 }
 0x33f   :  { %v4765_v59 = vadd.f32 %v4712_v1, %v4393_v27  ;;  %v13730_v22 = vadd.f32 %v13111_v39, %v5141_v24  ;;  %v4768_v28 = vadd.f32 %v4718_v25, %v4396_v2  ;;  %v18634_v1 = vld [vmem:[#allocation22_spill] sm:$0xff]  ;;  %v1258_v25 = vmul.f32 %v13778_v16, %v13751_v56 }
 0x340   :  { %v13733_v29 = vadd.f32 %v13111_v39, %v5142_v36  ;;  %v5084_v3 = vpop.permute.xlu0 %5083  ;;  %v13788_v27 = vld [vmem:[#allocation2] sm:$0xff] }
 0x341   :  { %v5090_v4 = vpop.permute.xlu1 %5089  ;;  %v5137_v47 = vadd.f32 %v5084_v3, %v4765_v59  ;;  %5427 = vrot.lane.b32.xlu0 %v13730_v22, %s10633_s0  ;;  %v1253_v44 = vmul.f32 %v13788_v27, %v13751_v56  ;;  %v1590_v59 = vmul.f32 %v13778_v16, %v13761_v53 }
 0x342   :  { %v5140_v19 = vadd.f32 %v5090_v4, %v4768_v28  ;;  %5429 = vrot.lane.b32.xlu1 %v13733_v29, %s10633_s0  ;;  %v13796_v28 = vmul.f32 %v13774_v63, %v13761_v53  ;;  %v1637_v4 = vsel %vm324_vm3, %v1634_v32, %v1636_v58 }
 0x343   :  { %v13740_v17 = vadd.f32 %v13111_v39, %v5137_v47 }
 0x344   :  { %v13743_v48 = vadd.f32 %v13111_v39, %v5140_v19  ;;  %v5386_v30 = vpop.permute.xlu0 %5385  ;;  %v1254_v39 = vmul.f32 %v13753_v61, %v13751_v56 }
 0x345   :  { %v5388_v38 = vpop.permute.xlu1 %5387  ;;  %v5456_v8 = vmax.f32 %v18633_v41, %v5386_v30  ;;  %5419 = vrot.lane.b32.xlu0 %v13740_v17, %s10633_s0 }
 0x346   :  { %v5457_v18 = vmax.f32 %v18634_v1, %v5388_v38  ;;  %5425 = vrot.lane.b32.xlu1 %v13743_v48, %s10633_s0  ;;  %v18639_v38 = vld [vmem:[#allocation25_spill] sm:$0xff] }
 0x347   :  { %v5504_v52 = vrot.slane %v5456_v8, 1 }
 0x348   :  { %v5506_v23 = vrot.slane %v5457_v18, 1  ;;  %v5392_v34 = vpop.permute.xlu0 %5391  ;;  %v13810_v18 = vld [vmem:[#allocation2 + $0x18] sm:$0xff] }
 0x349   :  { %v5394_v37 = vpop.permute.xlu1 %5393  ;;  %v5459_v31 = vmax.f32 %v18635_v46, %v5392_v34  ;;  %1303 = vrot.lane.b32.xlu0 %v1254_v39, %s10633_s0  ;;  %v18640_v39 = vld [vmem:[#allocation39_spill] sm:$0xff] }
 0x34a   :  { %v5460_v26 = vmax.f32 %v18636_v60, %v5394_v37  ;;  %1305 = vrot.lane.b32.xlu1 %v1255_v7, %s10633_s0  ;;  %v5507_v0 = vsel %vm324_vm3, %v5504_v52, %v5506_v23  ;;  %v1641_v7 = vrot.slane %v1590_v59, 1  ;;  %v1639_v37 = vrot.slane %v13796_v28, 1  ;;  %v18641_v59 = vld [vmem:[#allocation32_spill] sm:$0xff] }
 0x34b   :  { %v5509_v45 = vrot.slane %v5459_v31, 1  ;;  %v5560_v49 = vmax.f32 %v5456_v8, %v5507_v0 }
 0x34c   :  { %v5511_v21 = vrot.slane %v5460_v26, 1  ;;  %v5384_v6 = vpop.permute.xlu0 %5383  ;;  %v1642_v26 = vsel %vm324_vm3, %v1639_v37, %v1641_v7 }
 0x34d   :  { %v5390_v50 = vpop.permute.xlu1 %5389  ;;  %v5455_v40 = vmax.f32 %v18637_v57, %v5384_v6  ;;  %1309 = vrot.lane.b32.xlu0 %v1257_v62, %s10633_s0  ;;  %v5576_v12 = vmax.f32 %v5560_v49, 0.0  ;;  %v1585_v6 = vmul.f32 %v13788_v27, %v13761_v53 }
 0x34e   :  { %v5458_v11 = vmax.f32 %v18638_v13, %v5390_v50  ;;  %1311 = vrot.lane.b32.xlu1 %v1258_v25, %s10633_s0  ;;  %v5512_v55 = vsel %vm324_vm3, %v5509_v45, %v5511_v21  ;;  %v13849_v25 = vld [vmem:[%s17899_s2 + $0x10] sm:$0xff]  ;;  %v13853_v50 = vld [vmem:[#allocation2 + $0x38] sm:$0xff] }
 0x34f   :  { %v5503_v42 = vrot.slane %v5455_v40, 1  ;;  %10179 = vmatprep.subr.mxu0 %v5576_v12  ;;  %v5562_v24 = vmax.f32 %v5459_v31, %v5512_v55  ;;  %v13820_v31 = vld [vmem:[%s17899_s2 + $0x18] sm:$0x3]  ;;  %v1260_v57 = vmul.f32 %v13853_v50, %v13751_v56  ;;  %v1633_v55 = vrot.slane %v1585_v6, 1 }
 0x350   :  { %v5508_v2 = vrot.slane %v5458_v11, 1  ;;  %10180 = vmatpush3.msra.mxu0 %v5576_v12  ;;  %v5398_v36 = vpop.permute.xlu0 %5397  ;;  %v13859_v12 = vld [vmem:[#allocation2 + $0x40] sm:$0xf] }
 0x351   :  { %v5505_v3 = vsel %vm324_vm3, %v5503_v42, %v5504_v52  ;;  %1301 = vrot.lane.b32.xlu0 %v1253_v44, %s10633_s0  ;;  %v5578_v47 = vmax.f32 %v5562_v24, 0.0  ;;  %v13807_v41 = vmax.f32 %v18639_v38, %v5398_v36  ;;  %v1256_v52 = vmul.f32 %v13810_v18, %v13751_v56 }
 0x352   :  { %v5510_v19 = vsel %vm324_vm3, %v5508_v2, %v5509_v45  ;;  %v5559_v30 = vmax.f32 %v5455_v40, %v5505_v3  ;;  %1675 = vrot.lane.b32.xlu1 %v1637_v4, %s10633_s0  ;;  %v13831_v45 = vstv %s13798_s17  ;;  %v1635_v42 = vsel %vm324_vm3, %v1633_v55, %v1634_v32  ;;  %v13877_v3 = vld [vmem:[#allocation2 + $0x50] sm:$0xff] }
 0x353   :  { %v5561_v8 = vmax.f32 %v5458_v11, %v5510_v19  ;;  %10186 = vmatprep.subr.mxu1 %v5578_v47  ;;  %v5400_v1 = vpop.permute.xlu1 %5399  ;;  %v5514_v9 = vrot.slane %v13807_v41, 1  ;;  %v13837_v49 = vmul.f32 %v13753_v61, %v13831_v45  ;;  %v1959_v21 = vmul.f32 %v13757_v14, %v13831_v45 }
 0x354   :  { %v5463_v23 = vmax.f32 %v18640_v39, %v5400_v1  ;;  %10187 = vmatpush3.msra.mxu1 %v5578_v47  ;;  %v5575_v34 = vmax.f32 %v5559_v30, 0.0  ;;  %v1588_v24 = vmul.f32 %v13810_v18, %v13761_v53  ;;  %v1263_v51 = vmul.f32 %v13877_v3, %v13751_v56  ;;  %v18642_v47 = vld [vmem:[#allocation34_spill] sm:$0xff]  ;;  %v13891_v1 = vld [vmem:[#allocation2 + $0x58] sm:$0xf] }
 0x355   :  { %1677 = vrot.lane.b32.xlu0 %v1636_v58, %s10633_s0  ;;  %v5577_v46 = vmax.f32 %v5561_v8, 0.0  ;;  %v1261_v58 = vmul.f32 %v13859_v12, %v13751_v56  ;;  %v2006_v13 = vrot.slane %v13837_v49, 2  ;;  %v2008_v11 = vrot.slane %v1959_v21, 2  ;;  %v13913_v21 = vld [vmem:[#allocation2 + $0x30] sm:$0xff] }
 0x356   :  { %v5516_v60 = vrot.slane %v5463_v23, 1  ;;  %1307 = vrot.lane.b32.xlu1 %v1256_v52, %s10633_s0  ;;  %10181 = vmatprep.subr.mxu0 %v5575_v34  ;;  %v1962_v32 = vmul.f32 %v13778_v16, %v13831_v45  ;;  %v13885_v4 = vmul.f32 %v13774_v63, %v13831_v45  ;;  %v1638_v30 = vrot.slane %v1588_v24, 1  ;;  %v18643_v24 = vld [vmem:[#allocation19_spill] sm:$0xff] }
 0x357   :  { %10188 = vmatprep.subr.mxu1 %v5577_v46  ;;  %10182 = vmatpush3.msra.mxu0 %v5575_v34  ;;  %v2009_v44 = vsel %vm601_vm4, %v2006_v13, %v2008_v11  ;;  %v1264_v52 = vmul.f32 %v13891_v1, %v13751_v56  ;;  %v1259_v6 = vmul.f32 %v13913_v21, %v13751_v56 }
 0x358   :  { %10189 = vmatpush3.msra.mxu1 %v5577_v46  ;;  %v5517_v0 = vsel %vm324_vm3, %v5514_v9, %v5516_v60  ;;  %10184 = vmatmul.mubr.msk.f32.vlgmr.msra.gmra.mxu0 %vm5591_vm6, %v13820_v31  ;;  %v2013_v39 = vrot.slane %v1962_v32, 2  ;;  %v2011_v23 = vrot.slane %v13885_v4, 2  ;;  %v13903_v46 = vmul.f32 %v13853_v50, %v13761_v53 }
 0x359   :  { %1681 = vrot.lane.b32.xlu0 %v1642_v26, %s10633_s0  ;;  %v5564_v62 = vmax.f32 %v13807_v41, %v5517_v0  ;;  %10191 = vmatmul.mubr.msk.f32.vlgmr.msra.gmra.mxu1 %vm5591_vm6, %v13820_v31  ;;  %v1593_v60 = vmul.f32 %v13859_v12, %v13761_v53  ;;  %v13938_v32 = vmul.f32 %v13877_v3, %v13761_v53 }
 0x35a   :  { %1683 = vrot.lane.b32.xlu1 %v1641_v7, %s10633_s0  ;;  %10197 = vmatprep.mubr.msk.f32.mxu0 %vm5591_vm6, %v13849_v25  ;;  %v1640_v7 = vsel %vm324_vm3, %v1638_v30, %v1639_v37  ;;  %v2014_v0 = vsel %vm601_vm4, %v2011_v23, %v2013_v39  ;;  %v1644_v37 = vrot.slane %v13903_v46, 1  ;;  %v1596_v4 = vmul.f32 %v13891_v1, %v13761_v53 }
 0x35b   :  { %v5580_v40 = vmax.f32 %v5564_v62, 0.0  ;;  %10204 = vmatprep.mubr.msk.f32.mxu1 %vm5591_vm6, %v13849_v25  ;;  %v1646_v49 = vrot.slane %v1593_v60, 1 }
 0x35d   :  { %1315 = vrot.lane.b32.xlu0 %v1260_v57, %s10633_s0  ;;  %10193 = vmatprep.subr.mxu0 %v5580_v40  ;;  %v1957_v57 = vmul.f32 %v13788_v27, %v13831_v45  ;;  %v1647_v55 = vsel %vm324_vm3, %v1644_v37, %v1646_v49 }
 0x35e   :  { %1317 = vrot.lane.b32.xlu1 %v1261_v58, %s10633_s0  ;;  %10194 = vmatpush3.msra.mxu0 %v5580_v40  ;;  %v13919_v40 = vstv %s9918_s22 }
 0x35f   :  { %v2331_v58 = vmul.f32 %v13757_v14, %v13919_v40  ;;  %v13962_v60 = vmul.f32 %v13774_v63, %v13919_v40 }
 0x361   :  { %1673 = vrot.lane.b32.xlu0 %v1635_v42, %s10633_s0 }
 0x362   :  { %2047 = vrot.lane.b32.xlu1 %v2009_v44, %s10633_s0  ;;  %v5404_v2 = vpop.permute.xlu0 %5403  ;;  %v2005_v44 = vrot.slane %v1957_v57, 2  ;;  %v18644_v57 = vld [vmem:[#allocation42_spill] sm:$0xff] }
 0x363   :  { %v13875_v28 = vmax.f32 %v18641_v59, %v5404_v2 }
 0x364   :  { %v5406_v36 = vpop.permute.xlu1 %5405 }
 0x365   :  { %v5466_v19 = vmax.f32 %v18642_v47, %v5406_v36  ;;  %2049 = vrot.lane.b32.xlu0 %v2008_v11, %s10633_s0  ;;  %v5519_v38 = vrot.slane %v13875_v28, 1  ;;  %v13925_v11 = vmul.f32 %v13753_v61, %v13919_v40  ;;  %v2380_v36 = vrot.slane %v2331_v58, 3 }
 0x366   :  { %1321 = vrot.lane.b32.xlu1 %v1263_v51, %s10633_s0  ;;  %v2007_v51 = vsel %vm601_vm4, %v2005_v44, %v2006_v13 }
 0x367   :  { %v5521_v8 = vrot.slane %v5466_v19, 1  ;;  %v2378_v59 = vrot.slane %v13925_v11, 3 }
 0x369   :  { %v5522_v34 = vsel %vm324_vm3, %v5519_v38, %v5521_v8  ;;  %1323 = vrot.lane.b32.xlu0 %v1264_v52, %s10633_s0  ;;  %v2381_v13 = vsel %vm878_vm5, %v2378_v59, %v2380_v36  ;;  %v1649_v8 = vrot.slane %v13938_v32, 1  ;;  %v1651_v52 = vrot.slane %v1596_v4, 1  ;;  %v13994_v4 = vld [vmem:[#allocation2 + $0x68] sm:$0xff] }
 0x36a   :  { %v5566_v26 = vmax.f32 %v13875_v28, %v5522_v34  ;;  %1679 = vrot.lane.b32.xlu1 %v1640_v7, %s10633_s0  ;;  %v13954_v34 = vld [vmem:[#allocation2 + $0x48] sm:$0xff]  ;;  %v2334_v7 = vmul.f32 %v13778_v16, %v13919_v40  ;;  %v13998_v28 = vld [vmem:[#allocation2 + $0x70] sm:$0xf] }
 0x36b   :  { %v1262_v41 = vmul.f32 %v13954_v34, %v13751_v56  ;;  %v1594_v11 = vmul.f32 %v13954_v34, %v13761_v53 }
 0x36c   :  { %v5582_v62 = vmax.f32 %v5566_v26, 0.0  ;;  %v1652_v26 = vsel %vm324_vm3, %v1649_v8, %v1651_v52 }
 0x36d   :  { %2053 = vrot.lane.b32.xlu0 %v2014_v0, %s10633_s0 }
 0x36e   :  { %2055 = vrot.lane.b32.xlu1 %v2013_v39, %s10633_s0  ;;  %10200 = vmatprep.subr.mxu1 %v5582_v62  ;;  %v1960_v39 = vmul.f32 %v13810_v18, %v13831_v45 }
 0x36f   :  { %10201 = vmatpush3.msra.mxu1 %v5582_v62 }
 0x370   :  { %v2010_v0 = vrot.slane %v1960_v39, 2 }
 0x371   :  { %1313 = vrot.lane.b32.xlu0 %v1259_v6, %s10633_s0  ;;  %v2383_v6 = vrot.slane %v13962_v60, 3 }
 0x372   :  { %1687 = vrot.lane.b32.xlu1 %v1647_v55, %s10633_s0  ;;  %v5396_v42 = vpop.permute.xlu0 %5395  ;;  %v2012_v55 = vsel %vm601_vm4, %v2010_v0, %v2011_v23  ;;  %v13989_v23 = vmul.f32 %v13853_v50, %v13831_v45 }
 0x373   :  { %v5461_v2 = vmax.f32 %v18643_v24, %v5396_v42  ;;  %v1591_v24 = vmul.f32 %v13913_v21, %v13761_v53 }
 0x375   :  { %1689 = vrot.lane.b32.xlu0 %v1646_v49, %s10633_s0  ;;  %v5513_v47 = vrot.slane %v5461_v2, 1  ;;  %v2385_v49 = vrot.slane %v2334_v7, 3 }
 0x376   :  { %2045 = vrot.lane.b32.xlu1 %v2007_v51, %s10633_s0 }
 0x377   :  { %v5515_v19 = vsel %vm324_vm3, %v5513_v47, %v5514_v9  ;;  %v2386_v44 = vsel %vm878_vm5, %v2383_v6, %v2385_v49  ;;  %v1266_v47 = vmul.f32 %v13994_v4, %v13751_v56 }
 0x378   :  { %v5563_v30 = vmax.f32 %v5461_v2, %v5515_v19 }
 0x379   :  { %2419 = vrot.lane.b32.xlu0 %v2381_v13, %s10633_s0  ;;  %v1643_v13 = vrot.slane %v1591_v24, 1  ;;  %v1968_v24 = vmul.f32 %v13891_v1, %v13831_v45 }
 0x37a   :  { %2421 = vrot.lane.b32.xlu1 %v2380_v36, %s10633_s0  ;;  %v5579_v9 = vmax.f32 %v5563_v30, 0.0  ;;  %v1965_v36 = vmul.f32 %v13859_v12, %v13831_v45  ;;  %v2016_v30 = vrot.slane %v13989_v23, 2 }
 0x37c   :  { %10195 = vmatprep.subr.mxu0 %v5579_v9 }
 0x37d   :  { %1319 = vrot.lane.b32.xlu0 %v1262_v41, %s10633_s0  ;;  %10196 = vmatpush3.msra.mxu0 %v5579_v9  ;;  %v2329_v41 = vmul.f32 %v13788_v27, %v13919_v40 }
 0x37e   :  { %1693 = vrot.lane.b32.xlu1 %v1652_v26, %s10633_s0  ;;  %10198 = vmatmul.mubr.msk.f32.vlgmr.msra.gmra.mxu0 %vm5591_vm6, %v13820_v31  ;;  %v1645_v26 = vsel %vm324_vm3, %v1643_v13, %v1644_v37 }
 0x37f   :  { %10211 = vmatprep.mubr.msk.f32.mxu0 %vm5591_vm6, %v13849_v25  ;;  %v2377_v37 = vrot.slane %v2329_v41, 3 }
 0x380   :  { %v5402_v62 = vpop.permute.xlu1 %5401 }
 0x381   :  { %v5464_v58 = vmax.f32 %v18644_v57, %v5402_v62  ;;  %1695 = vrot.lane.b32.xlu0 %v1651_v52, %s10633_s0  ;;  %v2018_v52 = vrot.slane %v1965_v36, 2  ;;  %v14047_v36 = vld [vmem:[#allocation2 + $0x80] sm:$0xff] }
 0x382   :  { %2051 = vrot.lane.b32.xlu1 %v2012_v55, %s10633_s0 }
 0x383   :  { %v5518_v42 = vrot.slane %v5464_v58, 1  ;;  %v2019_v62 = vsel %vm601_vm4, %v2016_v30, %v2018_v52 }
 0x385   :  { %v5520_v2 = vsel %vm324_vm3, %v5518_v42, %v5519_v38  ;;  %2425 = vrot.lane.b32.xlu0 %v2386_v44, %s10633_s0  ;;  %v1267_v38 = vmul.f32 %v13998_v28, %v13751_v56 }
 0x386   :  { %v5565_v51 = vmax.f32 %v5464_v58, %v5520_v2  ;;  %2427 = vrot.lane.b32.xlu1 %v2385_v49, %s10633_s0  ;;  %v14031_v58 = vstv %s9920_s1 }
 0x387   :  { %v2662_v55 = vmul.f32 %v13753_v61, %v14031_v58  ;;  %v2663_v42 = vmul.f32 %v13757_v14, %v14031_v58  ;;  %v2666_v60 = vmul.f32 %v13778_v16, %v14031_v58 }
 0x388   :  { %v5581_v19 = vmax.f32 %v5565_v51, 0.0  ;;  %v1269_v51 = vmul.f32 %v14047_v36, %v13751_v56 }
 0x389   :  { %1327 = vrot.lane.b32.xlu0 %v1266_v47, %s10633_s0 }
 0x38a   :  { %1329 = vrot.lane.b32.xlu1 %v1267_v38, %s10633_s0  ;;  %10202 = vmatprep.subr.mxu1 %v5581_v19 }
 0x38b   :  { %10203 = vmatpush3.msra.mxu1 %v5581_v19  ;;  %v5410_v39 = vpop.permute.xlu0 %5409  ;;  %v14052_v19 = vld [vmem:[#allocation2 + $0x88] sm:$0xf] }
 0x38c   :  { %v5412_v9 = vpop.permute.xlu1 %5411  ;;  %v14008_v7 = vmax.f32 %v13557_v10, %v5410_v39  ;;  %10205 = vmatmul.mubr.msk.f32.vlgmr.msra.gmra.mxu1 %vm5591_vm6, %v13820_v31  ;;  %v1270_v13 = vmul.f32 %v14052_v19, %v13751_v56 }
 0x38d   :  { %v5469_v0 = vmax.f32 %v13562_v33, %v5412_v9  ;;  %1685 = vrot.lane.b32.xlu0 %v1645_v26, %s10633_s0  ;;  %10218 = vmatprep.mubr.msk.f32.mxu1 %vm5591_vm6, %v13849_v25  ;;  %v2379_v33 = vsel %vm878_vm5, %v2377_v37, %v2378_v59  ;;  %v14042_v59 = vmul.f32 %v13877_v3, %v13831_v45  ;;  %v2023_v9 = vrot.slane %v1968_v24, 2 }
 0x38e   :  { %v5524_v10 = vrot.slane %v14008_v7, 1  ;;  %2059 = vrot.lane.b32.xlu1 %v2019_v62, %s10633_s0 }
 0x38f   :  { %v5526_v46 = vrot.slane %v5469_v0, 1  ;;  %v2021_v41 = vrot.slane %v14042_v59, 2 }
 0x391   :  { %v5527_v49 = vsel %vm324_vm3, %v5524_v10, %v5526_v46  ;;  %2061 = vrot.lane.b32.xlu0 %v2018_v52, %s10633_s0  ;;  %v1648_v52 = vrot.slane %v1594_v11, 1 }
 0x392   :  { %v5568_v57 = vmax.f32 %v14008_v7, %v5527_v49  ;;  %2417 = vrot.lane.b32.xlu1 %v2379_v33, %s10633_s0  ;;  %v2332_v7 = vmul.f32 %v13810_v18, %v13919_v40 }
 0x393   :  { %v1650_v0 = vsel %vm324_vm3, %v1648_v52, %v1649_v8  ;;  %v14078_v8 = vmul.f32 %v13994_v4, %v13761_v53 }
 0x394   :  { %v5584_v44 = vmax.f32 %v5568_v57, 0.0  ;;  %v2382_v46 = vrot.slane %v2332_v7, 3 }
 0x395   :  { %2711 = vrot.lane.b32.xlu0 %v2662_v55, %s10634_s24  ;;  %v1599_v55 = vmul.f32 %v13998_v28, %v13761_v53  ;;  %v1654_v11 = vrot.slane %v14078_v8, 1 }
 0x396   :  { %2713 = vrot.lane.b32.xlu1 %v2663_v42, %s10634_s24  ;;  %10207 = vmatprep.subr.mxu0 %v5584_v44  ;;  %v2384_v32 = vsel %vm878_vm5, %v2382_v46, %v2383_v6  ;;  %v1963_v6 = vmul.f32 %v13913_v21, %v13831_v45 }
 0x397   :  { %10208 = vmatpush3.msra.mxu0 %v5584_v44  ;;  %v1656_v24 = vrot.slane %v1599_v55, 1 }
 0x398   :  { %v5416_v2 = vpop.permute.xlu0 %5415  ;;  %v2015_v52 = vrot.slane %v1963_v6, 2 }
 0x399   :  { %v5418_v47 = vpop.permute.xlu1 %5417  ;;  %v5471_v38 = vmax.f32 %v13623_v15, %v5416_v2  ;;  %1333 = vrot.lane.b32.xlu0 %v1269_v51, %s10633_s0  ;;  %v14093_v51 = vld [vmem:[#allocation2 + $0x60] sm:$0xff]  ;;  %v1657_v7 = vsel %vm324_vm3, %v1654_v11, %v1656_v24 }
 0x39a   :  { %v5472_v39 = vmax.f32 %v13629_v35, %v5418_v47  ;;  %1335 = vrot.lane.b32.xlu1 %v1270_v13, %s10633_s0  ;;  %v2024_v35 = vsel %vm601_vm4, %v2021_v41, %v2023_v9  ;;  %v1265_v47 = vmul.f32 %v14093_v51, %v13751_v56 }
 0x39b   :  { %v5529_v26 = vrot.slane %v5471_v38, 1 }
 0x39c   :  { %v5531_v15 = vrot.slane %v5472_v39, 1  ;;  %v2337_v39 = vmul.f32 %v13859_v12, %v13919_v40 }
 0x39d   :  { %1691 = vrot.lane.b32.xlu0 %v1650_v0, %s10633_s0 }
 0x39e   :  { %v5532_v62 = vsel %vm324_vm3, %v5529_v26, %v5531_v15  ;;  %2065 = vrot.lane.b32.xlu1 %v2024_v35, %s10633_s0  ;;  %v2390_v35 = vrot.slane %v2337_v39, 3 }
 0x39f   :  { %v5570_v37 = vmax.f32 %v5471_v38, %v5532_v62  ;;  %v2017_v62 = vsel %vm601_vm4, %v2015_v52, %v2016_v30 }
 0x3a1   :  { %v5408_v49 = vpop.permute.xlu0 %5407  ;;  %v5586_v33 = vmax.f32 %v5570_v37, 0.0  ;;  %2067 = vrot.lane.b32.xlu0 %v2023_v9, %s10633_s0 }
 0x3a2   :  { %v5467_v57 = vmax.f32 %v13666_v54, %v5408_v49  ;;  %2423 = vrot.lane.b32.xlu1 %v2384_v32, %s10633_s0  ;;  %v2665_v54 = vmul.f32 %v13774_v63, %v14031_v58 }
 0x3a3   :  { %10214 = vmatprep.subr.mxu1 %v5586_v33 }
 0x3a4   :  { %v5523_v42 = vrot.slane %v5467_v57, 1  ;;  %10215 = vmatpush3.msra.mxu1 %v5586_v33 }
 0x3a5   :  { %2717 = vrot.lane.b32.xlu0 %v2665_v54, %s10634_s24 }
 0x3a6   :  { %v5525_v44 = vsel %vm324_vm3, %v5523_v42, %v5524_v10  ;;  %2719 = vrot.lane.b32.xlu1 %v2666_v60, %s10634_s24  ;;  %v14101_v10 = vmul.f32 %v13853_v50, %v13919_v40 }
 0x3a7   :  { %v5567_v2 = vmax.f32 %v5467_v57, %v5525_v44  ;;  %v1602_v44 = vmul.f32 %v14052_v19, %v13761_v53 }
 0x3a8   :  { %v5414_v38 = vpop.permute.xlu1 %5413  ;;  %v2388_v46 = vrot.slane %v14101_v10, 3  ;;  %v2668_v10 = vmul.f32 %v13853_v50, %v14031_v58 }
 0x3a9   :  { %v5583_v13 = vmax.f32 %v5567_v2, 0.0  ;;  %v5470_v9 = vmax.f32 %v13698_v5, %v5414_v38  ;;  %1325 = vrot.lane.b32.xlu0 %v1265_v47, %s10633_s0  ;;  %v14113_v5 = vstv %s9922_s23  ;;  %v14144_v38 = vmul.f32 %v14047_v36, %v13761_v53 }
 0x3aa   :  { %1699 = vrot.lane.b32.xlu1 %v1657_v7, %s10633_s0  ;;  %v14121_v49 = vmul.f32 %v13753_v61, %v14113_v5  ;;  %v2995_v23 = vmul.f32 %v13757_v14, %v14113_v5  ;;  %v2391_v32 = vsel %vm878_vm5, %v2388_v46, %v2390_v35 }
 0x3ab   :  { %10209 = vmatprep.subr.mxu0 %v5583_v13  ;;  %v5528_v15 = vrot.slane %v5470_v9, 1 }
 0x3ac   :  { %10210 = vmatpush3.msra.mxu0 %v5583_v13  ;;  %v5422_v0 = vpop.permute.xlu0 %5421  ;;  %v3042_v42 = vrot.slane %v14121_v49, 1  ;;  %v3044_v54 = vrot.slane %v2995_v23, 1  ;;  %v17989_v23 = vrot.slane %v14144_v38, 1 }
 0x3ad   :  { %10212 = vmatmul.mubr.msk.f32.vlgmr.msra.gmra.mxu0 %vm5591_vm6, %v13820_v31  ;;  %v5530_v37 = vsel %vm324_vm3, %v5528_v15, %v5529_v26  ;;  %1701 = vrot.lane.b32.xlu0 %v1656_v24, %s10633_s0  ;;  %v5474_v33 = vmax.f32 %v13712_v43, %v5422_v0  ;;  %v14156_v15 = vld [vmem:[#allocation2 + $0x78] sm:$0xff] }
 0x3ae   :  { %10225 = vmatprep.mubr.msk.f32.mxu0 %vm5591_vm6, %v13849_v25  ;;  %v5569_v30 = vmax.f32 %v5470_v9, %v5530_v37  ;;  %2057 = vrot.lane.b32.xlu1 %v2017_v62, %s10633_s0  ;;  %v3045_v52 = vsel %vm324_vm3, %v3042_v42, %v3044_v54  ;;  %v1661_v62 = vrot.slane %v1602_v44, 1 }
 0x3af   :  { %v5534_v60 = vrot.slane %v5474_v33, 1 }
 0x3b0   :  { %v5424_v57 = vpop.permute.xlu1 %5423  ;;  %v5585_v55 = vmax.f32 %v5569_v30, 0.0  ;;  %v1966_v30 = vmul.f32 %v13954_v34, %v13831_v45 }
 0x3b1   :  { %v5475_v26 = vmax.f32 %v13722_v20, %v5424_v57  ;;  %2431 = vrot.lane.b32.xlu0 %v2391_v32, %s10633_s0  ;;  %v2661_v20 = vmul.f32 %v13788_v27, %v14031_v58 }
 0x3b2   :  { %2433 = vrot.lane.b32.xlu1 %v2390_v35, %s10633_s0  ;;  %10216 = vmatprep.subr.mxu1 %v5585_v55  ;;  %v2020_v44 = vrot.slane %v1966_v30, 2 }
 0x3b3   :  { %v5536_v6 = vrot.slane %v5475_v26, 1  ;;  %10217 = vmatpush3.msra.mxu1 %v5585_v55  ;;  %v5428_v43 = vpop.permute.xlu0 %5427  ;;  %v2340_v26 = vmul.f32 %v13891_v1, %v13919_v40 }
 0x3b4   :  { %v5430_v24 = vpop.permute.xlu1 %5429  ;;  %v5477_v2 = vmax.f32 %v13730_v22, %v5428_v43  ;;  %10219 = vmatmul.mubr.msk.f32.vlgmr.msra.gmra.mxu1 %vm5591_vm6, %v13820_v31 }
 0x3b5   :  { %v5537_v47 = vsel %vm324_vm3, %v5534_v60, %v5536_v6  ;;  %v5478_v13 = vmax.f32 %v13733_v29, %v5430_v24  ;;  %2709 = vrot.lane.b32.xlu0 %v2661_v20, %s10634_s24  ;;  %10232 = vmatprep.mubr.msk.f32.mxu1 %vm5591_vm6, %v13849_v25  ;;  %v1268_v29 = vmul.f32 %v14156_v15, %v13751_v56 }
 0x3b6   :  { %v5572_v39 = vmax.f32 %v5474_v33, %v5537_v47  ;;  %v5539_v22 = vrot.slane %v5477_v2, 1  ;;  %3083 = vrot.lane.b32.xlu1 %v3045_v52, %s10634_s24  ;;  %v14164_v25 = vmul.f32 %v13877_v3, %v13919_v40 }
 0x3b7   :  { %v5541_v9 = vrot.slane %v5478_v13, 1  ;;  %v5420_v7 = vpop.permute.xlu0 %5419  ;;  %v2395_v13 = vrot.slane %v2340_v26, 3 }
 0x3b8   :  { %v5588_v0 = vmax.f32 %v5572_v39, 0.0  ;;  %v5426_v35 = vpop.permute.xlu1 %5425  ;;  %v5473_v37 = vmax.f32 %v13740_v17, %v5420_v7  ;;  %v17988_v47 = vrot.slane %v14164_v25, 3 }
 0x3b9   :  { %v5542_v33 = vsel %vm324_vm3, %v5539_v22, %v5541_v9  ;;  %v5476_v57 = vmax.f32 %v13743_v48, %v5426_v35  ;;  %3085 = vrot.lane.b32.xlu0 %v3044_v54, %s10634_s24  ;;  %v1662_v48 = vsel %vm324_vm3, %v17989_v23, %v1661_v62  ;;  %v2664_v35 = vmul.f32 %v13810_v18, %v14031_v58 }
 0x3ba   :  { %10221 = vmatprep.subr.mxu0 %v5588_v0  ;;  %v5574_v17 = vmax.f32 %v5477_v2, %v5542_v33  ;;  %v5533_v32 = vrot.slane %v5473_v37, 1  ;;  %1331 = vrot.lane.b32.xlu1 %v1268_v29, %s10633_s0  ;;  %v2998_v29 = vmul.f32 %v13778_v16, %v14113_v5 }
 0x3bb   :  { %10222 = vmatpush3.msra.mxu0 %v5588_v0  ;;  %v5538_v55 = vrot.slane %v5476_v57, 1  ;;  %v14174_v6 = vpop.permute.xlu0 %1303  ;;  %v14197_v0 = vmul.f32 %v13774_v63, %v14113_v5 }
 0x3bc   :  { %v5535_v43 = vsel %vm324_vm3, %v5533_v32, %v5534_v60  ;;  %v14177_v20 = vpop.permute.xlu1 %1305  ;;  %v5590_v54 = vmax.f32 %v5574_v17, 0.0  ;;  %v1597_v17 = vmul.f32 %v14093_v51, %v13761_v53  ;;  %v1971_v32 = vmul.f32 %v13998_v28, %v13831_v45 }
 0x3bd   :  { %v5540_v24 = vsel %vm324_vm3, %v5538_v55, %v5539_v22  ;;  %v5571_v2 = vmax.f32 %v5473_v37, %v5535_v43  ;;  %1705 = vrot.lane.b32.xlu0 %v1662_v48, %s10633_s0  ;;  %v2022_v22 = vsel %vm601_vm4, %v2020_v44, %v2021_v41  ;;  %v3049_v37 = vrot.slane %v2998_v29, 1  ;;  %v14236_v43 = vld [vmem:[#allocation2 + $0x98] sm:$0xff]  ;;  %v14242_v44 = vld [vmem:[#allocation2 + $0xa0] sm:$0xf] }
 0x3be   :  { %v5573_v52 = vmax.f32 %v5476_v57, %v5540_v24  ;;  %1707 = vrot.lane.b32.xlu1 %v1661_v62, %s10633_s0  ;;  %10228 = vmatprep.subr.mxu1 %v5590_v54  ;;  %v2396_v62 = vsel %vm878_vm5, %v17988_v47, %v2395_v13  ;;  %v17987_v30 = vrot.slane %v14197_v0, 1  ;;  %v1272_v48 = vmul.f32 %v14236_v43, %v13751_v56 }
 0x3bf   :  { %10229 = vmatpush3.msra.mxu1 %v5590_v54  ;;  %v14186_v60 = vpop.permute.xlu0 %1309  ;;  %v5587_v39 = vmax.f32 %v5571_v2, 0.0  ;;  %v1273_v24 = vmul.f32 %v14242_v44, %v13751_v56  ;;  %v1653_v2 = vrot.slane %v1597_v17, 1  ;;  %v14267_v17 = vstv %s9924_s25 }
 0x3c0   :  { %v14188_v9 = vpop.permute.xlu1 %1311  ;;  %v5589_v7 = vmax.f32 %v5573_v52, 0.0  ;;  %v3050_v26 = vsel %vm324_vm3, %v17987_v30, %v3049_v37  ;;  %v2028_v52 = vrot.slane %v1971_v32, 2  ;;  %v3367_v32 = vmul.f32 %v13757_v14, %v14267_v17 }
 0x3c1   :  { %2063 = vrot.lane.b32.xlu0 %v2022_v22, %s10633_s0  ;;  %10223 = vmatprep.subr.mxu0 %v5587_v39  ;;  %v1655_v29 = vsel %vm324_vm3, %v1653_v2, %v1654_v11  ;;  %v14275_v11 = vmul.f32 %v13753_v61, %v14267_v17  ;;  %v2669_v2 = vmul.f32 %v13859_v12, %v14031_v58 }
 0x3c2   :  { %2437 = vrot.lane.b32.xlu1 %v2396_v62, %s10633_s0  ;;  %10230 = vmatprep.subr.mxu1 %v5589_v7 }
 0x3c3   :  { %10224 = vmatpush3.msra.mxu0 %v5587_v39  ;;  %10231 = vmatpush3.msra.mxu1 %v5589_v7  ;;  %v14204_v59 = vpop.permute.xlu0 %1301  ;;  %v2335_v39 = vmul.f32 %v13913_v21, %v13919_v40 }
 0x3c4   :  { %18645 = vst [vmem:[#allocation55_spill] sm:$0xff] %v14204_v59  ;;  %v14206_v41 = vpop.permute.xlu1 %1675  ;;  %10226 = vmatmul.mubr.msk.f32.vlgmr.msra.gmra.mxu0 %vm5591_vm6, %v13820_v31  ;;  %10233 = vmatmul.mubr.msk.f32.vlgmr.msra.gmra.mxu1 %vm5591_vm6, %v13820_v31  ;;  %v14229_v31 = vmul.f32 %v13994_v4, %v13831_v45 }
 0x3c5   :  { %2439 = vrot.lane.b32.xlu0 %v2395_v13, %s10633_s0 }
 0x3c6   :  { %2715 = vrot.lane.b32.xlu1 %v2664_v35, %s10634_s24  ;;  %v17985_v13 = vrot.slane %v14229_v31, 2  ;;  %v2387_v35 = vrot.slane %v2335_v39, 3  ;;  %v3416_v39 = vrot.slane %v3367_v32, 2  ;;  %v1600_v32 = vmul.f32 %v14156_v15, %v13761_v53 }
 0x3c7   :  { %v14217_v33 = vpop.permute.xlu0 %1677 }
 0x3c8   :  { %v14219_v57 = vpop.permute.xlu1 %1307  ;;  %v2029_v62 = vsel %vm601_vm4, %v17985_v13, %v2028_v52  ;;  %v2389_v8 = vsel %vm878_vm5, %v2387_v35, %v2388_v46 }
 0x3c9   :  { %18646 = vst [vmem:[#allocation21_spill] sm:$0xff] %v14219_v57  ;;  %3089 = vrot.lane.b32.xlu0 %v3050_v26, %s10634_s24 }
 0x3ca   :  { %3091 = vrot.lane.b32.xlu1 %v3049_v37, %s10634_s24 }
 0x3cb   :  { %v14234_v55 = vpop.permute.xlu0 %1681 }
 0x3cc   :  { %v14240_v54 = vpop.permute.xlu1 %1683 }
 0x3cd   :  { %1339 = vrot.lane.b32.xlu0 %v1272_v48, %s10633_s0  ;;  %v2993_v48 = vmul.f32 %v13788_v27, %v14113_v5 }
 0x3ce   :  { %1341 = vrot.lane.b32.xlu1 %v1273_v24, %s10633_s0 }
 0x3cf   :  { %v14251_v22 = vpop.permute.xlu0 %1315 }
 0x3d0   :  { %18647 = vst [vmem:[#allocation74_spill] sm:$0xff] %v14251_v22  ;;  %v14253_v7 = vpop.permute.xlu1 %1317 }
 0x3d1   :  { %18648 = vst [vmem:[#allocation31_spill] sm:$0xff] %v14253_v7  ;;  %1697 = vrot.lane.b32.xlu0 %v1655_v29, %s10633_s0  ;;  %v3041_v29 = vrot.slane %v2993_v48, 1  ;;  %v2672_v7 = vmul.f32 %v13891_v1, %v14031_v58 }
 0x3d2   :  { %2071 = vrot.lane.b32.xlu1 %v2029_v62, %s10633_s0 }
 0x3d3   :  { %v14263_v37 = vpop.permute.xlu0 %1673 }
 0x3d4   :  { %18649 = vst [vmem:[#allocation46_spill] sm:$0xff] %v14263_v37  ;;  %v14265_v26 = vpop.permute.xlu1 %2047 }
 0x3d5   :  { %2073 = vrot.lane.b32.xlu0 %v2028_v52, %s10633_s0  ;;  %v17986_v52 = vrot.slane %v14275_v11, 2 }
 0x3d6   :  { %2429 = vrot.lane.b32.xlu1 %v2389_v8, %s10633_s0  ;;  %v3043_v8 = vsel %vm324_vm3, %v3041_v29, %v3042_v42  ;;  %v1974_v42 = vmul.f32 %v14052_v19, %v13831_v45  ;;  %v14319_v29 = vmul.f32 %v14047_v36, %v13831_v45 }
 0x3d7   :  { %v14282_v24 = vpop.permute.xlu0 %2049  ;;  %v3417_v13 = vsel %vm601_vm4, %v17986_v52, %v3416_v39  ;;  %v14325_v52 = vld [vmem:[#allocation2 + $0xb8] sm:$0xf] }
 0x3d8   :  { %v14286_v46 = vpop.permute.xlu1 %1321  ;;  %v1276_v30 = vmul.f32 %v14325_v52, %v13751_v56  ;;  %v2033_v23 = vrot.slane %v1974_v42, 2 }
 0x3d9   :  { %18650 = vst [vmem:[#allocation75_spill] sm:$0xff] %v14286_v46  ;;  %2723 = vrot.lane.b32.xlu0 %v2668_v10, %s10634_s24  ;;  %v2338_v46 = vmul.f32 %v13954_v34, %v13919_v40 }
 0x3da   :  { %2725 = vrot.lane.b32.xlu1 %v2669_v2, %s10634_s24  ;;  %v14311_v2 = vld [vmem:[#allocation2 + $0xb0] sm:$0xff] }
 0x3db   :  { %v14293_v62 = vpop.permute.xlu0 %1323  ;;  %v1275_v49 = vmul.f32 %v14311_v2, %v13751_v56 }
 0x3dc   :  { %18651 = vst [vmem:[#allocation51_spill] sm:$0xff] %v14293_v62  ;;  %v14295_v35 = vpop.permute.xlu1 %1679  ;;  %v17990_v62 = vrot.slane %v14319_v29, 2 }
 0x3dd   :  { %18652 = vst [vmem:[#allocation53_spill] sm:$0xff] %v14295_v35  ;;  %3081 = vrot.lane.b32.xlu0 %v3043_v8, %s10634_s24  ;;  %v1658_v8 = vrot.slane %v1600_v32, 1  ;;  %v18671_v35 = vrot.slane %v14229_v31, 2 }
 0x3de   :  { %3455 = vrot.lane.b32.xlu1 %v3417_v13, %s10634_s24  ;;  %v2034_v42 = vsel %vm601_vm4, %v17990_v62, %v2033_v23 }
 0x3df   :  { %v14307_v48 = vpop.permute.xlu0 %2053 }
 0x3e0   :  { %18653 = vst [vmem:[#allocation63_spill] sm:$0xff] %v14307_v48  ;;  %v14309_v10 = vpop.permute.xlu1 %2055 }
 0x3e1   :  { %18654 = vst [vmem:[#allocation97_spill] sm:$0xff] %v14309_v10  ;;  %3457 = vrot.lane.b32.xlu0 %v3416_v39, %s10634_s24  ;;  %v18657_v39 = vrot.slane %v14144_v38, 1  ;;  %v2996_v38 = vmul.f32 %v13810_v18, %v14113_v5 }
 0x3e2   :  { %1345 = vrot.lane.b32.xlu1 %v1275_v49, %s10633_s0 }
 0x3e3   :  { %v14323_v13 = vpop.permute.xlu0 %1313  ;;  %v1660_v32 = vsel %vm324_vm3, %v1658_v8, %v18657_v39  ;;  %v2671_v39 = vmul.f32 %v13877_v3, %v14031_v58 }
 0x3e4   :  { %18655 = vst [vmem:[#allocation64_spill] sm:$0xff] %v14323_v13  ;;  %v14329_v47 = vpop.permute.xlu1 %1687 }
 0x3e5   :  { %18656 = vst [vmem:[#allocation98_spill] sm:$0xff] %v14329_v47  ;;  %1347 = vrot.lane.b32.xlu0 %v1276_v30, %s10633_s0  ;;  %v2392_v47 = vrot.slane %v2338_v46, 3  ;;  %v3370_v46 = vmul.f32 %v13778_v16, %v14267_v17  ;;  %v18664_v16 = vrot.slane %v14197_v0, 1 }
 0x3e6   :  { %1703 = vrot.lane.b32.xlu1 %v1660_v32, %s10633_s0  ;;  %v18661_v32 = vrot.slane %v14164_v25, 3 }
 0x3e7   :  { %v14339_v49 = vpop.permute.xlu0 %1689 }
 0x3e8   :  { %18658 = vst [vmem:[#allocation85_spill] sm:$0xff] %v14339_v49  ;;  %v14341_v13 = vpop.permute.xlu1 %2045  ;;  %v2394_v49 = vsel %vm878_vm5, %v2392_v47, %v18661_v32  ;;  %v3421_v47 = vrot.slane %v3370_v46, 2 }
 0x3e9   :  { %18659 = vst [vmem:[#allocation121_spill] sm:$0xff] %v14341_v13  ;;  %2077 = vrot.lane.b32.xlu0 %v2034_v42, %s10633_s0  ;;  %v14363_v42 = vmul.f32 %v13774_v63, %v14267_v17 }
 0x3ea   :  { %2079 = vrot.lane.b32.xlu1 %v2033_v23, %s10633_s0  ;;  %v3046_v23 = vrot.slane %v2996_v38, 1  ;;  %v1605_v38 = vmul.f32 %v14242_v44, %v13761_v53 }
 0x3eb   :  { %v14350_v8 = vpop.permute.xlu0 %2419  ;;  %v17991_v32 = vrot.slane %v14363_v42, 2 }
 0x3ec   :  { %v14352_v30 = vpop.permute.xlu1 %2421  ;;  %v3048_v63 = vsel %vm324_vm3, %v3046_v23, %v18664_v16  ;;  %v1666_v23 = vrot.slane %v1605_v38, 1  ;;  %v1969_v16 = vmul.f32 %v14093_v51, %v13831_v45  ;;  %v14409_v38 = vmul.f32 %v13994_v4, %v13919_v40 }
 0x3ed   :  { %18660 = vst [vmem:[#allocation62_spill] sm:$0xff] %v14352_v30  ;;  %2435 = vrot.lane.b32.xlu0 %v2394_v49, %s10633_s0  ;;  %v14380_v49 = vmul.f32 %v14236_v43, %v13761_v53  ;;  %v3422_v0 = vsel %vm601_vm4, %v17991_v32, %v3421_v47 }
 0x3ee   :  { %2729 = vrot.lane.b32.xlu1 %v2671_v39, %s10634_s24  ;;  %v2025_v32 = vrot.slane %v1969_v16, 2  ;;  %v3001_v16 = vmul.f32 %v13859_v12, %v14113_v5  ;;  %v2667_v12 = vmul.f32 %v13913_v21, %v14031_v58 }
 0x3ef   :  { %v14367_v62 = vpop.permute.xlu0 %1319 }
 0x3f0   :  { %18662 = vst [vmem:[#allocation86_spill] sm:$0xff] %v14367_v62  ;;  %v14371_v25 = vpop.permute.xlu1 %1693 }
 0x3f1   :  { %18663 = vst [vmem:[#allocation122_spill] sm:$0xff] %v14371_v25  ;;  %2731 = vrot.lane.b32.xlu0 %v2672_v7, %s10634_s24  ;;  %v17992_v7 = vrot.slane %v14380_v49, 1 }
 0x3f2   :  { %3087 = vrot.lane.b32.xlu1 %v3048_v63, %s10634_s24  ;;  %v14399_v63 = vld [vmem:[#allocation2 + $0x90] sm:$0xff] }
 0x3f3   :  { %v14385_v39 = vpop.permute.xlu0 %1695 }
 0x3f4   :  { %18665 = vst [vmem:[#allocation52_spill] sm:$0xff] %v14385_v39  ;;  %v14387_v46 = vpop.permute.xlu1 %2051  ;;  %v1271_v39 = vmul.f32 %v14399_v63, %v13751_v56 }
 0x3f5   :  { %18666 = vst [vmem:[#allocation73_spill] sm:$0xff] %v14387_v46  ;;  %3461 = vrot.lane.b32.xlu0 %v3422_v0, %s10634_s24  ;;  %v2343_v0 = vmul.f32 %v13998_v28, %v13919_v40 }
 0x3f6   :  { %3463 = vrot.lane.b32.xlu1 %v3421_v47, %s10634_s24  ;;  %v1667_v47 = vsel %vm324_vm3, %v17992_v7, %v1666_v23 }
 0x3f7   :  { %v14397_v62 = vpop.permute.xlu0 %2425  ;;  %v2400_v13 = vrot.slane %v2343_v0, 3 }
 0x3f8   :  { %18667 = vst [vmem:[#allocation109_spill] sm:$0xff] %v14397_v62  ;;  %v14403_v25 = vpop.permute.xlu1 %2427  ;;  %v2027_v62 = vsel %vm601_vm4, %v2025_v32, %v18671_v35  ;;  %v3054_v32 = vrot.slane %v3001_v16, 1 }
 0x3f9   :  { %18668 = vst [vmem:[#allocation146_spill] sm:$0xff] %v14403_v25  ;;  %1337 = vrot.lane.b32.xlu0 %v1271_v39, %s10633_s0  ;;  %v17993_v25 = vrot.slane %v14409_v38, 3  ;;  %v14427_v39 = vmul.f32 %v13853_v50, %v14113_v5 }
 0x3fa   :  { %1711 = vrot.lane.b32.xlu1 %v1667_v47, %s10633_s0 }
 0x3fb   :  { %v14416_v22 = vpop.permute.xlu0 %1327  ;;  %v2401_v31 = vsel %vm878_vm5, %v17993_v25, %v2400_v13  ;;  %v17994_v35 = vrot.slane %v14427_v39, 1 }
 0x3fc   :  { %18669 = vst [vmem:[#allocation84_spill] sm:$0xff] %v14416_v22  ;;  %v14418_v46 = vpop.permute.xlu1 %1329 }
 0x3fd   :  { %18670 = vst [vmem:[#allocation110_spill] sm:$0xff] %v14418_v46  ;;  %1713 = vrot.lane.b32.xlu0 %v1666_v23, %s10633_s0  ;;  %v14448_v23 = vstv %s9926_s26 }
 0x3fe   :  { %2069 = vrot.lane.b32.xlu1 %v2027_v62, %s10633_s0  ;;  %v3365_v62 = vmul.f32 %v13788_v27, %v14267_v17  ;;  %v14456_v16 = vmul.f32 %v13753_v61, %v14448_v23 }
 0x3ff   :  { %v14432_v47 = vpop.permute.xlu0 %1685 }
 0x400   :  { %18672 = vst [vmem:[#allocation147_spill] sm:$0xff] %v14432_v47  ;;  %v14434_v0 = vpop.permute.xlu1 %2059  ;;  %v3413_v25 = vrot.slane %v3365_v62, 2  ;;  %v18678_v47 = vrot.slane %v14275_v11, 2 }
 0x401   :  { %18673 = vst [vmem:[#allocation96_spill] sm:$0xff] %v14434_v0  ;;  %2443 = vrot.lane.b32.xlu0 %v2401_v31, %s10633_s0  ;;  %v3739_v31 = vmul.f32 %v13757_v14, %v14448_v23  ;;  %v17995_v14 = vrot.slane %v14456_v16, 3  ;;  %v18685_v0 = vrot.slane %v14319_v29, 2 }
 0x402   :  { %2445 = vrot.lane.b32.xlu1 %v2400_v13, %s10633_s0  ;;  %v3055_v13 = vsel %vm324_vm3, %v17994_v35, %v3054_v32  ;;  %v3415_v61 = vsel %vm601_vm4, %v3413_v25, %v18678_v47  ;;  %v14474_v35 = vmul.f32 %v14311_v2, %v13761_v53 }
 0x403   :  { %v14442_v50 = vpop.permute.xlu0 %2061  ;;  %v3788_v22 = vrot.slane %v3739_v31, 3 }
 0x404   :  { %18674 = vst [vmem:[#allocation133_spill] sm:$0xff] %v14442_v50  ;;  %v14450_v7 = vpop.permute.xlu1 %2417  ;;  %v17996_v25 = vrot.slane %v14474_v35, 1 }
 0x405   :  { %18675 = vst [vmem:[#allocation170_spill] sm:$0xff] %v14450_v7  ;;  %2721 = vrot.lane.b32.xlu0 %v2667_v12, %s10634_s24  ;;  %v1608_v12 = vmul.f32 %v14325_v52, %v13761_v53  ;;  %v3789_v11 = vsel %vm878_vm5, %v17995_v14, %v3788_v22 }
 0x406   :  { %3095 = vrot.lane.b32.xlu1 %v3055_v13, %s10634_s24 }
 0x407   :  { %v14463_v27 = vpop.permute.xlu0 %2711  ;;  %v1671_v47 = vrot.slane %v1608_v12, 1  ;;  %v14503_v12 = vmul.f32 %v14047_v36, %v13919_v40 }
 0x408   :  { %18676 = vst [vmem:[#allocation108_spill] sm:$0xff] %v14463_v27  ;;  %v14465_v46 = vpop.permute.xlu1 %2713 }
 0x409   :  { %18677 = vst [vmem:[#allocation134_spill] sm:$0xff] %v14465_v46  ;;  %3097 = vrot.lane.b32.xlu0 %v3054_v32, %s10634_s24  ;;  %v1972_v32 = vmul.f32 %v14156_v15, %v13831_v45  ;;  %v17997_v50 = vrot.slane %v14503_v12, 3 }
 0x40a   :  { %3453 = vrot.lane.b32.xlu1 %v3415_v61, %s10634_s24  ;;  %v14493_v61 = vld [vmem:[#allocation2 + $0xa8] sm:$0xff] }
 0x40b   :  { %v14479_v62 = vpop.permute.xlu0 %1333  ;;  %v2030_v14 = vrot.slane %v1972_v32, 2 }
 0x40c   :  { %18679 = vst [vmem:[#allocation171_spill] sm:$0xff] %v14479_v62  ;;  %v14481_v31 = vpop.permute.xlu1 %1335 }
 0x40d   :  { %18680 = vst [vmem:[#allocation71_spill] sm:$0xff] %v14481_v31  ;;  %3827 = vrot.lane.b32.xlu0 %v3789_v11, %s10634_s24  ;;  %v1274_v31 = vmul.f32 %v14493_v61, %v13751_v56  ;;  %v2346_v11 = vmul.f32 %v14052_v19, %v13919_v40  ;;  %v2032_v7 = vsel %vm601_vm4, %v2030_v14, %v18685_v0 }
 0x40e   :  { %3829 = vrot.lane.b32.xlu1 %v3788_v22, %s10634_s24  ;;  %v1672_v22 = vsel %vm324_vm3, %v17996_v25, %v1671_v47  ;;  %v14521_v25 = vmul.f32 %v13877_v3, %v14113_v5  ;;  %v3368_v3 = vmul.f32 %v13810_v18, %v14267_v17 }
 0x40f   :  { %v14491_v13 = vpop.permute.xlu0 %1691 }
 0x410   :  { %18681 = vst [vmem:[#allocation120_spill] sm:$0xff] %v14491_v13  ;;  %v14497_v62 = vpop.permute.xlu1 %2065  ;;  %v17998_v0 = vrot.slane %v14521_v25, 1 }
 0x411   :  { %18682 = vst [vmem:[#allocation158_spill] sm:$0xff] %v14497_v62  ;;  %1343 = vrot.lane.b32.xlu0 %v1274_v31, %s10633_s0  ;;  %v2405_v62 = vrot.slane %v2346_v11, 3  ;;  %v3004_v31 = vmul.f32 %v13891_v1, %v14113_v5 }
 0x412   :  { %1717 = vrot.lane.b32.xlu1 %v1672_v22, %s10633_s0  ;;  %v14544_v22 = vld [vmem:[#allocation2 + $0x28] sm:$0xf] }
 0x413   :  { %v14510_v13 = vpop.permute.xlu0 %2067  ;;  %v2406_v29 = vsel %vm878_vm5, %v17997_v50, %v2405_v62  ;;  %v3059_v14 = vrot.slane %v3004_v31, 1  ;;  %v14548_v50 = vld [vmem:[#allocation2 + $0x20] sm:$0xff] }
 0x414   :  { %18683 = vst [vmem:[#allocation194_spill] sm:$0xff] %v14510_v13  ;;  %v14512_v56 = vpop.permute.xlu1 %2423  ;;  %v14552_v31 = vmul.f32 %v14548_v50, %v14448_v23 }
 0x415   :  { %18684 = vst [vmem:[#allocation132_spill] sm:$0xff] %v14512_v56  ;;  %1719 = vrot.lane.b32.xlu0 %v1671_v47, %s10633_s0  ;;  %v3060_v18 = vsel %vm324_vm3, %v17998_v0, %v3059_v14  ;;  %v2341_v0 = vmul.f32 %v14093_v51, %v13919_v40 }
 0x416   :  { %2075 = vrot.lane.b32.xlu1 %v2032_v7, %s10633_s0  ;;  %v2670_v7 = vmul.f32 %v13954_v34, %v14031_v58  ;;  %v17999_v56 = vrot.slane %v14552_v31, 3 }
 0x417   :  { %v14526_v32 = vpop.permute.xlu0 %2717 }
 0x418   :  { %18686 = vst [vmem:[#allocation159_spill] sm:$0xff] %v14526_v32  ;;  %v14528_v11 = vpop.permute.xlu1 %2719  ;;  %v18692_v32 = vrot.slane %v14363_v42, 2 }
 0x419   :  { %18687 = vst [vmem:[#allocation195_spill] sm:$0xff] %v14528_v11  ;;  %2449 = vrot.lane.b32.xlu0 %v2406_v29, %s10633_s0  ;;  %v3742_v29 = vmul.f32 %v14544_v22, %v14448_v23  ;;  %v1603_v11 = vmul.f32 %v14399_v63, %v13761_v53 }
 0x41a   :  { %2451 = vrot.lane.b32.xlu1 %v2405_v62, %s10633_s0  ;;  %v3418_v62 = vrot.slane %v3368_v3, 2  ;;  %v14572_v3 = vmul.f32 %v14236_v43, %v13831_v45 }
 0x41b   :  { %v14538_v1 = vpop.permute.xlu0 %1325  ;;  %v3793_v13 = vrot.slane %v3742_v29, 3 }
 0x41c   :  { %18688 = vst [vmem:[#allocation94_spill] sm:$0xff] %v14538_v1  ;;  %v14542_v47 = vpop.permute.xlu1 %1699  ;;  %v3420_v37 = vsel %vm601_vm4, %v3418_v62, %v18692_v32  ;;  %v1663_v32 = vrot.slane %v1603_v11, 1 }
 0x41d   :  { %18689 = vst [vmem:[#allocation145_spill] sm:$0xff] %v14542_v47  ;;  %2727 = vrot.lane.b32.xlu0 %v2670_v7, %s10634_s24  ;;  %v1977_v7 = vmul.f32 %v14242_v44, %v13831_v45  ;;  %v3794_v42 = vsel %vm878_vm5, %v17999_v56, %v3793_v13  ;;  %v2999_v56 = vmul.f32 %v13913_v21, %v14113_v5 }
 0x41e   :  { %3101 = vrot.lane.b32.xlu1 %v3060_v18, %s10634_s24 }
 0x41f   :  { %v14559_v1 = vpop.permute.xlu0 %1701  ;;  %v2038_v62 = vrot.slane %v1977_v7, 2  ;;  %v2397_v7 = vrot.slane %v2341_v0, 3 }
 0x420   :  { %18690 = vst [vmem:[#allocation182_spill] sm:$0xff] %v14559_v1  ;;  %v14561_v47 = vpop.permute.xlu1 %2057 }
 0x421   :  { %18691 = vst [vmem:[#allocation72_spill] sm:$0xff] %v14561_v47  ;;  %3103 = vrot.lane.b32.xlu0 %v3059_v14, %s10634_s24  ;;  %v18000_v14 = vrot.slane %v14572_v3, 2  ;;  %v18697_v47 = vrot.slane %v14380_v49, 1  ;;  %v18700_v49 = vrot.slane %v14409_v38, 3  ;;  %v2674_v38 = vmul.f32 %v13994_v4, %v14031_v58 }
 0x422   :  { %3459 = vrot.lane.b32.xlu1 %v3420_v37, %s10634_s24 }
 0x423   :  { %v14577_v29 = vpop.permute.xlu0 %2431  ;;  %v2039_v11 = vsel %vm601_vm4, %v18000_v14, %v2038_v62 }
 0x424   :  { %18693 = vst [vmem:[#allocation157_spill] sm:$0xff] %v14577_v29  ;;  %v14579_v18 = vpop.permute.xlu1 %2433 }
 0x425   :  { %18694 = vst [vmem:[#allocation183_spill] sm:$0xff] %v14579_v18  ;;  %3833 = vrot.lane.b32.xlu0 %v3794_v42, %s10634_s24  ;;  %v1665_v18 = vsel %vm324_vm3, %v1663_v32, %v18697_v47  ;;  %v2399_v47 = vsel %vm878_vm5, %v2397_v7, %v18700_v49  ;;  %v14611_v32 = vld [vmem:[#allocation2 + $0x38] sm:$0xff]  ;;  %v3051_v49 = vrot.slane %v2999_v56, 1 }
 0x426   :  { %3835 = vrot.lane.b32.xlu1 %v3793_v13, %s10634_s24  ;;  %v14615_v0 = vmul.f32 %v14611_v32, %v14267_v17 }
 0x427   :  { %v14589_v37 = vpop.permute.xlu0 %2709 }
 0x428   :  { %18695 = vst [vmem:[#allocation118_spill] sm:$0xff] %v14589_v37  ;;  %v14591_v1 = vpop.permute.xlu1 %3083  ;;  %v18001_v14 = vrot.slane %v14615_v0, 2  ;;  %v18705_v37 = vrot.slane %v14427_v39, 1  ;;  %v18708_v39 = vrot.slane %v14456_v16, 3 }
 0x429   :  { %18696 = vst [vmem:[#allocation169_spill] sm:$0xff] %v14591_v1  ;;  %1709 = vrot.lane.b32.xlu0 %v1665_v18, %s10633_s0  ;;  %v14617_v18 = vld [vmem:[#allocation2 + $0x40] sm:$0xf] }
 0x42a   :  { %2083 = vrot.lane.b32.xlu1 %v2039_v11, %s10633_s0  ;;  %v3373_v11 = vmul.f32 %v14617_v18, %v14267_v17  ;;  %v3053_v56 = vsel %vm324_vm3, %v3051_v49, %v18705_v37  ;;  %v14661_v49 = vmul.f32 %v14311_v2, %v13831_v45 }
 0x42b   :  { %v14601_v42 = vpop.permute.xlu0 %3085 }
 0x42c   :  { %18698 = vst [vmem:[#allocation210_spill] sm:$0xff] %v14601_v42  ;;  %v14603_v13 = vpop.permute.xlu1 %1331 }
 0x42d   :  { %18699 = vst [vmem:[#allocation95_spill] sm:$0xff] %v14603_v13  ;;  %2085 = vrot.lane.b32.xlu0 %v2038_v62, %s10633_s0  ;;  %v2675_v62 = vmul.f32 %v13998_v28, %v14031_v58  ;;  %v3426_v13 = vrot.slane %v3373_v11, 2 }
 0x42e   :  { %2441 = vrot.lane.b32.xlu1 %v2399_v47, %s10633_s0 }
 0x42f   :  { %v14622_v21 = vpop.permute.xlu0 %1705  ;;  %v3427_v11 = vsel %vm601_vm4, %v18001_v14, %v3426_v13 }
 0x430   :  { %18701 = vst [vmem:[#allocation181_spill] sm:$0xff] %v14622_v21  ;;  %v14626_v7 = vpop.permute.xlu1 %1707  ;;  %v14635_v21 = vld [vmem:[#allocation2] sm:$0xff] }
 0x431   :  { %18702 = vst [vmem:[#allocation211_spill] sm:$0xff] %v14626_v7  ;;  %2735 = vrot.lane.b32.xlu0 %v2674_v38, %s10634_s24  ;;  %v3737_v29 = vmul.f32 %v14635_v21, %v14448_v23 }
 0x432   :  { %2737 = vrot.lane.b32.xlu1 %v2675_v62, %s10634_s24 }
 0x433   :  { %v14633_v47 = vpop.permute.xlu0 %2063  ;;  %v3785_v62 = vrot.slane %v3737_v29, 3  ;;  %v14666_v29 = vstv %s9928_s27 }
 0x434   :  { %18703 = vst [vmem:[#allocation143_spill] sm:$0xff] %v14633_v47  ;;  %v14639_v7 = vpop.permute.xlu1 %2437 }
 0x435   :  { %18704 = vst [vmem:[#allocation193_spill] sm:$0xff] %v14639_v7  ;;  %3093 = vrot.lane.b32.xlu0 %v3053_v56, %s10634_s24  ;;  %v1606_v7 = vmul.f32 %v14493_v61, %v13761_v53  ;;  %v3787_v37 = vsel %vm878_vm5, %v3785_v62, %v18708_v39  ;;  %v1980_v56 = vmul.f32 %v14325_v52, %v13831_v45  ;;  %v14670_v53 = vld [vmem:[#allocation2 + $0x8] sm:$0xff] }
 0x436   :  { %3467 = vrot.lane.b32.xlu1 %v3427_v11, %s10634_s24  ;;  %v4070_v16 = vmul.f32 %v14670_v53, %v14666_v29 }
 0x437   :  { %v14649_v38 = vpop.permute.xlu0 %2439  ;;  %v1668_v14 = vrot.slane %v1606_v7, 1 }
 0x438   :  { %18706 = vst [vmem:[#allocation119_spill] sm:$0xff] %v14649_v38  ;;  %v14651_v47 = vpop.permute.xlu1 %2715  ;;  %v2043_v38 = vrot.slane %v1980_v56, 2 }
 0x439   :  { %18707 = vst [vmem:[#allocation207_spill] sm:$0xff] %v14651_v47  ;;  %3469 = vrot.lane.b32.xlu0 %v3426_v13, %s10634_s24  ;;  %v14676_v13 = vld [vmem:[#allocation2 + $0x10] sm:$0xf]  ;;  %v2344_v47 = vmul.f32 %v14156_v15, %v13919_v40 }
 0x43a   :  { %3825 = vrot.lane.b32.xlu1 %v3787_v37, %s10634_s24  ;;  %v4071_v39 = vmul.f32 %v14676_v13, %v14666_v29  ;;  %v18002_v37 = vrot.slane %v14661_v49, 2 }
 0x43b   :  { %v14668_v11 = vpop.permute.xlu0 %3089  ;;  %v2402_v56 = vrot.slane %v2344_v47, 3  ;;  %v14713_v47 = vld [vmem:[#allocation2 + $0x58] sm:$0xf] }
 0x43c   :  { %18709 = vst [vmem:[#allocation167_spill] sm:$0xff] %v14668_v11  ;;  %v14674_v62 = vpop.permute.xlu1 %3091  ;;  %v2044_v7 = vsel %vm601_vm4, %v18002_v37, %v2043_v38 }
 0x43d   :  { %18710 = vst [vmem:[#allocation144_spill] sm:$0xff] %v14674_v62  ;;  %4119 = vrot.lane.b32.xlu0 %v4070_v16, %s10635_s4  ;;  %v18713_v62 = vrot.slane %v14474_v35, 1  ;;  %v18716_v35 = vrot.slane %v14503_v12, 3  ;;  %v2677_v12 = vmul.f32 %v14047_v36, %v14031_v58 }
 0x43e   :  { %4121 = vrot.lane.b32.xlu1 %v4071_v39, %s10635_s4 }
 0x43f   :  { %v14685_v11 = vpop.permute.xlu0 %1339  ;;  %v1670_v1 = vsel %vm324_vm3, %v1668_v14, %v18713_v62  ;;  %v2404_v14 = vsel %vm878_vm5, %v2402_v56, %v18716_v35  ;;  %v14707_v62 = vld [vmem:[#allocation2 + $0x50] sm:$0xff] }
 0x440   :  { %18711 = vst [vmem:[#allocation191_spill] sm:$0xff] %v14685_v11  ;;  %v14687_v42 = vpop.permute.xlu1 %1341 }
 0x441   :  { %18712 = vst [vmem:[#allocation11_spill] sm:$0xff] %v14687_v42  ;;  %1715 = vrot.lane.b32.xlu0 %v1670_v1, %s10633_s0  ;;  %v3002_v42 = vmul.f32 %v13954_v34, %v14113_v5  ;;  %v14711_v1 = vmul.f32 %v14707_v62, %v14267_v17 }
 0x442   :  { %2089 = vrot.lane.b32.xlu1 %v2044_v7, %s10633_s0  ;;  %v3376_v7 = vmul.f32 %v14713_v47, %v14267_v17 }
 0x443   :  { %v14697_v16 = vpop.permute.xlu0 %1697  ;;  %v3056_v35 = vrot.slane %v3002_v42, 1  ;;  %v18003_v37 = vrot.slane %v14711_v1, 2 }
 0x444   :  { %18714 = vst [vmem:[#allocation168_spill] sm:$0xff] %v14697_v16  ;;  %v14699_v39 = vpop.permute.xlu1 %2071  ;;  %v3431_v11 = vrot.slane %v3376_v7, 2  ;;  %v14728_v16 = vld [vmem:[#allocation2 + $0x18] sm:$0xff] }
 0x445   :  { %18715 = vst [vmem:[#allocation10_spill] sm:$0xff] %v14699_v39  ;;  %2091 = vrot.lane.b32.xlu0 %v2043_v38, %s10633_s0  ;;  %v2678_v38 = vmul.f32 %v14052_v19, %v14031_v58  ;;  %v18721_v39 = vrot.slane %v14521_v25, 1  ;;  %v18724_v25 = vrot.slane %v14552_v31, 3  ;;  %v4074_v31 = vmul.f32 %v14544_v22, %v14666_v29 }
 0x446   :  { %2447 = vrot.lane.b32.xlu1 %v2404_v14, %s10633_s0  ;;  %v3740_v14 = vmul.f32 %v14728_v16, %v14448_v23  ;;  %v3432_v42 = vsel %vm601_vm4, %v18003_v37, %v3431_v11 }
 0x447   :  { %v14718_v34 = vpop.permute.xlu0 %2073  ;;  %v3058_v19 = vsel %vm324_vm3, %v3056_v35, %v18721_v39  ;;  %v14757_v35 = vmul.f32 %v14236_v43, %v13919_v40 }
 0x448   :  { %18717 = vst [vmem:[#allocation36_spill] sm:$0xff] %v14718_v34  ;;  %v14722_v56 = vpop.permute.xlu1 %2429  ;;  %v3790_v7 = vrot.slane %v3740_v14, 3  ;;  %v2349_v14 = vmul.f32 %v14242_v44, %v13919_v40 }
 0x449   :  { %18718 = vst [vmem:[#allocation192_spill] sm:$0xff] %v14722_v56  ;;  %2741 = vrot.lane.b32.xlu0 %v2677_v12, %s10634_s24  ;;  %v1975_v56 = vmul.f32 %v14399_v63, %v13831_v45 }
 0x44a   :  { %2743 = vrot.lane.b32.xlu1 %v2678_v38, %s10634_s24  ;;  %v3792_v39 = vsel %vm878_vm5, %v3790_v7, %v18724_v25  ;;  %v18004_v7 = vrot.slane %v14757_v35, 3  ;;  %v2410_v25 = vrot.slane %v2349_v14, 3 }
 0x44b   :  { %v14733_v34 = vpop.permute.xlu0 %2723 }
 0x44c   :  { %18719 = vst [vmem:[#allocation208_spill] sm:$0xff] %v14733_v34  ;;  %v14735_v36 = vpop.permute.xlu1 %2725  ;;  %v18729_v34 = vrot.slane %v14572_v3, 2  ;;  %v2411_v14 = vsel %vm878_vm5, %v18004_v7, %v2410_v25 }
 0x44d   :  { %18720 = vst [vmem:[#allocation29_spill] sm:$0xff] %v14735_v36  ;;  %3099 = vrot.lane.b32.xlu0 %v3058_v19, %s10634_s24 }
 0x44e   :  { %3473 = vrot.lane.b32.xlu1 %v3432_v42, %s10634_s24  ;;  %v4073_v42 = vmul.f32 %v14548_v50, %v14666_v29 }
 0x44f   :  { %v14745_v12 = vpop.permute.xlu0 %3081 }
 0x450   :  { %18722 = vst [vmem:[#allocation44_spill] sm:$0xff] %v14745_v12  ;;  %v14747_v38 = vpop.permute.xlu1 %3455 }
 0x451   :  { %18723 = vst [vmem:[#allocation33_spill] sm:$0xff] %v14747_v38  ;;  %3475 = vrot.lane.b32.xlu0 %v3431_v11, %s10634_s24  ;;  %v2035_v11 = vrot.slane %v1975_v56, 2  ;;  %v14784_v56 = vmul.f32 %v13994_v4, %v14113_v5 }
 0x452   :  { %3831 = vrot.lane.b32.xlu1 %v3792_v39, %s10634_s24 }
 0x453   :  { %v14762_v19 = vpop.permute.xlu0 %3457  ;;  %v2037_v12 = vsel %vm601_vm4, %v2035_v11, %v18729_v34  ;;  %v18005_v4 = vrot.slane %v14784_v56, 1  ;;  %v18760_v27 = vrot.slane %v14784_v56, 1 }
 0x454   :  { %18725 = vst [vmem:[#allocation60_spill] sm:$0xff] %v14762_v19  ;;  %v14766_v37 = vpop.permute.xlu1 %1345 }
 0x455   :  { %18726 = vst [vmem:[#allocation61_spill] sm:$0xff] %v14766_v37  ;;  %4125 = vrot.lane.b32.xlu0 %v4073_v42, %s10635_s4  ;;  %v3007_v37 = vmul.f32 %v13998_v28, %v14113_v5  ;;  %v2673_v28 = vmul.f32 %v14093_v51, %v14031_v58 }
 0x456   :  { %4127 = vrot.lane.b32.xlu1 %v4074_v31, %s10635_s4  ;;  %v14798_v31 = vld [vmem:[#allocation2 + $0x30] sm:$0xff] }
 0x457   :  { %v14773_v36 = vpop.permute.xlu0 %1347  ;;  %v3064_v34 = vrot.slane %v3007_v37, 1  ;;  %v3371_v11 = vmul.f32 %v14798_v31, %v14267_v17  ;;  %v3743_v57 = vmul.f32 %v14798_v31, %v14448_v23 }
 0x458   :  { %18727 = vst [vmem:[#allocation82_spill] sm:$0xff] %v14773_v36  ;;  %v14775_v39 = vpop.permute.xlu1 %1703 }
 0x459   :  { %18728 = vst [vmem:[#allocation204_spill] sm:$0xff] %v14775_v39  ;;  %2081 = vrot.lane.b32.xlu0 %v2037_v12, %s10633_s0  ;;  %v14805_v12 = vmul.f32 %v14611_v32, %v14448_v23  ;;  %v3065_v7 = vsel %vm324_vm3, %v18005_v4, %v3064_v34  ;;  %v3423_v36 = vrot.slane %v3371_v11, 2 }
 0x45a   :  { %2455 = vrot.lane.b32.xlu1 %v2411_v14, %s10633_s0  ;;  %v3745_v14 = vmul.f32 %v14617_v18, %v14448_v23 }
 0x45b   :  { %v14791_v42 = vpop.permute.xlu0 %2077 }
 0x45c   :  { %18730 = vst [vmem:[#allocation83_spill] sm:$0xff] %v14791_v42  ;;  %v14793_v3 = vpop.permute.xlu1 %2079  ;;  %v3798_v39 = vrot.slane %v3745_v14, 3  ;;  %v14822_v42 = vstv %s9930_s28 }
 0x45d   :  { %18731 = vst [vmem:[#allocation106_spill] sm:$0xff] %v14793_v3  ;;  %2457 = vrot.lane.b32.xlu0 %v2410_v25, %s10633_s0  ;;  %v18006_v25 = vrot.slane %v14805_v12, 3  ;;  %v4403_v11 = vmul.f32 %v14676_v13, %v14822_v42 }
 0x45e   :  { %2733 = vrot.lane.b32.xlu1 %v2673_v28, %s10634_s24 }
 0x45f   :  { %v14810_v51 = vpop.permute.xlu0 %2435 }
 0x460   :  { %18732 = vst [vmem:[#allocation107_spill] sm:$0xff] %v14810_v51  ;;  %v14812_v37 = vpop.permute.xlu1 %2729  ;;  %v18736_v51 = vrot.slane %v14615_v0, 2 }
 0x461   :  { %18733 = vst [vmem:[#allocation130_spill] sm:$0xff] %v14812_v37  ;;  %3107 = vrot.lane.b32.xlu0 %v3065_v7, %s10634_s24  ;;  %v14833_v7 = vmul.f32 %v14670_v53, %v14822_v42 }
 0x462   :  { %3109 = vrot.lane.b32.xlu1 %v3064_v34, %s10634_s24  ;;  %v3425_v37 = vsel %vm601_vm4, %v3423_v36, %v18736_v51  ;;  %v3799_v34 = vsel %vm878_vm5, %v18006_v25, %v3798_v39  ;;  %v4069_v36 = vmul.f32 %v14635_v21, %v14666_v29  ;;  %v4452_v51 = vrot.slane %v4403_v11, 1 }
 0x463   :  { %v14820_v3 = vpop.permute.xlu0 %2731  ;;  %v18007_v4 = vrot.slane %v14833_v7, 1 }
 0x464   :  { %18734 = vst [vmem:[#allocation131_spill] sm:$0xff] %v14820_v3  ;;  %v14824_v28 = vpop.permute.xlu1 %3087  ;;  %v1978_v3 = vmul.f32 %v14493_v61, %v13831_v45 }
 0x465   :  { %18735 = vst [vmem:[#allocation155_spill] sm:$0xff] %v14824_v28  ;;  %3465 = vrot.lane.b32.xlu0 %v3425_v37, %s10634_s24  ;;  %v14852_v37 = vmul.f32 %v14311_v2, %v13919_v40  ;;  %v4453_v11 = vsel %vm324_vm3, %v18007_v4, %v4452_v51  ;;  %v14878_v4 = vld [vmem:[#allocation2 + $0x80] sm:$0xff] }
 0x466   :  { %3839 = vrot.lane.b32.xlu1 %v3799_v34, %s10634_s24  ;;  %v2352_v34 = vmul.f32 %v14325_v52, %v13919_v40  ;;  %v2040_v45 = vrot.slane %v1978_v3, 2 }
 0x467   :  { %v14840_v14 = vpop.permute.xlu0 %3461 }
 0x468   :  { %18737 = vst [vmem:[#allocation156_spill] sm:$0xff] %v14840_v14  ;;  %v14842_v0 = vpop.permute.xlu1 %3463 }
 0x469   :  { %18738 = vst [vmem:[#allocation12_spill] sm:$0xff] %v14842_v0  ;;  %3841 = vrot.lane.b32.xlu0 %v3798_v39, %s10634_s24  ;;  %v18008_v39 = vrot.slane %v14852_v37, 3  ;;  %v2415_v0 = vrot.slane %v2352_v34, 3  ;;  %v14882_v34 = vmul.f32 %v14878_v4, %v14113_v5 }
 0x46a   :  { %4117 = vrot.lane.b32.xlu1 %v4069_v36, %s10635_s4  ;;  %v18743_v36 = vrot.slane %v14661_v49, 2 }
 0x46b   :  { %v14857_v25 = vpop.permute.xlu0 %1337 }
 0x46c   :  { %18739 = vst [vmem:[#allocation205_spill] sm:$0xff] %v14857_v25  ;;  %v14859_v28 = vpop.permute.xlu1 %1711  ;;  %v2042_v25 = vsel %vm601_vm4, %v2040_v45, %v18743_v36  ;;  %v2676_v45 = vmul.f32 %v14156_v15, %v14031_v58 }
 0x46d   :  { %18740 = vst [vmem:[#allocation179_spill] sm:$0xff] %v14859_v28  ;;  %4491 = vrot.lane.b32.xlu0 %v4453_v11, %s10635_s4  ;;  %v14874_v28 = vld [vmem:[#allocation2 + $0x88] sm:$0xf] }
 0x46e   :  { %4493 = vrot.lane.b32.xlu1 %v4452_v51, %s10635_s4  ;;  %v3010_v3 = vmul.f32 %v14874_v28, %v14113_v5  ;;  %v2416_v51 = vsel %vm878_vm5, %v18008_v39, %v2415_v0 }
 0x46f   :  { %v14867_v14 = vpop.permute.xlu0 %1713 }
 0x470   :  { %18741 = vst [vmem:[#allocation180_spill] sm:$0xff] %v14867_v14  ;;  %v14869_v19 = vpop.permute.xlu1 %2069  ;;  %v3069_v36 = vrot.slane %v3010_v3, 1  ;;  %v18009_v14 = vrot.slane %v14882_v34, 1 }
 0x471   :  { %18742 = vst [vmem:[#allocation45_spill] sm:$0xff] %v14869_v19  ;;  %2087 = vrot.lane.b32.xlu0 %v2042_v25, %s10633_s0  ;;  %v14896_v19 = vld [vmem:[#allocation2 + $0x48] sm:$0xff]  ;;  %v14903_v25 = vmul.f32 %v14707_v62, %v14448_v23 }
 0x472   :  { %2461 = vrot.lane.b32.xlu1 %v2416_v51, %s10633_s0  ;;  %v3374_v38 = vmul.f32 %v14896_v19, %v14267_v17  ;;  %v3748_v51 = vmul.f32 %v14713_v47, %v14448_v23  ;;  %v3070_v39 = vsel %vm324_vm3, %v18009_v14, %v3069_v36  ;;  %v2347_v14 = vmul.f32 %v14399_v63, %v13919_v40 }
 0x473   :  { %v14889_v49 = vpop.permute.xlu0 %2443 }
 0x474   :  { %18744 = vst [vmem:[#allocation203_spill] sm:$0xff] %v14889_v49  ;;  %v14891_v11 = vpop.permute.xlu1 %2445  ;;  %v3803_v49 = vrot.slane %v3748_v51, 3 }
 0x475   :  { %18745 = vst [vmem:[#allocation206_spill] sm:$0xff] %v14891_v11  ;;  %2463 = vrot.lane.b32.xlu0 %v2415_v0, %s10633_s0  ;;  %v3428_v11 = vrot.slane %v3374_v38, 2  ;;  %v18010_v0 = vrot.slane %v14903_v25, 3  ;;  %v14929_v38 = vmul.f32 %v14548_v50, %v14822_v42 }
 0x476   :  { %2739 = vrot.lane.b32.xlu1 %v2676_v45, %s10634_s24  ;;  %v18750_v45 = vrot.slane %v14711_v1, 2 }
 0x477   :  { %v14908_v15 = vpop.permute.xlu0 %2721 }
 0x478   :  { %18746 = vst [vmem:[#allocation50_spill] sm:$0xff] %v14908_v15  ;;  %v14910_v3 = vpop.permute.xlu1 %3095  ;;  %v3430_v15 = vsel %vm601_vm4, %v3428_v11, %v18750_v45  ;;  %v4072_v11 = vmul.f32 %v14728_v16, %v14666_v29  ;;  %v18011_v45 = vrot.slane %v14929_v38, 1 }
 0x479   :  { %18747 = vst [vmem:[#allocation214_spill] sm:$0xff] %v14910_v3  ;;  %3113 = vrot.lane.b32.xlu0 %v3070_v39, %s10634_s24  ;;  %v4406_v3 = vmul.f32 %v14544_v22, %v14822_v42  ;;  %v3804_v39 = vsel %vm878_vm5, %v18010_v0, %v3803_v49 }
 0x47a   :  { %3115 = vrot.lane.b32.xlu1 %v3069_v36, %s10634_s24 }
 0x47b   :  { %v14918_v46 = vpop.permute.xlu0 %3097  ;;  %v4457_v51 = vrot.slane %v4406_v3, 1  ;;  %v14955_v3 = vld [vmem:[#allocation2 + $0x60] sm:$0xff] }
 0x47c   :  { %18748 = vst [vmem:[#allocation215_spill] sm:$0xff] %v14918_v46  ;;  %v14920_v10 = vpop.permute.xlu1 %3453  ;;  %v2407_v46 = vrot.slane %v2347_v14, 3 }
 0x47d   :  { %18749 = vst [vmem:[#allocation70_spill] sm:$0xff] %v14920_v10  ;;  %3471 = vrot.lane.b32.xlu0 %v3430_v15, %s10634_s24  ;;  %v4458_v0 = vsel %vm324_vm3, %v18011_v45, %v4457_v51  ;;  %v3005_v10 = vmul.f32 %v14955_v3, %v14113_v5  ;;  %v14969_v45 = vld [vmem:[#allocation2 + $0x70] sm:$0xf] }
 0x47e   :  { %3845 = vrot.lane.b32.xlu1 %v3804_v39, %s10634_s24 }
 0x47f   :  { %v14936_v36 = vpop.permute.xlu0 %3827 }
 0x480   :  { %18751 = vst [vmem:[#allocation93_spill] sm:$0xff] %v14936_v36  ;;  %v14938_v1 = vpop.permute.xlu1 %3829 }
 0x481   :  { %18752 = vst [vmem:[#allocation117_spill] sm:$0xff] %v14938_v1  ;;  %3847 = vrot.lane.b32.xlu0 %v3803_v49, %s10634_s24  ;;  %v14973_v1 = vld [vmem:[#allocation2 + $0x68] sm:$0xff] }
 0x482   :  { %4123 = vrot.lane.b32.xlu1 %v4072_v11, %s10635_s4 }
 0x483   :  { %v14947_v15 = vpop.permute.xlu0 %1343 }
 0x484   :  { %18753 = vst [vmem:[#allocation142_spill] sm:$0xff] %v14947_v15  ;;  %v14949_v39 = vpop.permute.xlu1 %1717  ;;  %v2680_v15 = vmul.f32 %v14236_v43, %v14031_v58 }
 0x485   :  { %18754 = vst [vmem:[#allocation14_spill] sm:$0xff] %v14949_v39  ;;  %4497 = vrot.lane.b32.xlu0 %v4458_v0, %s10635_s4  ;;  %v18757_v39 = vrot.slane %v14757_v35, 3  ;;  %v3379_v0 = vmul.f32 %v14969_v45, %v14267_v17 }
 0x486   :  { %4499 = vrot.lane.b32.xlu1 %v4457_v51, %s10635_s4  ;;  %v14977_v51 = vmul.f32 %v14973_v1, %v14267_v17 }
 0x487   :  { %v14960_v49 = vpop.permute.xlu0 %1719  ;;  %v2409_v14 = vsel %vm878_vm5, %v2407_v46, %v18757_v39  ;;  %v2681_v46 = vmul.f32 %v14242_v44, %v14031_v58  ;;  %v3436_v39 = vrot.slane %v3379_v0, 2 }
 0x488   :  { %18755 = vst [vmem:[#allocation166_spill] sm:$0xff] %v14960_v49  ;;  %v14962_v11 = vpop.permute.xlu1 %2075  ;;  %v3061_v49 = vrot.slane %v3005_v10, 1  ;;  %v18012_v36 = vrot.slane %v14977_v51, 2 }
 0x489   :  { %18756 = vst [vmem:[#allocation47_spill] sm:$0xff] %v14962_v11  ;;  %2453 = vrot.lane.b32.xlu0 %v2409_v14, %s10633_s0 }
 0x48a   :  { %2747 = vrot.lane.b32.xlu1 %v2680_v15, %s10634_s24  ;;  %v3063_v10 = vsel %vm324_vm3, %v3061_v49, %v18760_v27  ;;  %v3437_v0 = vsel %vm601_vm4, %v18012_v36, %v3436_v39  ;;  %v4401_v27 = vmul.f32 %v14635_v21, %v14822_v42  ;;  %v15008_v49 = vstv %s9932_s29 }
 0x48b   :  { %v14981_v11 = vpop.permute.xlu0 %2449 }
 0x48c   :  { %18758 = vst [vmem:[#allocation190_spill] sm:$0xff] %v14981_v11  ;;  %v14985_v35 = vpop.permute.xlu1 %2451  ;;  %v18765_v11 = vrot.slane %v14805_v12, 3 }
 0x48d   :  { %18759 = vst [vmem:[#allocation59_spill] sm:$0xff] %v14985_v35  ;;  %2749 = vrot.lane.b32.xlu0 %v2681_v46, %s10634_s24  ;;  %v3795_v35 = vrot.slane %v3743_v57, 3 }
 0x48e   :  { %3105 = vrot.lane.b32.xlu1 %v3063_v10, %s10634_s24  ;;  %v4076_v10 = vmul.f32 %v14611_v32, %v14666_v29 }
 0x48f   :  { %v14995_v15 = vpop.permute.xlu0 %2727  ;;  %v3797_v57 = vsel %vm878_vm5, %v3795_v35, %v18765_v11 }
 0x490   :  { %18761 = vst [vmem:[#allocation81_spill] sm:$0xff] %v14995_v15  ;;  %v14997_v14 = vpop.permute.xlu1 %3101  ;;  %v4449_v15 = vrot.slane %v4401_v27, 1 }
 0x491   :  { %18762 = vst [vmem:[#allocation105_spill] sm:$0xff] %v14997_v14  ;;  %3479 = vrot.lane.b32.xlu0 %v3437_v0, %s10634_s24  ;;  %v4775_v0 = vmul.f32 %v14676_v13, %v15008_v49  ;;  %v2350_v14 = vmul.f32 %v14493_v61, %v13919_v40  ;;  %v15047_v40 = vld [vmem:[#allocation2 + $0x78] sm:$0xff] }
 0x492   :  { %3481 = vrot.lane.b32.xlu1 %v3436_v39, %s10634_s24  ;;  %v15021_v39 = vmul.f32 %v14670_v53, %v15008_v49 }
 0x493   :  { %v15004_v56 = vpop.permute.xlu0 %3103  ;;  %v4824_v11 = vrot.slane %v4775_v0, 2 }
 0x494   :  { %18763 = vst [vmem:[#allocation129_spill] sm:$0xff] %v15004_v56  ;;  %v15010_v46 = vpop.permute.xlu1 %3459  ;;  %v4077_v56 = vmul.f32 %v14617_v18, %v14666_v29  ;;  %v18013_v35 = vrot.slane %v15021_v39, 2 }
 0x495   :  { %18764 = vst [vmem:[#allocation16_spill] sm:$0xff] %v15010_v46  ;;  %3837 = vrot.lane.b32.xlu0 %v3797_v57, %s10634_s24  ;;  %v18768_v46 = vrot.slane %v14833_v7, 1  ;;  %v3008_v7 = vmul.f32 %v15047_v40, %v14113_v5 }
 0x496   :  { %4131 = vrot.lane.b32.xlu1 %v4076_v10, %s10635_s4  ;;  %v4825_v0 = vsel %vm601_vm4, %v18013_v35, %v4824_v11  ;;  %v15065_v35 = vmul.f32 %v14878_v4, %v14267_v17 }
 0x497   :  { %v15025_v36 = vpop.permute.xlu0 %3833  ;;  %v4451_v57 = vsel %vm324_vm3, %v4449_v15, %v18768_v46  ;;  %v2683_v46 = vmul.f32 %v14311_v2, %v14031_v58 }
 0x498   :  { %18766 = vst [vmem:[#allocation13_spill] sm:$0xff] %v15025_v36  ;;  %v15029_v12 = vpop.permute.xlu1 %3835 }
 0x499   :  { %18767 = vst [vmem:[#allocation154_spill] sm:$0xff] %v15029_v12  ;;  %4133 = vrot.lane.b32.xlu0 %v4077_v56, %s10635_s4  ;;  %v2412_v12 = vrot.slane %v2350_v14, 3 }
 0x49a   :  { %4489 = vrot.lane.b32.xlu1 %v4451_v57, %s10635_s4  ;;  %v18773_v57 = vrot.slane %v14852_v37, 3 }
 0x49b   :  { %v15039_v27 = vpop.permute.xlu0 %1709 }
 0x49c   :  { %18769 = vst [vmem:[#allocation48_spill] sm:$0xff] %v15039_v27  ;;  %v15041_v10 = vpop.permute.xlu1 %2083  ;;  %v2414_v14 = vsel %vm878_vm5, %v2412_v12, %v18773_v57  ;;  %v18014_v57 = vrot.slane %v15065_v35, 2 }
 0x49d   :  { %18770 = vst [vmem:[#allocation49_spill] sm:$0xff] %v15041_v10  ;;  %4863 = vrot.lane.b32.xlu0 %v4825_v0, %s10635_s4  ;;  %v3382_v0 = vmul.f32 %v14874_v28, %v14267_v17  ;;  %v3746_v10 = vmul.f32 %v14896_v19, %v14448_v23 }
 0x49e   :  { %4865 = vrot.lane.b32.xlu1 %v4824_v11, %s10635_s4  ;;  %v3066_v11 = vrot.slane %v3008_v7, 1 }
 0x49f   :  { %v15052_v15 = vpop.permute.xlu0 %2085  ;;  %v3441_v12 = vrot.slane %v3382_v0, 2 }
 0x4a0   :  { %18771 = vst [vmem:[#allocation178_spill] sm:$0xff] %v15052_v15  ;;  %v15054_v56 = vpop.permute.xlu1 %2441  ;;  %v2684_v15 = vmul.f32 %v14325_v52, %v14031_v58 }
 0x4a1   :  { %18772 = vst [vmem:[#allocation68_spill] sm:$0xff] %v15054_v56  ;;  %2459 = vrot.lane.b32.xlu0 %v2414_v14, %s10633_s0  ;;  %v18776_v56 = vrot.slane %v14882_v34, 1  ;;  %v3442_v0 = vsel %vm601_vm4, %v18014_v57, %v3441_v12  ;;  %v4404_v34 = vmul.f32 %v14728_v16, %v14822_v42 }
 0x4a2   :  { %2753 = vrot.lane.b32.xlu1 %v2683_v46, %s10634_s24 }
 0x4a3   :  { %v15069_v27 = vpop.permute.xlu0 %2735  ;;  %v3068_v14 = vsel %vm324_vm3, %v3066_v11, %v18776_v56  ;;  %v4079_v11 = vmul.f32 %v14707_v62, %v14666_v29 }
 0x4a4   :  { %18774 = vst [vmem:[#allocation69_spill] sm:$0xff] %v15069_v27  ;;  %v15073_v37 = vpop.permute.xlu1 %2737 }
 0x4a5   :  { %18775 = vst [vmem:[#allocation202_spill] sm:$0xff] %v15073_v37  ;;  %2755 = vrot.lane.b32.xlu0 %v2684_v15, %s10634_s24  ;;  %v3800_v37 = vrot.slane %v3746_v10, 3  ;;  %v4778_v10 = vmul.f32 %v14544_v22, %v15008_v49 }
 0x4a6   :  { %3111 = vrot.lane.b32.xlu1 %v3068_v14, %s10634_s24  ;;  %v18781_v14 = vrot.slane %v14903_v25, 3 }
 0x4a7   :  { %v15083_v7 = vpop.permute.xlu0 %3093 }
 0x4a8   :  { %18777 = vst [vmem:[#allocation91_spill] sm:$0xff] %v15083_v7  ;;  %v15085_v46 = vpop.permute.xlu1 %3467  ;;  %v3802_v27 = vsel %vm878_vm5, %v3800_v37, %v18781_v14  ;;  %v4080_v7 = vmul.f32 %v14713_v47, %v14666_v29  ;;  %v4829_v37 = vrot.slane %v4778_v10, 2 }
 0x4a9   :  { %18778 = vst [vmem:[#allocation92_spill] sm:$0xff] %v15085_v46  ;;  %3485 = vrot.lane.b32.xlu0 %v3442_v0, %s10634_s24  ;;  %v15107_v0 = vmul.f32 %v14548_v50, %v15008_v49 }
 0x4aa   :  { %3487 = vrot.lane.b32.xlu1 %v3441_v12, %s10634_s24  ;;  %v4454_v12 = vrot.slane %v4404_v34, 1  ;;  %v3013_v34 = vmul.f32 %v14242_v44, %v14113_v5 }
 0x4ab   :  { %v15094_v56 = vpop.permute.xlu0 %3469  ;;  %v18015_v14 = vrot.slane %v15107_v0, 2 }
 0x4ac   :  { %18779 = vst [vmem:[#allocation115_spill] sm:$0xff] %v15094_v56  ;;  %v15096_v15 = vpop.permute.xlu1 %3825  ;;  %v18784_v56 = vrot.slane %v14929_v38, 1 }
 0x4ad   :  { %18780 = vst [vmem:[#allocation116_spill] sm:$0xff] %v15096_v15  ;;  %3843 = vrot.lane.b32.xlu0 %v3802_v27, %s10634_s24  ;;  %v15124_v27 = vmul.f32 %v14236_v43, %v14113_v5  ;;  %v4830_v38 = vsel %vm601_vm4, %v18015_v14, %v4829_v37  ;;  %v3377_v43 = vmul.f32 %v14955_v3, %v14267_v17  ;;  %v18791_v15 = vrot.slane %v14977_v51, 2 }
 0x4ae   :  { %4137 = vrot.lane.b32.xlu1 %v4079_v11, %s10635_s4  ;;  %v4456_v46 = vsel %vm324_vm3, %v4454_v12, %v18784_v56  ;;  %v3074_v56 = vrot.slane %v3013_v34, 1  ;;  %v3751_v14 = vmul.f32 %v14969_v45, %v14448_v23 }
 0x4af   :  { %v15111_v57 = vpop.permute.xlu0 %4119 }
 0x4b0   :  { %18782 = vst [vmem:[#allocation140_spill] sm:$0xff] %v15111_v57  ;;  %v15115_v25 = vpop.permute.xlu1 %4121 }
 0x4b1   :  { %18783 = vst [vmem:[#allocation141_spill] sm:$0xff] %v15115_v25  ;;  %4139 = vrot.lane.b32.xlu0 %v4080_v7, %s10635_s4  ;;  %v18016_v7 = vrot.slane %v15124_v27, 1 }
 0x4b2   :  { %4495 = vrot.lane.b32.xlu1 %v4456_v46, %s10635_s4  ;;  %v2679_v46 = vmul.f32 %v14399_v63, %v14031_v58 }
 0x4b3   :  { %v15129_v11 = vpop.permute.xlu0 %1715  ;;  %v3075_v34 = vsel %vm324_vm3, %v18016_v7, %v3074_v56  ;;  %v4773_v7 = vmul.f32 %v14635_v21, %v15008_v49 }
 0x4b4   :  { %18785 = vst [vmem:[#allocation20_spill] sm:$0xff] %v15129_v11  ;;  %v15131_v10 = vpop.permute.xlu1 %2089 }
 0x4b5   :  { %18786 = vst [vmem:[#allocation164_spill] sm:$0xff] %v15131_v10  ;;  %4869 = vrot.lane.b32.xlu0 %v4830_v38, %s10635_s4  ;;  %v15151_v38 = vmul.f32 %v14973_v1, %v14448_v23  ;;  %v3808_v10 = vrot.slane %v3751_v14, 3 }
 0x4b6   :  { %4871 = vrot.lane.b32.xlu1 %v4829_v37, %s10635_s4  ;;  %v3433_v37 = vrot.slane %v3377_v43, 2  ;;  %v4409_v43 = vmul.f32 %v14617_v18, %v14822_v42 }
 0x4b7   :  { %v15141_v44 = vpop.permute.xlu0 %2091 }
 0x4b8   :  { %18787 = vst [vmem:[#allocation17_spill] sm:$0xff] %v15141_v44  ;;  %v15145_v12 = vpop.permute.xlu1 %2447  ;;  %v3435_v36 = vsel %vm601_vm4, %v3433_v37, %v18791_v15 }
 0x4b9   :  { %18788 = vst [vmem:[#allocation165_spill] sm:$0xff] %v15145_v12  ;;  %2745 = vrot.lane.b32.xlu0 %v2679_v46, %s10634_s24  ;;  %v18017_v12 = vrot.slane %v15151_v38, 3  ;;  %v15169_v46 = vmul.f32 %v14611_v32, %v14822_v42 }
 0x4ba   :  { %3119 = vrot.lane.b32.xlu1 %v3075_v34, %s10634_s24 }
 0x4bb   :  { %v15158_v11 = vpop.permute.xlu0 %2741  ;;  %v3809_v51 = vsel %vm878_vm5, %v18017_v12, %v3808_v10  ;;  %v18018_v15 = vrot.slane %v15169_v46, 1 }
 0x4bc   :  { %18789 = vst [vmem:[#allocation57_spill] sm:$0xff] %v15158_v11  ;;  %v15160_v44 = vpop.permute.xlu1 %2743 }
 0x4bd   :  { %18790 = vst [vmem:[#allocation188_spill] sm:$0xff] %v15160_v44  ;;  %3121 = vrot.lane.b32.xlu0 %v3074_v56, %s10634_s24  ;;  %v4462_v56 = vrot.slane %v4409_v43, 1  ;;  %v15190_v44 = vstv %s9934_s30 }
 0x4be   :  { %3477 = vrot.lane.b32.xlu1 %v3435_v36, %s10634_s24  ;;  %v4075_v36 = vmul.f32 %v14798_v31, %v14666_v29  ;;  %v15198_v43 = vmul.f32 %v14670_v53, %v15190_v44 }
 0x4bf   :  { %v15174_v34 = vpop.permute.xlu0 %3099 }
 0x4c0   :  { %18792 = vst [vmem:[#allocation58_spill] sm:$0xff] %v15174_v34  ;;  %v15176_v14 = vpop.permute.xlu1 %3473  ;;  %v4821_v34 = vrot.slane %v4773_v7, 2 }
 0x4c1   :  { %18793 = vst [vmem:[#allocation189_spill] sm:$0xff] %v15176_v14  ;;  %3851 = vrot.lane.b32.xlu0 %v3809_v51, %s10634_s24  ;;  %v5147_v51 = vmul.f32 %v14676_v13, %v15190_v44  ;;  %v18019_v13 = vrot.slane %v15198_v43, 3 }
 0x4c2   :  { %3853 = vrot.lane.b32.xlu1 %v3808_v10, %s10634_s24  ;;  %v4463_v10 = vsel %vm324_vm3, %v18018_v15, %v4462_v56  ;;  %v15216_v15 = vmul.f32 %v14311_v2, %v14113_v5  ;;  %v3380_v2 = vmul.f32 %v15047_v40, %v14267_v17 }
 0x4c3   :  { %v15184_v37 = vpop.permute.xlu0 %3475  ;;  %v5196_v14 = vrot.slane %v5147_v51, 3 }
 0x4c4   :  { %18794 = vst [vmem:[#allocation79_spill] sm:$0xff] %v15184_v37  ;;  %v15192_v11 = vpop.permute.xlu1 %3831 }
 0x4c5   :  { %18795 = vst [vmem:[#allocation80_spill] sm:$0xff] %v15192_v11  ;;  %4129 = vrot.lane.b32.xlu0 %v4075_v36, %s10635_s4  ;;  %v18798_v11 = vrot.slane %v15021_v39, 2  ;;  %v3016_v36 = vmul.f32 %v14325_v52, %v14113_v5  ;;  %v5197_v39 = vsel %vm878_vm5, %v18019_v13, %v5196_v14 }
 0x4c6   :  { %4503 = vrot.lane.b32.xlu1 %v4463_v10, %s10635_s4 }
 0x4c7   :  { %v15205_v12 = vpop.permute.xlu0 %4125  ;;  %v4823_v53 = vsel %vm601_vm4, %v4821_v34, %v18798_v11  ;;  %v18020_v11 = vrot.slane %v15216_v15, 1  ;;  %v3079_v34 = vrot.slane %v3016_v36, 1 }
 0x4c8   :  { %18796 = vst [vmem:[#allocation103_spill] sm:$0xff] %v15205_v12  ;;  %v15207_v37 = vpop.permute.xlu1 %4127 }
 0x4c9   :  { %18797 = vst [vmem:[#allocation104_spill] sm:$0xff] %v15207_v37  ;;  %4505 = vrot.lane.b32.xlu0 %v4462_v56, %s10635_s4  ;;  %v2682_v56 = vmul.f32 %v14493_v61, %v14031_v58  ;;  %v3080_v36 = vsel %vm324_vm3, %v18020_v11, %v3079_v34  ;;  %v15261_v11 = vmul.f32 %v14707_v62, %v14822_v42 }
 0x4ca   :  { %4861 = vrot.lane.b32.xlu1 %v4823_v53, %s10635_s4  ;;  %v3754_v53 = vmul.f32 %v14874_v28, %v14448_v23  ;;  %v3749_v37 = vmul.f32 %v14955_v3, %v14448_v23 }
 0x4cb   :  { %v15221_v7 = vpop.permute.xlu0 %2081 }
 0x4cc   :  { %18799 = vst [vmem:[#allocation127_spill] sm:$0xff] %v15221_v7  ;;  %v15223_v51 = vpop.permute.xlu1 %2455  ;;  %v3813_v7 = vrot.slane %v3754_v53, 3 }
 0x4cd   :  { %18800 = vst [vmem:[#allocation23_spill] sm:$0xff] %v15223_v51  ;;  %5235 = vrot.lane.b32.xlu0 %v5197_v39, %s10635_s4  ;;  %v15243_v39 = vmul.f32 %v14878_v4, %v14448_v23  ;;  %v18805_v51 = vrot.slane %v15065_v35, 2 }
 0x4ce   :  { %5237 = vrot.lane.b32.xlu1 %v5196_v14, %s10635_s4  ;;  %v3438_v14 = vrot.slane %v3380_v2, 2  ;;  %v4412_v2 = vmul.f32 %v14713_v47, %v14822_v42 }
 0x4cf   :  { %v15233_v52 = vpop.permute.xlu0 %2457 }
 0x4d0   :  { %18801 = vst [vmem:[#allocation128_spill] sm:$0xff] %v15233_v52  ;;  %v15237_v10 = vpop.permute.xlu1 %2733  ;;  %v18021_v52 = vrot.slane %v15243_v39, 3 }
 0x4d1   :  { %18802 = vst [vmem:[#allocation152_spill] sm:$0xff] %v15237_v10  ;;  %2751 = vrot.lane.b32.xlu0 %v2682_v56, %s10634_s24  ;;  %v3440_v10 = vsel %vm601_vm4, %v3438_v14, %v18805_v51  ;;  %v18022_v51 = vrot.slane %v15261_v11, 1 }
 0x4d2   :  { %3125 = vrot.lane.b32.xlu1 %v3080_v36, %s10634_s24  ;;  %v3814_v35 = vsel %vm878_vm5, %v18021_v52, %v3813_v7  ;;  %v4776_v36 = vmul.f32 %v14728_v16, %v15008_v49  ;;  %v5150_v52 = vmul.f32 %v14544_v22, %v15190_v44 }
 0x4d3   :  { %v15250_v13 = vpop.permute.xlu0 %3107 }
 0x4d4   :  { %18803 = vst [vmem:[#allocation67_spill] sm:$0xff] %v15250_v13  ;;  %v15252_v58 = vpop.permute.xlu1 %3109 }
 0x4d5   :  { %18804 = vst [vmem:[#allocation153_spill] sm:$0xff] %v15252_v58  ;;  %3127 = vrot.lane.b32.xlu0 %v3079_v34, %s10634_s24  ;;  %v4467_v34 = vrot.slane %v4412_v2, 1 }
 0x4d6   :  { %3483 = vrot.lane.b32.xlu1 %v3440_v10, %s10634_s24  ;;  %v4078_v10 = vmul.f32 %v14896_v19, %v14666_v29 }
 0x4d7   :  { %v15266_v56 = vpop.permute.xlu0 %3465  ;;  %v4468_v2 = vsel %vm324_vm3, %v18022_v51, %v4467_v34 }
 0x4d8   :  { %18806 = vst [vmem:[#allocation176_spill] sm:$0xff] %v15266_v56  ;;  %v15268_v53 = vpop.permute.xlu1 %3839 }
 0x4d9   :  { %18807 = vst [vmem:[#allocation90_spill] sm:$0xff] %v15268_v53  ;;  %3857 = vrot.lane.b32.xlu0 %v3814_v35, %s10634_s24  ;;  %v15288_v35 = vmul.f32 %v14548_v50, %v15190_v44  ;;  %v3011_v50 = vmul.f32 %v14399_v63, %v14113_v5  ;;  %v18812_v53 = vrot.slane %v15107_v0, 2 }
 0x4da   :  { %3859 = vrot.lane.b32.xlu1 %v3813_v7, %s10634_s24  ;;  %v4826_v7 = vrot.slane %v4776_v36, 2 }
 0x4db   :  { %v15278_v14 = vpop.permute.xlu0 %3841  ;;  %v18023_v22 = vrot.slane %v15288_v35, 3 }
 0x4dc   :  { %18808 = vst [vmem:[#allocation177_spill] sm:$0xff] %v15278_v14  ;;  %v15282_v58 = vpop.permute.xlu1 %4117  ;;  %v5201_v14 = vrot.slane %v5150_v52, 3 }
 0x4dd   :  { %18809 = vst [vmem:[#allocation200_spill] sm:$0xff] %v15282_v58  ;;  %4135 = vrot.lane.b32.xlu0 %v4078_v10, %s10635_s4  ;;  %v4828_v58 = vsel %vm601_vm4, %v4826_v7, %v18812_v53  ;;  %v15306_v10 = vld [vmem:[#allocation2 + $0x98] sm:$0xff] }
 0x4de   :  { %4509 = vrot.lane.b32.xlu1 %v4468_v2, %s10635_s4  ;;  %v15310_v36 = vmul.f32 %v15306_v10, %v14267_v17  ;;  %v15312_v2 = vld [vmem:[#allocation2 + $0xa0] sm:$0xf]  ;;  %v5202_v53 = vsel %vm878_vm5, %v18023_v22, %v5201_v14  ;;  %v4407_v22 = vmul.f32 %v14798_v31, %v14822_v42 }
 0x4df   :  { %v15295_v13 = vpop.permute.xlu0 %4491  ;;  %v3385_v52 = vmul.f32 %v15312_v2, %v14267_v17 }
 0x4e0   :  { %18810 = vst [vmem:[#allocation114_spill] sm:$0xff] %v15295_v13  ;;  %v15297_v56 = vpop.permute.xlu1 %4493  ;;  %v18024_v7 = vrot.slane %v15310_v36, 2 }
 0x4e1   :  { %18811 = vst [vmem:[#allocation201_spill] sm:$0xff] %v15297_v56  ;;  %4511 = vrot.lane.b32.xlu0 %v4467_v34, %s10635_s4  ;;  %v3071_v34 = vrot.slane %v3011_v50, 1  ;;  %v3446_v51 = vrot.slane %v3385_v52, 2  ;;  %v3805_v52 = vrot.slane %v3749_v37, 3 }
 0x4e2   :  { %4867 = vrot.lane.b32.xlu1 %v4828_v58, %s10635_s4 }
 0x4e3   :  { %v15317_v63 = vpop.permute.xlu0 %2087  ;;  %v3447_v50 = vsel %vm601_vm4, %v18024_v7, %v3446_v51 }
 0x4e4   :  { %18813 = vst [vmem:[#allocation56_spill] sm:$0xff] %v15317_v63  ;;  %v15319_v0 = vpop.permute.xlu1 %2461 }
 0x4e5   :  { %18814 = vst [vmem:[#allocation139_spill] sm:$0xff] %v15319_v0  ;;  %5241 = vrot.lane.b32.xlu0 %v5202_v53, %s10635_s4  ;;  %v18817_v0 = vrot.slane %v15124_v27, 1  ;;  %v18820_v27 = vrot.slane %v15151_v38, 3  ;;  %v4083_v38 = vmul.f32 %v14969_v45, %v14666_v29 }
 0x4e6   :  { %5243 = vrot.lane.b32.xlu1 %v5201_v14, %s10635_s4 }
 0x4e7   :  { %v15329_v58 = vpop.permute.xlu0 %2463  ;;  %v3073_v12 = vsel %vm324_vm3, %v3071_v34, %v18817_v0  ;;  %v3807_v0 = vsel %vm878_vm5, %v3805_v52, %v18820_v27  ;;  %v15353_v34 = vmul.f32 %v14611_v32, %v15008_v49 }
 0x4e8   :  { %18815 = vst [vmem:[#allocation78_spill] sm:$0xff] %v15329_v58  ;;  %v15331_v63 = vpop.permute.xlu1 %2739 }
 0x4e9   :  { %18816 = vst [vmem:[#allocation163_spill] sm:$0xff] %v15331_v63  ;;  %3117 = vrot.lane.b32.xlu0 %v3073_v12, %s10634_s24  ;;  %v4781_v12 = vmul.f32 %v14617_v18, %v15008_v49  ;;  %v18025_v52 = vrot.slane %v15353_v34, 2 }
 0x4ea   :  { %3491 = vrot.lane.b32.xlu1 %v3447_v50, %s10634_s24  ;;  %v4082_v50 = vmul.f32 %v14973_v1, %v14666_v29 }
 0x4eb   :  { %v15341_v53 = vpop.permute.xlu0 %3113  ;;  %v4834_v27 = vrot.slane %v4781_v12, 2 }
 0x4ec   :  { %18818 = vst [vmem:[#allocation65_spill] sm:$0xff] %v15341_v53  ;;  %v15343_v14 = vpop.permute.xlu1 %3115 }
 0x4ed   :  { %18819 = vst [vmem:[#allocation102_spill] sm:$0xff] %v15343_v14  ;;  %3493 = vrot.lane.b32.xlu0 %v3446_v51, %s10634_s24  ;;  %v4459_v51 = vrot.slane %v4407_v22, 1  ;;  %v18825_v14 = vrot.slane %v15169_v46, 1  ;;  %v3014_v22 = vmul.f32 %v14493_v61, %v14113_v5  ;;  %v4835_v12 = vsel %vm601_vm4, %v18025_v52, %v4834_v27 }
 0x4ee   :  { %3849 = vrot.lane.b32.xlu1 %v3807_v0, %s10634_s24  ;;  %v5145_v0 = vmul.f32 %v14635_v21, %v15190_v44 }
 0x4ef   :  { %v15358_v37 = vpop.permute.xlu0 %3471  ;;  %v4461_v53 = vsel %vm324_vm3, %v4459_v51, %v18825_v14  ;;  %v3076_v51 = vrot.slane %v3014_v22, 1  ;;  %v18831_v22 = vrot.slane %v15216_v15, 1  ;;  %v18834_v15 = vrot.slane %v15243_v39, 3 }
 0x4f0   :  { %18821 = vst [vmem:[#allocation187_spill] sm:$0xff] %v15358_v37  ;;  %v15362_v7 = vpop.permute.xlu1 %3845  ;;  %v5193_v61 = vrot.slane %v5145_v0, 3  ;;  %v4086_v39 = vmul.f32 %v14874_v28, %v14666_v29 }
 0x4f1   :  { %18822 = vst [vmem:[#allocation88_spill] sm:$0xff] %v15362_v7  ;;  %4143 = vrot.lane.b32.xlu0 %v4082_v50, %s10635_s4  ;;  %v15384_v50 = vld [vmem:[#allocation2 + $0xb0] sm:$0xff]  ;;  %v3752_v7 = vmul.f32 %v15047_v40, %v14448_v23 }
 0x4f2   :  { %4145 = vrot.lane.b32.xlu1 %v4083_v38, %s10635_s4  ;;  %v15388_v21 = vmul.f32 %v15384_v50, %v14267_v17  ;;  %v15390_v38 = vld [vmem:[#allocation2 + $0xb8] sm:$0xf] }
 0x4f3   :  { %v15369_v58 = vpop.permute.xlu0 %3847  ;;  %v3388_v46 = vmul.f32 %v15390_v38, %v14267_v17 }
 0x4f4   :  { %18823 = vst [vmem:[#allocation126_spill] sm:$0xff] %v15369_v58  ;;  %v15373_v63 = vpop.permute.xlu1 %4123  ;;  %v18026_v37 = vrot.slane %v15388_v21, 2 }
 0x4f5   :  { %18824 = vst [vmem:[#allocation66_spill] sm:$0xff] %v15373_v63  ;;  %4501 = vrot.lane.b32.xlu0 %v4461_v53, %s10635_s4  ;;  %v18828_v53 = vrot.slane %v15198_v43, 3  ;;  %v3451_v58 = vrot.slane %v3388_v46, 2  ;;  %v3078_v43 = vsel %vm324_vm3, %v3076_v51, %v18831_v22  ;;  %v3810_v46 = vrot.slane %v3752_v7, 3 }
 0x4f6   :  { %4875 = vrot.lane.b32.xlu1 %v4835_v12, %s10635_s4  ;;  %v15431_v22 = vmul.f32 %v14707_v62, %v15008_v49  ;;  %v4784_v7 = vmul.f32 %v14713_v47, %v15008_v49  ;;  %v4092_v63 = vmul.f32 %v15390_v38, %v14666_v29 }
 0x4f7   :  { %v15395_v5 = vpop.permute.xlu0 %4497  ;;  %v5195_v52 = vsel %vm878_vm5, %v5193_v61, %v18828_v53  ;;  %v4410_v53 = vmul.f32 %v14896_v19, %v14822_v42  ;;  %v3812_v51 = vsel %vm878_vm5, %v3810_v46, %v18834_v15 }
 0x4f8   :  { %18826 = vst [vmem:[#allocation112_spill] sm:$0xff] %v15395_v5  ;;  %v15397_v14 = vpop.permute.xlu1 %4499  ;;  %v18027_v46 = vrot.slane %v15431_v22, 2  ;;  %v4839_v15 = vrot.slane %v4784_v7, 2  ;;  %v15775_v5 = vld [vmem:[#allocation2 + $0x48] sm:$0xff] }
 0x4f9   :  { %18827 = vst [vmem:[#allocation151_spill] sm:$0xff] %v15397_v14  ;;  %4877 = vrot.lane.b32.xlu0 %v4834_v27, %s10635_s4  ;;  %v3452_v27 = vsel %vm601_vm4, %v18026_v37, %v3451_v58  ;;  %18881 = vst [vmem:[#allocation9_spill] sm:$0xff] %v15775_v5 }
 0x4fa   :  { %5233 = vrot.lane.b32.xlu1 %v5195_v52, %s10635_s4  ;;  %v4840_v7 = vsel %vm601_vm4, %v18027_v46, %v4839_v15 }
 0x4fb   :  { %v15407_v12 = vpop.permute.xlu0 %2453 }
 0x4fc   :  { %18829 = vst [vmem:[#allocation89_spill] sm:$0xff] %v15407_v12  ;;  %v15409_v0 = vpop.permute.xlu1 %2747  ;;  %v5148_v12 = vmul.f32 %v14728_v16, %v15190_v44 }
 0x4fd   :  { %18830 = vst [vmem:[#allocation136_spill] sm:$0xff] %v15409_v0  ;;  %3123 = vrot.lane.b32.xlu0 %v3078_v43, %s10634_s24  ;;  %v18839_v0 = vrot.slane %v15261_v11, 1  ;;  %v3757_v11 = vmul.f32 %v15312_v2, %v14448_v23 }
 0x4fe   :  { %3497 = vrot.lane.b32.xlu1 %v3452_v27, %s10634_s24  ;;  %v4085_v27 = vmul.f32 %v14878_v4, %v14666_v29  ;;  %v5198_v16 = vrot.slane %v5148_v12, 3 }
 0x4ff   :  { %v15419_v61 = vpop.permute.xlu0 %2749 }
 0x500   :  { %18832 = vst [vmem:[#allocation175_spill] sm:$0xff] %v15419_v61  ;;  %v15421_v52 = vpop.permute.xlu1 %3105 }
 0x501   :  { %18833 = vst [vmem:[#allocation76_spill] sm:$0xff] %v15421_v52  ;;  %3499 = vrot.lane.b32.xlu0 %v3451_v58, %s10634_s24  ;;  %v4464_v58 = vrot.slane %v4410_v53, 1 }
 0x502   :  { %3855 = vrot.lane.b32.xlu1 %v3812_v51, %s10634_s24 }
 0x503   :  { %v15436_v43 = vpop.permute.xlu0 %3479  ;;  %v4466_v52 = vsel %vm324_vm3, %v4464_v58, %v18839_v0 }
 0x504   :  { %18835 = vst [vmem:[#allocation113_spill] sm:$0xff] %v15436_v43  ;;  %v15440_v37 = vpop.permute.xlu1 %3481  ;;  %v18842_v43 = vrot.slane %v15288_v35, 3  ;;  %v4415_v35 = vmul.f32 %v14969_v45, %v14822_v42 }
 0x505   :  { %18836 = vst [vmem:[#allocation77_spill] sm:$0xff] %v15440_v37  ;;  %4149 = vrot.lane.b32.xlu0 %v4085_v27, %s10635_s4  ;;  %v15456_v37 = vld [vmem:[#allocation2 + $0x90] sm:$0xff]  ;;  %v15466_v27 = vmul.f32 %v15306_v10, %v14448_v23 }
 0x506   :  { %4151 = vrot.lane.b32.xlu1 %v4086_v39, %s10635_s4  ;;  %v3383_v53 = vmul.f32 %v15456_v37, %v14267_v17  ;;  %v5200_v46 = vsel %vm878_vm5, %v5198_v16, %v18842_v43  ;;  %v15492_v43 = vmul.f32 %v14973_v1, %v14822_v42  ;;  %v4472_v16 = vrot.slane %v4415_v35, 1 }
 0x507   :  { %v15449_v51 = vpop.permute.xlu0 %3837  ;;  %v18028_v12 = vrot.slane %v15466_v27, 3 }
 0x508   :  { %18837 = vst [vmem:[#allocation161_spill] sm:$0xff] %v15449_v51  ;;  %v15451_v61 = vpop.permute.xlu1 %4131  ;;  %v3443_v58 = vrot.slane %v3383_v53, 2  ;;  %v4081_v53 = vmul.f32 %v14955_v3, %v14666_v29 }
 0x509   :  { %18838 = vst [vmem:[#allocation199_spill] sm:$0xff] %v15451_v61  ;;  %4507 = vrot.lane.b32.xlu0 %v4466_v52, %s10635_s4  ;;  %v3818_v52 = vrot.slane %v3757_v11, 3  ;;  %v18029_v11 = vrot.slane %v15492_v43, 1 }
 0x50a   :  { %4881 = vrot.lane.b32.xlu1 %v4840_v7, %s10635_s4  ;;  %v18845_v7 = vrot.slane %v15310_v36, 2 }
 0x50b   :  { %v15471_v0 = vpop.permute.xlu0 %4133  ;;  %v4473_v35 = vsel %vm324_vm3, %v18029_v11, %v4472_v16 }
 0x50c   :  { %18840 = vst [vmem:[#allocation100_spill] sm:$0xff] %v15471_v0  ;;  %v15473_v39 = vpop.permute.xlu1 %4489  ;;  %v3445_v0 = vsel %vm601_vm4, %v3443_v58, %v18845_v7  ;;  %v4779_v58 = vmul.f32 %v14798_v31, %v15008_v49  ;;  %v5153_v7 = vmul.f32 %v14617_v18, %v15190_v44 }
 0x50d   :  { %18841 = vst [vmem:[#allocation138_spill] sm:$0xff] %v15473_v39  ;;  %4883 = vrot.lane.b32.xlu0 %v4839_v15, %s10635_s4  ;;  %v3819_v15 = vsel %vm878_vm5, %v18028_v12, %v3818_v52 }
 0x50e   :  { %5239 = vrot.lane.b32.xlu1 %v5200_v46, %s10635_s4 }
 0x50f   :  { %v15481_v51 = vpop.permute.xlu0 %4863 }
 0x510   :  { %18843 = vst [vmem:[#allocation101_spill] sm:$0xff] %v15481_v51  ;;  %v15483_v61 = vpop.permute.xlu1 %4865 }
 0x511   :  { %18844 = vst [vmem:[#allocation185_spill] sm:$0xff] %v15483_v61  ;;  %3489 = vrot.lane.b32.xlu0 %v3445_v0, %s10634_s24  ;;  %v15511_v0 = vmul.f32 %v14611_v32, %v15190_v44  ;;  %v5206_v32 = vrot.slane %v5153_v7, 3  ;;  %v15541_v7 = vmul.f32 %v15384_v50, %v14448_v23 }
 0x512   :  { %3863 = vrot.lane.b32.xlu1 %v3819_v15, %s10634_s24 }
 0x513   :  { %v15499_v46 = vpop.permute.xlu0 %2459 }
 0x514   :  { %18846 = vst [vmem:[#allocation87_spill] sm:$0xff] %v15499_v46  ;;  %v15501_v36 = vpop.permute.xlu1 %2753  ;;  %v4831_v46 = vrot.slane %v4779_v58, 2 }
 0x515   :  { %18847 = vst [vmem:[#allocation99_spill] sm:$0xff] %v15501_v36  ;;  %3865 = vrot.lane.b32.xlu0 %v3818_v52, %s10634_s24  ;;  %v18030_v52 = vrot.slane %v15511_v0, 3  ;;  %v15525_v36 = vld [vmem:[#allocation2 + $0xa8] sm:$0xff] }
 0x516   :  { %4141 = vrot.lane.b32.xlu1 %v4081_v53, %s10635_s4  ;;  %v3386_v18 = vmul.f32 %v15525_v36, %v14267_v17 }
 0x517   :  { %v15516_v15 = vpop.permute.xlu0 %2755  ;;  %v5207_v17 = vsel %vm878_vm5, %v18030_v52, %v5206_v32  ;;  %v15559_v52 = vmul.f32 %v14878_v4, %v14822_v42 }
 0x518   :  { %18848 = vst [vmem:[#allocation124_spill] sm:$0xff] %v15516_v15  ;;  %v15518_v12 = vpop.permute.xlu1 %3111 }
 0x519   :  { %18849 = vst [vmem:[#allocation162_spill] sm:$0xff] %v15518_v12  ;;  %4515 = vrot.lane.b32.xlu0 %v4473_v35, %s10635_s4  ;;  %v18852_v12 = vrot.slane %v15353_v34, 2  ;;  %v3760_v35 = vmul.f32 %v15390_v38, %v14448_v23 }
 0x51a   :  { %4517 = vrot.lane.b32.xlu1 %v4472_v16, %s10635_s4  ;;  %v3448_v16 = vrot.slane %v3386_v18, 2  ;;  %v4418_v18 = vmul.f32 %v14874_v28, %v14822_v42 }
 0x51b   :  { %v15530_v53 = vpop.permute.xlu0 %3485  ;;  %v4833_v58 = vsel %vm601_vm4, %v4831_v46, %v18852_v12  ;;  %v3823_v12 = vrot.slane %v3760_v35, 3  ;;  %v18031_v46 = vrot.slane %v15541_v7, 3 }
 0x51c   :  { %18850 = vst [vmem:[#allocation125_spill] sm:$0xff] %v15530_v53  ;;  %v15532_v15 = vpop.permute.xlu1 %3487 }
 0x51d   :  { %18851 = vst [vmem:[#allocation213_spill] sm:$0xff] %v15532_v15  ;;  %4873 = vrot.lane.b32.xlu0 %v4833_v58, %s10635_s4  ;;  %v18855_v15 = vrot.slane %v15388_v21, 2  ;;  %v3824_v21 = vsel %vm878_vm5, %v18031_v46, %v3823_v12  ;;  %v5156_v46 = vmul.f32 %v14713_v47, %v15190_v44 }
 0x51e   :  { %5247 = vrot.lane.b32.xlu1 %v5207_v17, %s10635_s4  ;;  %v4782_v17 = vmul.f32 %v14896_v19, %v15008_v49 }
 0x51f   :  { %v15548_v11 = vpop.permute.xlu0 %3843  ;;  %v3450_v53 = vsel %vm601_vm4, %v3448_v16, %v18855_v15  ;;  %v18032_v15 = vrot.slane %v15559_v52, 1 }
 0x520   :  { %18853 = vst [vmem:[#allocation111_spill] sm:$0xff] %v15548_v11  ;;  %v15550_v34 = vpop.permute.xlu1 %4137 }
 0x521   :  { %18854 = vst [vmem:[#allocation149_spill] sm:$0xff] %v15550_v34  ;;  %5249 = vrot.lane.b32.xlu0 %v5206_v32, %s10635_s4  ;;  %v4477_v32 = vrot.slane %v4418_v18, 1  ;;  %v5211_v34 = vrot.slane %v5156_v46, 3  ;;  %v15612_v46 = vld [vmem:[%s17899_s2 + $0x20] sm:$0xff] }
 0x522   :  { %3495 = vrot.lane.b32.xlu1 %v3450_v53, %s10634_s24  ;;  %v4084_v53 = vmul.f32 %v15047_v40, %v14666_v29 }
 0x523   :  { %v15564_v58 = vpop.permute.xlu0 %4139  ;;  %v4478_v19 = vsel %vm324_vm3, %v18032_v15, %v4477_v32 }
 0x524   :  { %18856 = vst [vmem:[#allocation186_spill] sm:$0xff] %v15564_v58  ;;  %v15566_v35 = vpop.permute.xlu1 %4495 }
 0x525   :  { %18857 = vst [vmem:[#allocation123_spill] sm:$0xff] %v15566_v35  ;;  %3869 = vrot.lane.b32.xlu0 %v3824_v21, %s10634_s24  ;;  %v15586_v21 = vmul.f32 %v14707_v62, %v15190_v44  ;;  %v3755_v62 = vmul.f32 %v15456_v37, %v14448_v23  ;;  %v18862_v35 = vrot.slane %v15431_v22, 2 }
 0x526   :  { %3871 = vrot.lane.b32.xlu1 %v3823_v12, %s10634_s24  ;;  %v4836_v12 = vrot.slane %v4782_v17, 2  ;;  %v10192_v17 = vpop.f32.mrf.mxu1 }
 0x527   :  { %v15576_v16 = vpop.permute.xlu0 %4869  ;;  %v18033_v47 = vrot.slane %v15586_v21, 3  ;;  %v3815_v15 = vrot.slane %v3755_v62, 3 }
 0x528   :  { %18858 = vst [vmem:[#allocation150_spill] sm:$0xff] %v15576_v16  ;;  %v15580_v11 = vpop.permute.xlu1 %4871  ;;  %v4838_v39 = vsel %vm601_vm4, %v4836_v12, %v18862_v35 }
 0x529   :  { %18859 = vst [vmem:[#allocation135_spill] sm:$0xff] %v15580_v11  ;;  %4147 = vrot.lane.b32.xlu0 %v4084_v53, %s10635_s4  ;;  %v10185_v53 = vpop.f32.mrf.mxu0  ;;  %v5212_v12 = vsel %vm878_vm5, %v18033_v47, %v5211_v34  ;;  %v4088_v47 = vmul.f32 %v15306_v10, %v14666_v29 }
 0x52a   :  { %4521 = vrot.lane.b32.xlu1 %v4478_v19, %s10635_s4  ;;  %v15607_v19 = vld [vmem:[%s17899_s2 + $0x28] sm:$0xff] }
 0x52b   :  { %v15593_v18 = vpop.permute.xlu0 %2745  ;;  %10235 = vmatprep.subr.mxu0 %v15607_v19  ;;  %10242 = vmatprep.subr.mxu1 %v15607_v19  ;;  %v5664_v35 = vpop.f32.mrf.mxu0 }
 0x52c   :  { %18860 = vst [vmem:[#allocation173_spill] sm:$0xff] %v15593_v18  ;;  %v15595_v58 = vpop.permute.xlu1 %3119  ;;  %10236 = vmatpush3.msra.mxu0 %v15607_v19  ;;  %10243 = vmatpush3.msra.mxu1 %v15607_v19  ;;  %v5739_v18 = vpop.f32.mrf.mxu1 }
 0x52d   :  { %18861 = vst [vmem:[#allocation148_spill] sm:$0xff] %v15595_v58  ;;  %4523 = vrot.lane.b32.xlu0 %v4477_v32, %s10635_s4  ;;  %10237 = vmatprep.subr.mxu0 %v15612_v46 }
 0x52e   :  { %4879 = vrot.lane.b32.xlu1 %v4838_v39, %s10635_s4  ;;  %v4413_v39 = vmul.f32 %v14955_v3, %v14822_v42  ;;  %10244 = vmatprep.subr.mxu1 %v15612_v46 }
 0x52f   :  { %v15616_v22 = vpop.permute.xlu0 %3121  ;;  %10238 = vmatpush3.msra.mxu0 %v15612_v46  ;;  %10239 = vmatprep.mubr.msk.f32.mxu0 %vm5591_vm6, %v5664_v35 }
 0x530   :  { %18863 = vst [vmem:[#allocation174_spill] sm:$0xff] %v15616_v22  ;;  %v15620_v32 = vpop.permute.xlu1 %3477  ;;  %v10199_v22 = vpop.f32.mrf.mxu0  ;;  %10245 = vmatpush3.msra.mxu1 %v15612_v46  ;;  %10246 = vmatprep.mubr.msk.f32.mxu1 %vm5591_vm6, %v5739_v18  ;;  %v5151_v18 = vmul.f32 %v14798_v31, %v15190_v44  ;;  %v15685_v31 = vstv %s15633_s9 }
 0x531   :  { %18864 = vst [vmem:[#allocation18_spill] sm:$0xff] %v15620_v32  ;;  %5253 = vrot.lane.b32.xlu0 %v5212_v12, %s10635_s4  ;;  %v18867_v12 = vrot.slane %v15466_v27, 3  ;;  %v15650_v32 = vmul.f32 %v14973_v1, %v15008_v49  ;;  %10240 = vmatmul.mubr.msk.f32.vlgmr.msra.gmra.mxu0 %vm5591_vm6, %v10185_v53  ;;  %v4089_v1 = vmul.f32 %v15312_v2, %v14666_v29  ;;  %18871 = vst [vmem:[#allocation198_spill] sm:$0xff] %v15685_v31 }
 0x532   :  { %5255 = vrot.lane.b32.xlu1 %v5211_v34, %s10635_s4  ;;  %v4787_v34 = vmul.f32 %v14969_v45, %v15008_v49  ;;  %v5814_v35 = vpop.f32.mrf.mxu0  ;;  %10247 = vmatmul.mubr.msk.f32.vlgmr.msra.gmra.mxu1 %vm5591_vm6, %v10192_v17  ;;  %v3758_v17 = vmul.f32 %v15525_v36, %v14448_v23 }
 0x533   :  { %v15635_v62 = vpop.permute.xlu0 %3851  ;;  %v3817_v58 = vsel %vm878_vm5, %v3815_v15, %v18867_v12  ;;  %10249 = vmatprep.subr.mxu0 %v15607_v19  ;;  %10253 = vmatprep.mubr.msk.f32.mxu0 %vm5591_vm6, %v5814_v35  ;;  %v18034_v15 = vrot.slane %v15650_v32, 2  ;;  %v5203_v35 = vrot.slane %v5151_v18, 3 }
 0x534   :  { %18865 = vst [vmem:[#allocation160_spill] sm:$0xff] %v15635_v62  ;;  %v15641_v3 = vpop.permute.xlu1 %3853  ;;  %v4469_v62 = vrot.slane %v4413_v39, 1  ;;  %10250 = vmatpush3.msra.mxu0 %v15607_v19  ;;  %10256 = vmatprep.subr.mxu1 %v15607_v19  ;;  %v10206_v39 = vpop.f32.mrf.mxu1 }
 0x535   :  { %18866 = vst [vmem:[#allocation197_spill] sm:$0xff] %v15641_v3  ;;  %3861 = vrot.lane.b32.xlu0 %v3817_v58, %s10634_s24  ;;  %v4844_v58 = vrot.slane %v4787_v34, 2  ;;  %10251 = vmatprep.subr.mxu0 %v15612_v46  ;;  %v15716_v3 = vstv %s15666_s11 }
 0x536   :  { %4155 = vrot.lane.b32.xlu1 %v4088_v47, %s10635_s4  ;;  %v18870_v47 = vrot.slane %v15492_v43, 1  ;;  %10252 = vmatpush3.msra.mxu0 %v15612_v46  ;;  %v5889_v43 = vpop.f32.mrf.mxu1 }
 0x537   :  { %v15660_v45 = vpop.permute.xlu0 %4129  ;;  %10254 = vmatmul.mubr.msk.f32.vlgmr.msra.gmra.mxu0 %vm5591_vm6, %v10199_v22  ;;  %10257 = vmatpush3.msra.mxu1 %v15607_v19  ;;  %v4845_v22 = vsel %vm601_vm4, %v18034_v15, %v4844_v58  ;;  %v15709_v15 = vstv %s15658_s10 }
 0x538   :  { %18868 = vst [vmem:[#allocation8_spill] sm:$0xff] %v15660_v45  ;;  %v15668_v27 = vpop.permute.xlu1 %4503  ;;  %v4471_v53 = vsel %vm324_vm3, %v4469_v62, %v18870_v47  ;;  %10263 = vmatprep.subr.mxu0 %v15607_v19  ;;  %v10587_v62 = vld [vmem:[#allocation2 + $0x10] sm:$0xf]  ;;  %10258 = vmatprep.subr.mxu1 %v15612_v46 }
 0x539   :  { %18869 = vst [vmem:[#allocation172_spill] sm:$0xff] %v15668_v27  ;;  %4157 = vrot.lane.b32.xlu0 %v4089_v1, %s10635_s4  ;;  %v417_v23 = vmul.f32 %v10587_v62, %v15685_v31  ;;  %10260 = vmatprep.mubr.msk.f32.mxu1 %vm5591_vm6, %v5889_v43  ;;  %v10588_v1 = vld [vmem:[#allocation2 + $0x8] sm:$0xff]  ;;  %v10213_v27 = vpop.f32.mrf.mxu0 }
 0x53a   :  { %4513 = vrot.lane.b32.xlu1 %v4471_v53, %s10635_s4  ;;  %v15702_v47 = vmul.f32 %v10588_v1, %v15685_v31  ;;  %v3820_v53 = vrot.slane %v3758_v17, 3  ;;  %10259 = vmatpush3.msra.mxu1 %v15612_v46  ;;  %v18876_v17 = vrot.slane %v15511_v0, 3  ;;  %v15734_v0 = vmul.f32 %v14878_v4, %v15008_v49  ;;  %v10589_v4 = vld [vmem:[#allocation2 + $0x28] sm:$0xf] }
 0x53b   :  { %v15687_v12 = vpop.permute.xlu0 %4505  ;;  %10261 = vmatmul.mubr.msk.f32.vlgmr.msra.gmra.mxu1 %vm5591_vm6, %v10206_v39  ;;  %10264 = vmatpush3.msra.mxu0 %v15607_v19  ;;  %v466_v43 = vrot.slane %v417_v23, 1  ;;  %v4091_v39 = vmul.f32 %v15384_v50, %v14666_v29  ;;  %v5964_v61 = vpop.f32.mrf.mxu0 }
 0x53c   :  { %18872 = vst [vmem:[#allocation184_spill] sm:$0xff] %v15687_v12  ;;  %v15694_v34 = vpop.permute.xlu1 %4861  ;;  %10270 = vmatprep.subr.mxu1 %v15607_v19  ;;  %10265 = vmatprep.subr.mxu0 %v15612_v46  ;;  %v18877_v12 = vrot.slane %v15541_v7, 3  ;;  %v15744_v7 = vmul.f32 %v10588_v1, %v15716_v3 }
 0x53d   :  { %18873 = vst [vmem:[#allocation6_spill] sm:$0xff] %v15694_v34  ;;  %4887 = vrot.lane.b32.xlu0 %v4845_v22, %s10635_s4  ;;  %v5205_v22 = vsel %vm878_vm5, %v5203_v35, %v18876_v17  ;;  %10271 = vmatpush3.msra.mxu1 %v15607_v19  ;;  %v15738_v35 = vmul.f32 %v14874_v28, %v15008_v49  ;;  %v10590_v28 = vld [vmem:[#allocation2 + $0x20] sm:$0xff] }
 0x53e   :  { %4889 = vrot.lane.b32.xlu1 %v4844_v58, %s10635_s4  ;;  %v4416_v58 = vmul.f32 %v15047_v40, %v14822_v42  ;;  %v3822_v23 = vsel %vm878_vm5, %v3820_v53, %v18877_v12  ;;  %10266 = vmatpush3.msra.mxu0 %v15612_v46  ;;  %v228_v40 = vmul.f32 %v10587_v62, %v15709_v15 }
 0x53f   :  { %v15711_v18 = vpop.permute.xlu0 %5235  ;;  %v694_v17 = vmul.f32 %v10587_v62, %v15716_v3  ;;  %10272 = vmatprep.subr.mxu1 %v15612_v46  ;;  %v15749_v12 = vmul.f32 %v10589_v4, %v15685_v31  ;;  %v15752_v53 = vmul.f32 %v10590_v28, %v15685_v31  ;;  %10277 = vmatprep.subr.mxu0 %v15607_v19 }
 0x540   :  { %18874 = vst [vmem:[#allocation27_spill] sm:$0xff] %v15711_v18  ;;  %v15718_v45 = vpop.permute.xlu1 %5237  ;;  %10273 = vmatpush3.msra.mxu1 %v15612_v46  ;;  %v227_v34 = vmul.f32 %v10588_v1, %v15709_v15  ;;  %v4474_v16 = vrot.slane %v4416_v58, 1  ;;  %v4849_v18 = vrot.slane %v15738_v35, 2  ;;  %v529_v51 = vadd.f32 %v466_v43, %v228_v40  ;;  %10267 = vmatprep.mubr.msk.f32.mxu0 %vm5591_vm6, %v5964_v61 }
 0x541   :  { %18875 = vst [vmem:[#allocation196_spill] sm:$0xff] %v15718_v45  ;;  %5245 = vrot.lane.b32.xlu0 %v5205_v22, %s10635_s4  ;;  %10284 = vmatprep.subr.mxu1 %v15607_v19  ;;  %v18037_v35 = vrot.slane %v15744_v7, 2  ;;  %v18884_v61 = vrot.slane %v15559_v52, 1  ;;  %v10220_v52 = vpop.f32.mrf.mxu1  ;;  %v230_v25 = vmul.f32 %v10590_v28, %v15709_v15 }
 0x542   :  { %3867 = vrot.lane.b32.xlu1 %v3822_v23, %s10634_s24  ;;  %v15761_v23 = vstv %s15692_s12  ;;  %10268 = vmatmul.mubr.msk.f32.vlgmr.msra.gmra.mxu0 %vm5591_vm6, %v10213_v27  ;;  %v15811_v27 = vmul.f32 %v15306_v10, %v14822_v42 }
 0x543   :  { %v15754_v22 = vpop.permute.xlu0 %2751  ;;  %v15780_v58 = vmul.f32 %v10587_v62, %v15761_v23  ;;  %v15783_v56 = vmul.f32 %v10588_v1, %v15761_v23  ;;  %v15797_v1 = vmul.f32 %v10590_v28, %v15716_v3  ;;  %v4476_v40 = vsel %vm324_vm3, %v4474_v16, %v18884_v61  ;;  %10278 = vmatpush3.msra.mxu0 %v15607_v19 }
 0x544   :  { %18878 = vst [vmem:[#allocation26_spill] sm:$0xff] %v15754_v22  ;;  %v15764_v11 = vpop.permute.xlu1 %3125  ;;  %v18880_v22 = vrot.slane %v15702_v47, 1  ;;  %10279 = vmatprep.subr.mxu0 %v15612_v46 }
 0x545   :  { %18879 = vst [vmem:[#allocation212_spill] sm:$0xff] %v15764_v11  ;;  %4161 = vrot.lane.b32.xlu0 %v4091_v39, %s10635_s4  ;;  %v5154_v11 = vmul.f32 %v15775_v5, %v15190_v44  ;;  %v743_v39 = vrot.slane %v694_v17, 2  ;;  %v18885_v17 = vrot.slane %v15734_v0, 2  ;;  %v1020_v61 = vrot.slane %v15780_v58, 3  ;;  %10280 = vmatpush3.msra.mxu0 %v15612_v46 }
 0x546   :  { %v467_v45 = vsel %vm324_vm3, %v18880_v22, %v466_v43  ;;  %4163 = vrot.lane.b32.xlu1 %v4092_v63, %s10635_s4  ;;  %v471_v22 = vrot.slane %v15749_v12, 1  ;;  %v15794_v43 = vmul.f32 %v10589_v4, %v15716_v3  ;;  %v15833_v58 = vmul.f32 %v10590_v28, %v15761_v23 }
 0x547   :  { %v15790_v5 = vpop.permute.xlu0 %3127  ;;  %v528_v62 = vadd.f32 %v467_v45, %v227_v34  ;;  %v4850_v12 = vsel %vm601_vm4, %v18885_v17, %v4849_v18  ;;  %v5208_v45 = vrot.slane %v5154_v11, 3  ;;  %v15815_v34 = vmul.f32 %v15312_v2, %v14822_v42 }
 0x548   :  { %18882 = vst [vmem:[#allocation137_spill] sm:$0xff] %v15790_v5  ;;  %v15799_v63 = vpop.permute.xlu1 %3483  ;;  %v806_v16 = vadd.f32 %v743_v39, %v529_v51  ;;  %v231_v17 = vmul.f32 %v10589_v4, %v15709_v15  ;;  %v744_v11 = vsel %vm601_vm4, %v18037_v35, %v743_v39  ;;  %v18886_v5 = vrot.slane %v15752_v53, 1 }
 0x549   :  { %18883 = vst [vmem:[#allocation30_spill] sm:$0xff] %v15799_v63  ;;  %4519 = vrot.lane.b32.xlu0 %v4476_v40, %s10635_s4  ;;  %v15827_v40 = vmul.f32 %v10589_v4, %v15761_v23  ;;  %v6039_v63 = vpop.f32.mrf.mxu1  ;;  %v748_v13 = vrot.slane %v15794_v43, 2  ;;  %v18889_v4 = vrot.slane %v15586_v21, 3 }
 0x54a   :  { %4893 = vrot.lane.b32.xlu1 %v4850_v12, %s10635_s4  ;;  %v472_v51 = vsel %vm324_vm3, %v18886_v5, %v471_v22  ;;  %v805_v12 = vadd.f32 %v744_v11, %v528_v62  ;;  %10274 = vmatprep.mubr.msk.f32.mxu1 %vm5591_vm6, %v6039_v63  ;;  %v4482_v62 = vrot.slane %v15815_v34, 1  ;;  %v15849_v11 = vld [vmem:[#allocation2 + $0x60] sm:$0xff]  ;;  %v532_v43 = vadd.f32 %v471_v22, %v231_v17  ;;  %v10594_v34 = vld [vmem:[#allocation2 + $0x18] sm:$0xff] }
 0x54b   :  { %v15835_v14 = vpop.permute.xlu0 %3857  ;;  %v5210_v5 = vsel %vm878_vm5, %v5208_v45, %v18889_v4  ;;  %v4785_v28 = vmul.f32 %v15849_v11, %v15008_v49  ;;  %10275 = vmatmul.mubr.msk.f32.vlgmr.msra.gmra.mxu1 %vm5591_vm6, %v10220_v52  ;;  %v531_v39 = vadd.f32 %v472_v51, %v230_v25  ;;  %v10593_v63 = vld [vmem:[#allocation2] sm:$0xff]  ;;  %v418_v4 = vmul.f32 %v10594_v34, %v15685_v31 }
 0x54c   :  { %18887 = vst [vmem:[#allocation28_spill] sm:$0xff] %v15835_v14  ;;  %v15840_v35 = vpop.permute.xlu1 %3859  ;;  %v415_v21 = vmul.f32 %v10593_v63, %v15685_v31  ;;  %10285 = vmatpush3.msra.mxu1 %v15607_v19  ;;  %v4087_v22 = vmul.f32 %v15456_v37, %v14666_v29  ;;  %v15865_v25 = vadd.f32 %v1020_v61, %v806_v16  ;;  %v18891_v52 = vrot.slane %v15783_v56, 3 }
 0x54d   :  { %18888 = vst [vmem:[#allocation38_spill] sm:$0xff] %v15840_v35  ;;  %4895 = vrot.lane.b32.xlu0 %v4849_v18, %s10635_s4  ;;  %v1025_v18 = vrot.slane %v15827_v40, 3  ;;  %10286 = vmatprep.subr.mxu1 %v15612_v46  ;;  %v15872_v40 = vld [vmem:[#allocation2 + $0x70] sm:$0xf]  ;;  %v18895_v35 = vrot.slane %v15797_v1, 2  ;;  %v468_v59 = vrot.slane %v418_v4, 1  ;;  %v10227_v4 = vpop.f32.mrf.mxu0 }
 0x54e   :  { %5251 = vrot.lane.b32.xlu1 %v5210_v5, %s10635_s4  ;;  %v1021_v19 = vsel %vm878_vm5, %v18891_v52, %v1020_v61  ;;  %18893 = vst [vmem:[#allocation43_spill] sm:$0xff] %v15872_v40  ;;  %v5159_v51 = vmul.f32 %v15872_v40, %v15190_v44  ;;  %v15876_v5 = vld [vmem:[#allocation2 + $0x68] sm:$0xff]  ;;  %10287 = vmatpush3.msra.mxu1 %v15612_v46  ;;  %v18896_v52 = vrot.slane %v15811_v27, 1  ;;  %v463_v48 = vrot.slane %v415_v21, 1  ;;  %v10597_v21 = vld [vmem:[#allocation2 + $0x40] sm:$0xf] }
 0x54f   :  { %v15860_v14 = vpop.permute.xlu0 %4135  ;;  %18894 = vst [vmem:[#allocation15_spill] sm:$0xff] %v15876_v5  ;;  %v15880_v45 = vmul.f32 %v15876_v5, %v15190_v44  ;;  %v15883_v16 = vadd.f32 %v1021_v19, %v805_v12  ;;  %v749_v61 = vsel %vm601_vm4, %v18895_v35, %v748_v13  ;;  %v809_v40 = vadd.f32 %v748_v13, %v532_v43 }
 0x550   :  { %18890 = vst [vmem:[#allocation24_spill] sm:$0xff] %v15860_v14  ;;  %v15870_v17 = vpop.permute.xlu1 %4509  ;;  %v4483_v14 = vsel %vm324_vm3, %v18896_v52, %v4482_v62  ;;  %v808_v57 = vadd.f32 %v749_v61, %v531_v39  ;;  %v692_v5 = vmul.f32 %v10593_v63, %v15716_v3  ;;  %v18897_v46 = vrot.slane %v15833_v58, 3 }
 0x551   :  { %18892 = vst [vmem:[#allocation40_spill] sm:$0xff] %v15870_v17  ;;  %4153 = vrot.lane.b32.xlu0 %v4087_v22, %s10635_s4  ;;  %v4841_v17 = vrot.slane %v4785_v28, 2  ;;  %v226_v35 = vmul.f32 %v10593_v63, %v15709_v15  ;;  %v969_v19 = vmul.f32 %v10593_v63, %v15761_v23  ;;  %v18899_v28 = vrot.slane %v15702_v47, 1 }
 0x552   :  { %4527 = vrot.lane.b32.xlu1 %v4483_v14, %s10635_s4  ;;  %v1026_v12 = vsel %vm878_vm5, %v18897_v46, %v1025_v18  ;;  %v695_v39 = vmul.f32 %v10594_v34, %v15716_v3  ;;  %v5216_v14 = vrot.slane %v5159_v51, 3  ;;  %v972_v22 = vmul.f32 %v10594_v34, %v15761_v23 }
 0x553   :  { %v15899_v52 = vpop.permute.xlu0 %4511  ;;  %v465_v13 = vsel %vm324_vm3, %v463_v48, %v18899_v28  ;;  %v18901_v61 = vrot.slane %v15650_v32, 2  ;;  %v15915_v47 = vmul.f32 %v15384_v50, %v14822_v42  ;;  %v15919_v48 = vmul.f32 %v15390_v38, %v14822_v42 }
 0x554   :  { %18898 = vst [vmem:[#allocation54_spill] sm:$0xff] %v15899_v52  ;;  %v15905_v43 = vpop.permute.xlu1 %4867  ;;  %v15921_v51 = vadd.f32 %v1025_v18, %v809_v40  ;;  %v15923_v46 = vadd.f32 %v1026_v12, %v808_v57  ;;  %v740_v28 = vrot.slane %v692_v5, 2  ;;  %v229_v32 = vmul.f32 %v10594_v34, %v15709_v15  ;;  %v6114_v40 = vpop.f32.mrf.mxu0 }
 0x555   :  { %18900 = vst [vmem:[#allocation7_spill] sm:$0xff] %v15905_v43  ;;  %v4843_v63 = vsel %vm601_vm4, %v4841_v17, %v18901_v61  ;;  %4529 = vrot.lane.b32.xlu0 %v4482_v62, %s10635_s4  ;;  %v1017_v17 = vrot.slane %v969_v19, 3  ;;  %v18902_v62 = vrot.slane %v15752_v53, 1  ;;  %v15931_v52 = vmul.f32 %v10597_v21, %v15685_v31  ;;  %v10598_v43 = vld [vmem:[#allocation2 + $0x38] sm:$0xff]  ;;  %10281 = vmatprep.mubr.msk.f32.mxu0 %vm5591_vm6, %v6114_v40 }
 0x556   :  { %4885 = vrot.lane.b32.xlu1 %v4843_v63, %s10635_s4  ;;  %v15934_v18 = vmul.f32 %v10598_v43, %v15685_v31  ;;  %v527_v5 = vadd.f32 %v465_v13, %v226_v35  ;;  %v18905_v34 = vrot.slane %v15744_v7, 2  ;;  %v745_v19 = vrot.slane %v695_v39, 2  ;;  %v15950_v13 = vld [vmem:[#allocation2 + $0x78] sm:$0xff]  ;;  %10282 = vmatmul.mubr.msk.f32.vlgmr.msra.gmra.mxu0 %vm5591_vm6, %v10227_v4  ;;  %v15984_v4 = vld [vmem:[#allocation2 + $0x80] sm:$0xff] }
 0x557   :  { %v470_v61 = vsel %vm324_vm3, %v468_v59, %v18902_v62  ;;  %v15936_v57 = vpop.permute.xlu0 %5241  ;;  %v18907_v59 = vrot.slane %v15880_v45, 3  ;;  %v1022_v62 = vrot.slane %v972_v22, 3  ;;  %v4487_v35 = vrot.slane %v15919_v48, 1  ;;  %18908 = vst [vmem:[#allocation41_spill] sm:$0xff] %v15950_v13  ;;  %v10600_v48 = vld [vmem:[%s17899_s2 + $0x10] sm:$0xff]  ;;  %18915 = vst [vmem:[#allocation34_spill] sm:$0xff] %v15984_v4 }
 0x558   :  { %18903 = vst [vmem:[#allocation22_spill] sm:$0xff] %v15934_v18  ;;  %18904 = vst [vmem:[#allocation35_spill] sm:$0xff] %v15936_v57  ;;  %v742_v12 = vsel %vm601_vm4, %v740_v28, %v18905_v34  ;;  %v15941_v53 = vpop.permute.xlu1 %5243  ;;  %v4788_v7 = vmul.f32 %v15950_v13, %v15008_v49  ;;  %v18909_v39 = vrot.slane %v15783_v56, 3  ;;  %v530_v34 = vadd.f32 %v470_v61, %v229_v32 }
 0x559   :  { %18906 = vst [vmem:[#allocation37_spill] sm:$0xff] %v15941_v53  ;;  %v5217_v63 = vsel %vm878_vm5, %v18907_v59, %v5216_v14  ;;  %v15959_v22 = vmul.f32 %v10597_v21, %v15716_v3  ;;  %10295 = vmatprep.mubr.msk.f32.mxu0 %vm5591_vm6, %v10600_v48  ;;  %v476_v40 = vrot.slane %v15931_v52, 1  ;;  %v15969_v56 = vmul.f32 %v10598_v43, %v15716_v3  ;;  %v10604_v53 = vld [vmem:[#allocation2 + $0x58] sm:$0xf] }
 0x55a   :  { %5259 = vrot.lane.b32.xlu0 %v5217_v63, %s10635_s4  ;;  %v1019_v28 = vsel %vm878_vm5, %v1017_v17, %v18909_v39  ;;  %5261 = vrot.lane.b32.xlu1 %v5216_v14, %s10635_s4  ;;  %v4090_v32 = vmul.f32 %v15525_v36, %v14666_v29  ;;  %v804_v61 = vadd.f32 %v742_v12, %v527_v5  ;;  %v18912_v14 = vrot.slane %v15797_v1, 2  ;;  %v15980_v39 = vld [vmem:[#allocation2 + $0x88] sm:$0xf] }
 0x55b   :  { %18910 = vst [vmem:[#allocation209_spill] sm:$0xff] %v15969_v56  ;;  %v15971_v17 = vpop.permute.xlu0 %3117  ;;  %18914 = vst [vmem:[#allocation32_spill] sm:$0xff] %v15980_v39  ;;  %v5162_v52 = vmul.f32 %v15980_v39, %v15190_v44  ;;  %v15988_v57 = vmul.f32 %v15984_v4, %v15190_v44  ;;  %v18916_v29 = vrot.slane %v15833_v58, 3  ;;  %v234_v1 = vmul.f32 %v10597_v21, %v15709_v15 }
 0x55c   :  { %18911 = vst [vmem:[#allocation25_spill] sm:$0xff] %v15971_v17  ;;  %v747_v59 = vsel %vm601_vm4, %v745_v19, %v18912_v14  ;;  %v15978_v63 = vpop.permute.xlu1 %3491  ;;  %v18917_v12 = vrot.slane %v15915_v47, 1  ;;  %v4846_v14 = vrot.slane %v4788_v7, 2  ;;  %v10234_v17 = vpop.f32.mrf.mxu1  ;;  %v15999_v39 = vmul.f32 %v10597_v21, %v15761_v23 }
 0x55d   :  { %18913 = vst [vmem:[#allocation39_spill] sm:$0xff] %v15978_v63  ;;  %v1024_v5 = vsel %vm878_vm5, %v1022_v62, %v18916_v29  ;;  %v807_v63 = vadd.f32 %v747_v59, %v530_v34  ;;  %v233_v4 = vmul.f32 %v10598_v43, %v15709_v15  ;;  %v16003_v58 = vmul.f32 %v10598_v43, %v15761_v23 }
 0x55e   :  { %v4488_v19 = vsel %vm324_vm3, %v18917_v12, %v4487_v35  ;;  %4159 = vrot.lane.b32.xlu0 %v4090_v32, %s10635_s4  ;;  %v753_v62 = vrot.slane %v15959_v22, 2  ;;  %v18918_v29 = vrot.slane %v15934_v18, 1  ;;  %v10603_v32 = vld [vmem:[#allocation2 + $0x50] sm:$0xff]  ;;  %v6189_v59 = vpop.f32.mrf.mxu1  ;;  %v16017_v43 = vmul.f32 %v10604_v53, %v15685_v31 }
 0x55f   :  { %4533 = vrot.lane.b32.xlu1 %v4488_v19, %s10635_s4  ;;  %v16012_v34 = vmul.f32 %v10603_v32, %v15685_v31  ;;  %v16014_v21 = vpop.permute.xlu0 %3493  ;;  %v5221_v22 = vrot.slane %v5162_v52, 3  ;;  %10288 = vmatprep.mubr.msk.f32.mxu1 %vm5591_vm6, %v6189_v59  ;;  %v18921_v7 = vrot.slane %v15734_v0, 2  ;;  %v4793_v52 = vmul.f32 %v15312_v2, %v15008_v49 }
 0x560   :  { %v477_v12 = vsel %vm324_vm3, %v18918_v29, %v476_v40  ;;  %18919 = vst [vmem:[#allocation19_spill] sm:$0xff] %v16014_v21  ;;  %v16019_v19 = vpop.permute.xlu1 %3849  ;;  %v4419_v29 = vmul.f32 %v15456_v37, %v14822_v42  ;;  %v16031_v21 = vmul.f32 %v15306_v10, %v15008_v49  ;;  %10289 = vmatmul.mubr.msk.f32.vlgmr.msra.gmra.mxu1 %vm5591_vm6, %v10234_v17 }
 0x561   :  { %18920 = vst [vmem:[#allocation42_spill] sm:$0xff] %v16019_v19  ;;  %v4848_v30 = vsel %vm601_vm4, %v4846_v14, %v18921_v7  ;;  %v535_v18 = vadd.f32 %v476_v40, %v234_v1  ;;  %v1030_v19 = vrot.slane %v15999_v39, 3  ;;  %v534_v31 = vadd.f32 %v477_v12, %v233_v4  ;;  %10302 = vmatprep.mubr.msk.f32.mxu1 %vm5591_vm6, %v10600_v48 }
 0x562   :  { %4535 = vrot.lane.b32.xlu0 %v4487_v35, %s10635_s4  ;;  %v16040_v0 = vadd.f32 %v1019_v28, %v804_v61  ;;  %v18922_v35 = vrot.slane %v15969_v56, 2  ;;  %v16046_v7 = vmul.f32 %v10603_v32, %v15716_v3  ;;  %v16049_v40 = vmul.f32 %v10604_v53, %v15716_v3 }
 0x563   :  { %4891 = vrot.lane.b32.xlu1 %v4848_v30, %s10635_s4  ;;  %v16051_v17 = vpop.permute.xlu0 %4143  ;;  %v481_v30 = vrot.slane %v16017_v43, 1  ;;  %v18925_v28 = vrot.slane %v15988_v57, 3  ;;  %v4479_v61 = vrot.slane %v4419_v29, 1  ;;  %v16060_v1 = vadd.f32 %v1024_v5, %v807_v63 }
 0x564   :  { %v754_v14 = vsel %vm601_vm4, %v18922_v35, %v753_v62  ;;  %18923 = vst [vmem:[#allocation216_spill] sm:$0xff] %v16051_v17  ;;  %v16055_v39 = vpop.permute.xlu1 %4145  ;;  %v18050_v12 = vrot.slane %v16031_v21, 2  ;;  %v4854_v35 = vrot.slane %v4793_v52, 2  ;;  %v5157_v59 = vmul.f32 %v15849_v11, %v15190_v44 }
 0x565   :  { %18924 = vst [vmem:[#allocation217_spill] sm:$0xff] %v16055_v39  ;;  %v5222_v48 = vsel %vm878_vm5, %v18925_v28, %v5221_v22  ;;  %v812_v4 = vadd.f32 %v753_v62, %v535_v18  ;;  %v811_v17 = vadd.f32 %v754_v14, %v534_v31  ;;  %v18926_v43 = vrot.slane %v16003_v58, 3 }
 0x566   :  { %5265 = vrot.lane.b32.xlu0 %v5222_v48, %s10635_s4  ;;  %v236_v56 = vmul.f32 %v10603_v32, %v15709_v15  ;;  %v16073_v5 = vmul.f32 %v10603_v32, %v15761_v23  ;;  %v16079_v52 = vmul.f32 %v15384_v50, %v15008_v49  ;;  %v16083_v31 = vmul.f32 %v15390_v38, %v15008_v49 }
 0x567   :  { %v1031_v39 = vsel %vm878_vm5, %v18926_v43, %v1030_v19  ;;  %5267 = vrot.lane.b32.xlu1 %v5221_v22, %s10635_s4  ;;  %v16075_v29 = vpop.permute.xlu0 %4501  ;;  %v18928_v18 = vrot.slane %v16012_v34, 1  ;;  %v18929_v32 = vrot.slane %v15811_v27, 1  ;;  %v4422_v48 = vmul.f32 %v15525_v36, %v14822_v42 }
 0x568   :  { %18927 = vst [vmem:[#allocation218_spill] sm:$0xff] %v16075_v29  ;;  %v16089_v14 = vpop.permute.xlu1 %4875  ;;  %v16097_v43 = vmul.f32 %v10604_v53, %v15761_v23  ;;  %v4855_v63 = vsel %vm601_vm4, %v18050_v12, %v4854_v35  ;;  %v5160_v22 = vmul.f32 %v15950_v13, %v15190_v44  ;;  %v16105_v29 = vadd.f32 %v1030_v19, %v812_v4 }
 0x569   :  { %v482_v62 = vsel %vm324_vm3, %v18928_v18, %v481_v30  ;;  %v4481_v28 = vsel %vm324_vm3, %v4479_v61, %v18929_v32  ;;  %v5213_v18 = vrot.slane %v5157_v59, 3  ;;  %v237_v27 = vmul.f32 %v10604_v53, %v15709_v15 }
 0x56a   :  { %4525 = vrot.lane.b32.xlu0 %v4481_v28, %s10635_s4  ;;  %v16111_v42 = vmul.f32 %v15306_v10, %v15190_v44  ;;  %v16115_v61 = vmul.f32 %v15312_v2, %v15190_v44  ;;  %v537_v32 = vadd.f32 %v482_v62, %v236_v56  ;;  %v4859_v19 = vrot.slane %v16083_v31, 2 }
 0x56b   :  { %4899 = vrot.lane.b32.xlu1 %v4855_v63, %s10635_s4  ;;  %v16117_v28 = vpop.permute.xlu0 %4877  ;;  %v4791_v53 = vmul.f32 %v15456_v37, %v15008_v49  ;;  %v16123_v4 = vadd.f32 %v1031_v39, %v811_v17  ;;  %v18930_v63 = vrot.slane %v16049_v40, 2  ;;  %v18931_v10 = vrot.slane %v16046_v7, 2 }
 0x56c   :  { %v16131_v56 = vpop.permute.xlu1 %5233  ;;  %v4484_v62 = vrot.slane %v4422_v48, 1  ;;  %v1374_v59 = vadd.f32 %v14174_v6, %v15883_v16  ;;  %v1035_v31 = vrot.slane %v16097_v43, 3  ;;  %v18932_v13 = vrot.slane %v15880_v45, 3 }
 0x56d   :  { %v759_v12 = vsel %vm601_vm4, %v18931_v10, %v18930_v63  ;;  %v5218_v39 = vrot.slane %v5160_v22, 3  ;;  %v1375_v63 = vadd.f32 %v14177_v20, %v15865_v25  ;;  %v16142_v10 = vadd.f32 %v481_v30, %v237_v27 }
 0x56e   :  { %v5215_v17 = vsel %vm878_vm5, %v5213_v18, %v18932_v13  ;;  %4901 = vrot.lane.b32.xlu0 %v4854_v35, %s10635_s4  ;;  %v5224_v48 = vrot.slane %v16111_v42, 3  ;;  %v5226_v6 = vrot.slane %v16115_v61, 3  ;;  %v1746_v16 = vadd.f32 %v14206_v41, %v1374_v59 }
 0x56f   :  { %5257 = vrot.lane.b32.xlu1 %v5215_v17, %s10635_s4  ;;  %v16148_v2 = vadd.f32 %v759_v12, %v537_v32  ;;  %v16150_v45 = vpop.permute.xlu0 %3123  ;;  %v18934_v13 = vrot.slane %v16079_v52, 2  ;;  %v4851_v22 = vrot.slane %v4791_v53, 2  ;;  %v1747_v20 = vadd.f32 %v14217_v33, %v1375_v63  ;;  %v18939_v53 = vld [vmem:[#allocation62_spill] sm:$0xff]  ;;  %v18941_v63 = vld [vmem:[#allocation63_spill] sm:$0xff] }
 0x570   :  { %18933 = vst [vmem:[#allocation219_spill] sm:$0xff] %v16150_v45  ;;  %v16156_v25 = vpop.permute.xlu1 %3497  ;;  %v18935_v30 = vrot.slane %v15915_v47, 1  ;;  %v4794_v41 = vmul.f32 %v15525_v36, %v15008_v49  ;;  %v16165_v12 = vmul.f32 %v15390_v38, %v15190_v44  ;;  %v1377_v27 = vadd.f32 %v14186_v60, %v15923_v46  ;;  %v19086_v45 = vld [vmem:[#allocation218_spill] sm:$0xff] }
 0x571   :  { %v4860_v35 = vsel %vm601_vm4, %v18934_v13, %v4859_v19  ;;  %v2118_v42 = vadd.f32 %v14265_v26, %v1746_v16  ;;  %v18936_v33 = vrot.slane %v15988_v57, 3  ;;  %v16176_v32 = vmul.f32 %v15384_v50, %v15190_v44  ;;  %v18942_v16 = vld [vmem:[#allocation108_spill] sm:$0xff] }
 0x572   :  { %v4486_v18 = vsel %vm324_vm3, %v4484_v62, %v18935_v30  ;;  %v1378_v49 = vadd.f32 %v14188_v9, %v15921_v51  ;;  %v2119_v38 = vadd.f32 %v14282_v24, %v1747_v20  ;;  %v5227_v60 = vsel %vm878_vm5, %v5224_v48, %v5226_v6  ;;  %v18945_v20 = vld [vmem:[#allocation134_spill] sm:$0xff] }
 0x573   :  { %4531 = vrot.lane.b32.xlu0 %v4486_v18, %s10635_s4  ;;  %v5220_v47 = vsel %vm878_vm5, %v5218_v39, %v18936_v33  ;;  %4905 = vrot.lane.b32.xlu1 %v4860_v35, %s10635_s4  ;;  %v5163_v26 = vmul.f32 %v15456_v37, %v15190_v44  ;;  %v1749_v46 = vadd.f32 %v14234_v55, %v1377_v27  ;;  %v16189_v50 = vpop.permute.xlu0 %3499  ;;  %v18938_v59 = vrot.slane %v16031_v21, 2  ;;  %v18944_v35 = vld [vmem:[#allocation97_spill] sm:$0xff] }
 0x574   :  { %v2490_v57 = vadd.f32 %v14350_v8, %v2118_v42  ;;  %18937 = vst [vmem:[#allocation220_spill] sm:$0xff] %v16189_v50  ;;  %v16196_v24 = vmul.f32 %v15525_v36, %v15190_v44  ;;  %v1750_v51 = vadd.f32 %v14240_v54, %v1378_v49  ;;  %v2491_v62 = vadd.f32 %v18939_v53, %v2119_v38  ;;  %v16200_v17 = vpop.permute.xlu1 %3855  ;;  %v18940_v8 = vld [vmem:[#allocation55_spill] sm:$0xff]  ;;  %v18943_v54 = vld [vmem:[#allocation21_spill] sm:$0xff] }
 0x575   :  { %v4853_v9 = vsel %vm601_vm4, %v4851_v22, %v18938_v59  ;;  %v4856_v37 = vrot.slane %v4794_v41, 2  ;;  %v5231_v55 = vrot.slane %v16165_v12, 3  ;;  %v1373_v39 = vadd.f32 %v18940_v8, %v16040_v0  ;;  %v18946_v41 = vld [vmem:[#allocation46_spill] sm:$0xff]  ;;  %v18947_v27 = vld [vmem:[#allocation109_spill] sm:$0xff] }
 0x576   :  { %v2121_v21 = vadd.f32 %v18941_v63, %v1749_v46  ;;  %v2782_v13 = vadd.f32 %v18942_v16, %v2490_v57  ;;  %v5229_v44 = vrot.slane %v16176_v32, 3  ;;  %v1376_v36 = vadd.f32 %v18943_v54, %v16060_v1  ;;  %v18948_v33 = vld [vmem:[#allocation169_spill] sm:$0xff]  ;;  %v18950_v1 = vld [vmem:[#allocation146_spill] sm:$0xff]  ;;  %v18954_v63 = vld [vmem:[#allocation159_spill] sm:$0xff] }
 0x577   :  { %4907 = vrot.lane.b32.xlu0 %v4859_v19, %s10635_s4  ;;  %v2122_v22 = vadd.f32 %v18944_v35, %v1750_v51  ;;  %v2783_v30 = vadd.f32 %v18945_v20, %v2491_v62  ;;  %5263 = vrot.lane.b32.xlu1 %v5220_v47, %s10635_s4  ;;  %v5223_v18 = vrot.slane %v5163_v26, 3  ;;  %v1745_v0 = vadd.f32 %v18946_v41, %v1373_v39  ;;  %v16217_v38 = vpop.permute.xlu0 %4149  ;;  %v18949_v46 = vld [vmem:[#allocation53_spill] sm:$0xff]  ;;  %v18951_v51 = vld [vmem:[#allocation210_spill] sm:$0xff]  ;;  %v18958_v20 = vld [vmem:[#allocation60_spill] sm:$0xff] }
 0x578   :  { %v2493_v42 = vadd.f32 %v18947_v27, %v2121_v21  ;;  %v3154_v49 = vadd.f32 %v18948_v33, %v2782_v13  ;;  %v5228_v19 = vrot.slane %v16196_v24, 3  ;;  %v1748_v57 = vadd.f32 %v18949_v46, %v1376_v36  ;;  %v16223_v62 = vpop.permute.xlu1 %4151  ;;  %v18953_v8 = vld [vmem:[#allocation121_spill] sm:$0xff]  ;;  %v18959_v41 = vld [vmem:[#allocation74_spill] sm:$0xff]  ;;  %v19006_v32 = vld [vmem:[#allocation92_spill] sm:$0xff] }
 0x579   :  { %v2494_v59 = vadd.f32 %v18950_v1, %v2122_v22  ;;  %v3155_v53 = vadd.f32 %v18951_v51, %v2783_v30  ;;  %v18952_v47 = vrot.slane %v16079_v52, 2  ;;  %v2117_v39 = vadd.f32 %v18953_v8, %v1745_v0  ;;  %v18955_v16 = vld [vmem:[#allocation33_spill] sm:$0xff]  ;;  %v18957_v22 = vld [vmem:[#allocation195_spill] sm:$0xff]  ;;  %v18964_v51 = vld [vmem:[#allocation132_spill] sm:$0xff] }
 0x57a   :  { %v2785_v21 = vadd.f32 %v18954_v63, %v2493_v42  ;;  %v3526_v13 = vadd.f32 %v18955_v16, %v3154_v49  ;;  %v5232_v54 = vsel %vm878_vm5, %v5229_v44, %v5231_v55  ;;  %v18956_v36 = vld [vmem:[#allocation73_spill] sm:$0xff]  ;;  %v5225_v30 = vsel %vm878_vm5, %v5223_v18, %v5224_v48  ;;  %v18961_v42 = vld [vmem:[#allocation167_spill] sm:$0xff]  ;;  %v18967_v18 = vld [vmem:[#allocation98_spill] sm:$0xff] }
 0x57b   :  { %v4858_v26 = vsel %vm601_vm4, %v4856_v37, %v18952_v47  ;;  %4897 = vrot.lane.b32.xlu0 %v4853_v9, %s10635_s4  ;;  %v2120_v35 = vadd.f32 %v18956_v36, %v1748_v57  ;;  %v2786_v52 = vadd.f32 %v18957_v22, %v2494_v59  ;;  %v3527_v37 = vadd.f32 %v18958_v20, %v3155_v53  ;;  %v18960_v9 = vld [vmem:[#allocation170_spill] sm:$0xff]  ;;  %v18962_v49 = vld [vmem:[#allocation93_spill] sm:$0xff]  ;;  %v16247_v1 = vpop.permute.xlu0 %4507  ;;  %v18963_v57 = vld [vmem:[#allocation31_spill] sm:$0xff] }
 0x57c   :  { %5271 = vrot.lane.b32.xlu1 %v5227_v60, %s10635_s4  ;;  %v1380_v0 = vadd.f32 %v18959_v41, %v16123_v4  ;;  %v2489_v27 = vadd.f32 %v18960_v9, %v2117_v39  ;;  %v3157_v33 = vadd.f32 %v18961_v42, %v2785_v21  ;;  %v3898_v46 = vadd.f32 %v18962_v49, %v3526_v13  ;;  %v18965_v47 = vld [vmem:[#allocation144_spill] sm:$0xff]  ;;  %v18966_v8 = vld [vmem:[#allocation117_spill] sm:$0xff]  ;;  %v16256_v4 = vpop.permute.xlu1 %4881  ;;  %v18968_v63 = vld [vmem:[#allocation118_spill] sm:$0xff] }
 0x57d   :  { %v1381_v59 = vadd.f32 %v18963_v57, %v16105_v29  ;;  %v2492_v53 = vadd.f32 %v18964_v51, %v2120_v35  ;;  %v3158_v60 = vadd.f32 %v18965_v47, %v2786_v52  ;;  %v3899_v48 = vadd.f32 %v18966_v8, %v3527_v37  ;;  %v18969_v16 = vld [vmem:[#allocation156_spill] sm:$0xff]  ;;  %v18971_v29 = vld [vmem:[#allocation85_spill] sm:$0xff]  ;;  %v18972_v52 = vld [vmem:[#allocation207_spill] sm:$0xff] }
 0x57e   :  { %v1752_v39 = vadd.f32 %v18967_v18, %v1380_v0  ;;  %v2781_v21 = vadd.f32 %v18968_v63, %v2489_v27  ;;  %v3529_v13 = vadd.f32 %v18969_v16, %v3157_v33  ;;  %v18970_v36 = vld [vmem:[#allocation140_spill] sm:$0xff]  ;;  %v18974_v9 = vld [vmem:[#allocation141_spill] sm:$0xff]  ;;  %v18978_v51 = vld [vmem:[#allocation114_spill] sm:$0xff] }
 0x57f   :  { %v4190_v22 = vadd.f32 %v18970_v36, %v3898_v46  ;;  %5273 = vrot.lane.b32.xlu0 %v5226_v6, %s10635_s4  ;;  %v1753_v35 = vadd.f32 %v18971_v29, %v1381_v59  ;;  %v2784_v20 = vadd.f32 %v18972_v52, %v2492_v53  ;;  %v18973_v37 = vld [vmem:[#allocation12_spill] sm:$0xff]  ;;  %v4191_v42 = vadd.f32 %v18974_v9, %v3899_v48  ;;  %v18977_v57 = vld [vmem:[#allocation13_spill] sm:$0xff]  ;;  %v16274_v61 = vpop.permute.xlu0 %4883  ;;  %v18980_v8 = vld [vmem:[#allocation155_spill] sm:$0xff] }
 0x580   :  { %v3530_v41 = vadd.f32 %v18973_v37, %v3158_v60  ;;  %4903 = vrot.lane.b32.xlu1 %v4858_v26, %s10635_s4  ;;  %v18975_v0 = vld [vmem:[#allocation96_spill] sm:$0xff]  ;;  %v3901_v46 = vadd.f32 %v18977_v57, %v3529_v13  ;;  %v18979_v6 = vld [vmem:[#allocation133_spill] sm:$0xff]  ;;  %v18981_v18 = vld [vmem:[#allocation154_spill] sm:$0xff]  ;;  %v5240_v16 = vpop.permute.xlu1 %5239 }
 0x581   :  { %v2124_v27 = vadd.f32 %v18975_v0, %v1752_v39  ;;  %v18976_v49 = vld [vmem:[#allocation44_spill] sm:$0xff]  ;;  %v4562_v47 = vadd.f32 %v18978_v51, %v4190_v22  ;;  %v2125_v59 = vadd.f32 %v18979_v6, %v1753_v35  ;;  %v3156_v53 = vadd.f32 %v18980_v8, %v2784_v20  ;;  %v18982_v63 = vld [vmem:[#allocation201_spill] sm:$0xff]  ;;  %v18984_v39 = vld [vmem:[#allocation70_spill] sm:$0xff] }
 0x582   :  { %v3153_v33 = vadd.f32 %v18976_v49, %v2781_v21  ;;  %v3902_v60 = vadd.f32 %v18981_v18, %v3530_v41  ;;  %v4563_v48 = vadd.f32 %v18982_v63, %v4191_v42  ;;  %v18983_v26 = vld [vmem:[#allocation157_spill] sm:$0xff]  ;;  %v18985_v21 = vld [vmem:[#allocation103_spill] sm:$0xff]  ;;  %v18988_v9 = vld [vmem:[#allocation16_spill] sm:$0xff]  ;;  %v16301_v63 = vstv %s16254_s14 }
 0x583   :  { %v2496_v36 = vadd.f32 %v18983_v26, %v2124_v27  ;;  %v4193_v13 = vadd.f32 %v18985_v21, %v3901_v46  ;;  %v18986_v52 = vld [vmem:[#allocation101_spill] sm:$0xff]  ;;  %5277 = vrot.lane.b32.xlu0 %v5232_v54, %s10635_s4  ;;  %v18987_v37 = vld [vmem:[#allocation183_spill] sm:$0xff]  ;;  %v3528_v20 = vadd.f32 %v18988_v9, %v3156_v53  ;;  %v18989_v0 = vld [vmem:[#allocation104_spill] sm:$0xff]  ;;  %v16296_v8 = vpop.permute.xlu0 %3489 }
 0x584   :  { %v3525_v29 = vadd.f32 %v18984_v39, %v3153_v33  ;;  %v4934_v22 = vadd.f32 %v18986_v52, %v4562_v47  ;;  %v2497_v35 = vadd.f32 %v18987_v37, %v2125_v59  ;;  %v4194_v41 = vadd.f32 %v18989_v0, %v3902_v60  ;;  %v18990_v49 = vld [vmem:[#allocation185_spill] sm:$0xff]  ;;  %5279 = vrot.lane.b32.xlu1 %v5231_v55, %s10635_s4  ;;  %v18991_v27 = vld [vmem:[#allocation208_spill] sm:$0xff]  ;;  %v18994_v6 = vld [vmem:[#allocation27_spill] sm:$0xff]  ;;  %v16304_v12 = vpop.permute.xlu1 %3863 }
 0x585   :  { %v4935_v42 = vadd.f32 %v18990_v49, %v4563_v48  ;;  %v2788_v33 = vadd.f32 %v18991_v27, %v2496_v36  ;;  %v18992_v57 = vld [vmem:[#allocation116_spill] sm:$0xff]  ;;  %18995 = vst [vmem:[#allocation62_spill] sm:$0xff] %v16296_v8  ;;  %v18997_v18 = vld [vmem:[#allocation151_spill] sm:$0xff]  ;;  %v18999_v55 = vld [vmem:[#allocation214_spill] sm:$0xff]  ;;  %v5230_v52 = vsel %vm878_vm5, %v5228_v19, %v5229_v44 }
 0x586   :  { %v3897_v46 = vadd.f32 %v18992_v57, %v3525_v29  ;;  %v18993_v51 = vld [vmem:[#allocation112_spill] sm:$0xff]  ;;  %v5306_v54 = vadd.f32 %v18994_v6, %v4934_v22  ;;  %v4566_v60 = vadd.f32 %v18997_v18, %v4194_v41  ;;  %v19001_v21 = vld [vmem:[#allocation150_spill] sm:$0xff]  ;;  %v19002_v22 = vrot.slane %v16073_v5, 3  ;;  %v19003_v9 = vld [vmem:[#allocation29_spill] sm:$0xff] }
 0x587   :  { %v4565_v47 = vadd.f32 %v18993_v51, %v4193_v13  ;;  %v18996_v59 = vld [vmem:[#allocation80_spill] sm:$0xff]  ;;  %v3160_v36 = vadd.f32 %v18999_v55, %v2788_v33  ;;  %5269 = vrot.lane.b32.xlu0 %v5225_v30, %s10635_s4  ;;  %v19004_v0 = vld [vmem:[#allocation66_spill] sm:$0xff]  ;;  %v19005_v49 = vld [vmem:[#allocation135_spill] sm:$0xff]  ;;  %v16330_v57 = vpop.permute.xlu0 %3865 }
 0x588   :  { %v3900_v53 = vadd.f32 %v18996_v59, %v3528_v20  ;;  %v18998_v48 = vld [vmem:[#allocation196_spill] sm:$0xff]  ;;  %v1036_v37 = vsel %vm878_vm5, %v19002_v22, %v1035_v31  ;;  %v2789_v20 = vadd.f32 %v19003_v9, %v2497_v35  ;;  %5275 = vrot.lane.b32.xlu1 %v5230_v52, %s10635_s4  ;;  %v19007_v27 = vld [vmem:[#allocation138_spill] sm:$0xff]  ;;  %v16327_v19 = vadd.f32 %v16301_v63, %v5306_v54  ;;  %v19009_v30 = vld [vmem:[#allocation35_spill] sm:$0xff]  ;;  %v16338_v18 = vpop.permute.xlu1 %4141 }
 0x589   :  { %v5307_v26 = vadd.f32 %v18998_v48, %v4935_v42  ;;  %v19000_v39 = vld [vmem:[#allocation200_spill] sm:$0xff]  ;;  %v4937_v13 = vadd.f32 %v19001_v21, %v4565_v47  ;;  %v4938_v42 = vadd.f32 %v19005_v49, %v4566_v60  ;;  %v3532_v24 = vadd.f32 %v19006_v32, %v3160_v36  ;;  %v19011_v35 = vld [vmem:[#allocation123_spill] sm:$0xff]  ;;  %v19013_v59 = vld [vmem:[#allocation37_spill] sm:$0xff] }
 0x58a   :  { %v4189_v29 = vadd.f32 %v19000_v39, %v3897_v46  ;;  %v4192_v41 = vadd.f32 %v19004_v0, %v3900_v53  ;;  %19008 = vst [vmem:[#allocation55_spill] sm:$0xff] %v16327_v19  ;;  %v19010_v46 = vld [vmem:[#allocation215_spill] sm:$0xff]  ;;  %v19014_v60 = vrot.slane %v16049_v40, 2  ;;  %v10605_v48 = vld [vmem:[#allocation2 + $0x30] sm:$0xff]  ;;  %v19015_v55 = vld [vmem:[#allocation198_spill] sm:$0xff]  ;;  %v1091_v49 = vadd.f32 %v1036_v37, %v16148_v2 }
 0x58b   :  { %v5309_v33 = vadd.f32 %v19009_v30, %v4937_v13  ;;  %v3161_v51 = vadd.f32 %v19010_v46, %v2789_v20  ;;  %v16335_v6 = vadd.f32 %v16301_v63, %v5307_v26  ;;  %v5310_v53 = vadd.f32 %v19013_v59, %v4938_v42  ;;  %v19016_v39 = vld [vmem:[#allocation90_spill] sm:$0xff]  ;;  %6898 = vrot.lane.b32.xlu0 %v16327_v19, %s10633_s0  ;;  %v19018_v26 = vld [vmem:[#allocation115_spill] sm:$0xff]  ;;  %v19022_v42 = vld [vmem:[#allocation177_spill] sm:$0xff] }
 0x58c   :  { %v4561_v44 = vadd.f32 %v19007_v27, %v4189_v29  ;;  %v4564_v47 = vadd.f32 %v19011_v35, %v4192_v41  ;;  %v815_v54 = vadd.f32 %v19014_v60, %v16142_v10  ;;  %v421_v36 = vmul.f32 %v10605_v48, %v19015_v55  ;;  %v19017_v21 = vld [vmem:[#allocation6_spill] sm:$0xff]  ;;  %v19019_v22 = vld [vmem:[#allocation7_spill] sm:$0xff]  ;;  %v16357_v41 = vpop.permute.xlu0 %4515  ;;  %v19026_v35 = vld [vmem:[#allocation100_spill] sm:$0xff] }
 0x58d   :  { %19012 = vst [vmem:[#allocation63_spill] sm:$0xff] %v16335_v6  ;;  %v3904_v29 = vadd.f32 %v19016_v39, %v3532_v24  ;;  %v3533_v52 = vadd.f32 %v19018_v26, %v3161_v51  ;;  %6900 = vrot.lane.b32.xlu1 %v16335_v6, %s10633_s0  ;;  %v19020_v20 = vld [vmem:[#allocation199_spill] sm:$0xff]  ;;  %v16354_v10 = vadd.f32 %v16301_v63, %v5309_v33  ;;  %v19024_v51 = vld [vmem:[#allocation172_spill] sm:$0xff] }
 0x58e   :  { %v4933_v13 = vadd.f32 %v19017_v21, %v4561_v44  ;;  %v4936_v9 = vadd.f32 %v19019_v22, %v4564_v47  ;;  %v16362_v24 = vadd.f32 %v16301_v63, %v5310_v53  ;;  %v16364_v44 = vpop.permute.xlu1 %4517  ;;  %v1092_v30 = vadd.f32 %v1035_v31, %v815_v54  ;;  %v19025_v2 = vld [vmem:[#allocation75_spill] sm:$0xff] }
 0x58f   :  { %v4196_v40 = vadd.f32 %v19020_v20, %v3904_v29  ;;  %19021 = vst [vmem:[#allocation108_spill] sm:$0xff] %v16354_v10  ;;  %v3905_v32 = vadd.f32 %v19022_v42, %v3533_v52  ;;  %v473_v46 = vrot.slane %v421_v36, 1  ;;  %v698_v33 = vmul.f32 %v10605_v48, %v15716_v3  ;;  %6904 = vrot.lane.b32.xlu0 %v16354_v10, %s10633_s0  ;;  %v19029_v36 = vld [vmem:[#allocation122_spill] sm:$0xff]  ;;  %v19030_v29 = vld [vmem:[#allocation184_spill] sm:$0xff] }
 0x590   :  { %v5305_v0 = vadd.f32 %v16131_v56, %v4933_v13  ;;  %19023 = vst [vmem:[#allocation21_spill] sm:$0xff] %v16362_v24  ;;  %v5308_v27 = vadd.f32 %v5240_v16, %v4936_v9  ;;  %v1383_v37 = vadd.f32 %v19025_v2, %v1091_v49  ;;  %v19027_v16 = vld [vmem:[#allocation51_spill] sm:$0xff]  ;;  %v232_v43 = vmul.f32 %v10605_v48, %v15709_v15  ;;  %v16382_v60 = vpop.permute.xlu0 %4873  ;;  %v19032_v52 = vld [vmem:[#allocation22_spill] sm:$0xff]  ;;  %v19034_v20 = vld [vmem:[#allocation52_spill] sm:$0xff] }
 0x591   :  { %v4568_v56 = vadd.f32 %v19024_v51, %v4196_v40  ;;  %v4197_v47 = vadd.f32 %v19026_v35, %v3905_v32  ;;  %6906 = vrot.lane.b32.xlu1 %v16362_v24, %s10633_s0  ;;  %v1384_v59 = vadd.f32 %v19027_v16, %v1092_v30  ;;  %v975_v54 = vmul.f32 %v10605_v48, %v15761_v23  ;;  %v19035_v48 = vld [vmem:[#allocation158_spill] sm:$0xff]  ;;  %v19038_v51 = vld [vmem:[#allocation9_spill] sm:$0xff] }
 0x592   :  { %v16380_v53 = vadd.f32 %v16301_v63, %v5305_v0  ;;  %v1755_v39 = vadd.f32 %v19029_v36, %v1383_v37  ;;  %v16388_v13 = vadd.f32 %v16301_v63, %v5308_v27  ;;  %v5248_v26 = vpop.permute.xlu1 %5247  ;;  %v19033_v22 = vrot.slane %v19032_v52, 1  ;;  %v19036_v32 = vld [vmem:[#allocation194_spill] sm:$0xff]  ;;  %v19039_v2 = vld [vmem:[#allocation193_spill] sm:$0xff]  ;;  %v19043_v36 = vld [vmem:[#allocation119_spill] sm:$0xff] }
 0x593   :  { %v4940_v31 = vadd.f32 %v16089_v14, %v4568_v56  ;;  %v4569_v21 = vadd.f32 %v19030_v29, %v4197_v47  ;;  %v750_v14 = vrot.slane %v698_v33, 2  ;;  %v1756_v40 = vadd.f32 %v19034_v20, %v1384_v59  ;;  %v19041_v16 = vld [vmem:[#allocation209_spill] sm:$0xff]  ;;  %v19044_v29 = vld [vmem:[#allocation130_spill] sm:$0xff]  ;;  %v19046_v52 = vld [vmem:[#allocation131_spill] sm:$0xff] }
 0x594   :  { %19028 = vst [vmem:[#allocation97_spill] sm:$0xff] %v16380_v53  ;;  %19031 = vst [vmem:[#allocation134_spill] sm:$0xff] %v16388_v13  ;;  %v475_v9 = vsel %vm324_vm3, %v473_v46, %v19033_v22  ;;  %6896 = vrot.lane.b32.xlu0 %v16380_v53, %s10633_s0  ;;  %v2127_v49 = vadd.f32 %v19035_v48, %v1755_v39  ;;  %v5250_v46 = vpop.permute.xlu0 %5249  ;;  %v424_v56 = vmul.f32 %v19038_v51, %v19015_v55 }
 0x595   :  { %v5312_v0 = vadd.f32 %v5248_v26, %v4940_v31  ;;  %v4941_v42 = vadd.f32 %v16117_v28, %v4569_v21  ;;  %6902 = vrot.lane.b32.xlu1 %v16388_v13, %s10633_s0  ;;  %v2128_v27 = vadd.f32 %v19036_v32, %v1756_v40  ;;  %v533_v33 = vadd.f32 %v475_v9, %v232_v43  ;;  %v19051_v32 = vld [vmem:[#allocation43_spill] sm:$0xff] }
 0x596   :  { %v2499_v37 = vadd.f32 %v19039_v2, %v2127_v49  ;;  %v16407_v35 = vpop.permute.xlu1 %3495  ;;  %v19042_v28 = vrot.slane %v19041_v16, 2  ;;  %v1027_v31 = vrot.slane %v975_v54, 3  ;;  %v701_v26 = vmul.f32 %v19038_v51, %v15716_v3  ;;  %v19048_v54 = vld [vmem:[#allocation105_spill] sm:$0xff] }
 0x597   :  { %v16402_v30 = vadd.f32 %v16301_v63, %v5312_v0  ;;  %19040 = vst [vmem:[#allocation109_spill] sm:$0xff] %v16407_v35  ;;  %v5313_v47 = vadd.f32 %v5250_v46, %v4941_v42  ;;  %v2500_v39 = vadd.f32 %v19043_v36, %v2128_v27  ;;  %v19050_v48 = vrot.slane %v16003_v58, 3  ;;  %v19052_v46 = vld [vmem:[#allocation129_spill] sm:$0xff] }
 0x598   :  { %v752_v59 = vsel %vm601_vm4, %v750_v14, %v19042_v28  ;;  %v2791_v43 = vadd.f32 %v19044_v29, %v2499_v37  ;;  %v16422_v9 = vpop.permute.xlu0 %3869  ;;  %v478_v14 = vrot.slane %v424_v56, 1  ;;  %v978_v42 = vmul.f32 %v19038_v51, %v15761_v23  ;;  %v19053_v56 = vld [vmem:[#allocation15_spill] sm:$0xff]  ;;  %v19054_v37 = vld [vmem:[#allocation189_spill] sm:$0xff] }
 0x599   :  { %19037 = vst [vmem:[#allocation46_spill] sm:$0xff] %v16402_v30  ;;  %6910 = vrot.lane.b32.xlu0 %v16402_v30, %s10633_s0  ;;  %v16417_v21 = vadd.f32 %v16301_v63, %v5313_v47  ;;  %v2792_v22 = vadd.f32 %v19046_v52, %v2500_v39  ;;  %19047 = vst [vmem:[#allocation53_spill] sm:$0xff] %v16422_v9  ;;  %v810_v20 = vadd.f32 %v752_v59, %v533_v33  ;;  %v19055_v28 = vld [vmem:[#allocation79_spill] sm:$0xff] }
 0x59a   :  { %v3163_v40 = vadd.f32 %v19048_v54, %v2791_v43  ;;  %v16425_v0 = vpop.permute.xlu1 %3871  ;;  %v1029_v49 = vsel %vm878_vm5, %v1027_v31, %v19050_v48  ;;  %v429_v27 = vmul.f32 %v19051_v32, %v19015_v55  ;;  %v16439_v2 = vmul.f32 %v19053_v56, %v19015_v55  ;;  %v19057_v43 = vld [vmem:[#allocation88_spill] sm:$0xff] }
 0x59b   :  { %19045 = vst [vmem:[#allocation169_spill] sm:$0xff] %v16417_v21  ;;  %19049 = vst [vmem:[#allocation146_spill] sm:$0xff] %v16425_v0  ;;  %6912 = vrot.lane.b32.xlu1 %v16417_v21, %s10633_s0  ;;  %v3164_v33 = vadd.f32 %v19052_v46, %v2792_v22  ;;  %v235_v16 = vmul.f32 %v19038_v51, %v15709_v15  ;;  %v755_v58 = vrot.slane %v701_v26, 2  ;;  %v19056_v39 = vrot.slane %v16012_v34, 1  ;;  %v19058_v51 = vld [vmem:[#allocation126_spill] sm:$0xff]  ;;  %v19059_v46 = vld [vmem:[#allocation64_spill] sm:$0xff] }
 0x59c   :  { %v3535_v47 = vadd.f32 %v19054_v37, %v3163_v40  ;;  %v16445_v31 = vpop.permute.xlu0 %4147  ;;  %v1087_v36 = vadd.f32 %v1029_v49, %v810_v20  ;;  %v1032_v54 = vrot.slane %v978_v42, 3  ;;  %v486_v48 = vrot.slane %v429_v27, 1  ;;  %v19060_v20 = vld [vmem:[#allocation149_spill] sm:$0xff]  ;;  %v19085_v0 = vld [vmem:[#allocation143_spill] sm:$0xff] }
 0x59d   :  { %v3536_v59 = vadd.f32 %v19055_v28, %v3164_v33  ;;  %v480_v29 = vsel %vm324_vm3, %v478_v14, %v19056_v39  ;;  %v706_v40 = vmul.f32 %v19051_v32, %v15716_v3  ;;  %v18055_v37 = vrot.slane %v16439_v2, 1  ;;  %v19062_v28 = vld [vmem:[#allocation186_spill] sm:$0xff] }
 0x59e   :  { %v3907_v52 = vadd.f32 %v19057_v43, %v3535_v47  ;;  %v16451_v22 = vpop.permute.xlu1 %4521  ;;  %v1379_v33 = vadd.f32 %v19059_v46, %v1087_v36  ;;  %v16460_v34 = vmul.f32 %v19053_v56, %v15716_v3  ;;  %v536_v49 = vadd.f32 %v480_v29, %v235_v16  ;;  %v19063_v16 = vld [vmem:[#allocation147_spill] sm:$0xff]  ;;  %v19065_v46 = vld [vmem:[#allocation54_spill] sm:$0xff] }
 0x59f   :  { %v3908_v26 = vadd.f32 %v19058_v51, %v3536_v59  ;;  %v19061_v47 = vrot.slane %v16046_v7, 2  ;;  %v240_v27 = vmul.f32 %v19051_v32, %v15709_v15  ;;  %v16473_v36 = vmul.f32 %v19051_v32, %v15761_v23  ;;  %v19064_v7 = vld [vmem:[#allocation40_spill] sm:$0xff] }
 0x5a0   :  { %v4199_v14 = vadd.f32 %v19060_v20, %v3907_v52  ;;  %v16469_v39 = vpop.permute.xlu0 %4523  ;;  %v16477_v43 = vmul.f32 %v19053_v56, %v15761_v23  ;;  %v1751_v29 = vadd.f32 %v19063_v16, %v1379_v33  ;;  %v763_v51 = vrot.slane %v706_v40, 2 }
 0x5a1   :  { %v757_v42 = vsel %vm601_vm4, %v755_v58, %v19061_v47  ;;  %v4200_v59 = vadd.f32 %v19062_v28, %v3908_v26  ;;  %v239_v26 = vmul.f32 %v19053_v56, %v15709_v15  ;;  %v487_v32 = vsel %vm324_vm3, %v18055_v37, %v486_v48  ;;  %v19066_v28 = vld [vmem:[#allocation72_spill] sm:$0xff] }
 0x5a2   :  { %v4571_v52 = vadd.f32 %v19064_v7, %v4199_v14  ;;  %v16481_v58 = vpop.permute.xlu1 %4879  ;;  %v2123_v21 = vadd.f32 %v19066_v28, %v1751_v29  ;;  %v813_v16 = vadd.f32 %v757_v42, %v536_v49  ;;  %v19067_v14 = vrot.slane %v16073_v5, 3  ;;  %v19068_v37 = vld [vmem:[#allocation192_spill] sm:$0xff]  ;;  %v19070_v5 = vld [vmem:[#allocation34_spill] sm:$0xff] }
 0x5a3   :  { %v4572_v20 = vadd.f32 %v19065_v46, %v4200_v59  ;;  %v541_v7 = vadd.f32 %v486_v48, %v240_v27  ;;  %v18059_v59 = vrot.slane %v16473_v36, 3  ;;  %v18058_v46 = vrot.slane %v16477_v43, 3 }
 0x5a4   :  { %v4943_v33 = vadd.f32 %v16256_v4, %v4571_v52  ;;  %v1034_v40 = vsel %vm878_vm5, %v1032_v54, %v19067_v14  ;;  %v5254_v30 = vpop.permute.xlu0 %5253  ;;  %v2495_v13 = vadd.f32 %v19068_v37, %v2123_v21  ;;  %v540_v29 = vadd.f32 %v487_v32, %v239_v26  ;;  %v19069_v4 = vld [vmem:[#allocation32_spill] sm:$0xff]  ;;  %v19072_v52 = vld [vmem:[#allocation50_spill] sm:$0xff] }
 0x5a5   :  { %v4944_v56 = vadd.f32 %v16274_v61, %v4572_v20  ;;  %v432_v49 = vmul.f32 %v19069_v4, %v19015_v55  ;;  %v431_v42 = vmul.f32 %v19070_v5, %v19015_v55  ;;  %v19071_v48 = vrot.slane %v16460_v34, 2 }
 0x5a6   :  { %v5256_v47 = vpop.permute.xlu1 %5255  ;;  %v5315_v53 = vadd.f32 %v5254_v30, %v4943_v33  ;;  %v427_v27 = vmul.f32 %v15849_v11, %v19015_v55  ;;  %v2787_v20 = vadd.f32 %v19072_v52, %v2495_v13  ;;  %v1090_v30 = vadd.f32 %v1034_v40, %v813_v16  ;;  %v19076_v13 = vld [vmem:[#allocation91_spill] sm:$0xff] }
 0x5a7   :  { %v5316_v54 = vadd.f32 %v5256_v47, %v4944_v56  ;;  %v764_v61 = vsel %vm601_vm4, %v19071_v48, %v763_v51  ;;  %v818_v37 = vadd.f32 %v763_v51, %v541_v7  ;;  %v1041_v47 = vsel %vm878_vm5, %v18058_v46, %v18059_v59  ;;  %v19077_v48 = vld [vmem:[#allocation41_spill] sm:$0xff]  ;;  %v19079_v46 = vld [vmem:[#allocation86_spill] sm:$0xff] }
 0x5a8   :  { %v16510_v21 = vadd.f32 %v16301_v63, %v5315_v53  ;;  %v16515_v32 = vpop.permute.xlu0 %3861  ;;  %v709_v28 = vmul.f32 %v19069_v4, %v15716_v3  ;;  %v16526_v53 = vmul.f32 %v19070_v5, %v15716_v3  ;;  %v3159_v51 = vadd.f32 %v19076_v13, %v2787_v20  ;;  %v19078_v20 = vld [vmem:[#allocation176_spill] sm:$0xff] }
 0x5a9   :  { %v16513_v26 = vadd.f32 %v16301_v63, %v5316_v54  ;;  %19075 = vst [vmem:[#allocation159_spill] sm:$0xff] %v16515_v32  ;;  %v817_v16 = vadd.f32 %v764_v61, %v540_v29  ;;  %v491_v14 = vrot.slane %v432_v49, 1  ;;  %v489_v40 = vrot.slane %v431_v42, 1  ;;  %v19084_v32 = vld [vmem:[#allocation8_spill] sm:$0xff] }
 0x5aa   :  { %19073 = vst [vmem:[#allocation210_spill] sm:$0xff] %v16510_v21  ;;  %v16529_v33 = vpop.permute.xlu1 %4155  ;;  %6916 = vrot.lane.b32.xlu0 %v16510_v21, %s10633_s0  ;;  %v704_v7 = vmul.f32 %v15849_v11, %v15716_v3  ;;  %v243_v56 = vmul.f32 %v19069_v4, %v15709_v15  ;;  %v483_v54 = vrot.slane %v427_v27, 1  ;;  %v430_v52 = vmul.f32 %v19077_v48, %v19015_v55  ;;  %v19082_v21 = vld [vmem:[#allocation120_spill] sm:$0xff] }
 0x5ab   :  { %19074 = vst [vmem:[#allocation121_spill] sm:$0xff] %v16513_v26  ;;  %6918 = vrot.lane.b32.xlu1 %v16513_v26, %s10633_s0  ;;  %v3531_v13 = vadd.f32 %v19078_v20, %v3159_v51  ;;  %v1382_v59 = vadd.f32 %v19079_v46, %v1090_v30  ;;  %v986_v29 = vmul.f32 %v19069_v4, %v15761_v23  ;;  %v768_v27 = vrot.slane %v709_v28, 2  ;;  %v19081_v20 = vld [vmem:[#allocation161_spill] sm:$0xff] }
 0x5ac   :  { %v242_v49 = vmul.f32 %v19070_v5, %v15709_v15  ;;  %v16549_v42 = vmul.f32 %v19070_v5, %v15761_v23  ;;  %v16551_v61 = vpop.permute.xlu0 %4157  ;;  %v766_v26 = vrot.slane %v16526_v53, 2  ;;  %v981_v51 = vmul.f32 %v15849_v11, %v15761_v23 }
 0x5ad   :  { %19080 = vst [vmem:[#allocation33_spill] sm:$0xff] %v16551_v61  ;;  %v3903_v46 = vadd.f32 %v19081_v20, %v3531_v13  ;;  %v492_v4 = vsel %vm324_vm3, %v489_v40, %v491_v14  ;;  %v1754_v24 = vadd.f32 %v19082_v21, %v1382_v59  ;;  %v238_v5 = vmul.f32 %v15849_v11, %v15709_v15 }
 0x5ae   :  { %v16557_v30 = vpop.permute.xlu1 %4513  ;;  %v760_v10 = vrot.slane %v704_v7, 2  ;;  %v19083_v6 = vrot.slane %v16439_v2, 1  ;;  %v488_v53 = vrot.slane %v430_v52, 1  ;;  %v707_v19 = vmul.f32 %v19077_v48, %v15716_v3 }
 0x5af   :  { %v4195_v13 = vadd.f32 %v19084_v32, %v3903_v46  ;;  %v544_v20 = vadd.f32 %v491_v14, %v243_v56  ;;  %v1045_v35 = vrot.slane %v986_v29, 3  ;;  %v1043_v8 = vrot.slane %v16549_v42, 3  ;;  %v19087_v56 = vld [vmem:[#allocation107_spill] sm:$0xff] }
 0x5b0   :  { %v485_v28 = vsel %vm324_vm3, %v483_v54, %v19083_v6  ;;  %v2126_v59 = vadd.f32 %v19085_v0, %v1754_v24  ;;  %v16571_v21 = vpop.permute.xlu0 %4887  ;;  %v543_v11 = vadd.f32 %v492_v4, %v242_v49  ;;  %v769_v7 = vsel %vm601_vm4, %v766_v26, %v768_v27 }
 0x5b1   :  { %v1037_v2 = vrot.slane %v981_v51, 3  ;;  %v4567_v6 = vadd.f32 %v19086_v45, %v4195_v13  ;;  %v539_v52 = vadd.f32 %v485_v28, %v238_v5  ;;  %v241_v32 = vmul.f32 %v19077_v48, %v15709_v15  ;;  %v19090_v28 = vld [vmem:[#allocation81_spill] sm:$0xff] }
 0x5b2   :  { %v16575_v54 = vpop.permute.xlu1 %4889  ;;  %v984_v14 = vmul.f32 %v19077_v48, %v15761_v23  ;;  %v2498_v29 = vadd.f32 %v19087_v56, %v2126_v59  ;;  %v19088_v24 = vrot.slane %v16460_v34, 2  ;;  %v490_v49 = vsel %vm324_vm3, %v488_v53, %v489_v40 }
 0x5b3   :  { %v765_v42 = vrot.slane %v707_v19, 2  ;;  %v4939_v45 = vadd.f32 %v16382_v60, %v4567_v6  ;;  %v19089_v51 = vrot.slane %v16473_v36, 3  ;;  %v1094_v4 = vadd.f32 %v1041_v47, %v817_v16  ;;  %v19093_v36 = vld [vmem:[#allocation58_spill] sm:$0xff]  ;;  %v19094_v47 = vld [vmem:[#allocation84_spill] sm:$0xff] }
 0x5b4   :  { %v762_v0 = vsel %vm601_vm4, %v760_v10, %v19088_v24  ;;  %v821_v5 = vadd.f32 %v768_v27, %v544_v20  ;;  %v2790_v13 = vadd.f32 %v19090_v28, %v2498_v29  ;;  %v5246_v9 = vpop.permute.xlu0 %5245  ;;  %v820_v48 = vadd.f32 %v769_v7, %v543_v11  ;;  %v10606_v20 = vld [vmem:[#allocation2 + $0xa0] sm:$0xf]  ;;  %v19097_v29 = vld [vmem:[#allocation187_spill] sm:$0xff] }
 0x5b5   :  { %v1095_v46 = vadd.f32 %v19089_v51, %v818_v37  ;;  %v1046_v59 = vsel %vm878_vm5, %v1043_v8, %v1045_v35  ;;  %v19091_v34 = vrot.slane %v16477_v43, 3  ;;  %v5311_v19 = vadd.f32 %v5246_v9, %v4939_v45  ;;  %v19096_v43 = vld [vmem:[#allocation110_spill] sm:$0xff] }
 0x5b6   :  { %v16594_v56 = vpop.permute.xlu1 %3867  ;;  %v816_v40 = vadd.f32 %v762_v0, %v539_v52  ;;  %v542_v60 = vadd.f32 %v490_v49, %v241_v32  ;;  %v1042_v53 = vrot.slane %v984_v14, 3  ;;  %v3162_v37 = vadd.f32 %v19093_v36, %v2790_v13  ;;  %v19099_v14 = vld [vmem:[#allocation145_spill] sm:$0xff] }
 0x5b7   :  { %v1039_v10 = vsel %vm878_vm5, %v1037_v2, %v19091_v34  ;;  %19092 = vst [vmem:[#allocation73_spill] sm:$0xff] %v16594_v56  ;;  %v1386_v16 = vadd.f32 %v19094_v47, %v1094_v4  ;;  %v767_v27 = vsel %vm601_vm4, %v765_v42, %v766_v26  ;;  %v435_v11 = vmul.f32 %v10606_v20, %v19015_v55  ;;  %v10607_v49 = vld [vmem:[#allocation2 + $0x98] sm:$0xff]  ;;  %v19102_v4 = vld [vmem:[#allocation111_spill] sm:$0xff] }
 0x5b8   :  { %v16601_v7 = vadd.f32 %v16301_v63, %v5311_v19  ;;  %v1387_v2 = vadd.f32 %v19096_v43, %v1095_v46  ;;  %v1098_v6 = vadd.f32 %v1045_v35, %v821_v5  ;;  %v3534_v9 = vadd.f32 %v19097_v29, %v3162_v37  ;;  %v16605_v52 = vpop.permute.xlu0 %4161  ;;  %v19101_v35 = vld [vmem:[#allocation182_spill] sm:$0xff]  ;;  %v19104_v37 = vld [vmem:[#allocation36_spill] sm:$0xff] }
 0x5b9   :  { %19098 = vst [vmem:[#allocation60_spill] sm:$0xff] %v16605_v52  ;;  %v1097_v32 = vadd.f32 %v1046_v59, %v820_v48  ;;  %v1758_v24 = vadd.f32 %v19099_v14, %v1386_v16  ;;  %v246_v0 = vmul.f32 %v10606_v20, %v15709_v15  ;;  %v16610_v26 = vmul.f32 %v10607_v49, %v19015_v55  ;;  %v19103_v59 = vld [vmem:[#allocation10_spill] sm:$0xff] }
 0x5ba   :  { %19095 = vst [vmem:[#allocation195_spill] sm:$0xff] %v16601_v7  ;;  %v16612_v42 = vpop.permute.xlu1 %4163  ;;  %6908 = vrot.lane.b32.xlu0 %v16601_v7, %s10633_s0  ;;  %v16616_v45 = vadd.f32 %v1039_v10, %v816_v40  ;;  %v1759_v51 = vadd.f32 %v19101_v35, %v1387_v2  ;;  %v819_v46 = vadd.f32 %v767_v27, %v542_v60  ;;  %v496_v13 = vrot.slane %v435_v11, 1  ;;  %v19105_v40 = vld [vmem:[#allocation24_spill] sm:$0xff]  ;;  %v19107_v29 = vld [vmem:[#allocation206_spill] sm:$0xff]  ;;  %v19115_v7 = vld [vmem:[#allocation77_spill] sm:$0xff] }
 0x5bb   :  { %19100 = vst [vmem:[#allocation74_spill] sm:$0xff] %v16612_v42  ;;  %v3906_v5 = vadd.f32 %v19102_v4, %v3534_v9  ;;  %v1044_v28 = vsel %vm878_vm5, %v1042_v53, %v1043_v8  ;;  %v712_v48 = vmul.f32 %v10606_v20, %v15716_v3  ;;  %v2130_v34 = vadd.f32 %v19103_v59, %v1758_v24  ;;  %v19106_v53 = vld [vmem:[#allocation203_spill] sm:$0xff]  ;;  %v10608_v35 = vld [vmem:[#allocation2 + $0xb0] sm:$0xff] }
 0x5bc   :  { %v989_v19 = vmul.f32 %v10606_v20, %v15761_v23  ;;  %v16625_v36 = vmul.f32 %v10607_v49, %v15716_v3  ;;  %v2131_v10 = vadd.f32 %v19104_v37, %v1759_v51  ;;  %v16629_v16 = vpop.permute.xlu0 %4519  ;;  %v547_v60 = vadd.f32 %v496_v13, %v246_v0  ;;  %v10609_v51 = vld [vmem:[#allocation2 + $0xb8] sm:$0xf] }
 0x5bd   :  { %v4198_v47 = vadd.f32 %v19105_v40, %v3906_v5  ;;  %v18066_v27 = vrot.slane %v16610_v26, 1  ;;  %v16633_v8 = vmul.f32 %v10607_v49, %v15761_v23  ;;  %v2502_v11 = vadd.f32 %v19106_v53, %v2130_v34  ;;  %v19108_v5 = vld [vmem:[#allocation69_spill] sm:$0xff] }
 0x5be   :  { %v16636_v43 = vpop.permute.xlu1 %4893  ;;  %v16638_v20 = vadd.f32 %v1044_v28, %v819_v46  ;;  %v245_v2 = vmul.f32 %v10607_v49, %v15709_v15  ;;  %v2503_v9 = vadd.f32 %v19107_v29, %v2131_v10  ;;  %v773_v24 = vrot.slane %v712_v48, 2  ;;  %v19109_v28 = vld [vmem:[#allocation202_spill] sm:$0xff]  ;;  %v19114_v46 = vld [vmem:[#allocation71_spill] sm:$0xff] }
 0x5bf   :  { %v4570_v14 = vadd.f32 %v16247_v1, %v4198_v47  ;;  %v16644_v0 = vmul.f32 %v10608_v35, %v19015_v55  ;;  %v16647_v4 = vmul.f32 %v10609_v51, %v19015_v55  ;;  %v2794_v59 = vadd.f32 %v19108_v5, %v2502_v11  ;;  %v19110_v47 = vld [vmem:[#allocation67_spill] sm:$0xff] }
 0x5c0   :  { %v1050_v34 = vrot.slane %v989_v19, 3  ;;  %v2795_v49 = vadd.f32 %v19109_v28, %v2503_v9  ;;  %v16653_v10 = vpop.permute.xlu0 %4895  ;;  %v824_v1 = vadd.f32 %v773_v24, %v547_v60  ;;  %v497_v48 = vsel %vm324_vm3, %v18066_v27, %v496_v13  ;;  %v19111_v9 = vld [vmem:[#allocation153_spill] sm:$0xff]  ;;  %v19112_v5 = vld [vmem:[#allocation171_spill] sm:$0xff] }
 0x5c1   :  { %v4942_v37 = vadd.f32 %v16481_v58, %v4570_v14  ;;  %v3166_v53 = vadd.f32 %v19110_v47, %v2794_v59  ;;  %v16661_v19 = vmul.f32 %v10608_v35, %v15716_v3  ;;  %v16664_v11 = vmul.f32 %v10609_v51, %v15716_v3  ;;  %v19113_v27 = vld [vmem:[#allocation113_spill] sm:$0xff] }
 0x5c2   :  { %v5252_v29 = vpop.permute.xlu1 %5251  ;;  %v3167_v58 = vadd.f32 %v19111_v9, %v2795_v49  ;;  %v1389_v60 = vadd.f32 %v19112_v5, %v1097_v32  ;;  %v18068_v28 = vrot.slane %v16644_v0, 1  ;;  %v501_v13 = vrot.slane %v16647_v4, 1  ;;  %v19118_v49 = vld [vmem:[#allocation181_spill] sm:$0xff]  ;;  %v19120_v9 = vld [vmem:[#allocation160_spill] sm:$0xff] }
 0x5c3   :  { %v5314_v14 = vadd.f32 %v5252_v29, %v4942_v37  ;;  %v3538_v40 = vadd.f32 %v19113_v27, %v3166_v53  ;;  %v1390_v59 = vadd.f32 %v19114_v46, %v1098_v6  ;;  %v546_v47 = vadd.f32 %v497_v48, %v245_v2  ;;  %v19121_v6 = vld [vmem:[#allocation211_spill] sm:$0xff]  ;;  %v19122_v48 = vld [vmem:[#allocation197_spill] sm:$0xff] }
 0x5c4   :  { %v3539_v56 = vadd.f32 %v19115_v7, %v3167_v58  ;;  %v16676_v52 = vpop.permute.xlu0 %4153  ;;  %v1761_v37 = vadd.f32 %v19118_v49, %v1389_v60  ;;  %v19119_v32 = vrot.slane %v16625_v36, 2  ;;  %v248_v4 = vmul.f32 %v10608_v35, %v15709_v15  ;;  %v19124_v60 = vld [vmem:[#allocation216_spill] sm:$0xff] }
 0x5c5   :  { %v16674_v42 = vadd.f32 %v16301_v63, %v5314_v14  ;;  %19117 = vst [vmem:[#allocation167_spill] sm:$0xff] %v16676_v52  ;;  %v3910_v27 = vadd.f32 %v19120_v9, %v3538_v40  ;;  %v1762_v2 = vadd.f32 %v19121_v6, %v1390_v59  ;;  %v778_v46 = vrot.slane %v16664_v11, 2  ;;  %v19123_v40 = vld [vmem:[#allocation83_spill] sm:$0xff]  ;;  %v19127_v6 = vld [vmem:[#allocation217_spill] sm:$0xff] }
 0x5c6   :  { %v774_v29 = vsel %vm601_vm4, %v19119_v32, %v773_v24  ;;  %v16684_v53 = vpop.permute.xlu1 %4527  ;;  %v3911_v58 = vadd.f32 %v19122_v48, %v3539_v56  ;;  %v502_v24 = vsel %vm324_vm3, %v18068_v28, %v501_v13  ;;  %v16696_v14 = vmul.f32 %v10608_v35, %v15761_v23  ;;  %v19126_v32 = vld [vmem:[#allocation106_spill] sm:$0xff]  ;;  %v19132_v52 = vld [vmem:[#allocation57_spill] sm:$0xff] }
 0x5c7   :  { %19116 = vst [vmem:[#allocation170_spill] sm:$0xff] %v16674_v42  ;;  %6914 = vrot.lane.b32.xlu1 %v16674_v42, %s10633_s0  ;;  %v2133_v5 = vadd.f32 %v19123_v40, %v1761_v37  ;;  %v4202_v59 = vadd.f32 %v19124_v60, %v3910_v27  ;;  %v16700_v49 = vadd.f32 %v1050_v34, %v824_v1  ;;  %v19125_v11 = vrot.slane %v16633_v8, 3  ;;  %v19129_v37 = vld [vmem:[#allocation190_spill] sm:$0xff] }
 0x5c8   :  { %v2134_v9 = vadd.f32 %v19126_v32, %v1762_v2  ;;  %v4203_v48 = vadd.f32 %v19127_v6, %v3911_v58  ;;  %v16707_v7 = vpop.permute.xlu0 %4529  ;;  %v16710_v28 = vmul.f32 %v10609_v51, %v15761_v23  ;;  %v249_v35 = vmul.f32 %v10609_v51, %v15709_v15 }
 0x5c9   :  { %v1051_v56 = vsel %vm878_vm5, %v19125_v11, %v1050_v34  ;;  %19128 = vst [vmem:[#allocation93_spill] sm:$0xff] %v16707_v7  ;;  %v2505_v40 = vadd.f32 %v19129_v37, %v2133_v5  ;;  %v4574_v1 = vadd.f32 %v16357_v41, %v4202_v59  ;;  %v823_v60 = vadd.f32 %v774_v29, %v546_v47  ;;  %v19130_v34 = vld [vmem:[#allocation59_spill] sm:$0xff]  ;;  %v19133_v41 = vld [vmem:[#allocation94_spill] sm:$0xff]  ;;  %v10610_v37 = vld [vmem:[#allocation2 + $0x90] sm:$0xff] }
 0x5ca   :  { %v16715_v27 = vpop.permute.xlu1 %4885  ;;  %v549_v42 = vadd.f32 %v502_v24, %v248_v4  ;;  %v2506_v11 = vadd.f32 %v19130_v34, %v2134_v9  ;;  %v4575_v2 = vadd.f32 %v16364_v44, %v4203_v48  ;;  %v19131_v58 = vrot.slane %v16661_v19, 2  ;;  %v19134_v29 = vld [vmem:[#allocation188_spill] sm:$0xff]  ;;  %v19135_v34 = vld [vmem:[#allocation65_spill] sm:$0xff] }
 0x5cb   :  { %v2797_v51 = vadd.f32 %v19132_v52, %v2505_v40  ;;  %v4946_v5 = vadd.f32 %v16571_v21, %v4574_v1  ;;  %v1385_v59 = vadd.f32 %v19133_v41, %v16616_v45  ;;  %v433_v47 = vmul.f32 %v10610_v37, %v19015_v55  ;;  %v19136_v40 = vld [vmem:[#allocation168_spill] sm:$0xff]  ;;  %v10611_v1 = vld [vmem:[#allocation2 + $0xa8] sm:$0xff]  ;;  %v19137_v41 = vld [vmem:[#allocation102_spill] sm:$0xff] }
 0x5cc   :  { %v779_v32 = vsel %vm601_vm4, %v19131_v58, %v778_v46  ;;  %v2798_v4 = vadd.f32 %v19134_v29, %v2506_v11  ;;  %v4947_v44 = vadd.f32 %v16575_v54, %v4575_v2  ;;  %v5260_v24 = vpop.permute.xlu0 %5259  ;;  %v1055_v9 = vrot.slane %v16710_v28, 3  ;;  %v19138_v54 = vld [vmem:[#allocation125_spill] sm:$0xff] }
 0x5cd   :  { %v550_v48 = vadd.f32 %v501_v13, %v249_v35  ;;  %v3169_v58 = vadd.f32 %v19135_v34, %v2797_v51  ;;  %v5318_v52 = vadd.f32 %v5260_v24, %v4946_v5  ;;  %v1757_v21 = vadd.f32 %v19136_v40, %v1385_v59  ;;  %v19139_v35 = vld [vmem:[#allocation45_spill] sm:$0xff] }
 0x5ce   :  { %v5262_v6 = vpop.permute.xlu1 %5261  ;;  %v436_v45 = vmul.f32 %v10611_v1, %v19015_v55  ;;  %v3170_v7 = vadd.f32 %v19137_v41, %v2798_v4  ;;  %v1100_v61 = vadd.f32 %v1051_v56, %v823_v60  ;;  %v710_v11 = vmul.f32 %v10610_v37, %v15716_v3  ;;  %v19140_v5 = vld [vmem:[#allocation213_spill] sm:$0xff] }
 0x5cf   :  { %v5319_v50 = vadd.f32 %v5262_v6, %v4947_v44  ;;  %v3541_v2 = vadd.f32 %v19138_v54, %v3169_v58  ;;  %v16738_v29 = vadd.f32 %v16301_v63, %v5318_v52  ;;  %v493_v13 = vrot.slane %v433_v47, 1  ;;  %v19142_v44 = vld [vmem:[#allocation28_spill] sm:$0xff]  ;;  %v19145_v54 = vld [vmem:[#allocation95_spill] sm:$0xff] }
 0x5d0   :  { %v2129_v51 = vadd.f32 %v19139_v35, %v1757_v21  ;;  %v3542_v24 = vadd.f32 %v19140_v5, %v3170_v7  ;;  %v16745_v55 = vpop.permute.xlu0 %4159  ;;  %v826_v4 = vadd.f32 %v779_v32, %v549_v42  ;;  %v19141_v56 = vrot.slane %v16696_v14, 3  ;;  %v19143_v58 = vld [vmem:[#allocation68_spill] sm:$0xff]  ;;  %v19144_v42 = vld [vmem:[#allocation38_spill] sm:$0xff] }
 0x5d1   :  { %v16743_v59 = vadd.f32 %v16301_v63, %v5319_v50  ;;  %v713_v6 = vmul.f32 %v10611_v1, %v15716_v3  ;;  %v3913_v47 = vadd.f32 %v19142_v44, %v3541_v2  ;;  %6922 = vrot.lane.b32.xlu0 %v16738_v29, %s10633_s0  ;;  %v827_v50 = vadd.f32 %v778_v46, %v550_v48 }
 0x5d2   :  { %v1056_v60 = vsel %vm878_vm5, %v19141_v56, %v1055_v9  ;;  %v16754_v34 = vpop.permute.xlu1 %4533  ;;  %v498_v7 = vrot.slane %v436_v45, 1  ;;  %v2501_v52 = vadd.f32 %v19143_v58, %v2129_v51  ;;  %v3914_v32 = vadd.f32 %v19144_v42, %v3542_v24  ;;  %v19147_v45 = vld [vmem:[#allocation152_spill] sm:$0xff] }
 0x5d3   :  { %6924 = vrot.lane.b32.xlu1 %v16743_v59, %s10633_s0  ;;  %v244_v40 = vmul.f32 %v10610_v37, %v15709_v15  ;;  %v770_v21 = vrot.slane %v710_v11, 2  ;;  %v987_v3 = vmul.f32 %v10610_v37, %v15761_v23  ;;  %v4205_v41 = vadd.f32 %v16217_v38, %v3913_v47  ;;  %v19150_v47 = vld [vmem:[#allocation76_spill] sm:$0xff] }
 0x5d4   :  { %v1388_v2 = vadd.f32 %v19145_v54, %v16638_v20  ;;  %v19146_v46 = vrot.slane %v16610_v26, 1  ;;  %v2793_v35 = vadd.f32 %v19147_v45, %v2501_v52  ;;  %v4206_v51 = vadd.f32 %v16223_v62, %v3914_v32  ;;  %v16772_v5 = vpop.permute.xlu0 %4535  ;;  %v19148_v20 = vld [vmem:[#allocation204_spill] sm:$0xff]  ;;  %v19153_v32 = vld [vmem:[#allocation47_spill] sm:$0xff]  ;;  %v19154_v54 = vld [vmem:[#allocation18_spill] sm:$0xff] }
 0x5d5   :  { %v247_v24 = vmul.f32 %v10611_v1, %v15709_v15  ;;  %v775_v11 = vrot.slane %v713_v6, 2  ;;  %v990_v37 = vmul.f32 %v10611_v1, %v15761_v23  ;;  %v4577_v38 = vadd.f32 %v16451_v22, %v4205_v41  ;;  %v19152_v1 = vld [vmem:[#allocation191_spill] sm:$0xff] }
 0x5d6   :  { %v495_v48 = vsel %vm324_vm3, %v493_v13, %v19146_v46  ;;  %v16777_v56 = vpop.permute.xlu1 %4891  ;;  %v1760_v44 = vadd.f32 %v19148_v20, %v1388_v2  ;;  %v19149_v26 = vrot.slane %v16644_v0, 1  ;;  %v3165_v58 = vadd.f32 %v19150_v47, %v2793_v35  ;;  %v19159_v20 = vld [vmem:[#allocation11_spill] sm:$0xff] }
 0x5d7   :  { %v4578_v62 = vadd.f32 %v16469_v39, %v4206_v51  ;;  %v545_v52 = vadd.f32 %v495_v48, %v244_v40  ;;  %v19151_v15 = vrot.slane %v16625_v36, 2  ;;  %v1047_v23 = vrot.slane %v987_v3, 3  ;;  %v19156_v3 = vld [vmem:[#allocation179_spill] sm:$0xff] }
 0x5d8   :  { %v500_v13 = vsel %vm324_vm3, %v498_v7, %v19149_v26  ;;  %v4949_v22 = vadd.f32 %v16636_v43, %v4577_v38  ;;  %v1392_v42 = vadd.f32 %v19152_v1, %v1100_v61  ;;  %v2132_v41 = vadd.f32 %v19153_v32, %v1760_v44  ;;  %v5266_v2 = vpop.permute.xlu0 %5265  ;;  %v19157_v43 = vld [vmem:[#allocation165_spill] sm:$0xff]  ;;  %v19158_v61 = vld [vmem:[#allocation42_spill] sm:$0xff]  ;;  %v19161_v26 = vld [vmem:[#allocation163_spill] sm:$0xff] }
 0x5d9   :  { %v772_v6 = vsel %vm601_vm4, %v770_v21, %v19151_v15  ;;  %v3537_v0 = vadd.f32 %v19154_v54, %v3165_v58  ;;  %v4950_v7 = vadd.f32 %v16653_v10, %v4578_v62  ;;  %v548_v46 = vadd.f32 %v500_v13, %v247_v24  ;;  %v19165_v1 = vld [vmem:[#allocation23_spill] sm:$0xff]  ;;  %v19166_v32 = vld [vmem:[#allocation162_spill] sm:$0xff] }
 0x5da   :  { %v19155_v39 = vrot.slane %v16661_v19, 2  ;;  %v1052_v36 = vrot.slane %v990_v37, 3  ;;  %v5268_v48 = vpop.permute.xlu1 %5267  ;;  %v5321_v21 = vadd.f32 %v5266_v2, %v4949_v22  ;;  %v1764_v45 = vadd.f32 %v19156_v3, %v1392_v42  ;;  %v19170_v2 = vld [vmem:[#allocation136_spill] sm:$0xff] }
 0x5db   :  { %v2504_v35 = vadd.f32 %v19157_v43, %v2132_v41  ;;  %v3909_v51 = vadd.f32 %v19158_v61, %v3537_v0  ;;  %v5322_v38 = vadd.f32 %v5268_v48, %v4950_v7  ;;  %v1393_v44 = vadd.f32 %v19159_v20, %v16700_v49  ;;  %v19169_v0 = vld [vmem:[#allocation82_spill] sm:$0xff] }
 0x5dc   :  { %v777_v40 = vsel %vm601_vm4, %v775_v11, %v19155_v39  ;;  %v1103_v10 = vadd.f32 %v1056_v60, %v826_v4  ;;  %v1104_v24 = vadd.f32 %v1055_v9, %v827_v50  ;;  %v16804_v19 = vadd.f32 %v16301_v63, %v5321_v21  ;;  %v19160_v11 = vld [vmem:[#allocation49_spill] sm:$0xff]  ;;  %v16812_v62 = vpop.permute.xlu0 %4525  ;;  %v19163_v9 = vld [vmem:[#allocation180_spill] sm:$0xff]  ;;  %v19172_v21 = vld [vmem:[#allocation14_spill] sm:$0xff] }
 0x5dd   :  { %v2136_v37 = vadd.f32 %v19160_v11, %v1764_v45  ;;  %v2796_v13 = vadd.f32 %v19161_v26, %v2504_v35  ;;  %v4201_v47 = vadd.f32 %v16338_v18, %v3909_v51  ;;  %v16810_v58 = vadd.f32 %v16301_v63, %v5322_v38  ;;  %v19173_v45 = vld [vmem:[#allocation128_spill] sm:$0xff]  ;;  %v19174_v61 = vld [vmem:[#allocation166_spill] sm:$0xff] }
 0x5de   :  { %v822_v15 = vadd.f32 %v772_v6, %v545_v52  ;;  %v19162_v49 = vrot.slane %v16633_v8, 3  ;;  %v1765_v4 = vadd.f32 %v19163_v9, %v1393_v44  ;;  %v825_v60 = vadd.f32 %v777_v40, %v548_v46  ;;  %v4900_v50 = vpop.permute.xlu1 %4899  ;;  %6928 = vrot.lane.b32.xlu0 %v16804_v19, %s10633_s0  ;;  %v19167_v8 = vld [vmem:[#allocation61_spill] sm:$0xff]  ;;  %v19175_v38 = vld [vmem:[#allocation148_spill] sm:$0xff]  ;;  %v19181_v9 = vld [vmem:[#allocation39_spill] sm:$0xff] }
 0x5df   :  { %v19164_v22 = vrot.slane %v16696_v14, 3  ;;  %v2508_v42 = vadd.f32 %v19165_v1, %v2136_v37  ;;  %v3168_v41 = vadd.f32 %v19166_v32, %v2796_v13  ;;  %v4573_v52 = vadd.f32 %v16557_v30, %v4201_v47  ;;  %6930 = vrot.lane.b32.xlu1 %v16810_v58, %s10633_s0  ;;  %v19171_v14 = vld [vmem:[#allocation30_spill] sm:$0xff]  ;;  %v19179_v47 = vld [vmem:[#allocation175_spill] sm:$0xff] }
 0x5e0   :  { %v1049_v28 = vsel %vm878_vm5, %v1047_v23, %v19162_v49  ;;  %v1395_v6 = vadd.f32 %v19167_v8, %v1103_v10  ;;  %v19168_v23 = vld [vmem:[#allocation178_spill] sm:$0xff]  ;;  %v1396_v7 = vadd.f32 %v19169_v0, %v1104_v24  ;;  %v19176_v24 = vld [vmem:[#allocation205_spill] sm:$0xff] }
 0x5e1   :  { %v1054_v18 = vsel %vm878_vm5, %v1052_v36, %v19164_v22  ;;  %v2137_v54 = vadd.f32 %v19168_v23, %v1765_v4  ;;  %v2800_v46 = vadd.f32 %v19170_v2, %v2508_v42  ;;  %v3540_v39 = vadd.f32 %v19171_v14, %v3168_v41  ;;  %v4902_v36 = vpop.permute.xlu0 %4901  ;;  %v19177_v37 = vld [vmem:[#allocation142_spill] sm:$0xff]  ;;  %v19180_v49 = vld [vmem:[#allocation17_spill] sm:$0xff]  ;;  %v19183_v42 = vld [vmem:[#allocation139_spill] sm:$0xff] }
 0x5e2   :  { %v4945_v40 = vadd.f32 %v16715_v27, %v4573_v52  ;;  %v1099_v48 = vadd.f32 %v1049_v28, %v822_v15  ;;  %v1767_v3 = vadd.f32 %v19172_v21, %v1395_v6  ;;  %v1102_v30 = vadd.f32 %v1054_v18, %v825_v60  ;;  %v5258_v35 = vpop.permute.xlu1 %5257  ;;  %v19178_v27 = vld [vmem:[#allocation164_spill] sm:$0xff]  ;;  %v19184_v41 = vld [vmem:[#allocation174_spill] sm:$0xff]  ;;  %v19187_v2 = vld [vmem:[#allocation127_spill] sm:$0xff] }
 0x5e3   :  { %v2509_v43 = vadd.f32 %v19173_v45, %v2137_v54  ;;  %v1768_v51 = vadd.f32 %v19174_v61, %v1396_v7  ;;  %v3172_v20 = vadd.f32 %v19175_v38, %v2800_v46  ;;  %v3912_v44 = vadd.f32 %v16200_v17, %v3540_v39  ;;  %v19182_v17 = vld [vmem:[#allocation48_spill] sm:$0xff]  ;;  %v19186_v54 = vld [vmem:[#allocation78_spill] sm:$0xff]  ;;  %v19188_v14 = vld [vmem:[#allocation99_spill] sm:$0xff] }
 0x5e4   :  { %v5317_v10 = vadd.f32 %v5258_v35, %v4945_v40  ;;  %v1391_v11 = vadd.f32 %v19176_v24, %v1099_v48  ;;  %v1394_v26 = vadd.f32 %v19177_v37, %v1102_v30  ;;  %v2139_v13 = vadd.f32 %v19178_v27, %v1767_v3  ;;  %v19185_v6 = vld [vmem:[#allocation20_spill] sm:$0xff]  ;;  %v19189_v40 = vld [vmem:[#allocation19_spill] sm:$0xff]  ;;  %v19192_v61 = vld [vmem:[#allocation89_spill] sm:$0xff] }
 0x5e5   :  { %v2801_v15 = vadd.f32 %v19179_v47, %v2509_v43  ;;  %v2140_v28 = vadd.f32 %v19180_v49, %v1768_v51  ;;  %v3544_v4 = vadd.f32 %v19181_v9, %v3172_v20  ;;  %v4204_v60 = vadd.f32 %v16445_v31, %v3912_v44  ;;  %v16849_v18 = vpop.permute.xlu0 %4531  ;;  %v19190_v21 = vld [vmem:[#allocation56_spill] sm:$0xff]  ;;  %v19198_v49 = vld [vmem:[#allocation26_spill] sm:$0xff] }
 0x5e6   :  { %v16847_v22 = vadd.f32 %v16301_v63, %v5317_v10  ;;  %v1763_v1 = vadd.f32 %v19182_v17, %v1391_v11  ;;  %v2511_v32 = vadd.f32 %v19183_v42, %v2139_v13  ;;  %v4906_v8 = vpop.permute.xlu1 %4905  ;;  %v1766_v23 = vadd.f32 %v19185_v6, %v1394_v26  ;;  %v19191_v30 = vld [vmem:[#allocation124_spill] sm:$0xff]  ;;  %v19194_v10 = vld [vmem:[#allocation87_spill] sm:$0xff]  ;;  %v19195_v11 = vld [vmem:[#allocation137_spill] sm:$0xff] }
 0x5e7   :  { %v3173_v52 = vadd.f32 %v19184_v41, %v2801_v15  ;;  %v2512_v0 = vadd.f32 %v19186_v54, %v2140_v28  ;;  %v3916_v7 = vadd.f32 %v16304_v12, %v3544_v4  ;;  %v4576_v31 = vadd.f32 %v16629_v16, %v4204_v60  ;;  %v19193_v51 = vld [vmem:[#allocation212_spill] sm:$0xff]  ;;  %v19196_v13 = vld [vmem:[#allocation173_spill] sm:$0xff]  ;;  %v19204_v54 = vld [vmem:[#allocation146_spill] sm:$0xff] }
 0x5e8   :  { %6920 = vrot.lane.b32.xlu0 %v16847_v22, %s10633_s0  ;;  %v2135_v46 = vadd.f32 %v19187_v2, %v1763_v1  ;;  %v2803_v39 = vadd.f32 %v19188_v14, %v2511_v32  ;;  %v2138_v3 = vadd.f32 %v19190_v21, %v1766_v23  ;;  %v19199_v9 = vld [vmem:[#allocation220_spill] sm:$0xff]  ;;  %v19200_v1 = vld [vmem:[#allocation25_spill] sm:$0xff]  ;;  %v19203_v23 = vld [vmem:[#allocation219_spill] sm:$0xff] }
 0x5e9   :  { %v3545_v48 = vadd.f32 %v19189_v40, %v3173_v52  ;;  %v2804_v45 = vadd.f32 %v19191_v30, %v2512_v0  ;;  %v4208_v43 = vadd.f32 %v16529_v33, %v3916_v7  ;;  %v4948_v35 = vadd.f32 %v16777_v56, %v4576_v31  ;;  %v4908_v12 = vpop.permute.xlu0 %4907  ;;  %v19197_v56 = vld [vmem:[#allocation33_spill] sm:$0xff]  ;;  %v19206_v2 = vld [vmem:[#allocation60_spill] sm:$0xff] }
 0x5ea   :  { %v2507_v16 = vadd.f32 %v19192_v61, %v2135_v46  ;;  %v3175_v38 = vadd.f32 %v19193_v51, %v2803_v39  ;;  %v5264_v44 = vpop.permute.xlu1 %5263  ;;  %v2510_v24 = vadd.f32 %v19194_v10, %v2138_v3  ;;  %v19201_v32 = vld [vmem:[#allocation53_spill] sm:$0xff] }
 0x5eb   :  { %v3917_v20 = vadd.f32 %v16330_v57, %v3545_v48  ;;  %v3176_v37 = vadd.f32 %v19195_v11, %v2804_v45  ;;  %v4580_v26 = vadd.f32 %v16684_v53, %v4208_v43  ;;  %v5320_v27 = vadd.f32 %v5264_v44, %v4948_v35  ;;  %v19202_v41 = vld [vmem:[#allocation93_spill] sm:$0xff]  ;;  %v19208_v48 = vld [vmem:[#allocation74_spill] sm:$0xff]  ;;  %v19209_v45 = vld [vmem:[#allocation159_spill] sm:$0xff] }
 0x5ec   :  { %v2799_v47 = vadd.f32 %v19196_v13, %v2507_v16  ;;  %v3547_v33 = vadd.f32 %v16156_v25, %v3175_v38  ;;  %v2802_v28 = vadd.f32 %v19198_v49, %v2510_v24  ;;  %v19207_v39 = vld [vmem:[#allocation109_spill] sm:$0xff]  ;;  %v19211_v44 = vld [vmem:[#allocation167_spill] sm:$0xff] }
 0x5ed   :  { %v4209_v15 = vadd.f32 %v19197_v56, %v3917_v20  ;;  %v3548_v4 = vadd.f32 %v19199_v9, %v3176_v37  ;;  %v4952_v60 = vadd.f32 %v4900_v50, %v4580_v26  ;;  %v16879_v57 = vadd.f32 %v16301_v63, %v5320_v27  ;;  %v4898_v17 = vpop.permute.xlu0 %4897  ;;  %v19205_v50 = vld [vmem:[#allocation62_spill] sm:$0xff]  ;;  %v19210_v51 = vld [vmem:[#allocation73_spill] sm:$0xff] }
 0x5ee   :  { %v3171_v42 = vadd.f32 %v19200_v1, %v2799_v47  ;;  %v3919_v53 = vadd.f32 %v19201_v32, %v3547_v33  ;;  %v5272_v6 = vpop.permute.xlu1 %5271  ;;  %v3174_v25 = vadd.f32 %v19203_v23, %v2802_v28  ;;  %v19213_v23 = vld [vmem:[#allocation63_spill] sm:$0xff] }
 0x5ef   :  { %v4581_v52 = vadd.f32 %v19202_v41, %v4209_v15  ;;  %v3920_v0 = vadd.f32 %v19204_v54, %v3548_v4  ;;  %v5324_v7 = vadd.f32 %v5272_v6, %v4952_v60  ;;  %6926 = vrot.lane.b32.xlu1 %v16879_v57, %s10633_s0 }
 0x5f0   :  { %v3543_v31 = vadd.f32 %v19205_v50, %v3171_v42  ;;  %v4211_v46 = vadd.f32 %v19206_v2, %v3919_v53  ;;  %v3546_v40 = vadd.f32 %v19207_v39, %v3174_v25  ;;  %v19212_v53 = vld [vmem:[#allocation55_spill] sm:$0xff]  ;;  %v19214_v2 = vld [vmem:[#allocation108_spill] sm:$0xff] }
 0x5f1   :  { %v4953_v14 = vadd.f32 %v4902_v36, %v4581_v52  ;;  %v4212_v21 = vadd.f32 %v19208_v48, %v3920_v0  ;;  %v16893_v3 = vadd.f32 %v16301_v63, %v5324_v7  ;;  %v5274_v30 = vpop.permute.xlu0 %5273  ;;  %v8354_v36 = vlaneseq }
 0x5f2   :  { %v3915_v43 = vadd.f32 %v19209_v45, %v3543_v31  ;;  %v4583_v35 = vadd.f32 %v16754_v34, %v4211_v46  ;;  %v4904_v61 = vpop.permute.xlu1 %4903  ;;  %v3918_v38 = vadd.f32 %v19210_v51, %v3546_v40  ;;  %v19215_v40 = vld [vmem:[#allocation21_spill] sm:$0xff] }
 0x5f3   :  { %v5325_v16 = vadd.f32 %v5274_v30, %v4953_v14  ;;  %v4584_v20 = vadd.f32 %v16772_v5, %v4212_v21  ;;  %6934 = vrot.lane.b32.xlu0 %v16893_v3, %s10633_s0  ;;  %v16910_v56 = vshrl.u32 %v8354_v36, 7  ;;  %v19217_v36 = vld [vmem:[#allocation134_spill] sm:$0xff] }
 0x5f4   :  { %v4207_v10 = vadd.f32 %v19211_v44, %v3915_v43  ;;  %v4955_v24 = vadd.f32 %v4906_v8, %v4583_v35  ;;  %v4210_v37 = vadd.f32 %v16745_v55, %v3918_v38 }
 0x5f5   :  { %v16903_v11 = vadd.f32 %v16301_v63, %v5325_v16  ;;  %v4956_v26 = vadd.f32 %v4908_v12, %v4584_v20  ;;  %v5278_v34 = vpop.permute.xlu0 %5277  ;;  %v8588_v9 = vsub.s32 3, %v16910_v56  ;;  %v8484_v4 = vsub.s32 1, %v16910_v56  ;;  %v19216_v16 = vld [vmem:[#allocation97_spill] sm:$0xff] }
 0x5f6   :  { %v4579_v27 = vadd.f32 %v16812_v62, %v4207_v10  ;;  %v5280_v13 = vpop.permute.xlu1 %5279  ;;  %v5327_v47 = vadd.f32 %v5278_v34, %v4955_v24  ;;  %v4582_v5 = vadd.f32 %v16849_v18, %v4210_v37  ;;  %v8948_v6 = vsub.s32 7, %v16910_v56 }
 0x5f7   :  { %6936 = vrot.lane.b32.xlu1 %v16903_v11, %s10633_s0  ;;  %v5328_v33 = vadd.f32 %v5280_v13, %v4956_v26 }
 0x5f8   :  { %v4951_v8 = vadd.f32 %v4898_v17, %v4579_v27  ;;  %v16913_v15 = vadd.f32 %v16301_v63, %v5327_v47  ;;  %v4954_v49 = vadd.f32 %v4904_v61, %v4582_v5  ;;  %v16930_v17 = vld [vmem:[%s17899_s2] sm:$0xff] }
 0x5f9   :  { %v16916_v55 = vadd.f32 %v16301_v63, %v5328_v33  ;;  %v5270_v12 = vpop.permute.xlu0 %5269  ;;  %v8589_v52 = vrot.slane %v16930_v17, %v8588_v9  ;;  %v8485_v54 = vrot.slane %v16930_v17, %v8484_v4  ;;  %v8949_v14 = vrot.slane %v16930_v17, %v8948_v6  ;;  %v19218_v5 = vld [vmem:[#allocation46_spill] sm:$0xff] }
 0x5fa   :  { %v5276_v62 = vpop.permute.xlu1 %5275  ;;  %v5323_v28 = vadd.f32 %v5270_v12, %v4951_v8  ;;  %6940 = vrot.lane.b32.xlu0 %v16913_v15, %s10633_s0  ;;  %v19219_v12 = vld [vmem:[#allocation169_spill] sm:$0xff] }
 0x5fb   :  { %v5326_v18 = vadd.f32 %v5276_v62, %v4954_v49  ;;  %6942 = vrot.lane.b32.xlu1 %v16916_v55, %s10633_s0 }
 0x5fc   :  { %v16925_v60 = vadd.f32 %v16301_v63, %v5323_v28 }
 0x5fd   :  { %v16933_v1 = vadd.f32 %v16301_v63, %v5326_v18  ;;  %v6899_v42 = vpop.permute.xlu0 %6898  ;;  %v8844_v63 = vsub.s32 5, %v16910_v56 }
 0x5fe   :  { %v6969_v41 = vmax.f32 %v19212_v53, %v6899_v42  ;;  %6932 = vrot.lane.b32.xlu0 %v16925_v60, %s10633_s0  ;;  %v16960_v42 = vld [vmem:[%s17899_s2 + $0x18] sm:$0x3] }
 0x5ff   :  { %v6901_v32 = vpop.permute.xlu1 %6900  ;;  %6938 = vrot.lane.b32.xlu1 %v16933_v1, %s10633_s0  ;;  %v8845_v21 = vrot.slane %v16930_v17, %v8844_v63  ;;  %v19221_v63 = vld [vmem:[#allocation121_spill] sm:$0xff] }
 0x600   :  { %v6970_v25 = vmax.f32 %v19213_v23, %v6901_v32  ;;  %v7017_v0 = vrot.slane %v6969_v41, 1 }
 0x601   :  { %v6905_v50 = vpop.permute.xlu0 %6904 }
 0x602   :  { %v7019_v7 = vrot.slane %v6970_v25, 1  ;;  %v6972_v46 = vmax.f32 %v19214_v2, %v6905_v50  ;;  %8591 = vrot.lane.b32.xlu0 %v8589_v52, %s10636_s16  ;;  %v19220_v25 = vld [vmem:[#allocation210_spill] sm:$0xff] }
 0x603   :  { %v6907_v31 = vpop.permute.xlu1 %6906  ;;  %8487 = vrot.lane.b32.xlu1 %v8485_v54, %s10636_s16 }
 0x604   :  { %v7020_v39 = vsel %vm324_vm3, %v7017_v0, %v7019_v7  ;;  %v6973_v48 = vmax.f32 %v19215_v40, %v6907_v31  ;;  %v7022_v45 = vrot.slane %v6972_v46, 1 }
 0x605   :  { %v7073_v30 = vmax.f32 %v6969_v41, %v7020_v39  ;;  %v16970_v41 = vld [vmem:[%s17899_s2 + $0x10] sm:$0xff]  ;;  %v19222_v39 = vld [vmem:[#allocation195_spill] sm:$0xff] }
 0x606   :  { %v7024_v43 = vrot.slane %v6973_v48, 1  ;;  %v6897_v35 = vpop.permute.xlu0 %6896  ;;  %8951 = vrot.lane.b32.xlu0 %v8949_v14, %s10636_s16 }
 0x607   :  { %v6903_v61 = vpop.permute.xlu1 %6902  ;;  %v6968_v51 = vmax.f32 %v19216_v16, %v6897_v35  ;;  %v7089_v38 = vmax.f32 %v7073_v30, 0.0  ;;  %8847 = vrot.lane.b32.xlu1 %v8845_v21, %s10636_s16  ;;  %v19223_v35 = vld [vmem:[#allocation170_spill] sm:$0xff] }
 0x608   :  { %v7025_v20 = vsel %vm324_vm3, %v7022_v45, %v7024_v43  ;;  %v6971_v44 = vmax.f32 %v19217_v36, %v6903_v61 }
 0x609   :  { %v7075_v10 = vmax.f32 %v6972_v46, %v7025_v20  ;;  %v7016_v24 = vrot.slane %v6968_v51, 1  ;;  %10291 = vmatprep.subr.mxu0 %v7089_v38 }
 0x60a   :  { %v7021_v37 = vrot.slane %v6971_v44, 1  ;;  %10292 = vmatpush3.msra.mxu0 %v7089_v38 }
 0x60b   :  { %v6911_v26 = vpop.permute.xlu0 %6910  ;;  %v7018_v34 = vsel %vm324_vm3, %v7016_v24, %v7017_v0  ;;  %v7091_v27 = vmax.f32 %v7075_v10, 0.0 }
 0x60c   :  { %v7023_v13 = vsel %vm324_vm3, %v7021_v37, %v7022_v45  ;;  %v7072_v47 = vmax.f32 %v6968_v51, %v7018_v34  ;;  %v6975_v33 = vmax.f32 %v19218_v5, %v6911_v26 }
 0x60d   :  { %v7074_v8 = vmax.f32 %v6971_v44, %v7023_v13  ;;  %10298 = vmatprep.subr.mxu1 %v7091_v27  ;;  %v6913_v49 = vpop.permute.xlu1 %6912 }
 0x60e   :  { %v6976_v62 = vmax.f32 %v19219_v12, %v6913_v49  ;;  %10299 = vmatpush3.msra.mxu1 %v7091_v27  ;;  %v7088_v28 = vmax.f32 %v7072_v47, 0.0  ;;  %v7027_v18 = vrot.slane %v6975_v33, 1 }
 0x60f   :  { %v7090_v9 = vmax.f32 %v7074_v8, 0.0 }
 0x610   :  { %v7029_v4 = vrot.slane %v6976_v62, 1  ;;  %10293 = vmatprep.subr.mxu0 %v7088_v28 }
 0x611   :  { %10300 = vmatprep.subr.mxu1 %v7090_v9  ;;  %10294 = vmatpush3.msra.mxu0 %v7088_v28 }
 0x612   :  { %10301 = vmatpush3.msra.mxu1 %v7090_v9  ;;  %10296 = vmatmul.mubr.msk.f32.vlgmr.msra.gmra.mxu0 %vm5591_vm6, %v16960_v42  ;;  %v7030_v32 = vsel %vm324_vm3, %v7027_v18, %v7029_v4 }
 0x613   :  { %10303 = vmatmul.mubr.msk.f32.vlgmr.msra.gmra.mxu1 %vm5591_vm6, %v16960_v42  ;;  %v7077_v53 = vmax.f32 %v6975_v33, %v7030_v32  ;;  %10309 = vmatprep.mubr.msk.f32.mxu0 %vm5591_vm6, %v16970_v41 }
 0x614   :  { %10316 = vmatprep.mubr.msk.f32.mxu1 %vm5591_vm6, %v16970_v41 }
 0x615   :  { %v7093_v52 = vmax.f32 %v7077_v53, 0.0 }
 0x617   :  { %10305 = vmatprep.subr.mxu0 %v7093_v52 }
 0x618   :  { %10306 = vmatpush3.msra.mxu0 %v7093_v52 }
 0x61c   :  { %v6917_v6 = vpop.permute.xlu0 %6916 }
 0x61d   :  { %v6919_v23 = vpop.permute.xlu1 %6918  ;;  %v6978_v54 = vmax.f32 %v19220_v25, %v6917_v6 }
 0x61e   :  { %v6979_v0 = vmax.f32 %v19221_v63, %v6919_v23 }
 0x61f   :  { %v7032_v7 = vrot.slane %v6978_v54, 1 }
 0x620   :  { %v7034_v50 = vrot.slane %v6979_v0, 1 }
 0x622   :  { %v7035_v31 = vsel %vm324_vm3, %v7032_v7, %v7034_v50 }
 0x623   :  { %v7079_v2 = vmax.f32 %v6978_v54, %v7035_v31 }
 0x625   :  { %v7095_v46 = vmax.f32 %v7079_v2, 0.0 }
 0x627   :  { %10312 = vmatprep.subr.mxu1 %v7095_v46 }
 0x628   :  { %10313 = vmatpush3.msra.mxu1 %v7095_v46 }
 0x62c   :  { %v6909_v14 = vpop.permute.xlu0 %6908 }
 0x62d   :  { %v6974_v40 = vmax.f32 %v19222_v39, %v6909_v14 }
 0x62f   :  { %v7026_v48 = vrot.slane %v6974_v40, 1 }
 0x631   :  { %v7028_v21 = vsel %vm324_vm3, %v7026_v48, %v7027_v18 }
 0x632   :  { %v7076_v30 = vmax.f32 %v6974_v40, %v7028_v21 }
 0x634   :  { %v7092_v45 = vmax.f32 %v7076_v30, 0.0  ;;  %v17018_v30 = vpop.f32.mrf.mxu1 }
 0x636   :  { %10307 = vmatprep.subr.mxu0 %v7092_v45 }
 0x637   :  { %10308 = vmatpush3.msra.mxu0 %v7092_v45 }
 0x638   :  { %10310 = vmatmul.mubr.msk.f32.vlgmr.msra.gmra.mxu0 %vm5591_vm6, %v16960_v42 }
 0x639   :  { %v6915_v43 = vpop.permute.xlu1 %6914  ;;  %10323 = vmatprep.mubr.msk.f32.mxu0 %vm5591_vm6, %v16970_v41 }
 0x63a   :  { %v6977_v61 = vmax.f32 %v19223_v35, %v6915_v43 }
 0x63c   :  { %v7031_v16 = vrot.slane %v6977_v61, 1 }
 0x63e   :  { %v7033_v51 = vsel %vm324_vm3, %v7031_v16, %v7032_v7 }
 0x63f   :  { %v7078_v38 = vmax.f32 %v6977_v61, %v7033_v51 }
 0x641   :  { %v7094_v20 = vmax.f32 %v7078_v38, 0.0  ;;  %v17025_v38 = vpop.f32.mrf.mxu1 }
 0x643   :  { %10314 = vmatprep.subr.mxu1 %v7094_v20  ;;  %v6923_v36 = vpop.permute.xlu0 %6922 }
 0x644   :  { %10315 = vmatpush3.msra.mxu1 %v7094_v20  ;;  %v6981_v10 = vmax.f32 %v16738_v29, %v6923_v36 }
 0x645   :  { %v6925_v44 = vpop.permute.xlu1 %6924  ;;  %10317 = vmatmul.mubr.msk.f32.vlgmr.msra.gmra.mxu1 %vm5591_vm6, %v16960_v42 }
 0x646   :  { %v6982_v24 = vmax.f32 %v16743_v59, %v6925_v44  ;;  %10330 = vmatprep.mubr.msk.f32.mxu1 %vm5591_vm6, %v16970_v41  ;;  %v7037_v37 = vrot.slane %v6981_v10, 1 }
 0x648   :  { %v7039_v26 = vrot.slane %v6982_v24, 1 }
 0x64a   :  { %v7040_v34 = vsel %vm324_vm3, %v7037_v37, %v7039_v26 }
 0x64b   :  { %v7081_v27 = vmax.f32 %v6981_v10, %v7040_v34 }
 0x64d   :  { %v7097_v13 = vmax.f32 %v7081_v27, 0.0 }
 0x64f   :  { %10319 = vmatprep.subr.mxu0 %v7097_v13 }
 0x650   :  { %10320 = vmatpush3.msra.mxu0 %v7097_v13  ;;  %v6929_v47 = vpop.permute.xlu0 %6928 }
 0x651   :  { %v6931_v5 = vpop.permute.xlu1 %6930  ;;  %v6984_v33 = vmax.f32 %v16804_v19, %v6929_v47 }
 0x652   :  { %v6985_v8 = vmax.f32 %v16810_v58, %v6931_v5  ;;  %v17043_v5 = vpop.f32.mrf.mxu1 }
 0x653   :  { %v7042_v29 = vrot.slane %v6984_v33, 1 }
 0x654   :  { %v7044_v49 = vrot.slane %v6985_v8, 1 }
 0x656   :  { %v7045_v59 = vsel %vm324_vm3, %v7042_v29, %v7044_v49  ;;  %v17057_v49 = vpop.f32.mrf.mxu1 }
 0x657   :  { %v7083_v12 = vmax.f32 %v6984_v33, %v7045_v59 }
 0x659   :  { %v7099_v62 = vmax.f32 %v7083_v12, 0.0 }
 0x65a   :  { %v6921_v28 = vpop.permute.xlu0 %6920 }
 0x65b   :  { %v6980_v9 = vmax.f32 %v16847_v22, %v6921_v28  ;;  %10326 = vmatprep.subr.mxu1 %v7099_v62 }
 0x65c   :  { %10327 = vmatpush3.msra.mxu1 %v7099_v62  ;;  %v17066_v62 = vld [vmem:[%s17899_s2 + $0x28] sm:$0xff] }
 0x65d   :  { %v7036_v18 = vrot.slane %v6980_v9, 1 }
 0x65f   :  { %v7038_v4 = vsel %vm324_vm3, %v7036_v18, %v7037_v37 }
 0x660   :  { %v7080_v32 = vmax.f32 %v6980_v9, %v7038_v4  ;;  %v17081_v9 = vld [vmem:[%s17899_s2 + $0x20] sm:$0xff] }
 0x661   :  { %v6927_v52 = vpop.permute.xlu1 %6926 }
 0x662   :  { %v7096_v53 = vmax.f32 %v7080_v32, 0.0  ;;  %v6983_v19 = vmax.f32 %v16879_v57, %v6927_v52  ;;  %v17007_v57 = vpop.f32.mrf.mxu0 }
 0x664   :  { %10321 = vmatprep.subr.mxu0 %v7096_v53  ;;  %v7041_v58 = vrot.slane %v6983_v19, 1  ;;  %v17014_v40 = vpop.f32.mrf.mxu0 }
 0x665   :  { %10322 = vmatpush3.msra.mxu0 %v7096_v53  ;;  %v6935_v6 = vpop.permute.xlu0 %6934 }
 0x666   :  { %10324 = vmatmul.mubr.msk.f32.vlgmr.msra.gmra.mxu0 %vm5591_vm6, %v16960_v42  ;;  %v7043_v23 = vsel %vm324_vm3, %v7041_v58, %v7042_v29  ;;  %v6987_v25 = vmax.f32 %v16893_v3, %v6935_v6 }
 0x667   :  { %10337 = vmatprep.mubr.msk.f32.mxu0 %vm5591_vm6, %v16970_v41  ;;  %v7082_v22 = vmax.f32 %v6983_v19, %v7043_v23 }
 0x668   :  { %v7047_v7 = vrot.slane %v6987_v25, 1 }
 0x669   :  { %v6937_v54 = vpop.permute.xlu1 %6936  ;;  %v7098_v63 = vmax.f32 %v7082_v22, 0.0  ;;  %v17106_v22 = vpop.f32.mrf.mxu1 }
 0x66a   :  { %v6988_v0 = vmax.f32 %v16903_v11, %v6937_v54 }
 0x66b   :  { %10328 = vmatprep.subr.mxu1 %v7098_v63 }
 0x66c   :  { %v7049_v50 = vrot.slane %v6988_v0, 1  ;;  %10329 = vmatpush3.msra.mxu1 %v7098_v63  ;;  %v6941_v31 = vpop.permute.xlu0 %6940  ;;  %v17111_v0 = vpop.f32.mrf.mxu1 }
 0x66d   :  { %v6943_v2 = vpop.permute.xlu1 %6942  ;;  %10331 = vmatmul.mubr.msk.f32.vlgmr.msra.gmra.mxu1 %vm5591_vm6, %v16960_v42  ;;  %v6990_v46 = vmax.f32 %v16913_v15, %v6941_v31 }
 0x66e   :  { %v7050_v14 = vsel %vm324_vm3, %v7047_v7, %v7049_v50  ;;  %v6991_v3 = vmax.f32 %v16916_v55, %v6943_v2  ;;  %10344 = vmatprep.mubr.msk.f32.mxu1 %vm5591_vm6, %v16970_v41  ;;  %v17023_v55 = vpop.f32.mrf.mxu0 }
 0x66f   :  { %v7085_v39 = vmax.f32 %v6987_v25, %v7050_v14  ;;  %v7052_v11 = vrot.slane %v6990_v46, 1 }
 0x670   :  { %v7054_v48 = vrot.slane %v6991_v3, 1  ;;  %v6933_v21 = vpop.permute.xlu0 %6932  ;;  %v17033_v24 = vpop.f32.mrf.mxu0 }
 0x671   :  { %v7101_v45 = vmax.f32 %v7085_v39, 0.0  ;;  %v6939_v43 = vpop.permute.xlu1 %6938  ;;  %v6986_v35 = vmax.f32 %v16925_v60, %v6933_v21 }
 0x672   :  { %v7055_v15 = vsel %vm324_vm3, %v7052_v11, %v7054_v48  ;;  %v6989_v61 = vmax.f32 %v16933_v1, %v6939_v43  ;;  %v17084_v18 = vpop.f32.mrf.mxu0 }
 0x673   :  { %10333 = vmatprep.subr.mxu0 %v7101_v45  ;;  %v7087_v16 = vmax.f32 %v6990_v46, %v7055_v15  ;;  %v7046_v51 = vrot.slane %v6986_v35, 1 }
 0x674   :  { %10334 = vmatpush3.msra.mxu0 %v7101_v45  ;;  %v7051_v41 = vrot.slane %v6989_v61, 1  ;;  %v17045_v33 = vpop.permute.xlu0 %8591  ;;  %v17094_v52 = vpop.f32.mrf.mxu0 }
 0x675   :  { %v7103_v20 = vmax.f32 %v7087_v16, 0.0  ;;  %v7048_v36 = vsel %vm324_vm3, %v7046_v51, %v7047_v7  ;;  %v17028_v44 = vpop.permute.xlu1 %8487  ;;  %v8597_v59 = vmul.f32 %v17018_v30, %v17045_v33  ;;  %v8596_v12 = vmul.f32 %v17045_v33, %v17025_v38 }
 0x676   :  { %v7053_v60 = vsel %vm324_vm3, %v7051_v41, %v7052_v11  ;;  %v7084_v10 = vmax.f32 %v6986_v35, %v7048_v36  ;;  %v8493_v1 = vmul.f32 %v17018_v30, %v17028_v44  ;;  %v8492_v26 = vmul.f32 %v17028_v44, %v17025_v38  ;;  %v17130_v48 = vpop.f32.mrf.mxu0  ;;  %v17147_v36 = vpop.f32.mrf.mxu1 }
 0x677   :  { %v7086_v37 = vmax.f32 %v6989_v61, %v7053_v60  ;;  %10340 = vmatprep.subr.mxu1 %v7103_v20  ;;  %v8495_v27 = vmul.f32 %v17023_v55, %v17028_v44  ;;  %v8494_v47 = vmul.f32 %v17028_v44, %v17033_v24  ;;  %v8491_v8 = vmul.f32 %v17007_v57, %v17028_v44 }
 0x678   :  { %v7100_v34 = vmax.f32 %v7084_v10, 0.0  ;;  %8528 = vrot.lane.b32.xlu1 %v8493_v1, %s10633_s0  ;;  %10341 = vmatpush3.msra.mxu1 %v7103_v20  ;;  %v8490_v29 = vmul.f32 %v17028_v44, %v17014_v40  ;;  %v8496_v28 = vmul.f32 %v17028_v44, %v17057_v49  ;;  %v8630_v4 = vrot.slane %v8597_v59, 1  ;;  %v17139_v61 = vpop.f32.mrf.mxu0 }
 0x679   :  { %v7102_v13 = vmax.f32 %v7086_v37, 0.0  ;;  %8526 = vrot.lane.b32.xlu0 %v8492_v26, %s10633_s0  ;;  %v8629_v32 = vrot.slane %v8596_v12, 1  ;;  %v8599_v19 = vmul.f32 %v17023_v55, %v17045_v33  ;;  %v8598_v58 = vmul.f32 %v17045_v33, %v17033_v24  ;;  %v17156_v37 = vpop.f32.mrf.mxu1 }
 0x67a   :  { %10335 = vmatprep.subr.mxu0 %v7100_v34  ;;  %v8499_v6 = vmul.f32 %v17084_v18, %v17028_v44  ;;  %v8498_v23 = vmul.f32 %v17028_v44, %v17094_v52  ;;  %v8595_v7 = vmul.f32 %v17007_v57, %v17045_v33  ;;  %v8594_v50 = vmul.f32 %v17045_v33, %v17014_v40 }
 0x67b   :  { %10342 = vmatprep.subr.mxu1 %v7102_v13  ;;  %10336 = vmatpush3.msra.mxu0 %v7100_v34  ;;  %v8631_v53 = vsel %vm324_vm3, %v8629_v32, %v8630_v4  ;;  %v8633_v25 = vrot.slane %v8599_v19, 1  ;;  %v8632_v54 = vrot.slane %v8598_v58, 1  ;;  %v8501_v31 = vmul.f32 %v17106_v22, %v17028_v44 }
 0x67c   :  { %8532 = vrot.lane.b32.xlu1 %v8495_v27, %s10633_s0  ;;  %10343 = vmatpush3.msra.mxu1 %v7102_v13  ;;  %v8500_v2 = vmul.f32 %v17028_v44, %v17111_v0  ;;  %v8627_v46 = vrot.slane %v8595_v7, 1  ;;  %v8626_v14 = vrot.slane %v8594_v50, 1  ;;  %v8601_v3 = vmul.f32 %v17043_v5, %v17045_v33 }
 0x67d   :  { %8530 = vrot.lane.b32.xlu0 %v8494_v47, %s10633_s0  ;;  %10338 = vmatmul.mubr.msk.f32.vlgmr.msra.gmra.mxu0 %vm5591_vm6, %v16960_v42  ;;  %v8634_v63 = vsel %vm324_vm3, %v8632_v54, %v8633_v25  ;;  %v8600_v39 = vmul.f32 %v17045_v33, %v17057_v49  ;;  %v8603_v43 = vmul.f32 %v17084_v18, %v17045_v33 }
 0x67e   :  { %10345 = vmatmul.mubr.msk.f32.vlgmr.msra.gmra.mxu1 %vm5591_vm6, %v16960_v42  ;;  %10347 = vmatprep.subr.mxu0 %v17066_v62  ;;  %v8497_v42 = vmul.f32 %v17043_v5, %v17028_v44  ;;  %v8628_v11 = vsel %vm324_vm3, %v8626_v14, %v8627_v46  ;;  %v8636_v21 = vrot.slane %v8601_v3, 1  ;;  %v8602_v35 = vmul.f32 %v17045_v33, %v17094_v52 }
 0x67f   :  { %10354 = vmatprep.subr.mxu1 %v17066_v62  ;;  %10348 = vmatpush3.msra.mxu0 %v17066_v62  ;;  %v8635_v45 = vrot.slane %v8600_v39, 1  ;;  %v8503_v16 = vmul.f32 %v17130_v48, %v17028_v44  ;;  %v8502_v51 = vmul.f32 %v17028_v44, %v17139_v61  ;;  %v8639_v41 = vrot.slane %v8603_v43, 1 }
 0x680   :  { %8524 = vrot.lane.b32.xlu1 %v8491_v8, %s10633_s0  ;;  %10355 = vmatpush3.msra.mxu1 %v17066_v62  ;;  %v8638_v20 = vrot.slane %v8602_v35, 1  ;;  %v8605_v60 = vmul.f32 %v17106_v22, %v17045_v33  ;;  %v8604_v10 = vmul.f32 %v17045_v33, %v17111_v0  ;;  %v8505_v26 = vmul.f32 %v17147_v36, %v17028_v44 }
 0x681   :  { %8522 = vrot.lane.b32.xlu0 %v8490_v29, %s10633_s0  ;;  %10349 = vmatprep.subr.mxu0 %v17081_v9  ;;  %v8637_v15 = vsel %vm324_vm3, %v8635_v45, %v8636_v21  ;;  %v8607_v34 = vmul.f32 %v17130_v48, %v17045_v33  ;;  %v8504_v27 = vmul.f32 %v17028_v44, %v17156_v37 }
 0x682   :  { %10356 = vmatprep.subr.mxu1 %v17081_v9  ;;  %10350 = vmatpush3.msra.mxu0 %v17081_v9  ;;  %v8640_v1 = vsel %vm324_vm3, %v8638_v20, %v8639_v41  ;;  %v8642_v13 = vrot.slane %v8605_v60, 1  ;;  %v8641_v47 = vrot.slane %v8604_v10, 1  ;;  %v8606_v8 = vmul.f32 %v17045_v33, %v17139_v61 }
 0x683   :  { %10357 = vmatpush3.msra.mxu1 %v17081_v9  ;;  %10361 = vmatprep.subr.mxu0 %v17066_v62  ;;  %v8645_v29 = vrot.slane %v8607_v34, 1  ;;  %v8609_v12 = vmul.f32 %v17147_v36, %v17045_v33 }
 0x684   :  { %8536 = vrot.lane.b32.xlu1 %v8497_v42, %s10633_s0  ;;  %10368 = vmatprep.subr.mxu1 %v17066_v62  ;;  %v8644_v59 = vrot.slane %v8606_v8, 1  ;;  %v8608_v42 = vmul.f32 %v17045_v33, %v17156_v37 }
 0x685   :  { %8534 = vrot.lane.b32.xlu0 %v8496_v28, %s10633_s0  ;;  %v8643_v28 = vsel %vm324_vm3, %v8641_v47, %v8642_v13  ;;  %v8648_v44 = vrot.slane %v8609_v12, 1 }
 0x686   :  { %v8646_v32 = vsel %vm324_vm3, %v8644_v59, %v8645_v29 }
 0x688   :  { %8656 = vrot.lane.b32.xlu1 %v8630_v4, %s10633_s0  ;;  %v8647_v4 = vrot.slane %v8608_v42, 1 }
 0x689   :  { %8654 = vrot.lane.b32.xlu0 %v8631_v53, %s10633_s0 }
 0x68a   :  { %v8649_v53 = vsel %vm324_vm3, %v8647_v4, %v8648_v44 }
 0x68c   :  { %8540 = vrot.lane.b32.xlu1 %v8499_v6, %s10633_s0 }
 0x68d   :  { %8538 = vrot.lane.b32.xlu0 %v8498_v23, %s10633_s0  ;;  %v17195_v23 = vpop.permute.xlu1 %8847 }
 0x690   :  { %8660 = vrot.lane.b32.xlu1 %v8633_v25, %s10633_s0  ;;  %v17197_v25 = vpop.permute.xlu0 %8951 }
 0x691   :  { %8658 = vrot.lane.b32.xlu0 %v8634_v63, %s10633_s0  ;;  %v8392_v63 = vsub.s32 2, %v16910_v56 }
 0x694   :  { %8544 = vrot.lane.b32.xlu1 %v8501_v31, %s10633_s0  ;;  %v17205_v31 = vrot.slane %v16930_v17, %v8392_v63 }
 0x695   :  { %8542 = vrot.lane.b32.xlu0 %v8500_v2, %s10633_s0 }
 0x696   :  { %v8398_v14 = vmul.f32 %v17205_v31, %v17033_v24  ;;  %v8399_v3 = vmul.f32 %v17023_v55, %v17205_v31  ;;  %v8394_v60 = vmul.f32 %v17205_v31, %v17014_v40  ;;  %v8395_v34 = vmul.f32 %v17007_v57, %v17205_v31 }
 0x697   :  { %v8400_v47 = vmul.f32 %v17205_v31, %v17057_v49  ;;  %v8401_v59 = vmul.f32 %v17043_v5, %v17205_v31 }
 0x698   :  { %8652 = vrot.lane.b32.xlu1 %v8627_v46, %s10633_s0  ;;  %v8356_v46 = vsub.s32 0, %v16910_v56  ;;  %v8432_v45 = vrot.slane %v8398_v14, 1  ;;  %v8433_v43 = vrot.slane %v8399_v3, 1  ;;  %v8402_v14 = vmul.f32 %v17205_v31, %v17094_v52 }
 0x699   :  { %8650 = vrot.lane.b32.xlu0 %v8628_v11, %s10633_s0 }
 0x69a   :  { %v8434_v20 = vsel %vm324_vm3, %v8432_v45, %v8433_v43  ;;  %v8403_v45 = vmul.f32 %v17084_v18, %v17205_v31 }
 0x69c   :  { %8664 = vrot.lane.b32.xlu1 %v8636_v21, %s10633_s0  ;;  %v17213_v21 = vrot.slane %v16930_v17, %v8356_v46 }
 0x69d   :  { %8662 = vrot.lane.b32.xlu0 %v8637_v15, %s10633_s0 }
 0x69e   :  { %v8363_v15 = vmul.f32 %v17023_v55, %v17213_v21 }
 0x6a0   :  { %8548 = vrot.lane.b32.xlu1 %v8503_v16, %s10633_s0 }
 0x6a1   :  { %8546 = vrot.lane.b32.xlu0 %v8502_v51, %s10633_s0  ;;  %v8362_v51 = vmul.f32 %v17213_v21, %v17033_v24  ;;  %v8426_v24 = vrot.slane %v8394_v60, 1  ;;  %v8438_v60 = vrot.slane %v8402_v14, 1 }
 0x6a3   :  { %v8470_v55 = vadd.f32 %v8434_v20, %v8362_v51 }
 0x6a4   :  { %8668 = vrot.lane.b32.xlu1 %v8639_v41, %s10633_s0 }
 0x6a5   :  { %8666 = vrot.lane.b32.xlu0 %v8640_v1, %s10633_s0 }
 0x6a8   :  { %8552 = vrot.lane.b32.xlu1 %v8505_v26, %s10633_s0  ;;  %v8471_v26 = vadd.f32 %v8433_v43, %v8363_v15 }
 0x6a9   :  { %8550 = vrot.lane.b32.xlu0 %v8504_v27, %s10633_s0 }
 0x6ac   :  { %8672 = vrot.lane.b32.xlu1 %v8642_v13, %s10633_s0 }
 0x6ad   :  { %8670 = vrot.lane.b32.xlu0 %v8643_v28, %s10633_s0  ;;  %v8359_v28 = vmul.f32 %v17007_v57, %v17213_v21  ;;  %v8364_v57 = vmul.f32 %v17213_v21, %v17057_v49 }
 0x6b0   :  { %8676 = vrot.lane.b32.xlu1 %v8645_v29, %s10633_s0  ;;  %v8427_v29 = vrot.slane %v8395_v34, 1 }
 0x6b1   :  { %8674 = vrot.lane.b32.xlu0 %v8646_v32, %s10633_s0  ;;  %v8435_v32 = vrot.slane %v8400_v47, 1  ;;  %v8366_v47 = vmul.f32 %v17213_v21, %v17094_v52  ;;  %v8406_v52 = vmul.f32 %v17205_v31, %v17139_v61 }
 0x6b2   :  { %v8467_v63 = vadd.f32 %v8427_v29, %v8359_v28 }
 0x6b3   :  { %v8444_v14 = vrot.slane %v8406_v52, 1 }
 0x6b4   :  { %8680 = vrot.lane.b32.xlu1 %v8648_v44, %s10633_s0  ;;  %v8358_v44 = vmul.f32 %v17213_v21, %v17014_v40 }
 0x6b5   :  { %8678 = vrot.lane.b32.xlu0 %v8649_v53, %s10633_s0  ;;  %v8428_v53 = vsel %vm324_vm3, %v8426_v24, %v8427_v29  ;;  %v8367_v24 = vmul.f32 %v17084_v18, %v17213_v21  ;;  %v8404_v29 = vmul.f32 %v17205_v31, %v17111_v0 }
 0x6b6   :  { %v8466_v46 = vadd.f32 %v8428_v53, %v8358_v44 }
 0x6d2   :  { %v10297_v33 = vpop.f32.mrf.mxu0 }
 0x6d3   :  { %v10304_v19 = vpop.f32.mrf.mxu1 }
 0x6d4   :  { %v7170_v58 = vpop.f32.mrf.mxu0 }
 0x6d5   :  { %v7245_v6 = vpop.f32.mrf.mxu1  ;;  %10351 = vmatprep.mubr.msk.f32.mxu0 %vm5591_vm6, %v7170_v58 }
 0x6d6   :  { %10358 = vmatprep.mubr.msk.f32.mxu1 %vm5591_vm6, %v7245_v6  ;;  %10352 = vmatmul.mubr.msk.f32.vlgmr.msra.gmra.mxu0 %vm5591_vm6, %v10297_v33  ;;  %v8436_v33 = vrot.slane %v8401_v59, 1 }
 0x6d7   :  { %10359 = vmatmul.mubr.msk.f32.vlgmr.msra.gmra.mxu1 %vm5591_vm6, %v10304_v19  ;;  %10362 = vmatpush3.msra.mxu0 %v17066_v62 }
 0x6d8   :  { %10363 = vmatprep.subr.mxu0 %v17081_v9  ;;  %10369 = vmatpush3.msra.mxu1 %v17066_v62  ;;  %v8437_v3 = vsel %vm324_vm3, %v8435_v32, %v8436_v33  ;;  %v8441_v32 = vrot.slane %v8404_v29, 1 }
 0x6d9   :  { %10364 = vmatpush3.msra.mxu0 %v17081_v9  ;;  %10370 = vmatprep.subr.mxu1 %v17081_v9  ;;  %v8472_v20 = vadd.f32 %v8437_v3, %v8364_v57 }
 0x6da   :  { %10371 = vmatpush3.msra.mxu1 %v17081_v9  ;;  %10375 = vmatprep.subr.mxu0 %v17066_v62 }
 0x6db   :  { %10382 = vmatprep.subr.mxu1 %v17066_v62 }
 0x6ea   :  { %v17199_v54 = vpop.permute.xlu1 %8528 }
 0x6eb   :  { %v17202_v7 = vpop.permute.xlu0 %8526 }
 0x6ee   :  { %v8533_v50 = vpop.permute.xlu1 %8532 }
 0x6ef   :  { %v8531_v2 = vpop.permute.xlu0 %8530  ;;  %v8575_v8 = vadd.f32 %v8533_v50, %v8471_v26  ;;  %v8365_v50 = vmul.f32 %v17043_v5, %v17213_v21 }
 0x6f0   :  { %v8574_v42 = vadd.f32 %v8531_v2, %v8470_v55 }
 0x6f1   :  { %v8473_v5 = vadd.f32 %v8436_v33, %v8365_v50  ;;  %v8407_v33 = vmul.f32 %v17130_v48, %v17205_v31  ;;  %v8369_v50 = vmul.f32 %v17106_v22, %v17213_v21 }
 0x6f2   :  { %v8525_v39 = vpop.permute.xlu1 %8524 }
 0x6f3   :  { %v8523_v11 = vpop.permute.xlu0 %8522  ;;  %v8571_v51 = vadd.f32 %v8525_v39, %v8467_v63 }
 0x6f6   :  { %v8537_v35 = vpop.permute.xlu1 %8536 }
 0x6f7   :  { %v17217_v16 = vpop.permute.xlu0 %8534  ;;  %v8577_v39 = vadd.f32 %v8537_v35, %v8473_v5 }
 0x6f8   :  { %v10311_v41 = vpop.f32.mrf.mxu0 }
 0x6fa   :  { %v17224_v10 = vpop.permute.xlu1 %8656  ;;  %v7320_v1 = vpop.f32.mrf.mxu0 }
 0x6fb   :  { %v17228_v27 = vpop.permute.xlu0 %8654  ;;  %10365 = vmatprep.mubr.msk.f32.mxu0 %vm5591_vm6, %v7320_v1  ;;  %v8439_v1 = vrot.slane %v8403_v45, 1  ;;  %v8445_v45 = vrot.slane %v8407_v33, 1 }
 0x6fc   :  { %10366 = vmatmul.mubr.msk.f32.vlgmr.msra.gmra.mxu0 %vm5591_vm6, %v10311_v41  ;;  %v8570_v41 = vadd.f32 %v8523_v11, %v8466_v46  ;;  %v8576_v11 = vadd.f32 %v17217_v16, %v8472_v20  ;;  %v8368_v46 = vmul.f32 %v17213_v21, %v17111_v0 }
 0x6fd   :  { %10376 = vmatpush3.msra.mxu0 %v17066_v62  ;;  %v8440_v59 = vsel %vm324_vm3, %v8438_v60, %v8439_v1  ;;  %v8475_v44 = vadd.f32 %v8439_v1, %v8367_v24  ;;  %v8446_v0 = vsel %vm324_vm3, %v8444_v14, %v8445_v45  ;;  %v8752_v14 = vsub.s32 6, %v16910_v56 }
 0x6fe   :  { %v17233_v13 = vpop.permute.xlu1 %8540  ;;  %10377 = vmatprep.subr.mxu0 %v17081_v9 }
 0x6ff   :  { %v8539_v12 = vpop.permute.xlu0 %8538  ;;  %10378 = vmatpush3.msra.mxu0 %v17081_v9  ;;  %v8579_v63 = vadd.f32 %v17233_v13, %v8475_v44  ;;  %v8371_v13 = vmul.f32 %v17130_v48, %v17213_v21 }
 0x700   :  { %10389 = vmatprep.subr.mxu0 %v17066_v62 }
 0x701   :  { %v8479_v1 = vadd.f32 %v8445_v45, %v8371_v13 }
 0x702   :  { %v8661_v4 = vpop.permute.xlu1 %8660 }
 0x703   :  { %v17247_v19 = vadd.f32 %v8661_v4, %v8575_v8  ;;  %v8659_v58 = vpop.permute.xlu0 %8658  ;;  %v8474_v4 = vadd.f32 %v8440_v59, %v8366_v47 }
 0x704   :  { %v17249_v6 = vadd.f32 %v8659_v58, %v8574_v42  ;;  %v8405_v42 = vmul.f32 %v17106_v22, %v17205_v31  ;;  %v8370_v22 = vmul.f32 %v17213_v21, %v17139_v61 }
 0x705   :  { %v10318_v2 = vpop.f32.mrf.mxu1 }
 0x706   :  { %v8545_v40 = vpop.permute.xlu1 %8544  ;;  %v8442_v53 = vrot.slane %v8405_v42, 1 }
 0x707   :  { %v8543_v43 = vpop.permute.xlu0 %8542  ;;  %v7395_v15 = vpop.f32.mrf.mxu1 }
 0x708   :  { %10372 = vmatprep.mubr.msk.f32.mxu1 %vm5591_vm6, %v7395_v15  ;;  %v8443_v3 = vsel %vm324_vm3, %v8441_v32, %v8442_v53 }
 0x709   :  { %10373 = vmatmul.mubr.msk.f32.vlgmr.msra.gmra.mxu1 %vm5591_vm6, %v10318_v2  ;;  %v8578_v2 = vadd.f32 %v8539_v12, %v8474_v4  ;;  %v8476_v20 = vadd.f32 %v8443_v3, %v8368_v46 }
 0x70a   :  { %v8653_v49 = vpop.permute.xlu1 %8652  ;;  %10383 = vmatpush3.msra.mxu1 %v17066_v62 }
 0x70b   :  { %v17263_v26 = vadd.f32 %v8653_v49, %v8571_v51  ;;  %v8651_v34 = vpop.permute.xlu0 %8650  ;;  %10384 = vmatprep.subr.mxu1 %v17081_v9 }
 0x70c   :  { %v17266_v55 = vadd.f32 %v8651_v34, %v8570_v41  ;;  %10385 = vmatpush3.msra.mxu1 %v17081_v9  ;;  %v8477_v41 = vadd.f32 %v8442_v53, %v8369_v50  ;;  %v8580_v34 = vadd.f32 %v8543_v43, %v8476_v20  ;;  %v19224_v43 = vmov 0.0  }
 0x70d   :  { %10396 = vmatprep.subr.mxu1 %v17066_v62  ;;  %v8361_v50 = vmul.f32 %v17018_v30, %v17213_v21 }
 0x70e   :  { %v8665_v8 = vpop.permute.xlu1 %8664  ;;  %v8581_v60 = vadd.f32 %v8545_v40, %v8477_v41  ;;  %v17346_v41 = vrot.slane %v16930_v17, %v8752_v14 }
 0x70f   :  { %v17280_v35 = vadd.f32 %v8665_v8, %v8577_v39  ;;  %v8663_v28 = vpop.permute.xlu0 %8662  ;;  %v8478_v39 = vadd.f32 %v8446_v0, %v8370_v22 }
 0x710   :  { %v17282_v18 = vadd.f32 %v8663_v28, %v8576_v11 }
 0x712   :  { %v8549_v16 = vpop.permute.xlu1 %8548 }
 0x713   :  { %v8547_v58 = vpop.permute.xlu0 %8546  ;;  %v8583_v48 = vadd.f32 %v8549_v16, %v8479_v1 }
 0x714   :  { %v8582_v29 = vadd.f32 %v8547_v58, %v8478_v39 }
 0x716   :  { %v8669_v57 = vpop.permute.xlu1 %8668 }
 0x717   :  { %v17294_v15 = vadd.f32 %v8669_v57, %v8579_v63  ;;  %v8667_v51 = vpop.permute.xlu0 %8666  ;;  %v8716_v57 = vsub.s32 4, %v16910_v56 }
 0x718   :  { %v17296_v5 = vadd.f32 %v8667_v51, %v8578_v2  ;;  %v8360_v2 = vmul.f32 %v17213_v21, %v17025_v38 }
 0x719   :  { %v17343_v51 = vrot.slane %v16930_v17, %v8716_v57 }
 0x71a   :  { %v17302_v12 = vpop.permute.xlu1 %8552 }
 0x71b   :  { %v17305_v49 = vpop.permute.xlu0 %8550 }
 0x71e   :  { %v8673_v24 = vpop.permute.xlu1 %8672 }
 0x71f   :  { %v17307_v11 = vadd.f32 %v8673_v24, %v8581_v60  ;;  %v8671_v47 = vpop.permute.xlu0 %8670 }
 0x720   :  { %v17309_v8 = vadd.f32 %v8671_v47, %v8580_v34 }
 0x722   :  { %v8677_v59 = vpop.permute.xlu1 %8676 }
 0x723   :  { %v17311_v61 = vadd.f32 %v8677_v59, %v8583_v48  ;;  %v8675_v42 = vpop.permute.xlu0 %8674 }
 0x724   :  { %v17313_v28 = vadd.f32 %v8675_v42, %v8582_v29 }
 0x726   :  { %v10325_v44 = vpop.f32.mrf.mxu0 }
 0x728   :  { %v7470_v4 = vpop.f32.mrf.mxu0 }
 0x729   :  { %10379 = vmatprep.mubr.msk.f32.mxu0 %vm5591_vm6, %v7470_v4 }
 0x72a   :  { %10380 = vmatmul.mubr.msk.f32.vlgmr.msra.gmra.mxu0 %vm5591_vm6, %v10325_v44 }
 0x72b   :  { %10390 = vmatpush3.msra.mxu0 %v17066_v62 }
 0x72c   :  { %10391 = vmatprep.subr.mxu0 %v17081_v9 }
 0x72d   :  { %10392 = vmatpush3.msra.mxu0 %v17081_v9  ;;  %v10332_v40 = vpop.f32.mrf.mxu1 }
 0x72e   :  { %10403 = vmatprep.subr.mxu0 %v19224_v43 }
 0x72f   :  { %v7545_v16 = vpop.f32.mrf.mxu1 }
 0x730   :  { %10386 = vmatprep.mubr.msk.f32.mxu1 %vm5591_vm6, %v7545_v16 }
 0x731   :  { %10387 = vmatmul.mubr.msk.f32.vlgmr.msra.gmra.mxu1 %vm5591_vm6, %v10332_v40 }
 0x732   :  { %10397 = vmatpush3.msra.mxu1 %v17066_v62  ;;  %v8396_v62 = vmul.f32 %v17205_v31, %v17025_v38 }
 0x733   :  { %10398 = vmatprep.subr.mxu1 %v17081_v9 }
 0x734   :  { %10399 = vmatpush3.msra.mxu1 %v17081_v9  ;;  %v8397_v9 = vmul.f32 %v17018_v30, %v17205_v31  ;;  %v8429_v58 = vrot.slane %v8396_v62, 1 }
 0x735   :  { %10416 = vmatprep.subr.mxu1 %v19224_v43 }
 0x736   :  { %v8430_v63 = vrot.slane %v8397_v9, 1 }
 0x738   :  { %v8431_v46 = vsel %vm324_vm3, %v8429_v58, %v8430_v63  ;;  %v8469_v3 = vadd.f32 %v8430_v63, %v8361_v50 }
 0x739   :  { %v8468_v45 = vadd.f32 %v8431_v46, %v8360_v2 }
 0x73a   :  { %v8573_v13 = vadd.f32 %v17199_v54, %v8469_v3 }
 0x73b   :  { %v8572_v30 = vadd.f32 %v17202_v7, %v8468_v45 }
 0x73c   :  { %v8701_v56 = vadd.f32 %v17224_v10, %v8573_v13 }
 0x73d   :  { %v10339_v32 = vpop.f32.mrf.mxu0  ;;  %v8700_v1 = vadd.f32 %v17228_v27, %v8572_v30 }
 0x73e   :  { %v10346_v52 = vpop.f32.mrf.mxu1 }
 0x73f   :  { %v7620_v53 = vpop.f32.mrf.mxu0 }
 0x740   :  { %v7695_v33 = vpop.f32.mrf.mxu1  ;;  %10393 = vmatprep.mubr.msk.f32.mxu0 %vm5591_vm6, %v7620_v53 }
 0x741   :  { %10400 = vmatprep.mubr.msk.f32.mxu1 %vm5591_vm6, %v7695_v33  ;;  %10394 = vmatmul.mubr.msk.f32.vlgmr.msra.gmra.mxu0 %vm5591_vm6, %v10339_v32 }
 0x742   :  { %10401 = vmatmul.mubr.msk.f32.vlgmr.msra.gmra.mxu1 %vm5591_vm6, %v10346_v52  ;;  %10413 = vmatprep.mubr.msk.f32.mxu0 %vm10637_vm7, %v19224_v43 }
 0x743   :  { %10426 = vmatprep.mubr.msk.f32.mxu1 %vm10637_vm7, %v19224_v43 }
 0x796   :  { %v17365_v27 = vpop.f32.mrf.mxu0 }
 0x797   :  { %v10360_v20 = vpop.f32.mrf.mxu1  ;;  %v8719_v42 = vmul.f32 %v17365_v27, %v17343_v51  ;;  %v8755_v32 = vmul.f32 %v17365_v27, %v17346_v41  ;;  %v8851_v46 = vmul.f32 %v17365_v27, %v17195_v23 }
 0x798   :  { %v8721_v38 = vmul.f32 %v10360_v20, %v17343_v51  ;;  %v8853_v22 = vmul.f32 %v10360_v20, %v17195_v23  ;;  %v8757_v0 = vmul.f32 %v10360_v20, %v17346_v41  ;;  %v17367_v59 = vpop.f32.mrf.mxu0 }
 0x799   :  { %v7857_v60 = vpop.f32.mrf.mxu1  ;;  %v8754_v44 = vmul.f32 %v17346_v41, %v17367_v59  ;;  %v8718_v4 = vmul.f32 %v17343_v51, %v17367_v59  ;;  %v8735_v16 = vadd.f32 %v8719_v42, %v17263_v26  ;;  %v8787_v52 = vrot.slane %v8755_v32, 1 }
 0x79a   :  { %v8720_v34 = vmul.f32 %v17343_v51, %v7857_v60  ;;  %v8756_v17 = vmul.f32 %v17346_v41, %v7857_v60  ;;  %8888 = vrot.lane.b32.xlu1 %v8853_v22, %s10633_s0  ;;  %v8852_v54 = vmul.f32 %v17195_v23, %v7857_v60  ;;  %v8737_v7 = vadd.f32 %v8721_v38, %v8701_v56 }
 0x79b   :  { %v8790_v24 = vrot.slane %v8757_v0, 1  ;;  %v8786_v40 = vrot.slane %v8754_v44, 1  ;;  %v8734_v53 = vadd.f32 %v8718_v4, %v17266_v55  ;;  %v17379_v33 = vadd.f32 %v8787_v52, %v8735_v16 }
 0x79c   :  { %v8789_v39 = vrot.slane %v8756_v17, 1  ;;  %v8736_v47 = vadd.f32 %v8720_v34, %v8700_v1  ;;  %8886 = vrot.lane.b32.xlu0 %v8852_v54, %s10633_s0  ;;  %v8850_v13 = vmul.f32 %v17195_v23, %v17367_v59  ;;  %v8956_v1 = vmul.f32 %v17197_v25, %v7857_v60 }
 0x79d   :  { %v17360_v48 = vadd.f32 %v8790_v24, %v8737_v7  ;;  %v8788_v62 = vsel %vm324_vm3, %v8786_v40, %v8787_v52 }
 0x79e   :  { %v8791_v10 = vsel %vm324_vm3, %v8789_v39, %v8790_v24  ;;  %v17382_v9 = vadd.f32 %v8788_v62, %v8734_v53  ;;  %v8989_v39 = vrot.slane %v8956_v1, 1 }
 0x79f   :  { %v17363_v29 = vadd.f32 %v8791_v10, %v8736_v47 }
 0x7bc   :  { %v10367_v58 = vpop.f32.mrf.mxu0 }
 0x7bd   :  { %v8723_v63 = vmul.f32 %v10367_v58, %v17343_v51  ;;  %v8855_v50 = vmul.f32 %v10367_v58, %v17195_v23  ;;  %v8759_v2 = vmul.f32 %v10367_v58, %v17346_v41 }
 0x7be   :  { %v7938_v26 = vpop.f32.mrf.mxu0 }
 0x7bf   :  { %v8722_v57 = vmul.f32 %v17343_v51, %v7938_v26  ;;  %v8758_v55 = vmul.f32 %v17346_v41, %v7938_v26  ;;  %v8854_v14 = vmul.f32 %v17195_v23, %v7938_v26  ;;  %8892 = vrot.lane.b32.xlu1 %v8855_v50, %s10633_s0  ;;  %v8739_v3 = vadd.f32 %v8723_v63, %v17247_v19 }
 0x7c0   :  { %v8793_v45 = vrot.slane %v8759_v2, 1  ;;  %v8957_v19 = vmul.f32 %v10360_v20, %v17197_v25  ;;  %v8958_v53 = vmul.f32 %v17197_v25, %v7938_v26 }
 0x7c1   :  { %v8792_v30 = vrot.slane %v8758_v55, 1  ;;  %8890 = vrot.lane.b32.xlu0 %v8854_v14, %s10633_s0  ;;  %v8738_v38 = vadd.f32 %v8722_v57, %v17249_v6 }
 0x7c2   :  { %v17398_v22 = vadd.f32 %v8793_v45, %v8739_v3  ;;  %v8990_v7 = vrot.slane %v8957_v19, 1  ;;  %v8992_v55 = vrot.slane %v8958_v53, 1 }
 0x7c3   :  { %8884 = vrot.lane.b32.xlu1 %v8851_v46, %s10633_s0  ;;  %v8794_v0 = vsel %vm324_vm3, %v8792_v30, %v8793_v45  ;;  %v8955_v30 = vmul.f32 %v17365_v27, %v17197_v25 }
 0x7c4   :  { %v17402_v56 = vadd.f32 %v8794_v0, %v8738_v38  ;;  %v8991_v40 = vsel %vm324_vm3, %v8989_v39, %v8990_v7  ;;  %v8954_v0 = vmul.f32 %v17197_v25, %v17367_v59 }
 0x7c5   :  { %8882 = vrot.lane.b32.xlu0 %v8850_v13, %s10633_s0 }
 0x7c9   :  { %v10374_v34 = vpop.f32.mrf.mxu1 }
 0x7ca   :  { %v8725_v17 = vmul.f32 %v10374_v34, %v17343_v51  ;;  %v8857_v54 = vmul.f32 %v10374_v34, %v17195_v23  ;;  %v8761_v6 = vmul.f32 %v10374_v34, %v17346_v41 }
 0x7cb   :  { %v8019_v24 = vpop.f32.mrf.mxu1 }
 0x7cc   :  { %v8724_v47 = vmul.f32 %v17343_v51, %v8019_v24  ;;  %v8760_v10 = vmul.f32 %v17346_v41, %v8019_v24  ;;  %v8856_v42 = vmul.f32 %v17195_v23, %v8019_v24  ;;  %8896 = vrot.lane.b32.xlu1 %v8857_v54, %s10633_s0  ;;  %v8741_v20 = vadd.f32 %v8725_v17, %v17280_v35 }
 0x7cd   :  { %v8796_v60 = vrot.slane %v8761_v6, 1  ;;  %v8959_v35 = vmul.f32 %v10367_v58, %v17197_v25  ;;  %v8987_v54 = vrot.slane %v8955_v30, 1 }
 0x7ce   :  { %v8795_v44 = vrot.slane %v8760_v10, 1  ;;  %8894 = vrot.lane.b32.xlu0 %v8856_v42, %s10633_s0  ;;  %v8740_v4 = vadd.f32 %v8724_v47, %v17282_v18  ;;  %v8961_v42 = vmul.f32 %v10374_v34, %v17197_v25 }
 0x7cf   :  { %v17418_v16 = vadd.f32 %v8796_v60, %v8741_v20  ;;  %v8993_v26 = vrot.slane %v8959_v35, 1  ;;  %v8960_v20 = vmul.f32 %v17197_v25, %v8019_v24 }
 0x7d0   :  { %9016 = vrot.lane.b32.xlu1 %v8990_v7, %s10633_s0  ;;  %v8797_v32 = vsel %vm324_vm3, %v8795_v44, %v8796_v60  ;;  %v8986_v7 = vrot.slane %v8954_v0, 1  ;;  %v8996_v24 = vrot.slane %v8961_v42, 1 }
 0x7d1   :  { %v17422_v52 = vadd.f32 %v8797_v32, %v8740_v4  ;;  %v8408_v4 = vmul.f32 %v17205_v31, %v17156_v37 }
 0x7d2   :  { %9014 = vrot.lane.b32.xlu0 %v8991_v40, %s10633_s0  ;;  %v8409_v40 = vmul.f32 %v17147_v36, %v17205_v31  ;;  %v8373_v31 = vmul.f32 %v17147_v36, %v17213_v21 }
 0x7ea   :  { %v17427_v62 = vpop.f32.mrf.mxu0 }
 0x7eb   :  { %v8727_v18 = vmul.f32 %v17427_v62, %v17343_v51  ;;  %v8859_v63 = vmul.f32 %v17427_v62, %v17195_v23  ;;  %v8763_v50 = vmul.f32 %v17427_v62, %v17346_v41  ;;  %v8963_v36 = vmul.f32 %v17427_v62, %v17197_v25 }
 0x7ec   :  { %v8100_v2 = vpop.f32.mrf.mxu0 }
 0x7ed   :  { %v8726_v46 = vmul.f32 %v17343_v51, %v8100_v2  ;;  %v8762_v57 = vmul.f32 %v17346_v41, %v8100_v2  ;;  %v8858_v58 = vmul.f32 %v17195_v23, %v8100_v2  ;;  %8900 = vrot.lane.b32.xlu1 %v8859_v63, %s10633_s0  ;;  %v8743_v14 = vadd.f32 %v8727_v18, %v17294_v15 }
 0x7ee   :  { %v8799_v3 = vrot.slane %v8763_v50, 1  ;;  %v8994_v15 = vsel %vm324_vm3, %v8992_v55, %v8993_v26  ;;  %v8988_v18 = vsel %vm324_vm3, %v8986_v7, %v8987_v54  ;;  %v8447_v50 = vrot.slane %v8408_v4, 1 }
 0x7ef   :  { %v8798_v45 = vrot.slane %v8762_v57, 1  ;;  %8898 = vrot.lane.b32.xlu0 %v8858_v58, %s10633_s0  ;;  %v8742_v13 = vadd.f32 %v8726_v46, %v17296_v5  ;;  %v8448_v46 = vrot.slane %v8409_v40, 1  ;;  %v8999_v42 = vrot.slane %v8963_v36, 1 }
 0x7f0   :  { %v17444_v38 = vadd.f32 %v8799_v3, %v8743_v14 }
 0x7f1   :  { %9020 = vrot.lane.b32.xlu1 %v8993_v26, %s10633_s0  ;;  %v8800_v19 = vsel %vm324_vm3, %v8798_v45, %v8799_v3  ;;  %v17450_v1 = vpop.f32.mrf.mxu1  ;;  %v8449_v58 = vsel %vm324_vm3, %v8447_v50, %v8448_v46  ;;  %v8962_v26 = vmul.f32 %v17197_v25, %v8100_v2  ;;  %v8481_v55 = vadd.f32 %v8448_v46, %v8373_v31 }
 0x7f2   :  { %v17453_v17 = vadd.f32 %v8800_v19, %v8742_v13  ;;  %v8729_v5 = vmul.f32 %v17450_v1, %v17343_v51  ;;  %v8861_v27 = vmul.f32 %v17450_v1, %v17195_v23  ;;  %v8765_v59 = vmul.f32 %v17450_v1, %v17346_v41  ;;  %v8681_v13 = vpop.permute.xlu1 %8680  ;;  %v8679_v19 = vpop.permute.xlu0 %8678 }
 0x7f3   :  { %9018 = vrot.lane.b32.xlu0 %v8994_v15, %s10633_s0  ;;  %v17462_v6 = vpop.f32.mrf.mxu1  ;;  %v8585_v45 = vadd.f32 %v17302_v12, %v8481_v55  ;;  %v8998_v15 = vrot.slane %v8962_v26, 1 }
 0x7f4   :  { %v8728_v39 = vmul.f32 %v17343_v51, %v17462_v6  ;;  %v8764_v47 = vmul.f32 %v17346_v41, %v17462_v6  ;;  %v8860_v10 = vmul.f32 %v17195_v23, %v17462_v6  ;;  %v8745_v60 = vadd.f32 %v8729_v5, %v17307_v11 }
 0x7f5   :  { %8904 = vrot.lane.b32.xlu1 %v8861_v27, %s10633_s0  ;;  %v8802_v44 = vrot.slane %v8765_v59, 1  ;;  %v8995_v11 = vrot.slane %v8960_v20, 1 }
 0x7f6   :  { %v8801_v32 = vrot.slane %v8764_v47, 1  ;;  %v8744_v35 = vadd.f32 %v8728_v39, %v17309_v8  ;;  %v8372_v8 = vmul.f32 %v17213_v21, %v17156_v37  ;;  %v8713_v39 = vadd.f32 %v8681_v13, %v8585_v45 }
 0x7f7   :  { %8902 = vrot.lane.b32.xlu0 %v8860_v10, %s10633_s0  ;;  %v17480_v53 = vadd.f32 %v8802_v44, %v8745_v60  ;;  %v8997_v57 = vsel %vm324_vm3, %v8995_v11, %v8996_v24 }
 0x7f8   :  { %v8803_v34 = vsel %vm324_vm3, %v8801_v32, %v8802_v44  ;;  %v8480_v14 = vadd.f32 %v8449_v58, %v8372_v8  ;;  %v9000_v32 = vsel %vm324_vm3, %v8998_v15, %v8999_v42 }
 0x7f9   :  { %9012 = vrot.lane.b32.xlu1 %v8987_v54, %s10633_s0  ;;  %v17485_v63 = vadd.f32 %v8803_v34, %v8744_v35 }
 0x7fa   :  { %v8584_v0 = vadd.f32 %v17305_v49, %v8480_v14 }
 0x7fb   :  { %9010 = vrot.lane.b32.xlu0 %v8988_v18, %s10633_s0 }
 0x7fc   :  { %v8712_v10 = vadd.f32 %v8679_v19, %v8584_v0 }
 0x7fd   :  { %9024 = vrot.lane.b32.xlu1 %v8996_v24, %s10633_s0  ;;  %v8964_v24 = vmul.f32 %v17197_v25, %v17462_v6 }
 0x7ff   :  { %9022 = vrot.lane.b32.xlu0 %v8997_v57, %s10633_s0  ;;  %v9001_v6 = vrot.slane %v8964_v24, 1 }
 0x801   :  { %v10395_v3 = vpop.f32.mrf.mxu0 }
 0x802   :  { %v8731_v30 = vmul.f32 %v10395_v3, %v17343_v51  ;;  %v8863_v37 = vmul.f32 %v10395_v3, %v17195_v23  ;;  %v10402_v21 = vpop.f32.mrf.mxu1  ;;  %v8767_v27 = vmul.f32 %v10395_v3, %v17346_v41  ;;  %v8967_v58 = vmul.f32 %v10395_v3, %v17197_v25 }
 0x803   :  { %v8733_v2 = vmul.f32 %v10402_v21, %v17343_v51  ;;  %v8262_v5 = vpop.f32.mrf.mxu0  ;;  %v8769_v7 = vmul.f32 %v10402_v21, %v17346_v41  ;;  %v8865_v18 = vmul.f32 %v10402_v21, %v17195_v23 }
 0x804   :  { %v8730_v12 = vmul.f32 %v17343_v51, %v8262_v5  ;;  %v8766_v59 = vmul.f32 %v17346_v41, %v8262_v5  ;;  %v8862_v62 = vmul.f32 %v17195_v23, %v8262_v5  ;;  %v8343_v54 = vpop.f32.mrf.mxu1  ;;  %8908 = vrot.lane.b32.xlu1 %v8863_v37, %s10633_s0  ;;  %v8747_v60 = vadd.f32 %v8731_v30, %v17311_v61 }
 0x805   :  { %v8732_v49 = vmul.f32 %v17343_v51, %v8343_v54  ;;  %v8768_v47 = vmul.f32 %v17346_v41, %v8343_v54  ;;  %v8805_v4 = vrot.slane %v8767_v27, 1  ;;  %v8749_v35 = vadd.f32 %v8733_v2, %v8713_v39 }
 0x806   :  { %v8804_v20 = vrot.slane %v8766_v59, 1  ;;  %8906 = vrot.lane.b32.xlu0 %v8862_v62, %s10633_s0  ;;  %v8746_v40 = vadd.f32 %v8730_v12, %v17313_v28  ;;  %v8808_v34 = vrot.slane %v8769_v7, 1  ;;  %v8965_v41 = vmul.f32 %v17450_v1, %v17197_v25  ;;  %v17553_v12 = vld [vmem:[%s17899_s2 + $0x8] ss:$0 sm:$0xff] }
 0x807   :  { %v8807_v44 = vrot.slane %v8768_v47, 1  ;;  %v8748_v51 = vadd.f32 %v8732_v49, %v8712_v10  ;;  %v17521_v11 = vadd.f32 %v8805_v4, %v8747_v60  ;;  %v8864_v1 = vmul.f32 %v17195_v23, %v8343_v54 }
 0x808   :  { %9028 = vrot.lane.b32.xlu1 %v8999_v42, %s10633_s0  ;;  %v8806_v61 = vsel %vm324_vm3, %v8804_v20, %v8805_v4  ;;  %v17528_v50 = vadd.f32 %v8808_v34, %v8749_v35  ;;  %v8966_v8 = vmul.f32 %v17197_v25, %v8262_v5  ;;  %v9002_v57 = vrot.slane %v8965_v41, 1 }
 0x809   :  { %v17526_v28 = vadd.f32 %v8806_v61, %v8746_v40  ;;  %v8809_v46 = vsel %vm324_vm3, %v8807_v44, %v8808_v34  ;;  %v8968_v55 = vmul.f32 %v17197_v25, %v8343_v54  ;;  %v9005_v45 = vrot.slane %v8967_v58, 1 }
 0x80a   :  { %9026 = vrot.lane.b32.xlu0 %v9000_v32, %s10633_s0  ;;  %v17531_v31 = vadd.f32 %v8809_v46, %v8748_v51  ;;  %v9004_v26 = vrot.slane %v8966_v8, 1  ;;  %v9003_v14 = vsel %vm324_vm3, %v9001_v6, %v9002_v57  ;;  %v8969_v23 = vmul.f32 %v10402_v21, %v17197_v25 }
 0x80b   :  { %v9007_v13 = vrot.slane %v8968_v55, 1 }
 0x80c   :  { %8912 = vrot.lane.b32.xlu1 %v8865_v18, %s10633_s0  ;;  %v9006_v36 = vsel %vm324_vm3, %v9004_v26, %v9005_v45  ;;  %v9008_v3 = vrot.slane %v8969_v23, 1  ;;  %v8889_v37 = vpop.permute.xlu1 %8888 }
 0x80d   :  { %v8933_v27 = vadd.f32 %v8889_v37, %v17360_v48 }
 0x80e   :  { %8910 = vrot.lane.b32.xlu0 %v8864_v1, %s10633_s0  ;;  %v9009_v30 = vsel %vm324_vm3, %v9007_v13, %v9008_v3  ;;  %v8887_v0 = vpop.permute.xlu0 %8886 }
 0x80f   :  { %v8932_v62 = vadd.f32 %v8887_v0, %v17363_v29 }
 0x810   :  { %9032 = vrot.lane.b32.xlu1 %v9002_v57, %s10633_s0 }
 0x812   :  { %9030 = vrot.lane.b32.xlu0 %v9003_v14, %s10633_s0 }
 0x814   :  { %9036 = vrot.lane.b32.xlu1 %v9005_v45, %s10633_s0 }
 0x816   :  { %9034 = vrot.lane.b32.xlu0 %v9006_v36, %s10633_s0 }
 0x818   :  { %9040 = vrot.lane.b32.xlu1 %v9008_v3, %s10633_s0 }
 0x81a   :  { %9038 = vrot.lane.b32.xlu0 %v9009_v30, %s10633_s0 }
 0x831   :  { %v8893_v19 = vpop.permute.xlu1 %8892 }
 0x832   :  { %v8935_v42 = vadd.f32 %v8893_v19, %v17398_v22 }
 0x833   :  { %v8891_v25 = vpop.permute.xlu0 %8890 }
 0x834   :  { %v8934_v20 = vadd.f32 %v8891_v25, %v17402_v56 }
 0x835   :  { %v8885_v21 = vpop.permute.xlu1 %8884 }
 0x836   :  { %v8931_v51 = vadd.f32 %v8885_v21, %v17379_v33 }
 0x837   :  { %v8883_v15 = vpop.permute.xlu0 %8882 }
 0x838   :  { %v8930_v56 = vadd.f32 %v8883_v15, %v17382_v9 }
 0x83e   :  { %v8897_v2 = vpop.permute.xlu1 %8896 }
 0x83f   :  { %v8937_v61 = vadd.f32 %v8897_v2, %v17418_v16 }
 0x840   :  { %v8895_v5 = vpop.permute.xlu0 %8894 }
 0x841   :  { %v8936_v6 = vadd.f32 %v8895_v5, %v17422_v52 }
 0x842   :  { %v9017_v59 = vpop.permute.xlu1 %9016 }
 0x843   :  { %v9061_v54 = vadd.f32 %v9017_v59, %v8933_v27 }
 0x844   :  { %v9015_v7 = vpop.permute.xlu0 %9014 }
 0x845   :  { %v17557_v39 = vadd.f32 %v17553_v12, %v9061_v54  ;;  %v9060_v49 = vadd.f32 %v9015_v7, %v8932_v62 }
 0x847   :  { %v17560_v47 = vadd.f32 %v17553_v12, %v9060_v49  ;;  %9116 = vrot.lane.b32.xlu1 %v17557_v39, %s10633_s0 }
 0x849   :  { %9114 = vrot.lane.b32.xlu0 %v17560_v47, %s10633_s0 }
 0x85f   :  { %v8901_v48 = vpop.permute.xlu1 %8900 }
 0x860   :  { %v8939_v55 = vadd.f32 %v8901_v48, %v17444_v38 }
 0x861   :  { %v8899_v10 = vpop.permute.xlu0 %8898 }
 0x862   :  { %v8938_v45 = vadd.f32 %v8899_v10, %v17453_v17 }
 0x863   :  { %v9021_v29 = vpop.permute.xlu1 %9020 }
 0x864   :  { %v9063_v60 = vadd.f32 %v9021_v29, %v8935_v42  ;;  %v9358_v42 = vld [vmem:[%s17899_s2 + $0x78] sm:$0x3f]  ;;  %v9242_v29 = vld [vmem:[%s17899_s2 + $0x48] sm:$0xff] }
 0x865   :  { %v9019_v44 = vpop.permute.xlu0 %9018  ;;  %10417 = vmatpush3.msk.msra.mxu1 %vm601_vm4, %v9358_v42 }
 0x866   :  { %v17569_v4 = vadd.f32 %v17553_v12, %v9063_v60  ;;  %v9062_v40 = vadd.f32 %v9019_v44, %v8934_v20  ;;  %v9357_v20 = vld [vmem:[%s17899_s2 + $0x70] sm:$0xff]  ;;  %10418 = vmatprep.subr.mxu1 %v19224_v43 }
 0x867   :  { %v8905_v32 = vpop.permute.xlu1 %8904  ;;  %10419 = vmatpush3.msra.mxu1 %v9357_v20 }
 0x868   :  { %v17572_v35 = vadd.f32 %v17553_v12, %v9062_v40  ;;  %9120 = vrot.lane.b32.xlu1 %v17569_v4, %s10633_s0  ;;  %v8941_v19 = vadd.f32 %v8905_v32, %v17480_v53  ;;  %v9241_v40 = vld [vmem:[%s17899_s2 + $0x40] sm:$0xff]  ;;  %10420 = vmatprep.subr.mxu1 %v19224_v43 }
 0x869   :  { %v8903_v34 = vpop.permute.xlu0 %8902 }
 0x86a   :  { %9118 = vrot.lane.b32.xlu0 %v17572_v35, %s10633_s0  ;;  %v8940_v17 = vadd.f32 %v8903_v34, %v17485_v63  ;;  %v9356_v34 = vld [vmem:[%s17899_s2 + $0x68] sm:$0xff] }
 0x86b   :  { %v9013_v22 = vpop.permute.xlu1 %9012  ;;  %10421 = vmatpush3.msra.mxu1 %v9356_v34 }
 0x86c   :  { %v9059_v41 = vadd.f32 %v9013_v22, %v8931_v51  ;;  %v9240_v51 = vld [vmem:[%s17899_s2 + $0x38] sm:$0xff]  ;;  %v9239_v22 = vld [vmem:[%s17899_s2 + $0x30] sm:$0xff]  ;;  %10422 = vmatprep.subr.mxu1 %v19224_v43 }
 0x86d   :  { %v9011_v24 = vpop.permute.xlu0 %9010 }
 0x86e   :  { %v17582_v18 = vadd.f32 %v17553_v12, %v9059_v41  ;;  %v9058_v46 = vadd.f32 %v9011_v24, %v8930_v56  ;;  %v9354_v56 = vld [vmem:[%s17899_s2 + $0x58] sm:$0xff] }
 0x86f   :  { %v9025_v1 = vpop.permute.xlu1 %9024 }
 0x870   :  { %v17586_v8 = vadd.f32 %v17553_v12, %v9058_v46  ;;  %v9065_v33 = vadd.f32 %v9025_v1, %v8937_v61  ;;  %9112 = vrot.lane.b32.xlu1 %v17582_v18, %s10633_s0 }
 0x871   :  { %v9023_v57 = vpop.permute.xlu0 %9022 }
 0x872   :  { %v17591_v9 = vadd.f32 %v17553_v12, %v9065_v33  ;;  %v9064_v58 = vadd.f32 %v9023_v57, %v8936_v6  ;;  %9110 = vrot.lane.b32.xlu0 %v17586_v8, %s10633_s0 }
 0x874   :  { %v17596_v16 = vadd.f32 %v17553_v12, %v9064_v58  ;;  %9124 = vrot.lane.b32.xlu1 %v17591_v9, %s10633_s0 }
 0x876   :  { %9122 = vrot.lane.b32.xlu0 %v17596_v16, %s10633_s0  ;;  %v8909_v52 = vpop.permute.xlu1 %8908 }
 0x877   :  { %v8943_v15 = vadd.f32 %v8909_v52, %v17521_v11 }
 0x878   :  { %v8907_v26 = vpop.permute.xlu0 %8906 }
 0x879   :  { %v8942_v59 = vadd.f32 %v8907_v26, %v17526_v28 }
 0x87a   :  { %v9029_v14 = vpop.permute.xlu1 %9028 }
 0x87b   :  { %v9067_v23 = vadd.f32 %v9029_v14, %v8939_v55 }
 0x87c   :  { %v9027_v13 = vpop.permute.xlu0 %9026 }
 0x87d   :  { %v17605_v36 = vadd.f32 %v17553_v12, %v9067_v23  ;;  %v9066_v3 = vadd.f32 %v9027_v13, %v8938_v45 }
 0x87e   :  { %v8913_v30 = vpop.permute.xlu1 %8912 }
 0x87f   :  { %v17608_v37 = vadd.f32 %v17553_v12, %v9066_v3  ;;  %9128 = vrot.lane.b32.xlu1 %v17605_v36, %s10633_s0  ;;  %v8945_v63 = vadd.f32 %v8913_v30, %v17528_v50  ;;  %v9243_v50 = vld [vmem:[%s17899_s2 + $0x50] sm:$0x3f] }
 0x880   :  { %v8911_v0 = vpop.permute.xlu0 %8910  ;;  %10404 = vmatpush3.msk.msra.mxu0 %vm601_vm4, %v9243_v50 }
 0x881   :  { %9126 = vrot.lane.b32.xlu0 %v17608_v37, %s10633_s0  ;;  %v8944_v28 = vadd.f32 %v8911_v0, %v17531_v31  ;;  %10405 = vmatprep.subr.mxu0 %v19224_v43 }
 0x882   :  { %v9033_v38 = vpop.permute.xlu1 %9032  ;;  %10406 = vmatpush3.msra.mxu0 %v9242_v29 }
 0x883   :  { %v9069_v25 = vadd.f32 %v9033_v38, %v8941_v19  ;;  %10407 = vmatprep.subr.mxu0 %v19224_v43 }
 0x884   :  { %v9031_v21 = vpop.permute.xlu0 %9030  ;;  %10408 = vmatpush3.msra.mxu0 %v9241_v40 }
 0x885   :  { %v17618_v2 = vadd.f32 %v17553_v12, %v9069_v25  ;;  %v9068_v5 = vadd.f32 %v9031_v21, %v8940_v17  ;;  %10409 = vmatprep.subr.mxu0 %v19224_v43 }
 0x886   :  { %v9037_v27 = vpop.permute.xlu1 %9036  ;;  %10410 = vmatpush3.msra.mxu0 %v9240_v51 }
 0x887   :  { %v17622_v62 = vadd.f32 %v17553_v12, %v9068_v5  ;;  %v9071_v53 = vadd.f32 %v9037_v27, %v8943_v15  ;;  %9132 = vrot.lane.b32.xlu1 %v17618_v2, %s10633_s0  ;;  %10411 = vmatprep.subr.mxu0 %v19224_v43 }
 0x888   :  { %v9035_v54 = vpop.permute.xlu0 %9034  ;;  %10412 = vmatpush3.msra.mxu0 %v9239_v22 }
 0x889   :  { %v17628_v7 = vadd.f32 %v17553_v12, %v9071_v53  ;;  %v9070_v11 = vadd.f32 %v9035_v54, %v8942_v59  ;;  %9130 = vrot.lane.b32.xlu0 %v17622_v62, %s10633_s0  ;;  %10429 = vmatprep.subr.mxu0 %v19224_v43 }
 0x88a   :  { %v9041_v49 = vpop.permute.xlu1 %9040 }
 0x88b   :  { %v17634_v48 = vadd.f32 %v17553_v12, %v9070_v11  ;;  %v9073_v10 = vadd.f32 %v9041_v49, %v8945_v63  ;;  %9136 = vrot.lane.b32.xlu1 %v17628_v7, %s10633_s0 }
 0x88c   :  { %v9039_v31 = vpop.permute.xlu0 %9038 }
 0x88d   :  { %v17653_v60 = vadd.f32 %v17553_v12, %v9073_v10  ;;  %v9072_v44 = vadd.f32 %v9039_v31, %v8944_v28  ;;  %9134 = vrot.lane.b32.xlu0 %v17634_v48, %s10633_s0 }
 0x88f   :  { %v17663_v32 = vadd.f32 %v17553_v12, %v9072_v44  ;;  %9140 = vrot.lane.b32.xlu1 %v17653_v60, %s10633_s0  ;;  %v9355_v12 = vld [vmem:[%s17899_s2 + $0x60] sm:$0xff] }
 0x890   :  { %10423 = vmatpush3.msra.mxu1 %v9355_v12 }
 0x891   :  { %9138 = vrot.lane.b32.xlu0 %v17663_v32, %s10633_s0  ;;  %10424 = vmatprep.subr.mxu1 %v19224_v43 }
 0x892   :  { %10425 = vmatpush3.msra.mxu1 %v9354_v56 }
 0x893   :  { %10442 = vmatprep.subr.mxu1 %v19224_v43 }
 0x8b9   :  { %v9117_v24 = vpop.permute.xlu1 %9116 }
 0x8ba   :  { %v9161_v45 = vmax.f32 %v17557_v39, %v9117_v24 }
 0x8bb   :  { %v9115_v41 = vpop.permute.xlu0 %9114 }
 0x8bc   :  { %v9160_v52 = vmax.f32 %v17560_v47, %v9115_v41  ;;  %v9194_v17 = vrot.slane %v9161_v45, 1 }
 0x8be   :  { %v9193_v19 = vrot.slane %v9160_v52, 1 }
 0x8da   :  { %v9121_v46 = vpop.permute.xlu1 %9120 }
 0x8db   :  { %v9163_v30 = vmax.f32 %v17569_v4, %v9121_v46 }
 0x8dc   :  { %v9119_v61 = vpop.permute.xlu0 %9118 }
 0x8dd   :  { %v9162_v55 = vmax.f32 %v17572_v35, %v9119_v61  ;;  %v9197_v39 = vrot.slane %v9163_v30, 1 }
 0x8df   :  { %v9196_v47 = vrot.slane %v9162_v55, 1 }
 0x8e2   :  { %v9113_v6 = vpop.permute.xlu1 %9112 }
 0x8e3   :  { %v9159_v26 = vmax.f32 %v17582_v18, %v9113_v6 }
 0x8e4   :  { %v9111_v1 = vpop.permute.xlu0 %9110 }
 0x8e5   :  { %v9158_v57 = vmax.f32 %v17586_v8, %v9111_v1  ;;  %v9191_v8 = vrot.slane %v9159_v26, 1 }
 0x8e6   :  { %v9125_v58 = vpop.permute.xlu1 %9124 }
 0x8e7   :  { %v9190_v23 = vrot.slane %v9158_v57, 1  ;;  %v9165_v38 = vmax.f32 %v17591_v9, %v9125_v58 }
 0x8e8   :  { %v9123_v33 = vpop.permute.xlu0 %9122 }
 0x8e9   :  { %v9164_v13 = vmax.f32 %v17596_v16, %v9123_v33  ;;  %v9192_v35 = vsel %vm324_vm3, %v9190_v23, %v9191_v8  ;;  %v9195_v16 = vsel %vm324_vm3, %v9193_v19, %v9194_v17  ;;  %v9200_v5 = vrot.slane %v9165_v38, 1 }
 0x8ea   :  { %v9222_v27 = vmax.f32 %v9158_v57, %v9192_v35  ;;  %v9223_v54 = vmax.f32 %v9160_v52, %v9195_v16 }
 0x8eb   :  { %v9199_v25 = vrot.slane %v9164_v13, 1 }
 0x8ec   :  { %v17714_v42 = vmax.f32 %v9222_v27, 0.0  ;;  %v17718_v40 = vmax.f32 %v9223_v54, 0.0  ;;  %v9548_v54 = vld [vmem:[%s17899_s2 + $0xc8] sm:$0x3f] }
 0x8ed   :  { %v9201_v53 = vsel %vm324_vm3, %v9199_v25, %v9200_v5 }
 0x8ee   :  { %v9359_v56 = vrot.slane %v17714_v42, 2  ;;  %v9252_v1 = vrot.slane %v17718_v40, 7  ;;  %v9360_v6 = vrot.slane %v17718_v40, 1  ;;  %v9550_v27 = vrot.slane %v17718_v40, 5 }
 0x8f0   :  { %v9254_v26 = vsel %vm9253_vm8, %v9252_v1, %v17714_v42  ;;  %v9449_v1 = vld [vmem:[%s17899_s2 + $0x80] sm:$0xff] }
 0x8f1   :  { %v9129_v3 = vpop.permute.xlu1 %9128 }
 0x8f2   :  { %v9167_v18 = vmax.f32 %v17605_v36, %v9129_v3 }
 0x8f3   :  { %v9127_v14 = vpop.permute.xlu0 %9126 }
 0x8f4   :  { %v9166_v0 = vmax.f32 %v17608_v37, %v9127_v14  ;;  %v9198_v37 = vsel %vm324_vm3, %v9196_v47, %v9197_v39  ;;  %v9203_v59 = vrot.slane %v9167_v18, 1  ;;  %v9549_v39 = vrot.slane %v17714_v42, 6 }
 0x8f5   :  { %v9224_v49 = vmax.f32 %v9162_v55, %v9198_v37  ;;  %v9361_v55 = vsel %vm9253_vm8, %v9360_v6, %v9359_v56  ;;  %v9545_v56 = vld [vmem:[%s17899_s2 + $0xb0] sm:$0xff] }
 0x8f6   :  { %v9202_v21 = vrot.slane %v9166_v0, 1 }
 0x8f7   :  { %v17720_v51 = vmax.f32 %v9224_v49, 0.0  ;;  %v9455_v49 = vrot.slane %v17718_v40, 3  ;;  %v9451_v40 = vld [vmem:[%s17899_s2 + $0x90] sm:$0xff] }
 0x8f8   :  { %v9204_v63 = vsel %vm324_vm3, %v9202_v21, %v9203_v59  ;;  %v9454_v59 = vrot.slane %v17714_v42, 4  ;;  %v9547_v42 = vld [vmem:[%s17899_s2 + $0xc0] sm:$0xff] }
 0x8f9   :  { %v9133_v15 = vpop.permute.xlu1 %9132  ;;  %v9226_v31 = vmax.f32 %v9166_v0, %v9204_v63  ;;  %v9362_v18 = vsel %vm9256_vm9, %v17720_v51, %v9361_v55 }
 0x8fa   :  { %v9169_v4 = vmax.f32 %v17618_v2, %v9133_v15  ;;  %v9225_v2 = vmax.f32 %v9164_v13, %v9201_v53 }
 0x8fb   :  { %v9131_v9 = vpop.permute.xlu0 %9130 }
 0x8fc   :  { %v9168_v36 = vmax.f32 %v17622_v62, %v9131_v9  ;;  %v9206_v28 = vrot.slane %v9169_v4, 1  ;;  %v17724_v41 = vmax.f32 %v9225_v2, 0.0  ;;  %v9552_v2 = vrot.slane %v17720_v51, 4 }
 0x8fd   :  { %v9137_v11 = vpop.permute.xlu1 %9136 }
 0x8fe   :  { %v9205_v10 = vrot.slane %v9168_v36, 1  ;;  %v9171_v50 = vmax.f32 %v17628_v7, %v9137_v11  ;;  %v9258_v14 = vrot.slane %v17724_v41, 5 }
 0x8ff   :  { %v9135_v29 = vpop.permute.xlu0 %9134 }
 0x900   :  { %v9207_v20 = vsel %vm324_vm3, %v9205_v10, %v9206_v28  ;;  %v9170_v44 = vmax.f32 %v17634_v48, %v9135_v29  ;;  %v9209_v12 = vrot.slane %v9171_v50, 1  ;;  %v17726_v48 = vmax.f32 %v9226_v31, 0.0  ;;  %v9452_v50 = vld [vmem:[%s17899_s2 + $0x98] sm:$0xff] }
 0x901   :  { %v9227_v62 = vmax.f32 %v9168_v36, %v9207_v20  ;;  %v9141_v34 = vpop.permute.xlu1 %9140  ;;  %v9453_v36 = vld [vmem:[%s17899_s2 + $0xa0] sm:$0x3f]  ;;  %v9551_v28 = vsel %vm9253_vm8, %v9550_v27, %v9549_v39  ;;  %v9554_v10 = vrot.slane %v17724_v41, 3  ;;  %v9456_v31 = vsel %vm9253_vm8, %v9455_v49, %v9454_v59 }
 0x902   :  { %v9208_v22 = vrot.slane %v9170_v44, 1  ;;  %v9173_v7 = vmax.f32 %v17653_v60, %v9141_v34  ;;  %v9255_v60 = vrot.slane %v17720_v51, 6  ;;  %v9261_v45 = vrot.slane %v17726_v48, 4 }
 0x903   :  { %v9139_v24 = vpop.permute.xlu0 %9138  ;;  %v17732_v33 = vmax.f32 %v9227_v62, 0.0  ;;  %v9365_v23 = vrot.slane %v17726_v48, 6  ;;  %v9556_v29 = vrot.slane %v17726_v48, 2  ;;  %v9459_v20 = vrot.slane %v17724_v41, 1  ;;  %v9546_v62 = vld [vmem:[%s17899_s2 + $0xb8] sm:$0xff] }
 0x904   :  { %v9210_v61 = vsel %vm324_vm3, %v9208_v22, %v9209_v12  ;;  %v9172_v46 = vmax.f32 %v17663_v32, %v9139_v24  ;;  %v9212_v58 = vrot.slane %v9173_v7, 1  ;;  %v9363_v32 = vrot.slane %v17724_v41, 7  ;;  %v9450_v7 = vld [vmem:[%s17899_s2 + $0x88] sm:$0xff] }
 0x905   :  { %v9228_v57 = vmax.f32 %v9170_v44, %v9210_v61  ;;  %v9264_v30 = vrot.slane %v17732_v33, 3  ;;  %v9367_v0 = vrot.slane %v17732_v33, 5  ;;  %v9257_v8 = vsel %vm9256_vm9, %v9255_v60, %v9254_v26 }
 0x906   :  { %v9211_v52 = vrot.slane %v9172_v46, 1  ;;  %v9260_v35 = vsel %vm9259_vm10, %v9258_v14, %v9257_v8  ;;  %v9364_v25 = vsel %vm9259_vm10, %v9363_v32, %v9362_v18  ;;  %v9558_v44 = vrot.slane %v17732_v33, 1  ;;  %v9643_v32 = vld [vmem:[%s17899_s2 + $0xf0] sm:$0xff] }
 0x907   :  { %v17742_v13 = vmax.f32 %v9228_v57, 0.0  ;;  %v9263_v21 = vsel %vm9262_vm11, %v9261_v45, %v9260_v35  ;;  %v9366_v15 = vsel %vm9262_vm11, %v9365_v23, %v9364_v25  ;;  %v9457_v34 = vrot.slane %v17720_v51, 2  ;;  %v9642_v45 = vld [vmem:[%s17899_s2 + $0xe8] sm:$0xff]  ;;  %v9641_v23 = vld [vmem:[%s17899_s2 + $0xe0] sm:$0xff]  ;;  %v10004_v8 = vld [vmem:[%s17899_s2 + $0xd0] ss:$0 sm:$0xff] }
 0x908   :  { %v9213_v3 = vsel %vm324_vm3, %v9211_v52, %v9212_v58  ;;  %v9266_v16 = vsel %vm9265_vm12, %v9264_v30, %v9263_v21  ;;  %v9368_v4 = vsel %vm9265_vm12, %v9367_v0, %v9366_v15  ;;  %v9553_v12 = vsel %vm9256_vm9, %v9552_v2, %v9551_v28  ;;  %v9544_v58 = vld [vmem:[%s17899_s2 + $0xa8] sm:$0xff]  ;;  %v10015_v28 = vld [vmem:[%s17899_s2 + $0x120] ss:$0 sm:$0xff] }
 0x909   :  { %v9229_v19 = vmax.f32 %v9172_v46, %v9213_v3  ;;  %v9267_v38 = vrot.slane %v17742_v13, 2  ;;  %v9369_v47 = vrot.slane %v17742_v13, 4  ;;  %v9462_v22 = vrot.slane %v17732_v33, 7 }
 0x90a   :  { %v9555_v51 = vsel %vm9259_vm10, %v9554_v10, %v9553_v12  ;;  %v9458_v41 = vsel %vm9256_vm9, %v9457_v34, %v9456_v31  ;;  %v9464_v24 = vrot.slane %v17742_v13, 6 }
 0x90b   :  { %v17752_v17 = vmax.f32 %v9229_v19, 0.0  ;;  %v9269_v9 = vsel %vm9268_vm13, %v9267_v38, %v9266_v16  ;;  %v9370_v53 = vsel %vm9268_vm13, %v9369_v47, %v9368_v4  ;;  %v9557_v61 = vsel %vm9262_vm11, %v9556_v29, %v9555_v51  ;;  %v9725_v16 = vld [vmem:[%s17899_s2 + $0x108] sm:$0xff]  ;;  %v10011_v4 = vld [vmem:[%s17899_s2 + $0xf8] ss:$0 sm:$0xff] }
 0x90c   :  { %v9460_v46 = vsel %vm9259_vm10, %v9459_v20, %v9458_v41  ;;  %v9559_v33 = vsel %vm9265_vm12, %v9558_v44, %v9557_v61 }
 0x90d   :  { %v9270_v5 = vrot.slane %v17752_v17, 1  ;;  %v9371_v37 = vrot.slane %v17752_v17, 3  ;;  %v9466_v6 = vrot.slane %v17752_v17, 5  ;;  %v9561_v60 = vrot.slane %v17752_v17, 7 }
 0x90e   :  { %v9461_v57 = vsel %vm9262_vm11, %v17726_v48, %v9460_v46  ;;  %v9560_v48 = vsel %vm9268_vm13, %v17742_v13, %v9559_v33  ;;  %v9640_v13 = vld [vmem:[%s17899_s2 + $0xd8] sm:$0xff] }
 0x90f   :  { %v9272_v63 = vsel %vm9271_vm14, %v9270_v5, %v9269_v9  ;;  %v9372_v11 = vsel %vm9271_vm14, %v9371_v37, %v9370_v53  ;;  %v9463_v52 = vsel %vm9265_vm12, %v9462_v22, %v9461_v57  ;;  %v9562_v14 = vsel %vm9271_vm14, %v9561_v60, %v9560_v48  ;;  %v9724_v5 = vld [vmem:[%s17899_s2 + $0x100] sm:$0xff]  ;;  %v9805_v53 = vld [vmem:[%s17899_s2 + $0x118] sm:$0xff] }
 0x910   :  { %10414 = vmatmul.mubr.msk.f32.vlgmr.msra.gmra.mxu0 %vm9273_vm15, %v9272_v63  ;;  %10427 = vmatmul.mubr.msk.f32.vlgmr.msra.gmra.mxu1 %vm9273_vm15, %v9372_v11  ;;  %v9465_v26 = vsel %vm9268_vm13, %v9464_v24, %v9463_v52 }
 0x911   :  { %10430 = vmatpush3.msk.msra.mxu0 %vm601_vm4, %v9453_v36  ;;  %10443 = vmatpush3.msk.msra.mxu1 %vm601_vm4, %v9548_v54  ;;  %v9467_v55 = vsel %vm9271_vm14, %v9466_v6, %v9465_v26  ;;  %v10013_v36 = vld [vmem:[%s17899_s2 + $0x110] ss:$0 sm:$0xff] }
 0x912   :  { %10431 = vmatprep.subr.mxu0 %v19224_v43  ;;  %10444 = vmatprep.subr.mxu1 %v19224_v43 }
 0x913   :  { %10432 = vmatpush3.msra.mxu0 %v9452_v50  ;;  %10445 = vmatpush3.msra.mxu1 %v9547_v42 }
 0x914   :  { %10433 = vmatprep.subr.mxu0 %v19224_v43  ;;  %10446 = vmatprep.subr.mxu1 %v19224_v43 }
 0x915   :  { %10434 = vmatpush3.msra.mxu0 %v9451_v40  ;;  %10447 = vmatpush3.msra.mxu1 %v9546_v62 }
 0x916   :  { %10435 = vmatprep.subr.mxu0 %v19224_v43  ;;  %10448 = vmatprep.subr.mxu1 %v19224_v43 }
 0x917   :  { %10436 = vmatpush3.msra.mxu0 %v9450_v7  ;;  %10449 = vmatpush3.msra.mxu1 %v9545_v56 }
 0x918   :  { %10437 = vmatprep.subr.mxu0 %v19224_v43  ;;  %10450 = vmatprep.subr.mxu1 %v19224_v43 }
 0x919   :  { %10438 = vmatpush3.msra.mxu0 %v9449_v1  ;;  %10439 = vmatprep.mubr.msk.f32.mxu0 %vm10637_vm7, %v19224_v43 }
 0x91a   :  { %10451 = vmatpush3.msra.mxu1 %v9544_v58  ;;  %10452 = vmatprep.mubr.msk.f32.mxu1 %vm10637_vm7, %v19224_v43 }
 0x91b   :  { %10440 = vmatmul.mubr.msk.f32.vlgmr.msra.gmra.mxu0 %vm9273_vm15, %v9467_v55  ;;  %10453 = vmatmul.mubr.msk.f32.vlgmr.msra.gmra.mxu1 %vm9273_vm15, %v9562_v14 }
 0x91c   :  { %10455 = vmatprep.subr.mxu0 %v19224_v43  ;;  %10463 = vmatprep.mubr.msk.f32.mxu0 %vm10637_vm7, %v19224_v43 }
 0x91d   :  { %10466 = vmatprep.subr.mxu1 %v19224_v43  ;;  %10470 = vmatprep.mubr.msk.f32.mxu1 %vm10637_vm7, %v19224_v43 }
 0x91e   :  { %10456 = vmatpush3.msra.mxu0 %v9643_v32  ;;  %10467 = vmatpush3.msra.mxu1 %v9725_v16 }
 0x91f   :  { %10457 = vmatprep.subr.mxu0 %v19224_v43  ;;  %10468 = vmatprep.subr.mxu1 %v19224_v43 }
 0x920   :  { %10458 = vmatpush3.msra.mxu0 %v9642_v45  ;;  %10469 = vmatpush3.msra.mxu1 %v9724_v5 }
 0x921   :  { %10459 = vmatprep.subr.mxu0 %v19224_v43  ;;  %10473 = vmatprep.subr.mxu1 %v19224_v43 }
 0x922   :  { %10460 = vmatpush3.msra.mxu0 %v9641_v23 }
 0x923   :  { %10461 = vmatprep.subr.mxu0 %v19224_v43 }
 0x924   :  { %10462 = vmatpush3.msra.mxu0 %v9640_v13 }
 0x9d0   :  { %v9345_v3 = vpop.f32.mrf.mxu0  ;;  %v9444_v30 = vpop.f32.mrf.mxu1 }
 0x9d1   :  { %v9353_v38 = vadd.f32 %v10004_v8, %v9345_v3 }
 0x9d2   :  { %v10415_v0 = vpop.f32.mrf.mxu0  ;;  %v10428_v19 = vpop.f32.mrf.mxu1 }
 0x9d3   :  { %v9448_v47 = vadd.f32 %v9444_v30, %v9353_v38 }
 0x9db   :  { %v9539_v18 = vpop.f32.mrf.mxu0  ;;  %v9634_v17 = vpop.f32.mrf.mxu1 }
 0x9dc   :  { %v9543_v35 = vadd.f32 %v9539_v18, %v9448_v47 }
 0x9dd   :  { %v10441_v25 = vpop.f32.mrf.mxu0  ;;  %v10454_v39 = vpop.f32.mrf.mxu1 }
 0x9de   :  { %v9638_v21 = vadd.f32 %v9634_v17, %v9543_v35 }
 0x9e0   :  { %v9639_v15 = vmax.f32 %v9638_v21, 0.0 }
 0x9e2   :  { %10464 = vmatmul.mubr.msk.f32.vlgmr.msra.gmra.mxu0 %vm9649_vm0, %v9639_v15 }
 0xaa2   :  { %v9719_v37 = vpop.f32.mrf.mxu0 }
 0xaa3   :  { %v9720_v27 = vadd.f32 %v10011_v4, %v9719_v37 }
 0xaa4   :  { %v10465_v59 = vpop.f32.mrf.mxu0 }
 0xaa5   :  { %v9723_v9 = vmax.f32 %v9720_v27, 0.0 }
 0xaa7   :  { %10471 = vmatmul.mubr.msk.f32.vlgmr.msra.gmra.mxu1 %vm5591_vm6, %v9723_v9 }
 0xaa8   :  { %10475 = vmatprep.mubr.msk.f32.mxu1 %vm10637_vm7, %v19224_v43  ;;  %10474 = vmatpush3.msra.mxu1 %v9805_v53 }
 0xb67   :  { %v9800_v54 = vpop.f32.mrf.mxu1 }
 0xb68   :  { %v9801_v63 = vadd.f32 %v10013_v36, %v9800_v54 }
 0xb69   :  { %v10472_v11 = vpop.f32.mrf.mxu1 }
 0xb6a   :  { %v9804_v49 = vmax.f32 %v9801_v63, 0.0 }
 0xb6c   :  { %10476 = vmatmul.mubr.msk.f32.vlgmr.msra.gmra.mxu1 %vm9811_vm1, %v9804_v49 }
 0xc2c   :  { %v9881_v43 = vpop.f32.mrf.mxu1 }
 0xc2d   :  { %v9882_v10 = vadd.f32 %v10015_v28, %v9881_v43 }
 0xc2e   :  { %v10477_v50 = vpop.f32.mrf.mxu1 }
 0xc2f   :  { %v9886_v42 = vsel %vm9885_vm2, %v9882_v10, -inf }
 0xc30   :  { %9887 = vmax.xlane.f32.xlu0 %v9886_v42 }
 0xcb9   :  { %v9888_v2 = vpop.xlane.xlu0 %9887 }
 0xcba   :  { %v9889_v29 = vsub.f32 %v9882_v10, %v9888_v2 }
 0xcbc   :  { %v9890_v31 = vmul.f32 1.442695, %v9889_v29 }
 0xcbe   :  { %10486 = vpow2.f32 %v9890_v31 }
 0xccb   :  { %v10487_v20 = vpop.eup %10486 }
 0xccc   :  { %v9892_v44 = vsel %vm9885_vm2, %v10487_v20, 0.0 }
 0xccd   :  { %9893 = vadd.xlane.f32.xlu1 %v9892_v44 }
 0xd56   :  { %v9894_v40 = vpop.xlane.xlu1 %9893 }
 0xd57   :  { %10488 = vlog2.f32 %v9894_v40 }
 0xd64   :  { %v10489_v62 = vpop.eup %10488 }
 0xd65   :  { %v9896_v34 = vmul.f32 0.6931472, %v10489_v62 }
 0xd67   :  { %v9897_v12 = vsub.f32 %v9889_v29, %v9896_v34 }
 0xd69   :  { %9898 = vst.msk [vmem:[%s17900_s3] sm:$0xff] %vm9885_vm2, %v9897_v12 }
 0xd6a   :  { %9903 = vsyncpa [#allocation4], 1 }

</bundles_post_ra>
